<compile_context>
chip_gen: v5e
topology: v5e:2x2
jax: 0.10.0
libtpu: 0.0.40
codegen_flags: <defaults>
</compile_context>

<pallas_src>
import functools

import jax
import jax.numpy as jnp
from jax import lax
from jax.experimental import pallas as pl
from jax.experimental.pallas import tpu as pltpu


_NEG = -3.0e38  # stand-in for -inf when padding max pools (inputs are finite)


# ----------------------------------------------------------------------------
# In-kernel helpers (traced; all operate on flattened (H*W, C) slabs)
# ----------------------------------------------------------------------------

def _shift_rows(x, k, fill):
    """y[m] = x[m + k] along the row (sublane) axis, out-of-range rows = fill."""
    M, C = x.shape
    if k == 0:
        return x
    pad = jnp.full((abs(k), C), fill, jnp.float32)
    if k > 0:
        return jnp.concatenate([x[k:, :], pad], axis=0)
    return jnp.concatenate([pad, x[:M + k, :]], axis=0)


def _col_mask(t, dj, jcol, S, fill):
    """Mask flattened positions whose column j + dj falls outside [0, S)."""
    if dj == -1:
        return jnp.where(jcol == 0, fill, t)
    if dj == 1:
        return jnp.where(jcol == S - 1, fill, t)
    return t


def _conv3x3_relu(x2d, w_ref, b_ref, S, jcol):
    """3x3, stride 1, zero-pad 1 conv + bias + ReLU on a flattened (S*S, Cin) slab."""
    Cout = w_ref.shape[-1]
    acc = jnp.zeros((S * S, Cout), jnp.float32)
    for di in (-1, 0, 1):
        for dj in (-1, 0, 1):
            t = _shift_rows(x2d, di * S + dj, 0.0)
            t = _col_mask(t, dj, jcol, S, 0.0)
            acc = acc + jnp.dot(t, w_ref[di + 1, dj + 1],
                                preferred_element_type=jnp.float32)
    return jnp.maximum(acc + b_ref[...], 0.0)


def _maxpool3x3_s1(x2d, S, jcol):
    """3x3, stride 1, pad 1 (-inf) max pool on a flattened (S*S, C) slab."""
    out = x2d
    for di in (-1, 0, 1):
        for dj in (-1, 0, 1):
            if di == 0 and dj == 0:
                continue
            t = _shift_rows(x2d, di * S + dj, _NEG)
            t = _col_mask(t, dj, jcol, S, _NEG)
            out = jnp.maximum(out, t)
    return out


def _maxpool3x3_s2(x2d, Wi, Ho):
    """3x3, stride 2, no padding max pool; x2d: (Hi*Wi, C) -> (Ho*Ho, C)."""
    rows = []
    for oh in range(Ho):
        b = 2 * oh * Wi
        r = jnp.maximum(jnp.maximum(x2d[b:b + Wi], x2d[b + Wi:b + 2 * Wi]),
                        x2d[b + 2 * Wi:b + 3 * Wi])                    # (Wi, C)
        cols = []
        for ow in range(Ho):
            cols.append(jnp.maximum(jnp.maximum(r[2 * ow:2 * ow + 1],
                                                r[2 * ow + 1:2 * ow + 2]),
                                    r[2 * ow + 2:2 * ow + 3]))         # (1, C)
        rows.append(cols[0] if Ho == 1 else jnp.concatenate(cols, axis=0))
    return rows[0] if Ho == 1 else jnp.concatenate(rows, axis=0)


# ----------------------------------------------------------------------------
# Fused per-sample kernel: conv1 ... pool3b, everything resident on-chip
# ----------------------------------------------------------------------------

def dexpression_fused_kernel(
        patches_ref,                    # (1, H1*H1, 7*7*Cin) stride-2 im2col patches
        w1_ref, b1_ref,                 # (7*7*Cin, 64), (1, 64)
        lng_ref, lnb_ref,               # (S1*S1, 64) LayerNorm affine (HWC-flat)
        w2a_ref, b2a_ref,               # (64, 96), (1, 96)
        w2b_ref, b2b_ref,               # (3, 3, 96, 208), (1, 208)
        w2c_ref, b2c_ref,               # (64, 64), (1, 64)
        w3a_ref, b3a_ref,               # (272, 96), (1, 96)
        w3b_ref, b3b_ref,               # (3, 3, 96, 208), (1, 208)
        w3c_ref, b3c_ref,               # (272, 64), (1, 64)
        jcol1_ref, jcol2_ref,           # (S1*S1, 1) int32, (S2*S2, 1) int32
        out_ref,                        # (1, S3*S3, 272)
        *, H1, S1, S2, S3, eps):
    # ---- conv1 (7x7, stride 2, pad 3) as a single MXU matmul + bias + ReLU
    c1 = jnp.dot(patches_ref[0], w1_ref[...], preferred_element_type=jnp.float32)
    c1 = jnp.maximum(c1 + b1_ref[...], 0.0)                            # (H1*H1, 64)

    # ---- pool1: 3x3 stride-2
    p1 = _maxpool3x3_s2(c1, H1, S1)                                    # (S1*S1, 64)

    # ---- LayerNorm over the whole (C, H, W) slab of the sample
    n = float(S1 * S1 * 64)
    mean = jnp.sum(p1, keepdims=True) / n
    xc = p1 - mean
    var = jnp.sum(xc * xc, keepdims=True) / n
    lrn = xc * lax.rsqrt(var + eps) * lng_ref[...] + lnb_ref[...]      # (S1*S1, 64)

    jcol1 = jcol1_ref[...]
    jcol2 = jcol2_ref[...]

    # ---- inception block 2
    c2a = jnp.maximum(jnp.dot(lrn, w2a_ref[...],
                              preferred_element_type=jnp.float32) + b2a_ref[...], 0.0)
    c2b = _conv3x3_relu(c2a, w2b_ref, b2b_ref, S1, jcol1)              # (S1*S1, 208)
    p2a = _maxpool3x3_s1(lrn, S1, jcol1)                               # (S1*S1, 64)
    c2c = jnp.maximum(jnp.dot(p2a, w2c_ref[...],
                              preferred_element_type=jnp.float32) + b2c_ref[...], 0.0)
    cat2 = jnp.concatenate([c2b, c2c], axis=-1)                        # (S1*S1, 272)
    p2b = _maxpool3x3_s2(cat2, S1, S2)                                 # (S2*S2, 272)

    # ---- inception block 3
    c3a = jnp.maximum(jnp.dot(p2b, w3a_ref[...],
                              preferred_element_type=jnp.float32) + b3a_ref[...], 0.0)
    c3b = _conv3x3_relu(c3a, w3b_ref, b3b_ref, S2, jcol2)              # (S2*S2, 208)
    p3a = _maxpool3x3_s1(p2b, S2, jcol2)                               # (S2*S2, 272)
    c3c = jnp.maximum(jnp.dot(p3a, w3c_ref[...],
                              preferred_element_type=jnp.float32) + b3c_ref[...], 0.0)
    cat3 = jnp.concatenate([c3b, c3c], axis=-1)                        # (S2*S2, 272)
    p3b = _maxpool3x3_s2(cat3, S2, S3)                                 # (S3*S3, 272)

    out_ref[0] = p3b.astype(out_ref.dtype)


def fc_logsoftmax_kernel(x_ref, w_ref, b_ref, o_ref):
    """Dense layer (with folded eval-BatchNorm) + log-softmax over classes."""
    logits = jnp.dot(x_ref[...], w_ref[...], preferred_element_type=jnp.float32)
    logits = logits + b_ref[...]
    m = jnp.max(logits, axis=1, keepdims=True)
    z = logits - m
    lse = jnp.log(jnp.sum(jnp.exp(z), axis=1, keepdims=True))
    o_ref[...] = (z - lse).astype(o_ref.dtype)


# ----------------------------------------------------------------------------
# Wrapper
# ----------------------------------------------------------------------------

def _im2col_conv1(x_nhwc, K, stride, pad):
    """Stride-2 im2col for conv1 (tiny, one-off glue on the raw input)."""
    N, H, W, Cin = x_nhwc.shape
    xp = jnp.pad(x_nhwc, ((0, 0), (pad, pad), (pad, pad), (0, 0)))
    Ho = (H + 2 * pad - K) // stride + 1
    Wo = (W + 2 * pad - K) // stride + 1
    cols = []
    for kh in range(K):
        for kw in range(K):
            cols.append(xp[:, kh:kh + stride * (Ho - 1) + 1:stride,
                            kw:kw + stride * (Wo - 1) + 1:stride, :])
    patches = jnp.concatenate(cols, axis=-1)        # (N, Ho, Wo, K*K*Cin)
    return patches.reshape(N, Ho * Wo, K * K * Cin), Ho


def _bcast_spec(a):
    zeros = (0,) * a.ndim
    return pl.BlockSpec(a.shape, lambda n: zeros)


@jax.jit
def dexpression_forward(x_nchw, params, *, eps=1e-5):
    p = params
    N, Cin, D, _ = x_nchw.shape
    x = jnp.transpose(x_nchw, (0, 2, 3, 1)).astype(jnp.float32)      # NCHW -> NHWC

    H1 = (D + 2 * 3 - 7) // 2 + 1        # conv1 output spatial
    S1 = (H1 - 3) // 2 + 1               # pool1 output spatial
    S2 = (S1 - 3) // 2 + 1               # pool2b output spatial
    S3 = (S2 - 3) // 2 + 1               # pool3b output spatial

    patches, _ = _im2col_conv1(x, K=7, stride=2, pad=3)              # (N, H1*H1, 49*Cin)

    # Kernel-friendly parameter layouts (tiny, folded by XLA).
    w1 = p["conv1"][0].reshape(7 * 7 * Cin, 64)
    b1 = p["conv1"][1].reshape(1, 64)
    lng = jnp.transpose(p["ln_g"], (1, 2, 0)).reshape(S1 * S1, 64)   # (C,H,W)->(HW,C)
    lnb = jnp.transpose(p["ln_b"], (1, 2, 0)).reshape(S1 * S1, 64)
    w2a = p["conv2a"][0].reshape(64, 96);   b2a = p["conv2a"][1].reshape(1, 96)
    w2b = p["conv2b"][0];                   b2b = p["conv2b"][1].reshape(1, 208)
    w2c = p["conv2c"][0].reshape(64, 64);   b2c = p["conv2c"][1].reshape(1, 64)
    w3a = p["conv3a"][0].reshape(272, 96);  b3a = p["conv3a"][1].reshape(1, 96)
    w3b = p["conv3b"][0];                   b3b = p["conv3b"][1].reshape(1, 208)
    w3c = p["conv3c"][0].reshape(272, 64);  b3c = p["conv3c"][1].reshape(1, 64)
    jcol1 = (jnp.arange(S1 * S1, dtype=jnp.int32) % S1).reshape(S1 * S1, 1)
    jcol2 = (jnp.arange(S2 * S2, dtype=jnp.int32) % S2).reshape(S2 * S2, 1)

    operands = [patches, w1, b1, lng, lnb, w2a, b2a, w2b, b2b, w2c, b2c,
                w3a, b3a, w3b, b3b, w3c, b3c, jcol1, jcol2]
    in_specs = [pl.BlockSpec((1, H1 * H1, 7 * 7 * Cin), lambda n: (n, 0, 0))]
    in_specs += [_bcast_spec(a) for a in operands[1:]]

    pool3b = pl.pallas_call(
        functools.partial(dexpression_fused_kernel,
                          H1=H1, S1=S1, S2=S2, S3=S3, eps=eps),
        out_shape=jax.ShapeDtypeStruct((N, S3 * S3, 272), jnp.float32),
        grid=(N,),
        in_specs=in_specs,
        out_specs=pl.BlockSpec((1, S3 * S3, 272), lambda n: (n, 0, 0)),
        compiler_params=pltpu.CompilerParams(dimension_semantics=("parallel",)),
    )(*operands)

    # TODO(synk): Dropout(p=0.2) is identity (inference); training-mode BatchNorm
    # (batch statistics) not implemented — eval-mode BN is folded into the FC below.
    scale = p["bn_g"] / jnp.sqrt(p["bn_var"] + eps)
    shift = p["bn_b"] - p["bn_mean"] * scale
    scale_flat = jnp.repeat(scale, S3 * S3)          # NCHW-flat channel-major order
    shift_flat = jnp.repeat(shift, S3 * S3)
    fc_w = p["fc_w"] * scale_flat[:, None]
    fc_b = p["fc_b"] + shift_flat @ p["fc_w"]

    # flatten in PyTorch NCHW channel-major order
    flat = jnp.transpose(pool3b.reshape(N, S3, S3, 272), (0, 3, 1, 2)).reshape(N, -1)

    F = fc_w.shape[1]
    logits = pl.pallas_call(
        fc_logsoftmax_kernel,
        out_shape=jax.ShapeDtypeStruct((N, F), jnp.float32),
        grid=(1,),
        in_specs=[pl.BlockSpec(flat.shape, lambda i: (0, 0)),
                  pl.BlockSpec(fc_w.shape, lambda i: (0, 0)),
                  pl.BlockSpec((1, F), lambda i: (0, 0))],
        out_specs=pl.BlockSpec((N, F), lambda i: (0, 0)),
    )(flat, fc_w, fc_b.reshape(1, F))
    return logits


# ----------------------------------------------------------------------------
# Parameter init (deterministic, shapes from Dexpression.__init__)
# ----------------------------------------------------------------------------

def _init_conv(key, kh, kw, cin, cout):
    k1, k2 = jax.random.split(key)
    bound = 1.0 / (kh * kw * cin) ** 0.5
    w = jax.random.uniform(k1, (kh, kw, cin, cout), jnp.float32, -bound, bound)
    b = jax.random.uniform(k2, (cout,), jnp.float32, -bound, bound)
    return w, b


def init_params(data_channels, data_dim, data_features, key):
    keys = jax.random.split(key, 8)
    s1 = data_dim // 4 - 1
    s3 = data_dim // 16 - 1
    p = {}
    p["conv1"] = _init_conv(keys[0], 7, 7, data_channels, 64)
    p["conv2a"] = _init_conv(keys[1], 1, 1, 64, 96)
    p["conv2b"] = _init_conv(keys[2], 3, 3, 96, 208)
    p["conv2c"] = _init_conv(keys[3], 1, 1, 64, 64)
    p["conv3a"] = _init_conv(keys[4], 1, 1, 272, 96)
    p["conv3b"] = _init_conv(keys[5], 3, 3, 96, 208)
    p["conv3c"] = _init_conv(keys[6], 1, 1, 272, 64)
    p["ln_g"] = jnp.ones((64, s1, s1), jnp.float32)      # PyTorch (C, H, W) layout
    p["ln_b"] = jnp.zeros((64, s1, s1), jnp.float32)
    p["bn_g"] = jnp.ones((272,), jnp.float32)
    p["bn_b"] = jnp.zeros((272,), jnp.float32)
    p["bn_mean"] = jnp.zeros((272,), jnp.float32)
    p["bn_var"] = jnp.ones((272,), jnp.float32)
    fin = 272 * s3 * s3
    k1, k2 = jax.random.split(keys[7])
    bound = 1.0 / fin ** 0.5
    p["fc_w"] = jax.random.uniform(k1, (fin, data_features), jnp.float32, -bound, bound)
    p["fc_b"] = jax.random.uniform(k2, (data_features,), jnp.float32, -bound, bound)
    return p


# ----------------------------------------------------------------------------
# Pure-JAX reference (for numerical validation of the Pallas path)
# ----------------------------------------------------------------------------

def _ref_conv(x, w, b, stride, pad):
    out = lax.conv_general_dilated(
        x, w, window_strides=(stride, stride),
        padding=((pad, pad), (pad, pad)),
        dimension_numbers=("NHWC", "HWIO", "NHWC"),
        precision=lax.Precision.HIGHEST)
    return out + b.reshape(1, 1, 1, -1)


def _ref_maxpool(x, k, stride, pad):
    return lax.reduce_window(
        x, -jnp.inf, lax.max,
        window_dimensions=(1, k, k, 1),
        window_strides=(1, stride, stride, 1),
        padding=((0, 0), (pad, pad), (pad, pad), (0, 0)))


def dexpression_reference(x_nchw, params, eps=1e-5):
    p = params
    x = jnp.transpose(x_nchw, (0, 2, 3, 1)).astype(jnp.float32)
    c1 = jax.nn.relu(_ref_conv(x, *p["conv1"], 2, 3))
    p1 = _ref_maxpool(c1, 3, 2, 0)
    mean = jnp.mean(p1, axis=(1, 2, 3), keepdims=True)
    var = jnp.mean((p1 - mean) ** 2, axis=(1, 2, 3), keepdims=True)
    g = jnp.transpose(p["ln_g"], (1, 2, 0))[None]
    b = jnp.transpose(p["ln_b"], (1, 2, 0))[None]
    lrn = (p1 - mean) * lax.rsqrt(var + eps) * g + b
    c2a = jax.nn.relu(_ref_conv(lrn, *p["conv2a"], 1, 0))
    c2b = jax.nn.relu(_ref_conv(c2a, *p["conv2b"], 1, 1))
    p2a = _ref_maxpool(lrn, 3, 1, 1)
    c2c = jax.nn.relu(_ref_conv(p2a, *p["conv2c"], 1, 0))
    p2b = _ref_maxpool(jnp.concatenate([c2b, c2c], axis=-1), 3, 2, 0)
    c3a = jax.nn.relu(_ref_conv(p2b, *p["conv3a"], 1, 0))
    c3b = jax.nn.relu(_ref_conv(c3a, *p["conv3b"], 1, 1))
    p3a = _ref_maxpool(p2b, 3, 1, 1)
    c3c = jax.nn.relu(_ref_conv(p3a, *p["conv3c"], 1, 0))
    p3b = _ref_maxpool(jnp.concatenate([c3b, c3c], axis=-1), 3, 2, 0)
    scale = p["bn_g"] / jnp.sqrt(p["bn_var"] + eps)
    shift = p["bn_b"] - p["bn_mean"] * scale
    p3b = p3b * scale + shift
    n, h, w, c = p3b.shape
    flat = jnp.transpose(p3b, (0, 3, 1, 2)).reshape(n, c * h * w)
    logits = jnp.dot(flat, p["fc_w"], precision=lax.Precision.HIGHEST) + p["fc_b"]
    return jax.nn.log_softmax(logits, axis=-1)


# ----------------------------------------------------------------------------
# Main
# ----------------------------------------------------------------------------

if __name__ == "__main__":
    data_channels, data_dim, data_features = 3, 32, 7
    batch = 2

    key = jax.random.PRNGKey(0)
    k_x, k_p = jax.random.split(key)
    x = jax.random.normal(k_x, (batch, data_channels, data_dim, data_dim), jnp.float32)
    params = init_params(data_channels, data_dim, data_features, k_p)

    logits = jax.block_until_ready(dexpression_forward(x, params))

    assert logits.shape == (batch, data_features), logits.shape
    assert bool(jnp.all(jnp.isfinite(logits)))
    # log-softmax rows should (approximately) exponentiate-sum to 1
    assert bool(jnp.allclose(jnp.sum(jnp.exp(logits), axis=1), 1.0, atol=1e-4))

    ref = jax.block_until_ready(dexpression_reference(x, params))
    max_err = float(jnp.max(jnp.abs(logits - ref)))
    assert bool(jnp.allclose(logits, ref, rtol=1e-2, atol=1e-2)), max_err

    print("KERNEL_OK")
</pallas_src>

<mosaic_0001>
module attributes {stable_mosaic.version = 11 : i64} {
  func.func @fc_logsoftmax_kernel(%arg0: i32, %arg1: memref<2x272xf32, #tpu.memory_space<vmem>>, %arg2: memref<272x7xf32, #tpu.memory_space<vmem>>, %arg3: memref<1x7xf32, #tpu.memory_space<vmem>>, %arg4: memref<2x7xf32, #tpu.memory_space<vmem>>) attributes {dimension_semantics = [#tpu.dimension_semantics<arbitrary>], iteration_bounds = array<i64: 1>, scalar_prefetch = 0 : i64, scratch_operands = 0 : i64, tpu.core_type = #tpu.core_type<tc>, window_params = [{pipeline_mode = #tpu.pipeline_mode<synchronous>, transform_indices = @transform_0, window_bounds = array<i64: 2, 272>}, {pipeline_mode = #tpu.pipeline_mode<synchronous>, transform_indices = @transform_1, window_bounds = array<i64: 272, 7>}, {pipeline_mode = #tpu.pipeline_mode<synchronous>, transform_indices = @transform_2, window_bounds = array<i64: 1, 7>}, {pipeline_mode = #tpu.pipeline_mode<synchronous>, transform_indices = @transform_3, window_bounds = array<i64: 2, 7>}]} {
    %c0 = arith.constant 0 : index
    %c0_0 = arith.constant 0 : index
    %0 = vector.load %arg1[%c0, %c0_0] : memref<2x272xf32, #tpu.memory_space<vmem>>, vector<2x272xf32>
    %c0_1 = arith.constant 0 : index
    %c0_2 = arith.constant 0 : index
    %1 = vector.load %arg2[%c0_1, %c0_2] : memref<272x7xf32, #tpu.memory_space<vmem>>, vector<272x7xf32>
    %cst = arith.constant dense<0.000000e+00> : vector<2x7xf32>
    %2 = tpu.matmul %0, %1, %cst {dimension_numbers = #tpu.dot_dimension_numbers<[1], [0], [0], [1], [0, 0, 1, 1], [], []>} : vector<2x272xf32>, vector<272x7xf32>, vector<2x7xf32> -> vector<2x7xf32>
    %c0_3 = arith.constant 0 : index
    %c0_4 = arith.constant 0 : index
    %3 = vector.load %arg3[%c0_3, %c0_4] : memref<1x7xf32, #tpu.memory_space<vmem>>, vector<1x7xf32>
    %4 = vector.broadcast %3 : vector<1x7xf32> to vector<2x7xf32>
    %5 = arith.addf %2, %4 : vector<2x7xf32>
    %cst_5 = arith.constant dense<0xFF800000> : vector<2xf32>
    %6 = vector.multi_reduction <maximumf>, %5, %cst_5 [1] : vector<2x7xf32> to vector<2xf32>
    %7 = vector.shape_cast %6 : vector<2xf32> to vector<2x1xf32>
    %8 = vector.broadcast %7 : vector<2x1xf32> to vector<2x7xf32>
    %9 = arith.subf %5, %8 : vector<2x7xf32>
    %10 = math.exp %9 : vector<2x7xf32>
    %cst_6 = arith.constant dense<0.000000e+00> : vector<2xf32>
    %11 = vector.multi_reduction <add>, %10, %cst_6 [1] : vector<2x7xf32> to vector<2xf32>
    %12 = vector.shape_cast %11 : vector<2xf32> to vector<2x1xf32>
    %13 = math.log %12 : vector<2x1xf32>
    %14 = vector.broadcast %13 : vector<2x1xf32> to vector<2x7xf32>
    %15 = arith.subf %9, %14 : vector<2x7xf32>
    %c0_7 = arith.constant 0 : index
    %c0_8 = arith.constant 0 : index
    %16 = vector.load %arg4[%c0_7, %c0_8] : memref<2x7xf32, #tpu.memory_space<vmem>>, vector<2x7xf32>
    tpu.vector_store %arg4[%c0_7, %c0_8], %15 {strides = array<i32>} : memref<2x7xf32, #tpu.memory_space<vmem>>, vector<2x7xf32>,
    return
  }
  func.func @transform_0(%arg0: i32) -> (i32, i32) {
    %c0_i32 = arith.constant 0 : i32
    %c0_i32_0 = arith.constant 0 : i32
    %c0_i32_1 = arith.constant 0 : i32
    return %c0_i32, %c0_i32_0 : i32, i32
  }
  func.func @transform_1(%arg0: i32) -> (i32, i32) {
    %c0_i32 = arith.constant 0 : i32
    %c0_i32_0 = arith.constant 0 : i32
    %c0_i32_1 = arith.constant 0 : i32
    return %c0_i32, %c0_i32_0 : i32, i32
  }
  func.func @transform_2(%arg0: i32) -> (i32, i32) {
    %c0_i32 = arith.constant 0 : i32
    %c0_i32_0 = arith.constant 0 : i32
    %c0_i32_1 = arith.constant 0 : i32
    return %c0_i32, %c0_i32_0 : i32, i32
  }
  func.func @transform_3(%arg0: i32) -> (i32, i32) {
    %c0_i32 = arith.constant 0 : i32
    %c0_i32_0 = arith.constant 0 : i32
    %c0_i32_1 = arith.constant 0 : i32
    return %c0_i32, %c0_i32_0 : i32, i32
  }
}

module attributes {stable_mosaic.version = 11 : i64} {
  func.func @dexpression_fused_kernel(%arg0: i32, %arg1: memref<1x256x147xf32, #tpu.memory_space<vmem>>, %arg2: memref<147x64xf32, #tpu.memory_space<vmem>>, %arg3: memref<1x64xf32, #tpu.memory_space<vmem>>, %arg4: memref<49x64xf32, #tpu.memory_space<vmem>>, %arg5: memref<49x64xf32, #tpu.memory_space<vmem>>, %arg6: memref<64x96xf32, #tpu.memory_space<vmem>>, %arg7: memref<1x96xf32, #tpu.memory_space<vmem>>, %arg8: memref<3x3x96x208xf32, #tpu.memory_space<vmem>>, %arg9: memref<1x208xf32, #tpu.memory_space<vmem>>, %arg10: memref<64x64xf32, #tpu.memory_space<vmem>>, %arg11: memref<1x64xf32, #tpu.memory_space<vmem>>, %arg12: memref<272x96xf32, #tpu.memory_space<vmem>>, %arg13: memref<1x96xf32, #tpu.memory_space<vmem>>, %arg14: memref<3x3x96x208xf32, #tpu.memory_space<vmem>>, %arg15: memref<1x208xf32, #tpu.memory_space<vmem>>, %arg16: memref<272x64xf32, #tpu.memory_space<vmem>>, %arg17: memref<1x64xf32, #tpu.memory_space<vmem>>, %arg18: memref<49x1xi32, #tpu.memory_space<vmem>>, %arg19: memref<9x1xi32, #tpu.memory_space<vmem>>, %arg20: memref<1x1x272xf32, #tpu.memory_space<vmem>>) attributes {dimension_semantics = [#tpu.dimension_semantics<parallel>], iteration_bounds = array<i64: 2>, scalar_prefetch = 0 : i64, scratch_operands = 0 : i64, tpu.core_type = #tpu.core_type<tc>, window_params = [{transform_indices = @transform_0, window_bounds = array<i64: 1, 256, 147>}, {pipeline_mode = #tpu.pipeline_mode<synchronous>, transform_indices = @transform_1, window_bounds = array<i64: 147, 64>}, {pipeline_mode = #tpu.pipeline_mode<synchronous>, transform_indices = @transform_2, window_bounds = array<i64: 1, 64>}, {pipeline_mode = #tpu.pipeline_mode<synchronous>, transform_indices = @transform_3, window_bounds = array<i64: 49, 64>}, {pipeline_mode = #tpu.pipeline_mode<synchronous>, transform_indices = @transform_4, window_bounds = array<i64: 49, 64>}, {pipeline_mode = #tpu.pipeline_mode<synchronous>, transform_indices = @transform_5, window_bounds = array<i64: 64, 96>}, {pipeline_mode = #tpu.pipeline_mode<synchronous>, transform_indices = @transform_6, window_bounds = array<i64: 1, 96>}, {pipeline_mode = #tpu.pipeline_mode<synchronous>, transform_indices = @transform_7, window_bounds = array<i64: 3, 3, 96, 208>}, {pipeline_mode = #tpu.pipeline_mode<synchronous>, transform_indices = @transform_8, window_bounds = array<i64: 1, 208>}, {pipeline_mode = #tpu.pipeline_mode<synchronous>, transform_indices = @transform_9, window_bounds = array<i64: 64, 64>}, {pipeline_mode = #tpu.pipeline_mode<synchronous>, transform_indices = @transform_10, window_bounds = array<i64: 1, 64>}, {pipeline_mode = #tpu.pipeline_mode<synchronous>, transform_indices = @transform_11, window_bounds = array<i64: 272, 96>}, {pipeline_mode = #tpu.pipeline_mode<synchronous>, transform_indices = @transform_12, window_bounds = array<i64: 1, 96>}, {pipeline_mode = #tpu.pipeline_mode<synchronous>, transform_indices = @transform_13, window_bounds = array<i64: 3, 3, 96, 208>}, {pipeline_mode = #tpu.pipeline_mode<synchronous>, transform_indices = @transform_14, window_bounds = array<i64: 1, 208>}, {pipeline_mode = #tpu.pipeline_mode<synchronous>, transform_indices = @transform_15, window_bounds = array<i64: 272, 64>}, {pipeline_mode = #tpu.pipeline_mode<synchronous>, transform_indices = @transform_16, window_bounds = array<i64: 1, 64>}, {pipeline_mode = #tpu.pipeline_mode<synchronous>, transform_indices = @transform_17, window_bounds = array<i64: 49, 1>}, {pipeline_mode = #tpu.pipeline_mode<synchronous>, transform_indices = @transform_18, window_bounds = array<i64: 9, 1>}, {transform_indices = @transform_19, window_bounds = array<i64: 1, 1, 272>}]} {
    %c0 = arith.constant 0 : index
    %c0_0 = arith.constant 0 : index
    %c0_1 = arith.constant 0 : index
    %0 = vector.load %arg1[%c0, %c0_0, %c0_1] : memref<1x256x147xf32, #tpu.memory_space<vmem>>, vector<1x256x147xf32>
    %1 = vector.shape_cast %0 : vector<1x256x147xf32> to vector<256x147xf32>
    %c0_2 = arith.constant 0 : index
    %c0_3 = arith.constant 0 : index
    %2 = vector.load %arg2[%c0_2, %c0_3] : memref<147x64xf32, #tpu.memory_space<vmem>>, vector<147x64xf32>
    %cst = arith.constant dense<0.000000e+00> : vector<256x64xf32>
    %3 = tpu.matmul %1, %2, %cst {dimension_numbers = #tpu.dot_dimension_numbers<[1], [0], [0], [1], [0, 0, 1, 1], [], []>} : vector<256x147xf32>, vector<147x64xf32>, vector<256x64xf32> -> vector<256x64xf32>
    %c0_4 = arith.constant 0 : index
    %c0_5 = arith.constant 0 : index
    %4 = vector.load %arg3[%c0_4, %c0_5] : memref<1x64xf32, #tpu.memory_space<vmem>>, vector<1x64xf32>
    %5 = vector.broadcast %4 : vector<1x64xf32> to vector<256x64xf32>
    %6 = arith.addf %3, %5 : vector<256x64xf32>
    %cst_6 = arith.constant 0.000000e+00 : f32
    %7 = vector.broadcast %cst_6 : f32 to vector<256x64xf32>
    %8 = arith.maximumf %6, %7 : vector<256x64xf32>
    %9 = vector.extract_strided_slice %8 {offsets = [0, 0], sizes = [16, 64], strides = [1, 1]} : vector<256x64xf32> to vector<16x64xf32>
    %10 = vector.extract_strided_slice %8 {offsets = [16, 0], sizes = [16, 64], strides = [1, 1]} : vector<256x64xf32> to vector<16x64xf32>
    %11 = arith.maximumf %9, %10 : vector<16x64xf32>
    %12 = vector.extract_strided_slice %8 {offsets = [32, 0], sizes = [16, 64], strides = [1, 1]} : vector<256x64xf32> to vector<16x64xf32>
    %13 = arith.maximumf %11, %12 : vector<16x64xf32>
    %14 = vector.extract_strided_slice %13 {offsets = [0, 0], sizes = [1, 64], strides = [1, 1]} : vector<16x64xf32> to vector<1x64xf32>
    %15 = vector.extract_strided_slice %13 {offsets = [1, 0], sizes = [1, 64], strides = [1, 1]} : vector<16x64xf32> to vector<1x64xf32>
    %16 = arith.maximumf %14, %15 : vector<1x64xf32>
    %17 = vector.extract_strided_slice %13 {offsets = [2, 0], sizes = [1, 64], strides = [1, 1]} : vector<16x64xf32> to vector<1x64xf32>
    %18 = arith.maximumf %16, %17 : vector<1x64xf32>
    %19 = vector.extract_strided_slice %13 {offsets = [2, 0], sizes = [1, 64], strides = [1, 1]} : vector<16x64xf32> to vector<1x64xf32>
    %20 = vector.extract_strided_slice %13 {offsets = [3, 0], sizes = [1, 64], strides = [1, 1]} : vector<16x64xf32> to vector<1x64xf32>
    %21 = arith.maximumf %19, %20 : vector<1x64xf32>
    %22 = vector.extract_strided_slice %13 {offsets = [4, 0], sizes = [1, 64], strides = [1, 1]} : vector<16x64xf32> to vector<1x64xf32>
    %23 = arith.maximumf %21, %22 : vector<1x64xf32>
    %24 = vector.extract_strided_slice %13 {offsets = [4, 0], sizes = [1, 64], strides = [1, 1]} : vector<16x64xf32> to vector<1x64xf32>
    %25 = vector.extract_strided_slice %13 {offsets = [5, 0], sizes = [1, 64], strides = [1, 1]} : vector<16x64xf32> to vector<1x64xf32>
    %26 = arith.maximumf %24, %25 : vector<1x64xf32>
    %27 = vector.extract_strided_slice %13 {offsets = [6, 0], sizes = [1, 64], strides = [1, 1]} : vector<16x64xf32> to vector<1x64xf32>
    %28 = arith.maximumf %26, %27 : vector<1x64xf32>
    %29 = vector.extract_strided_slice %13 {offsets = [6, 0], sizes = [1, 64], strides = [1, 1]} : vector<16x64xf32> to vector<1x64xf32>
    %30 = vector.extract_strided_slice %13 {offsets = [7, 0], sizes = [1, 64], strides = [1, 1]} : vector<16x64xf32> to vector<1x64xf32>
    %31 = arith.maximumf %29, %30 : vector<1x64xf32>
    %32 = vector.extract_strided_slice %13 {offsets = [8, 0], sizes = [1, 64], strides = [1, 1]} : vector<16x64xf32> to vector<1x64xf32>
    %33 = arith.maximumf %31, %32 : vector<1x64xf32>
    %34 = vector.extract_strided_slice %13 {offsets = [8, 0], sizes = [1, 64], strides = [1, 1]} : vector<16x64xf32> to vector<1x64xf32>
    %35 = vector.extract_strided_slice %13 {offsets = [9, 0], sizes = [1, 64], strides = [1, 1]} : vector<16x64xf32> to vector<1x64xf32>
    %36 = arith.maximumf %34, %35 : vector<1x64xf32>
    %37 = vector.extract_strided_slice %13 {offsets = [10, 0], sizes = [1, 64], strides = [1, 1]} : vector<16x64xf32> to vector<1x64xf32>
    %38 = arith.maximumf %36, %37 : vector<1x64xf32>
    %39 = vector.extract_strided_slice %13 {offsets = [10, 0], sizes = [1, 64], strides = [1, 1]} : vector<16x64xf32> to vector<1x64xf32>
    %40 = vector.extract_strided_slice %13 {offsets = [11, 0], sizes = [1, 64], strides = [1, 1]} : vector<16x64xf32> to vector<1x64xf32>
    %41 = arith.maximumf %39, %40 : vector<1x64xf32>
    %42 = vector.extract_strided_slice %13 {offsets = [12, 0], sizes = [1, 64], strides = [1, 1]} : vector<16x64xf32> to vector<1x64xf32>
    %43 = arith.maximumf %41, %42 : vector<1x64xf32>
    %44 = vector.extract_strided_slice %13 {offsets = [12, 0], sizes = [1, 64], strides = [1, 1]} : vector<16x64xf32> to vector<1x64xf32>
    %45 = vector.extract_strided_slice %13 {offsets = [13, 0], sizes = [1, 64], strides = [1, 1]} : vector<16x64xf32> to vector<1x64xf32>
    %46 = arith.maximumf %44, %45 : vector<1x64xf32>
    %47 = vector.extract_strided_slice %13 {offsets = [14, 0], sizes = [1, 64], strides = [1, 1]} : vector<16x64xf32> to vector<1x64xf32>
    %48 = arith.maximumf %46, %47 : vector<1x64xf32>
    %49 = tpu.concatenate %18, %23, %28, %33, %38, %43, %48 in 0 : vector<1x64xf32>, vector<1x64xf32>, vector<1x64xf32>, vector<1x64xf32>, vector<1x64xf32>, vector<1x64xf32>, vector<1x64xf32> -> vector<7x64xf32>
    %50 = vector.extract_strided_slice %8 {offsets = [32, 0], sizes = [16, 64], strides = [1, 1]} : vector<256x64xf32> to vector<16x64xf32>
    %51 = vector.extract_strided_slice %8 {offsets = [48, 0], sizes = [16, 64], strides = [1, 1]} : vector<256x64xf32> to vector<16x64xf32>
    %52 = arith.maximumf %50, %51 : vector<16x64xf32>
    %53 = vector.extract_strided_slice %8 {offsets = [64, 0], sizes = [16, 64], strides = [1, 1]} : vector<256x64xf32> to vector<16x64xf32>
    %54 = arith.maximumf %52, %53 : vector<16x64xf32>
    %55 = vector.extract_strided_slice %54 {offsets = [0, 0], sizes = [1, 64], strides = [1, 1]} : vector<16x64xf32> to vector<1x64xf32>
    %56 = vector.extract_strided_slice %54 {offsets = [1, 0], sizes = [1, 64], strides = [1, 1]} : vector<16x64xf32> to vector<1x64xf32>
    %57 = arith.maximumf %55, %56 : vector<1x64xf32>
    %58 = vector.extract_strided_slice %54 {offsets = [2, 0], sizes = [1, 64], strides = [1, 1]} : vector<16x64xf32> to vector<1x64xf32>
    %59 = arith.maximumf %57, %58 : vector<1x64xf32>
    %60 = vector.extract_strided_slice %54 {offsets = [2, 0], sizes = [1, 64], strides = [1, 1]} : vector<16x64xf32> to vector<1x64xf32>
    %61 = vector.extract_strided_slice %54 {offsets = [3, 0], sizes = [1, 64], strides = [1, 1]} : vector<16x64xf32> to vector<1x64xf32>
    %62 = arith.maximumf %60, %61 : vector<1x64xf32>
    %63 = vector.extract_strided_slice %54 {offsets = [4, 0], sizes = [1, 64], strides = [1, 1]} : vector<16x64xf32> to vector<1x64xf32>
    %64 = arith.maximumf %62, %63 : vector<1x64xf32>
    %65 = vector.extract_strided_slice %54 {offsets = [4, 0], sizes = [1, 64], strides = [1, 1]} : vector<16x64xf32> to vector<1x64xf32>
    %66 = vector.extract_strided_slice %54 {offsets = [5, 0], sizes = [1, 64], strides = [1, 1]} : vector<16x64xf32> to vector<1x64xf32>
    %67 = arith.maximumf %65, %66 : vector<1x64xf32>
    %68 = vector.extract_strided_slice %54 {offsets = [6, 0], sizes = [1, 64], strides = [1, 1]} : vector<16x64xf32> to vector<1x64xf32>
    %69 = arith.maximumf %67, %68 : vector<1x64xf32>
    %70 = vector.extract_strided_slice %54 {offsets = [6, 0], sizes = [1, 64], strides = [1, 1]} : vector<16x64xf32> to vector<1x64xf32>
    %71 = vector.extract_strided_slice %54 {offsets = [7, 0], sizes = [1, 64], strides = [1, 1]} : vector<16x64xf32> to vector<1x64xf32>
    %72 = arith.maximumf %70, %71 : vector<1x64xf32>
    %73 = vector.extract_strided_slice %54 {offsets = [8, 0], sizes = [1, 64], strides = [1, 1]} : vector<16x64xf32> to vector<1x64xf32>
    %74 = arith.maximumf %72, %73 : vector<1x64xf32>
    %75 = vector.extract_strided_slice %54 {offsets = [8, 0], sizes = [1, 64], strides = [1, 1]} : vector<16x64xf32> to vector<1x64xf32>
    %76 = vector.extract_strided_slice %54 {offsets = [9, 0], sizes = [1, 64], strides = [1, 1]} : vector<16x64xf32> to vector<1x64xf32>
    %77 = arith.maximumf %75, %76 : vector<1x64xf32>
    %78 = vector.extract_strided_slice %54 {offsets = [10, 0], sizes = [1, 64], strides = [1, 1]} : vector<16x64xf32> to vector<1x64xf32>
    %79 = arith.maximumf %77, %78 : vector<1x64xf32>
    %80 = vector.extract_strided_slice %54 {offsets = [10, 0], sizes = [1, 64], strides = [1, 1]} : vector<16x64xf32> to vector<1x64xf32>
    %81 = vector.extract_strided_slice %54 {offsets = [11, 0], sizes = [1, 64], strides = [1, 1]} : vector<16x64xf32> to vector<1x64xf32>
    %82 = arith.maximumf %80, %81 : vector<1x64xf32>
    %83 = vector.extract_strided_slice %54 {offsets = [12, 0], sizes = [1, 64], strides = [1, 1]} : vector<16x64xf32> to vector<1x64xf32>
    %84 = arith.maximumf %82, %83 : vector<1x64xf32>
    %85 = vector.extract_strided_slice %54 {offsets = [12, 0], sizes = [1, 64], strides = [1, 1]} : vector<16x64xf32> to vector<1x64xf32>
    %86 = vector.extract_strided_slice %54 {offsets = [13, 0], sizes = [1, 64], strides = [1, 1]} : vector<16x64xf32> to vector<1x64xf32>
    %87 = arith.maximumf %85, %86 : vector<1x64xf32>
    %88 = vector.extract_strided_slice %54 {offsets = [14, 0], sizes = [1, 64], strides = [1, 1]} : vector<16x64xf32> to vector<1x64xf32>
    %89 = arith.maximumf %87, %88 : vector<1x64xf32>
    %90 = tpu.concatenate %59, %64, %69, %74, %79, %84, %89 in 0 : vector<1x64xf32>, vector<1x64xf32>, vector<1x64xf32>, vector<1x64xf32>, vector<1x64xf32>, vector<1x64xf32>, vector<1x64xf32> -> vector<7x64xf32>
    %91 = vector.extract_strided_slice %8 {offsets = [64, 0], sizes = [16, 64], strides = [1, 1]} : vector<256x64xf32> to vector<16x64xf32>
    %92 = vector.extract_strided_slice %8 {offsets = [80, 0], sizes = [16, 64], strides = [1, 1]} : vector<256x64xf32> to vector<16x64xf32>
    %93 = arith.maximumf %91, %92 : vector<16x64xf32>
    %94 = vector.extract_strided_slice %8 {offsets = [96, 0], sizes = [16, 64], strides = [1, 1]} : vector<256x64xf32> to vector<16x64xf32>
    %95 = arith.maximumf %93, %94 : vector<16x64xf32>
    %96 = vector.extract_strided_slice %95 {offsets = [0, 0], sizes = [1, 64], strides = [1, 1]} : vector<16x64xf32> to vector<1x64xf32>
    %97 = vector.extract_strided_slice %95 {offsets = [1, 0], sizes = [1, 64], strides = [1, 1]} : vector<16x64xf32> to vector<1x64xf32>
    %98 = arith.maximumf %96, %97 : vector<1x64xf32>
    %99 = vector.extract_strided_slice %95 {offsets = [2, 0], sizes = [1, 64], strides = [1, 1]} : vector<16x64xf32> to vector<1x64xf32>
    %100 = arith.maximumf %98, %99 : vector<1x64xf32>
    %101 = vector.extract_strided_slice %95 {offsets = [2, 0], sizes = [1, 64], strides = [1, 1]} : vector<16x64xf32> to vector<1x64xf32>
    %102 = vector.extract_strided_slice %95 {offsets = [3, 0], sizes = [1, 64], strides = [1, 1]} : vector<16x64xf32> to vector<1x64xf32>
    %103 = arith.maximumf %101, %102 : vector<1x64xf32>
    %104 = vector.extract_strided_slice %95 {offsets = [4, 0], sizes = [1, 64], strides = [1, 1]} : vector<16x64xf32> to vector<1x64xf32>
    %105 = arith.maximumf %103, %104 : vector<1x64xf32>
    %106 = vector.extract_strided_slice %95 {offsets = [4, 0], sizes = [1, 64], strides = [1, 1]} : vector<16x64xf32> to vector<1x64xf32>
    %107 = vector.extract_strided_slice %95 {offsets = [5, 0], sizes = [1, 64], strides = [1, 1]} : vector<16x64xf32> to vector<1x64xf32>
    %108 = arith.maximumf %106, %107 : vector<1x64xf32>
    %109 = vector.extract_strided_slice %95 {offsets = [6, 0], sizes = [1, 64], strides = [1, 1]} : vector<16x64xf32> to vector<1x64xf32>
    %110 = arith.maximumf %108, %109 : vector<1x64xf32>
    %111 = vector.extract_strided_slice %95 {offsets = [6, 0], sizes = [1, 64], strides = [1, 1]} : vector<16x64xf32> to vector<1x64xf32>
    %112 = vector.extract_strided_slice %95 {offsets = [7, 0], sizes = [1, 64], strides = [1, 1]} : vector<16x64xf32> to vector<1x64xf32>
    %113 = arith.maximumf %111, %112 : vector<1x64xf32>
    %114 = vector.extract_strided_slice %95 {offsets = [8, 0], sizes = [1, 64], strides = [1, 1]} : vector<16x64xf32> to vector<1x64xf32>
    %115 = arith.maximumf %113, %114 : vector<1x64xf32>
    %116 = vector.extract_strided_slice %95 {offsets = [8, 0], sizes = [1, 64], strides = [1, 1]} : vector<16x64xf32> to vector<1x64xf32>
    %117 = vector.extract_strided_slice %95 {offsets = [9, 0], sizes = [1, 64], strides = [1, 1]} : vector<16x64xf32> to vector<1x64xf32>
    %118 = arith.maximumf %116, %117 : vector<1x64xf32>
    %119 = vector.extract_strided_slice %95 {offsets = [10, 0], sizes = [1, 64], strides = [1, 1]} : vector<16x64xf32> to vector<1x64xf32>
    %120 = arith.maximumf %118, %119 : vector<1x64xf32>
    %121 = vector.extract_strided_slice %95 {offsets = [10, 0], sizes = [1, 64], strides = [1, 1]} : vector<16x64xf32> to vector<1x64xf32>
    %122 = vector.extract_strided_slice %95 {offsets = [11, 0], sizes = [1, 64], strides = [1, 1]} : vector<16x64xf32> to vector<1x64xf32>
    %123 = arith.maximumf %121, %122 : vector<1x64xf32>
    %124 = vector.extract_strided_slice %95 {offsets = [12, 0], sizes = [1, 64], strides = [1, 1]} : vector<16x64xf32> to vector<1x64xf32>
    %125 = arith.maximumf %123, %124 : vector<1x64xf32>
    %126 = vector.extract_strided_slice %95 {offsets = [12, 0], sizes = [1, 64], strides = [1, 1]} : vector<16x64xf32> to vector<1x64xf32>
    %127 = vector.extract_strided_slice %95 {offsets = [13, 0], sizes = [1, 64], strides = [1, 1]} : vector<16x64xf32> to vector<1x64xf32>
    %128 = arith.maximumf %126, %127 : vector<1x64xf32>
    %129 = vector.extract_strided_slice %95 {offsets = [14, 0], sizes = [1, 64], strides = [1, 1]} : vector<16x64xf32> to vector<1x64xf32>
    %130 = arith.maximumf %128, %129 : vector<1x64xf32>
    %131 = tpu.concatenate %100, %105, %110, %115, %120, %125, %130 in 0 : vector<1x64xf32>, vector<1x64xf32>, vector<1x64xf32>, vector<1x64xf32>, vector<1x64xf32>, vector<1x64xf32>, vector<1x64xf32> -> vector<7x64xf32>
    %132 = vector.extract_strided_slice %8 {offsets = [96, 0], sizes = [16, 64], strides = [1, 1]} : vector<256x64xf32> to vector<16x64xf32>
    %133 = vector.extract_strided_slice %8 {offsets = [112, 0], sizes = [16, 64], strides = [1, 1]} : vector<256x64xf32> to vector<16x64xf32>
    %134 = arith.maximumf %132, %133 : vector<16x64xf32>
    %135 = vector.extract_strided_slice %8 {offsets = [128, 0], sizes = [16, 64], strides = [1, 1]} : vector<256x64xf32> to vector<16x64xf32>
    %136 = arith.maximumf %134, %135 : vector<16x64xf32>
    %137 = vector.extract_strided_slice %136 {offsets = [0, 0], sizes = [1, 64], strides = [1, 1]} : vector<16x64xf32> to vector<1x64xf32>
    %138 = vector.extract_strided_slice %136 {offsets = [1, 0], sizes = [1, 64], strides = [1, 1]} : vector<16x64xf32> to vector<1x64xf32>
    %139 = arith.maximumf %137, %138 : vector<1x64xf32>
    %140 = vector.extract_strided_slice %136 {offsets = [2, 0], sizes = [1, 64], strides = [1, 1]} : vector<16x64xf32> to vector<1x64xf32>
    %141 = arith.maximumf %139, %140 : vector<1x64xf32>
    %142 = vector.extract_strided_slice %136 {offsets = [2, 0], sizes = [1, 64], strides = [1, 1]} : vector<16x64xf32> to vector<1x64xf32>
    %143 = vector.extract_strided_slice %136 {offsets = [3, 0], sizes = [1, 64], strides = [1, 1]} : vector<16x64xf32> to vector<1x64xf32>
    %144 = arith.maximumf %142, %143 : vector<1x64xf32>
    %145 = vector.extract_strided_slice %136 {offsets = [4, 0], sizes = [1, 64], strides = [1, 1]} : vector<16x64xf32> to vector<1x64xf32>
    %146 = arith.maximumf %144, %145 : vector<1x64xf32>
    %147 = vector.extract_strided_slice %136 {offsets = [4, 0], sizes = [1, 64], strides = [1, 1]} : vector<16x64xf32> to vector<1x64xf32>
    %148 = vector.extract_strided_slice %136 {offsets = [5, 0], sizes = [1, 64], strides = [1, 1]} : vector<16x64xf32> to vector<1x64xf32>
    %149 = arith.maximumf %147, %148 : vector<1x64xf32>
    %150 = vector.extract_strided_slice %136 {offsets = [6, 0], sizes = [1, 64], strides = [1, 1]} : vector<16x64xf32> to vector<1x64xf32>
    %151 = arith.maximumf %149, %150 : vector<1x64xf32>
    %152 = vector.extract_strided_slice %136 {offsets = [6, 0], sizes = [1, 64], strides = [1, 1]} : vector<16x64xf32> to vector<1x64xf32>
    %153 = vector.extract_strided_slice %136 {offsets = [7, 0], sizes = [1, 64], strides = [1, 1]} : vector<16x64xf32> to vector<1x64xf32>
    %154 = arith.maximumf %152, %153 : vector<1x64xf32>
    %155 = vector.extract_strided_slice %136 {offsets = [8, 0], sizes = [1, 64], strides = [1, 1]} : vector<16x64xf32> to vector<1x64xf32>
    %156 = arith.maximumf %154, %155 : vector<1x64xf32>
    %157 = vector.extract_strided_slice %136 {offsets = [8, 0], sizes = [1, 64], strides = [1, 1]} : vector<16x64xf32> to vector<1x64xf32>
    %158 = vector.extract_strided_slice %136 {offsets = [9, 0], sizes = [1, 64], strides = [1, 1]} : vector<16x64xf32> to vector<1x64xf32>
    %159 = arith.maximumf %157, %158 : vector<1x64xf32>
    %160 = vector.extract_strided_slice %136 {offsets = [10, 0], sizes = [1, 64], strides = [1, 1]} : vector<16x64xf32> to vector<1x64xf32>
    %161 = arith.maximumf %159, %160 : vector<1x64xf32>
    %162 = vector.extract_strided_slice %136 {offsets = [10, 0], sizes = [1, 64], strides = [1, 1]} : vector<16x64xf32> to vector<1x64xf32>
    %163 = vector.extract_strided_slice %136 {offsets = [11, 0], sizes = [1, 64], strides = [1, 1]} : vector<16x64xf32> to vector<1x64xf32>
    %164 = arith.maximumf %162, %163 : vector<1x64xf32>
    %165 = vector.extract_strided_slice %136 {offsets = [12, 0], sizes = [1, 64], strides = [1, 1]} : vector<16x64xf32> to vector<1x64xf32>
    %166 = arith.maximumf %164, %165 : vector<1x64xf32>
    %167 = vector.extract_strided_slice %136 {offsets = [12, 0], sizes = [1, 64], strides = [1, 1]} : vector<16x64xf32> to vector<1x64xf32>
    %168 = vector.extract_strided_slice %136 {offsets = [13, 0], sizes = [1, 64], strides = [1, 1]} : vector<16x64xf32> to vector<1x64xf32>
    %169 = arith.maximumf %167, %168 : vector<1x64xf32>
    %170 = vector.extract_strided_slice %136 {offsets = [14, 0], sizes = [1, 64], strides = [1, 1]} : vector<16x64xf32> to vector<1x64xf32>
    %171 = arith.maximumf %169, %170 : vector<1x64xf32>
    %172 = tpu.concatenate %141, %146, %151, %156, %161, %166, %171 in 0 : vector<1x64xf32>, vector<1x64xf32>, vector<1x64xf32>, vector<1x64xf32>, vector<1x64xf32>, vector<1x64xf32>, vector<1x64xf32> -> vector<7x64xf32>
    %173 = vector.extract_strided_slice %8 {offsets = [128, 0], sizes = [16, 64], strides = [1, 1]} : vector<256x64xf32> to vector<16x64xf32>
    %174 = vector.extract_strided_slice %8 {offsets = [144, 0], sizes = [16, 64], strides = [1, 1]} : vector<256x64xf32> to vector<16x64xf32>
    %175 = arith.maximumf %173, %174 : vector<16x64xf32>
    %176 = vector.extract_strided_slice %8 {offsets = [160, 0], sizes = [16, 64], strides = [1, 1]} : vector<256x64xf32> to vector<16x64xf32>
    %177 = arith.maximumf %175, %176 : vector<16x64xf32>
    %178 = vector.extract_strided_slice %177 {offsets = [0, 0], sizes = [1, 64], strides = [1, 1]} : vector<16x64xf32> to vector<1x64xf32>
    %179 = vector.extract_strided_slice %177 {offsets = [1, 0], sizes = [1, 64], strides = [1, 1]} : vector<16x64xf32> to vector<1x64xf32>
    %180 = arith.maximumf %178, %179 : vector<1x64xf32>
    %181 = vector.extract_strided_slice %177 {offsets = [2, 0], sizes = [1, 64], strides = [1, 1]} : vector<16x64xf32> to vector<1x64xf32>
    %182 = arith.maximumf %180, %181 : vector<1x64xf32>
    %183 = vector.extract_strided_slice %177 {offsets = [2, 0], sizes = [1, 64], strides = [1, 1]} : vector<16x64xf32> to vector<1x64xf32>
    %184 = vector.extract_strided_slice %177 {offsets = [3, 0], sizes = [1, 64], strides = [1, 1]} : vector<16x64xf32> to vector<1x64xf32>
    %185 = arith.maximumf %183, %184 : vector<1x64xf32>
    %186 = vector.extract_strided_slice %177 {offsets = [4, 0], sizes = [1, 64], strides = [1, 1]} : vector<16x64xf32> to vector<1x64xf32>
    %187 = arith.maximumf %185, %186 : vector<1x64xf32>
    %188 = vector.extract_strided_slice %177 {offsets = [4, 0], sizes = [1, 64], strides = [1, 1]} : vector<16x64xf32> to vector<1x64xf32>
    %189 = vector.extract_strided_slice %177 {offsets = [5, 0], sizes = [1, 64], strides = [1, 1]} : vector<16x64xf32> to vector<1x64xf32>
    %190 = arith.maximumf %188, %189 : vector<1x64xf32>
    %191 = vector.extract_strided_slice %177 {offsets = [6, 0], sizes = [1, 64], strides = [1, 1]} : vector<16x64xf32> to vector<1x64xf32>
    %192 = arith.maximumf %190, %191 : vector<1x64xf32>
    %193 = vector.extract_strided_slice %177 {offsets = [6, 0], sizes = [1, 64], strides = [1, 1]} : vector<16x64xf32> to vector<1x64xf32>
    %194 = vector.extract_strided_slice %177 {offsets = [7, 0], sizes = [1, 64], strides = [1, 1]} : vector<16x64xf32> to vector<1x64xf32>
    %195 = arith.maximumf %193, %194 : vector<1x64xf32>
    %196 = vector.extract_strided_slice %177 {offsets = [8, 0], sizes = [1, 64], strides = [1, 1]} : vector<16x64xf32> to vector<1x64xf32>
    %197 = arith.maximumf %195, %196 : vector<1x64xf32>
    %198 = vector.extract_strided_slice %177 {offsets = [8, 0], sizes = [1, 64], strides = [1, 1]} : vector<16x64xf32> to vector<1x64xf32>
    %199 = vector.extract_strided_slice %177 {offsets = [9, 0], sizes = [1, 64], strides = [1, 1]} : vector<16x64xf32> to vector<1x64xf32>
    %200 = arith.maximumf %198, %199 : vector<1x64xf32>
    %201 = vector.extract_strided_slice %177 {offsets = [10, 0], sizes = [1, 64], strides = [1, 1]} : vector<16x64xf32> to vector<1x64xf32>
    %202 = arith.maximumf %200, %201 : vector<1x64xf32>
    %203 = vector.extract_strided_slice %177 {offsets = [10, 0], sizes = [1, 64], strides = [1, 1]} : vector<16x64xf32> to vector<1x64xf32>
    %204 = vector.extract_strided_slice %177 {offsets = [11, 0], sizes = [1, 64], strides = [1, 1]} : vector<16x64xf32> to vector<1x64xf32>
    %205 = arith.maximumf %203, %204 : vector<1x64xf32>
    %206 = vector.extract_strided_slice %177 {offsets = [12, 0], sizes = [1, 64], strides = [1, 1]} : vector<16x64xf32> to vector<1x64xf32>
    %207 = arith.maximumf %205, %206 : vector<1x64xf32>
    %208 = vector.extract_strided_slice %177 {offsets = [12, 0], sizes = [1, 64], strides = [1, 1]} : vector<16x64xf32> to vector<1x64xf32>
    %209 = vector.extract_strided_slice %177 {offsets = [13, 0], sizes = [1, 64], strides = [1, 1]} : vector<16x64xf32> to vector<1x64xf32>
    %210 = arith.maximumf %208, %209 : vector<1x64xf32>
    %211 = vector.extract_strided_slice %177 {offsets = [14, 0], sizes = [1, 64], strides = [1, 1]} : vector<16x64xf32> to vector<1x64xf32>
    %212 = arith.maximumf %210, %211 : vector<1x64xf32>
    %213 = tpu.concatenate %182, %187, %192, %197, %202, %207, %212 in 0 : vector<1x64xf32>, vector<1x64xf32>, vector<1x64xf32>, vector<1x64xf32>, vector<1x64xf32>, vector<1x64xf32>, vector<1x64xf32> -> vector<7x64xf32>
    %214 = vector.extract_strided_slice %8 {offsets = [160, 0], sizes = [16, 64], strides = [1, 1]} : vector<256x64xf32> to vector<16x64xf32>
    %215 = vector.extract_strided_slice %8 {offsets = [176, 0], sizes = [16, 64], strides = [1, 1]} : vector<256x64xf32> to vector<16x64xf32>
    %216 = arith.maximumf %214, %215 : vector<16x64xf32>
    %217 = vector.extract_strided_slice %8 {offsets = [192, 0], sizes = [16, 64], strides = [1, 1]} : vector<256x64xf32> to vector<16x64xf32>
    %218 = arith.maximumf %216, %217 : vector<16x64xf32>
    %219 = vector.extract_strided_slice %218 {offsets = [0, 0], sizes = [1, 64], strides = [1, 1]} : vector<16x64xf32> to vector<1x64xf32>
    %220 = vector.extract_strided_slice %218 {offsets = [1, 0], sizes = [1, 64], strides = [1, 1]} : vector<16x64xf32> to vector<1x64xf32>
    %221 = arith.maximumf %219, %220 : vector<1x64xf32>
    %222 = vector.extract_strided_slice %218 {offsets = [2, 0], sizes = [1, 64], strides = [1, 1]} : vector<16x64xf32> to vector<1x64xf32>
    %223 = arith.maximumf %221, %222 : vector<1x64xf32>
    %224 = vector.extract_strided_slice %218 {offsets = [2, 0], sizes = [1, 64], strides = [1, 1]} : vector<16x64xf32> to vector<1x64xf32>
    %225 = vector.extract_strided_slice %218 {offsets = [3, 0], sizes = [1, 64], strides = [1, 1]} : vector<16x64xf32> to vector<1x64xf32>
    %226 = arith.maximumf %224, %225 : vector<1x64xf32>
    %227 = vector.extract_strided_slice %218 {offsets = [4, 0], sizes = [1, 64], strides = [1, 1]} : vector<16x64xf32> to vector<1x64xf32>
    %228 = arith.maximumf %226, %227 : vector<1x64xf32>
    %229 = vector.extract_strided_slice %218 {offsets = [4, 0], sizes = [1, 64], strides = [1, 1]} : vector<16x64xf32> to vector<1x64xf32>
    %230 = vector.extract_strided_slice %218 {offsets = [5, 0], sizes = [1, 64], strides = [1, 1]} : vector<16x64xf32> to vector<1x64xf32>
    %231 = arith.maximumf %229, %230 : vector<1x64xf32>
    %232 = vector.extract_strided_slice %218 {offsets = [6, 0], sizes = [1, 64], strides = [1, 1]} : vector<16x64xf32> to vector<1x64xf32>
    %233 = arith.maximumf %231, %232 : vector<1x64xf32>
    %234 = vector.extract_strided_slice %218 {offsets = [6, 0], sizes = [1, 64], strides = [1, 1]} : vector<16x64xf32> to vector<1x64xf32>
    %235 = vector.extract_strided_slice %218 {offsets = [7, 0], sizes = [1, 64], strides = [1, 1]} : vector<16x64xf32> to vector<1x64xf32>
    %236 = arith.maximumf %234, %235 : vector<1x64xf32>
    %237 = vector.extract_strided_slice %218 {offsets = [8, 0], sizes = [1, 64], strides = [1, 1]} : vector<16x64xf32> to vector<1x64xf32>
    %238 = arith.maximumf %236, %237 : vector<1x64xf32>
    %239 = vector.extract_strided_slice %218 {offsets = [8, 0], sizes = [1, 64], strides = [1, 1]} : vector<16x64xf32> to vector<1x64xf32>
    %240 = vector.extract_strided_slice %218 {offsets = [9, 0], sizes = [1, 64], strides = [1, 1]} : vector<16x64xf32> to vector<1x64xf32>
    %241 = arith.maximumf %239, %240 : vector<1x64xf32>
    %242 = vector.extract_strided_slice %218 {offsets = [10, 0], sizes = [1, 64], strides = [1, 1]} : vector<16x64xf32> to vector<1x64xf32>
    %243 = arith.maximumf %241, %242 : vector<1x64xf32>
    %244 = vector.extract_strided_slice %218 {offsets = [10, 0], sizes = [1, 64], strides = [1, 1]} : vector<16x64xf32> to vector<1x64xf32>
    %245 = vector.extract_strided_slice %218 {offsets = [11, 0], sizes = [1, 64], strides = [1, 1]} : vector<16x64xf32> to vector<1x64xf32>
    %246 = arith.maximumf %244, %245 : vector<1x64xf32>
    %247 = vector.extract_strided_slice %218 {offsets = [12, 0], sizes = [1, 64], strides = [1, 1]} : vector<16x64xf32> to vector<1x64xf32>
    %248 = arith.maximumf %246, %247 : vector<1x64xf32>
    %249 = vector.extract_strided_slice %218 {offsets = [12, 0], sizes = [1, 64], strides = [1, 1]} : vector<16x64xf32> to vector<1x64xf32>
    %250 = vector.extract_strided_slice %218 {offsets = [13, 0], sizes = [1, 64], strides = [1, 1]} : vector<16x64xf32> to vector<1x64xf32>
    %251 = arith.maximumf %249, %250 : vector<1x64xf32>
    %252 = vector.extract_strided_slice %218 {offsets = [14, 0], sizes = [1, 64], strides = [1, 1]} : vector<16x64xf32> to vector<1x64xf32>
    %253 = arith.maximumf %251, %252 : vector<1x64xf32>
    %254 = tpu.concatenate %223, %228, %233, %238, %243, %248, %253 in 0 : vector<1x64xf32>, vector<1x64xf32>, vector<1x64xf32>, vector<1x64xf32>, vector<1x64xf32>, vector<1x64xf32>, vector<1x64xf32> -> vector<7x64xf32>
    %255 = vector.extract_strided_slice %8 {offsets = [192, 0], sizes = [16, 64], strides = [1, 1]} : vector<256x64xf32> to vector<16x64xf32>
    %256 = vector.extract_strided_slice %8 {offsets = [208, 0], sizes = [16, 64], strides = [1, 1]} : vector<256x64xf32> to vector<16x64xf32>
    %257 = arith.maximumf %255, %256 : vector<16x64xf32>
    %258 = vector.extract_strided_slice %8 {offsets = [224, 0], sizes = [16, 64], strides = [1, 1]} : vector<256x64xf32> to vector<16x64xf32>
    %259 = arith.maximumf %257, %258 : vector<16x64xf32>
    %260 = vector.extract_strided_slice %259 {offsets = [0, 0], sizes = [1, 64], strides = [1, 1]} : vector<16x64xf32> to vector<1x64xf32>
    %261 = vector.extract_strided_slice %259 {offsets = [1, 0], sizes = [1, 64], strides = [1, 1]} : vector<16x64xf32> to vector<1x64xf32>
    %262 = arith.maximumf %260, %261 : vector<1x64xf32>
    %263 = vector.extract_strided_slice %259 {offsets = [2, 0], sizes = [1, 64], strides = [1, 1]} : vector<16x64xf32> to vector<1x64xf32>
    %264 = arith.maximumf %262, %263 : vector<1x64xf32>
    %265 = vector.extract_strided_slice %259 {offsets = [2, 0], sizes = [1, 64], strides = [1, 1]} : vector<16x64xf32> to vector<1x64xf32>
    %266 = vector.extract_strided_slice %259 {offsets = [3, 0], sizes = [1, 64], strides = [1, 1]} : vector<16x64xf32> to vector<1x64xf32>
    %267 = arith.maximumf %265, %266 : vector<1x64xf32>
    %268 = vector.extract_strided_slice %259 {offsets = [4, 0], sizes = [1, 64], strides = [1, 1]} : vector<16x64xf32> to vector<1x64xf32>
    %269 = arith.maximumf %267, %268 : vector<1x64xf32>
    %270 = vector.extract_strided_slice %259 {offsets = [4, 0], sizes = [1, 64], strides = [1, 1]} : vector<16x64xf32> to vector<1x64xf32>
    %271 = vector.extract_strided_slice %259 {offsets = [5, 0], sizes = [1, 64], strides = [1, 1]} : vector<16x64xf32> to vector<1x64xf32>
    %272 = arith.maximumf %270, %271 : vector<1x64xf32>
    %273 = vector.extract_strided_slice %259 {offsets = [6, 0], sizes = [1, 64], strides = [1, 1]} : vector<16x64xf32> to vector<1x64xf32>
    %274 = arith.maximumf %272, %273 : vector<1x64xf32>
    %275 = vector.extract_strided_slice %259 {offsets = [6, 0], sizes = [1, 64], strides = [1, 1]} : vector<16x64xf32> to vector<1x64xf32>
    %276 = vector.extract_strided_slice %259 {offsets = [7, 0], sizes = [1, 64], strides = [1, 1]} : vector<16x64xf32> to vector<1x64xf32>
    %277 = arith.maximumf %275, %276 : vector<1x64xf32>
    %278 = vector.extract_strided_slice %259 {offsets = [8, 0], sizes = [1, 64], strides = [1, 1]} : vector<16x64xf32> to vector<1x64xf32>
    %279 = arith.maximumf %277, %278 : vector<1x64xf32>
    %280 = vector.extract_strided_slice %259 {offsets = [8, 0], sizes = [1, 64], strides = [1, 1]} : vector<16x64xf32> to vector<1x64xf32>
    %281 = vector.extract_strided_slice %259 {offsets = [9, 0], sizes = [1, 64], strides = [1, 1]} : vector<16x64xf32> to vector<1x64xf32>
    %282 = arith.maximumf %280, %281 : vector<1x64xf32>
    %283 = vector.extract_strided_slice %259 {offsets = [10, 0], sizes = [1, 64], strides = [1, 1]} : vector<16x64xf32> to vector<1x64xf32>
    %284 = arith.maximumf %282, %283 : vector<1x64xf32>
    %285 = vector.extract_strided_slice %259 {offsets = [10, 0], sizes = [1, 64], strides = [1, 1]} : vector<16x64xf32> to vector<1x64xf32>
    %286 = vector.extract_strided_slice %259 {offsets = [11, 0], sizes = [1, 64], strides = [1, 1]} : vector<16x64xf32> to vector<1x64xf32>
    %287 = arith.maximumf %285, %286 : vector<1x64xf32>
    %288 = vector.extract_strided_slice %259 {offsets = [12, 0], sizes = [1, 64], strides = [1, 1]} : vector<16x64xf32> to vector<1x64xf32>
    %289 = arith.maximumf %287, %288 : vector<1x64xf32>
    %290 = vector.extract_strided_slice %259 {offsets = [12, 0], sizes = [1, 64], strides = [1, 1]} : vector<16x64xf32> to vector<1x64xf32>
    %291 = vector.extract_strided_slice %259 {offsets = [13, 0], sizes = [1, 64], strides = [1, 1]} : vector<16x64xf32> to vector<1x64xf32>
    %292 = arith.maximumf %290, %291 : vector<1x64xf32>
    %293 = vector.extract_strided_slice %259 {offsets = [14, 0], sizes = [1, 64], strides = [1, 1]} : vector<16x64xf32> to vector<1x64xf32>
    %294 = arith.maximumf %292, %293 : vector<1x64xf32>
    %295 = tpu.concatenate %264, %269, %274, %279, %284, %289, %294 in 0 : vector<1x64xf32>, vector<1x64xf32>, vector<1x64xf32>, vector<1x64xf32>, vector<1x64xf32>, vector<1x64xf32>, vector<1x64xf32> -> vector<7x64xf32>
    %296 = tpu.concatenate %49, %90, %131, %172, %213, %254, %295 in 0 : vector<7x64xf32>, vector<7x64xf32>, vector<7x64xf32>, vector<7x64xf32>, vector<7x64xf32>, vector<7x64xf32>, vector<7x64xf32> -> vector<49x64xf32>
    %297 = vector.shape_cast %296 : vector<49x64xf32> to vector<1x49x64xf32>
    %cst_7 = arith.constant dense<0.000000e+00> : vector<1xf32>
    %298 = vector.multi_reduction <add>, %297, %cst_7 [1, 2] : vector<1x49x64xf32> to vector<1xf32>
    %299 = vector.shape_cast %298 : vector<1xf32> to vector<1x1x1xf32>
    %300 = vector.extract %299[0, 0, 0] : f32 from vector<1x1x1xf32>
    %301 = vector.broadcast %300 : f32 to vector<1x1xf32>
    %cst_8 = arith.constant 3.136000e+03 : f32
    %302 = vector.broadcast %cst_8 : f32 to vector<1x1xf32>
    %303 = arith.divf %301, %302 : vector<1x1xf32>
    %304 = vector.broadcast %303 : vector<1x1xf32> to vector<49x64xf32>
    %305 = arith.subf %296, %304 : vector<49x64xf32>
    %306 = arith.mulf %305, %305 : vector<49x64xf32>
    %307 = vector.shape_cast %306 : vector<49x64xf32> to vector<1x49x64xf32>
    %cst_9 = arith.constant dense<0.000000e+00> : vector<1xf32>
    %308 = vector.multi_reduction <add>, %307, %cst_9 [1, 2] : vector<1x49x64xf32> to vector<1xf32>
    %309 = vector.shape_cast %308 : vector<1xf32> to vector<1x1x1xf32>
    %310 = vector.extract %309[0, 0, 0] : f32 from vector<1x1x1xf32>
    %311 = vector.broadcast %310 : f32 to vector<1x1xf32>
    %cst_10 = arith.constant 3.136000e+03 : f32
    %312 = vector.broadcast %cst_10 : f32 to vector<1x1xf32>
    %313 = arith.divf %311, %312 : vector<1x1xf32>
    %cst_11 = arith.constant 9.99999974E-6 : f32
    %314 = vector.broadcast %cst_11 : f32 to vector<1x1xf32>
    %315 = arith.addf %313, %314 : vector<1x1xf32>
    %316 = math.rsqrt %315 : vector<1x1xf32>
    %317 = vector.broadcast %316 : vector<1x1xf32> to vector<49x64xf32>
    %318 = arith.mulf %305, %317 : vector<49x64xf32>
    %c0_12 = arith.constant 0 : index
    %c0_13 = arith.constant 0 : index
    %319 = vector.load %arg4[%c0_12, %c0_13] : memref<49x64xf32, #tpu.memory_space<vmem>>, vector<49x64xf32>
    %320 = arith.mulf %318, %319 : vector<49x64xf32>
    %c0_14 = arith.constant 0 : index
    %c0_15 = arith.constant 0 : index
    %321 = vector.load %arg5[%c0_14, %c0_15] : memref<49x64xf32, #tpu.memory_space<vmem>>, vector<49x64xf32>
    %322 = arith.addf %320, %321 : vector<49x64xf32>
    %c0_16 = arith.constant 0 : index
    %c0_17 = arith.constant 0 : index
    %323 = vector.load %arg18[%c0_16, %c0_17] : memref<49x1xi32, #tpu.memory_space<vmem>>, vector<49x1xi32>
    %c0_18 = arith.constant 0 : index
    %c0_19 = arith.constant 0 : index
    %324 = vector.load %arg19[%c0_18, %c0_19] : memref<9x1xi32, #tpu.memory_space<vmem>>, vector<9x1xi32>
    %c0_20 = arith.constant 0 : index
    %c0_21 = arith.constant 0 : index
    %325 = vector.load %arg6[%c0_20, %c0_21] : memref<64x96xf32, #tpu.memory_space<vmem>>, vector<64x96xf32>
    %cst_22 = arith.constant dense<0.000000e+00> : vector<49x96xf32>
    %326 = tpu.matmul %322, %325, %cst_22 {dimension_numbers = #tpu.dot_dimension_numbers<[1], [0], [0], [1], [0, 0, 1, 1], [], []>} : vector<49x64xf32>, vector<64x96xf32>, vector<49x96xf32> -> vector<49x96xf32>
    %c0_23 = arith.constant 0 : index
    %c0_24 = arith.constant 0 : index
    %327 = vector.load %arg7[%c0_23, %c0_24] : memref<1x96xf32, #tpu.memory_space<vmem>>, vector<1x96xf32>
    %328 = vector.broadcast %327 : vector<1x96xf32> to vector<49x96xf32>
    %329 = arith.addf %326, %328 : vector<49x96xf32>
    %cst_25 = arith.constant 0.000000e+00 : f32
    %330 = vector.broadcast %cst_25 : f32 to vector<49x96xf32>
    %331 = arith.maximumf %329, %330 : vector<49x96xf32>
    %cst_26 = arith.constant 0.000000e+00 : f32
    %332 = vector.broadcast %cst_26 : f32 to vector<49x208xf32>
    %cst_27 = arith.constant 0.000000e+00 : f32
    %333 = vector.broadcast %cst_27 : f32 to vector<8x96xf32>
    %334 = vector.extract_strided_slice %331 {offsets = [0, 0], sizes = [41, 96], strides = [1, 1]} : vector<49x96xf32> to vector<41x96xf32>
    %335 = tpu.concatenate %333, %334 in 0 : vector<8x96xf32>, vector<41x96xf32> -> vector<49x96xf32>
    %c0_i32 = arith.constant 0 : i32
    %336 = vector.broadcast %c0_i32 : i32 to vector<49x1xi32>
    %337 = arith.cmpi eq, %323, %336 : vector<49x1xi32>
    %cst_28 = arith.constant 0.000000e+00 : f32
    %338 = vector.shape_cast %337 : vector<49x1xi1> to vector<49x1xi1>
    %339 = vector.broadcast %338 : vector<49x1xi1> to vector<49x96xi1>
    %340 = vector.broadcast %cst_28 : f32 to vector<49x96xf32>
    %341 = arith.select %339, %340, %335 : vector<49x96xi1>, vector<49x96xf32>
    %c0_29 = arith.constant 0 : index
    %c0_30 = arith.constant 0 : index
    %c0_31 = arith.constant 0 : index
    %c0_32 = arith.constant 0 : index
    %342 = vector.load %arg8[%c0_29, %c0_30, %c0_31, %c0_32] : memref<3x3x96x208xf32, #tpu.memory_space<vmem>>, vector<1x1x96x208xf32>
    %343 = vector.shape_cast %342 : vector<1x1x96x208xf32> to vector<96x208xf32>
    %cst_33 = arith.constant dense<0.000000e+00> : vector<49x208xf32>
    %344 = tpu.matmul %341, %343, %cst_33 {dimension_numbers = #tpu.dot_dimension_numbers<[1], [0], [0], [1], [0, 0, 1, 1], [], []>} : vector<49x96xf32>, vector<96x208xf32>, vector<49x208xf32> -> vector<49x208xf32>
    %345 = arith.addf %332, %344 : vector<49x208xf32>
    %cst_34 = arith.constant 0.000000e+00 : f32
    %346 = vector.broadcast %cst_34 : f32 to vector<7x96xf32>
    %347 = vector.extract_strided_slice %331 {offsets = [0, 0], sizes = [42, 96], strides = [1, 1]} : vector<49x96xf32> to vector<42x96xf32>
    %348 = tpu.concatenate %346, %347 in 0 : vector<7x96xf32>, vector<42x96xf32> -> vector<49x96xf32>
    %c0_35 = arith.constant 0 : index
    %c1 = arith.constant 1 : index
    %c0_36 = arith.constant 0 : index
    %c0_37 = arith.constant 0 : index
    %349 = vector.load %arg8[%c0_35, %c1, %c0_36, %c0_37] : memref<3x3x96x208xf32, #tpu.memory_space<vmem>>, vector<1x1x96x208xf32>
    %350 = vector.shape_cast %349 : vector<1x1x96x208xf32> to vector<96x208xf32>
    %cst_38 = arith.constant dense<0.000000e+00> : vector<49x208xf32>
    %351 = tpu.matmul %348, %350, %cst_38 {dimension_numbers = #tpu.dot_dimension_numbers<[1], [0], [0], [1], [0, 0, 1, 1], [], []>} : vector<49x96xf32>, vector<96x208xf32>, vector<49x208xf32> -> vector<49x208xf32>
    %352 = arith.addf %345, %351 : vector<49x208xf32>
    %cst_39 = arith.constant 0.000000e+00 : f32
    %353 = vector.broadcast %cst_39 : f32 to vector<6x96xf32>
    %354 = vector.extract_strided_slice %331 {offsets = [0, 0], sizes = [43, 96], strides = [1, 1]} : vector<49x96xf32> to vector<43x96xf32>
    %355 = tpu.concatenate %353, %354 in 0 : vector<6x96xf32>, vector<43x96xf32> -> vector<49x96xf32>
    %c6_i32 = arith.constant 6 : i32
    %356 = vector.broadcast %c6_i32 : i32 to vector<49x1xi32>
    %357 = arith.cmpi eq, %323, %356 : vector<49x1xi32>
    %cst_40 = arith.constant 0.000000e+00 : f32
    %358 = vector.shape_cast %357 : vector<49x1xi1> to vector<49x1xi1>
    %359 = vector.broadcast %358 : vector<49x1xi1> to vector<49x96xi1>
    %360 = vector.broadcast %cst_40 : f32 to vector<49x96xf32>
    %361 = arith.select %359, %360, %355 : vector<49x96xi1>, vector<49x96xf32>
    %c0_41 = arith.constant 0 : index
    %c2 = arith.constant 2 : index
    %c0_42 = arith.constant 0 : index
    %c0_43 = arith.constant 0 : index
    %362 = vector.load %arg8[%c0_41, %c2, %c0_42, %c0_43] : memref<3x3x96x208xf32, #tpu.memory_space<vmem>>, vector<1x1x96x208xf32>
    %363 = vector.shape_cast %362 : vector<1x1x96x208xf32> to vector<96x208xf32>
    %cst_44 = arith.constant dense<0.000000e+00> : vector<49x208xf32>
    %364 = tpu.matmul %361, %363, %cst_44 {dimension_numbers = #tpu.dot_dimension_numbers<[1], [0], [0], [1], [0, 0, 1, 1], [], []>} : vector<49x96xf32>, vector<96x208xf32>, vector<49x208xf32> -> vector<49x208xf32>
    %365 = arith.addf %352, %364 : vector<49x208xf32>
    %cst_45 = arith.constant 0.000000e+00 : f32
    %366 = vector.broadcast %cst_45 : f32 to vector<1x96xf32>
    %367 = vector.extract_strided_slice %331 {offsets = [0, 0], sizes = [48, 96], strides = [1, 1]} : vector<49x96xf32> to vector<48x96xf32>
    %368 = tpu.concatenate %366, %367 in 0 : vector<1x96xf32>, vector<48x96xf32> -> vector<49x96xf32>
    %c0_i32_46 = arith.constant 0 : i32
    %369 = vector.broadcast %c0_i32_46 : i32 to vector<49x1xi32>
    %370 = arith.cmpi eq, %323, %369 : vector<49x1xi32>
    %cst_47 = arith.constant 0.000000e+00 : f32
    %371 = vector.shape_cast %370 : vector<49x1xi1> to vector<49x1xi1>
    %372 = vector.broadcast %371 : vector<49x1xi1> to vector<49x96xi1>
    %373 = vector.broadcast %cst_47 : f32 to vector<49x96xf32>
    %374 = arith.select %372, %373, %368 : vector<49x96xi1>, vector<49x96xf32>
    %c1_48 = arith.constant 1 : index
    %c0_49 = arith.constant 0 : index
    %c0_50 = arith.constant 0 : index
    %c0_51 = arith.constant 0 : index
    %375 = vector.load %arg8[%c1_48, %c0_49, %c0_50, %c0_51] : memref<3x3x96x208xf32, #tpu.memory_space<vmem>>, vector<1x1x96x208xf32>
    %376 = vector.shape_cast %375 : vector<1x1x96x208xf32> to vector<96x208xf32>
    %cst_52 = arith.constant dense<0.000000e+00> : vector<49x208xf32>
    %377 = tpu.matmul %374, %376, %cst_52 {dimension_numbers = #tpu.dot_dimension_numbers<[1], [0], [0], [1], [0, 0, 1, 1], [], []>} : vector<49x96xf32>, vector<96x208xf32>, vector<49x208xf32> -> vector<49x208xf32>
    %378 = arith.addf %365, %377 : vector<49x208xf32>
    %c1_53 = arith.constant 1 : index
    %c1_54 = arith.constant 1 : index
    %c0_55 = arith.constant 0 : index
    %c0_56 = arith.constant 0 : index
    %379 = vector.load %arg8[%c1_53, %c1_54, %c0_55, %c0_56] : memref<3x3x96x208xf32, #tpu.memory_space<vmem>>, vector<1x1x96x208xf32>
    %380 = vector.shape_cast %379 : vector<1x1x96x208xf32> to vector<96x208xf32>
    %cst_57 = arith.constant dense<0.000000e+00> : vector<49x208xf32>
    %381 = tpu.matmul %331, %380, %cst_57 {dimension_numbers = #tpu.dot_dimension_numbers<[1], [0], [0], [1], [0, 0, 1, 1], [], []>} : vector<49x96xf32>, vector<96x208xf32>, vector<49x208xf32> -> vector<49x208xf32>
    %382 = arith.addf %378, %381 : vector<49x208xf32>
    %cst_58 = arith.constant 0.000000e+00 : f32
    %383 = vector.broadcast %cst_58 : f32 to vector<1x96xf32>
    %384 = vector.extract_strided_slice %331 {offsets = [1, 0], sizes = [48, 96], strides = [1, 1]} : vector<49x96xf32> to vector<48x96xf32>
    %385 = tpu.concatenate %384, %383 in 0 : vector<48x96xf32>, vector<1x96xf32> -> vector<49x96xf32>
    %c6_i32_59 = arith.constant 6 : i32
    %386 = vector.broadcast %c6_i32_59 : i32 to vector<49x1xi32>
    %387 = arith.cmpi eq, %323, %386 : vector<49x1xi32>
    %cst_60 = arith.constant 0.000000e+00 : f32
    %388 = vector.shape_cast %387 : vector<49x1xi1> to vector<49x1xi1>
    %389 = vector.broadcast %388 : vector<49x1xi1> to vector<49x96xi1>
    %390 = vector.broadcast %cst_60 : f32 to vector<49x96xf32>
    %391 = arith.select %389, %390, %385 : vector<49x96xi1>, vector<49x96xf32>
    %c1_61 = arith.constant 1 : index
    %c2_62 = arith.constant 2 : index
    %c0_63 = arith.constant 0 : index
    %c0_64 = arith.constant 0 : index
    %392 = vector.load %arg8[%c1_61, %c2_62, %c0_63, %c0_64] : memref<3x3x96x208xf32, #tpu.memory_space<vmem>>, vector<1x1x96x208xf32>
    %393 = vector.shape_cast %392 : vector<1x1x96x208xf32> to vector<96x208xf32>
    %cst_65 = arith.constant dense<0.000000e+00> : vector<49x208xf32>
    %394 = tpu.matmul %391, %393, %cst_65 {dimension_numbers = #tpu.dot_dimension_numbers<[1], [0], [0], [1], [0, 0, 1, 1], [], []>} : vector<49x96xf32>, vector<96x208xf32>, vector<49x208xf32> -> vector<49x208xf32>
    %395 = arith.addf %382, %394 : vector<49x208xf32>
    %cst_66 = arith.constant 0.000000e+00 : f32
    %396 = vector.broadcast %cst_66 : f32 to vector<6x96xf32>
    %397 = vector.extract_strided_slice %331 {offsets = [6, 0], sizes = [43, 96], strides = [1, 1]} : vector<49x96xf32> to vector<43x96xf32>
    %398 = tpu.concatenate %397, %396 in 0 : vector<43x96xf32>, vector<6x96xf32> -> vector<49x96xf32>
    %c0_i32_67 = arith.constant 0 : i32
    %399 = vector.broadcast %c0_i32_67 : i32 to vector<49x1xi32>
    %400 = arith.cmpi eq, %323, %399 : vector<49x1xi32>
    %cst_68 = arith.constant 0.000000e+00 : f32
    %401 = vector.shape_cast %400 : vector<49x1xi1> to vector<49x1xi1>
    %402 = vector.broadcast %401 : vector<49x1xi1> to vector<49x96xi1>
    %403 = vector.broadcast %cst_68 : f32 to vector<49x96xf32>
    %404 = arith.select %402, %403, %398 : vector<49x96xi1>, vector<49x96xf32>
    %c2_69 = arith.constant 2 : index
    %c0_70 = arith.constant 0 : index
    %c0_71 = arith.constant 0 : index
    %c0_72 = arith.constant 0 : index
    %405 = vector.load %arg8[%c2_69, %c0_70, %c0_71, %c0_72] : memref<3x3x96x208xf32, #tpu.memory_space<vmem>>, vector<1x1x96x208xf32>
    %406 = vector.shape_cast %405 : vector<1x1x96x208xf32> to vector<96x208xf32>
    %cst_73 = arith.constant dense<0.000000e+00> : vector<49x208xf32>
    %407 = tpu.matmul %404, %406, %cst_73 {dimension_numbers = #tpu.dot_dimension_numbers<[1], [0], [0], [1], [0, 0, 1, 1], [], []>} : vector<49x96xf32>, vector<96x208xf32>, vector<49x208xf32> -> vector<49x208xf32>
    %408 = arith.addf %395, %407 : vector<49x208xf32>
    %cst_74 = arith.constant 0.000000e+00 : f32
    %409 = vector.broadcast %cst_74 : f32 to vector<7x96xf32>
    %410 = vector.extract_strided_slice %331 {offsets = [7, 0], sizes = [42, 96], strides = [1, 1]} : vector<49x96xf32> to vector<42x96xf32>
    %411 = tpu.concatenate %410, %409 in 0 : vector<42x96xf32>, vector<7x96xf32> -> vector<49x96xf32>
    %c2_75 = arith.constant 2 : index
    %c1_76 = arith.constant 1 : index
    %c0_77 = arith.constant 0 : index
    %c0_78 = arith.constant 0 : index
    %412 = vector.load %arg8[%c2_75, %c1_76, %c0_77, %c0_78] : memref<3x3x96x208xf32, #tpu.memory_space<vmem>>, vector<1x1x96x208xf32>
    %413 = vector.shape_cast %412 : vector<1x1x96x208xf32> to vector<96x208xf32>
    %cst_79 = arith.constant dense<0.000000e+00> : vector<49x208xf32>
    %414 = tpu.matmul %411, %413, %cst_79 {dimension_numbers = #tpu.dot_dimension_numbers<[1], [0], [0], [1], [0, 0, 1, 1], [], []>} : vector<49x96xf32>, vector<96x208xf32>, vector<49x208xf32> -> vector<49x208xf32>
    %415 = arith.addf %408, %414 : vector<49x208xf32>
    %cst_80 = arith.constant 0.000000e+00 : f32
    %416 = vector.broadcast %cst_80 : f32 to vector<8x96xf32>
    %417 = vector.extract_strided_slice %331 {offsets = [8, 0], sizes = [41, 96], strides = [1, 1]} : vector<49x96xf32> to vector<41x96xf32>
    %418 = tpu.concatenate %417, %416 in 0 : vector<41x96xf32>, vector<8x96xf32> -> vector<49x96xf32>
    %c6_i32_81 = arith.constant 6 : i32
    %419 = vector.broadcast %c6_i32_81 : i32 to vector<49x1xi32>
    %420 = arith.cmpi eq, %323, %419 : vector<49x1xi32>
    %cst_82 = arith.constant 0.000000e+00 : f32
    %421 = vector.shape_cast %420 : vector<49x1xi1> to vector<49x1xi1>
    %422 = vector.broadcast %421 : vector<49x1xi1> to vector<49x96xi1>
    %423 = vector.broadcast %cst_82 : f32 to vector<49x96xf32>
    %424 = arith.select %422, %423, %418 : vector<49x96xi1>, vector<49x96xf32>
    %c2_83 = arith.constant 2 : index
    %c2_84 = arith.constant 2 : index
    %c0_85 = arith.constant 0 : index
    %c0_86 = arith.constant 0 : index
    %425 = vector.load %arg8[%c2_83, %c2_84, %c0_85, %c0_86] : memref<3x3x96x208xf32, #tpu.memory_space<vmem>>, vector<1x1x96x208xf32>
    %426 = vector.shape_cast %425 : vector<1x1x96x208xf32> to vector<96x208xf32>
    %cst_87 = arith.constant dense<0.000000e+00> : vector<49x208xf32>
    %427 = tpu.matmul %424, %426, %cst_87 {dimension_numbers = #tpu.dot_dimension_numbers<[1], [0], [0], [1], [0, 0, 1, 1], [], []>} : vector<49x96xf32>, vector<96x208xf32>, vector<49x208xf32> -> vector<49x208xf32>
    %428 = arith.addf %415, %427 : vector<49x208xf32>
    %c0_88 = arith.constant 0 : index
    %c0_89 = arith.constant 0 : index
    %429 = vector.load %arg9[%c0_88, %c0_89] : memref<1x208xf32, #tpu.memory_space<vmem>>, vector<1x208xf32>
    %430 = vector.broadcast %429 : vector<1x208xf32> to vector<49x208xf32>
    %431 = arith.addf %428, %430 : vector<49x208xf32>
    %cst_90 = arith.constant 0.000000e+00 : f32
    %432 = vector.broadcast %cst_90 : f32 to vector<49x208xf32>
    %433 = arith.maximumf %431, %432 : vector<49x208xf32>
    %cst_91 = arith.constant -3.000000e+38 : f32
    %434 = vector.broadcast %cst_91 : f32 to vector<8x64xf32>
    %435 = vector.extract_strided_slice %322 {offsets = [0, 0], sizes = [41, 64], strides = [1, 1]} : vector<49x64xf32> to vector<41x64xf32>
    %436 = tpu.concatenate %434, %435 in 0 : vector<8x64xf32>, vector<41x64xf32> -> vector<49x64xf32>
    %c0_i32_92 = arith.constant 0 : i32
    %437 = vector.broadcast %c0_i32_92 : i32 to vector<49x1xi32>
    %438 = arith.cmpi eq, %323, %437 : vector<49x1xi32>
    %cst_93 = arith.constant -3.000000e+38 : f32
    %439 = vector.shape_cast %438 : vector<49x1xi1> to vector<49x1xi1>
    %440 = vector.broadcast %439 : vector<49x1xi1> to vector<49x64xi1>
    %441 = vector.broadcast %cst_93 : f32 to vector<49x64xf32>
    %442 = arith.select %440, %441, %436 : vector<49x64xi1>, vector<49x64xf32>
    %443 = arith.maximumf %322, %442 : vector<49x64xf32>
    %cst_94 = arith.constant -3.000000e+38 : f32
    %444 = vector.broadcast %cst_94 : f32 to vector<7x64xf32>
    %445 = vector.extract_strided_slice %322 {offsets = [0, 0], sizes = [42, 64], strides = [1, 1]} : vector<49x64xf32> to vector<42x64xf32>
    %446 = tpu.concatenate %444, %445 in 0 : vector<7x64xf32>, vector<42x64xf32> -> vector<49x64xf32>
    %447 = arith.maximumf %443, %446 : vector<49x64xf32>
    %cst_95 = arith.constant -3.000000e+38 : f32
    %448 = vector.broadcast %cst_95 : f32 to vector<6x64xf32>
    %449 = vector.extract_strided_slice %322 {offsets = [0, 0], sizes = [43, 64], strides = [1, 1]} : vector<49x64xf32> to vector<43x64xf32>
    %450 = tpu.concatenate %448, %449 in 0 : vector<6x64xf32>, vector<43x64xf32> -> vector<49x64xf32>
    %c6_i32_96 = arith.constant 6 : i32
    %451 = vector.broadcast %c6_i32_96 : i32 to vector<49x1xi32>
    %452 = arith.cmpi eq, %323, %451 : vector<49x1xi32>
    %cst_97 = arith.constant -3.000000e+38 : f32
    %453 = vector.shape_cast %452 : vector<49x1xi1> to vector<49x1xi1>
    %454 = vector.broadcast %453 : vector<49x1xi1> to vector<49x64xi1>
    %455 = vector.broadcast %cst_97 : f32 to vector<49x64xf32>
    %456 = arith.select %454, %455, %450 : vector<49x64xi1>, vector<49x64xf32>
    %457 = arith.maximumf %447, %456 : vector<49x64xf32>
    %cst_98 = arith.constant -3.000000e+38 : f32
    %458 = vector.broadcast %cst_98 : f32 to vector<1x64xf32>
    %459 = vector.extract_strided_slice %322 {offsets = [0, 0], sizes = [48, 64], strides = [1, 1]} : vector<49x64xf32> to vector<48x64xf32>
    %460 = tpu.concatenate %458, %459 in 0 : vector<1x64xf32>, vector<48x64xf32> -> vector<49x64xf32>
    %c0_i32_99 = arith.constant 0 : i32
    %461 = vector.broadcast %c0_i32_99 : i32 to vector<49x1xi32>
    %462 = arith.cmpi eq, %323, %461 : vector<49x1xi32>
    %cst_100 = arith.constant -3.000000e+38 : f32
    %463 = vector.shape_cast %462 : vector<49x1xi1> to vector<49x1xi1>
    %464 = vector.broadcast %463 : vector<49x1xi1> to vector<49x64xi1>
    %465 = vector.broadcast %cst_100 : f32 to vector<49x64xf32>
    %466 = arith.select %464, %465, %460 : vector<49x64xi1>, vector<49x64xf32>
    %467 = arith.maximumf %457, %466 : vector<49x64xf32>
    %cst_101 = arith.constant -3.000000e+38 : f32
    %468 = vector.broadcast %cst_101 : f32 to vector<1x64xf32>
    %469 = vector.extract_strided_slice %322 {offsets = [1, 0], sizes = [48, 64], strides = [1, 1]} : vector<49x64xf32> to vector<48x64xf32>
    %470 = tpu.concatenate %469, %468 in 0 : vector<48x64xf32>, vector<1x64xf32> -> vector<49x64xf32>
    %c6_i32_102 = arith.constant 6 : i32
    %471 = vector.broadcast %c6_i32_102 : i32 to vector<49x1xi32>
    %472 = arith.cmpi eq, %323, %471 : vector<49x1xi32>
    %cst_103 = arith.constant -3.000000e+38 : f32
    %473 = vector.shape_cast %472 : vector<49x1xi1> to vector<49x1xi1>
    %474 = vector.broadcast %473 : vector<49x1xi1> to vector<49x64xi1>
    %475 = vector.broadcast %cst_103 : f32 to vector<49x64xf32>
    %476 = arith.select %474, %475, %470 : vector<49x64xi1>, vector<49x64xf32>
    %477 = arith.maximumf %467, %476 : vector<49x64xf32>
    %cst_104 = arith.constant -3.000000e+38 : f32
    %478 = vector.broadcast %cst_104 : f32 to vector<6x64xf32>
    %479 = vector.extract_strided_slice %322 {offsets = [6, 0], sizes = [43, 64], strides = [1, 1]} : vector<49x64xf32> to vector<43x64xf32>
    %480 = tpu.concatenate %479, %478 in 0 : vector<43x64xf32>, vector<6x64xf32> -> vector<49x64xf32>
    %c0_i32_105 = arith.constant 0 : i32
    %481 = vector.broadcast %c0_i32_105 : i32 to vector<49x1xi32>
    %482 = arith.cmpi eq, %323, %481 : vector<49x1xi32>
    %cst_106 = arith.constant -3.000000e+38 : f32
    %483 = vector.shape_cast %482 : vector<49x1xi1> to vector<49x1xi1>
    %484 = vector.broadcast %483 : vector<49x1xi1> to vector<49x64xi1>
    %485 = vector.broadcast %cst_106 : f32 to vector<49x64xf32>
    %486 = arith.select %484, %485, %480 : vector<49x64xi1>, vector<49x64xf32>
    %487 = arith.maximumf %477, %486 : vector<49x64xf32>
    %cst_107 = arith.constant -3.000000e+38 : f32
    %488 = vector.broadcast %cst_107 : f32 to vector<7x64xf32>
    %489 = vector.extract_strided_slice %322 {offsets = [7, 0], sizes = [42, 64], strides = [1, 1]} : vector<49x64xf32> to vector<42x64xf32>
    %490 = tpu.concatenate %489, %488 in 0 : vector<42x64xf32>, vector<7x64xf32> -> vector<49x64xf32>
    %491 = arith.maximumf %487, %490 : vector<49x64xf32>
    %cst_108 = arith.constant -3.000000e+38 : f32
    %492 = vector.broadcast %cst_108 : f32 to vector<8x64xf32>
    %493 = vector.extract_strided_slice %322 {offsets = [8, 0], sizes = [41, 64], strides = [1, 1]} : vector<49x64xf32> to vector<41x64xf32>
    %494 = tpu.concatenate %493, %492 in 0 : vector<41x64xf32>, vector<8x64xf32> -> vector<49x64xf32>
    %c6_i32_109 = arith.constant 6 : i32
    %495 = vector.broadcast %c6_i32_109 : i32 to vector<49x1xi32>
    %496 = arith.cmpi eq, %323, %495 : vector<49x1xi32>
    %cst_110 = arith.constant -3.000000e+38 : f32
    %497 = vector.shape_cast %496 : vector<49x1xi1> to vector<49x1xi1>
    %498 = vector.broadcast %497 : vector<49x1xi1> to vector<49x64xi1>
    %499 = vector.broadcast %cst_110 : f32 to vector<49x64xf32>
    %500 = arith.select %498, %499, %494 : vector<49x64xi1>, vector<49x64xf32>
    %501 = arith.maximumf %491, %500 : vector<49x64xf32>
    %c0_111 = arith.constant 0 : index
    %c0_112 = arith.constant 0 : index
    %502 = vector.load %arg10[%c0_111, %c0_112] : memref<64x64xf32, #tpu.memory_space<vmem>>, vector<64x64xf32>
    %cst_113 = arith.constant dense<0.000000e+00> : vector<49x64xf32>
    %503 = tpu.matmul %501, %502, %cst_113 {dimension_numbers = #tpu.dot_dimension_numbers<[1], [0], [0], [1], [0, 0, 1, 1], [], []>} : vector<49x64xf32>, vector<64x64xf32>, vector<49x64xf32> -> vector<49x64xf32>
    %c0_114 = arith.constant 0 : index
    %c0_115 = arith.constant 0 : index
    %504 = vector.load %arg11[%c0_114, %c0_115] : memref<1x64xf32, #tpu.memory_space<vmem>>, vector<1x64xf32>
    %505 = vector.broadcast %504 : vector<1x64xf32> to vector<49x64xf32>
    %506 = arith.addf %503, %505 : vector<49x64xf32>
    %cst_116 = arith.constant 0.000000e+00 : f32
    %507 = vector.broadcast %cst_116 : f32 to vector<49x64xf32>
    %508 = arith.maximumf %506, %507 : vector<49x64xf32>
    %509 = tpu.concatenate %433, %508 in 1 : vector<49x208xf32>, vector<49x64xf32> -> vector<49x272xf32>
    %510 = vector.extract_strided_slice %509 {offsets = [0, 0], sizes = [7, 272], strides = [1, 1]} : vector<49x272xf32> to vector<7x272xf32>
    %511 = vector.extract_strided_slice %509 {offsets = [7, 0], sizes = [7, 272], strides = [1, 1]} : vector<49x272xf32> to vector<7x272xf32>
    %512 = arith.maximumf %510, %511 : vector<7x272xf32>
    %513 = vector.extract_strided_slice %509 {offsets = [14, 0], sizes = [7, 272], strides = [1, 1]} : vector<49x272xf32> to vector<7x272xf32>
    %514 = arith.maximumf %512, %513 : vector<7x272xf32>
    %515 = vector.extract_strided_slice %514 {offsets = [0, 0], sizes = [1, 272], strides = [1, 1]} : vector<7x272xf32> to vector<1x272xf32>
    %516 = vector.extract_strided_slice %514 {offsets = [1, 0], sizes = [1, 272], strides = [1, 1]} : vector<7x272xf32> to vector<1x272xf32>
    %517 = arith.maximumf %515, %516 : vector<1x272xf32>
    %518 = vector.extract_strided_slice %514 {offsets = [2, 0], sizes = [1, 272], strides = [1, 1]} : vector<7x272xf32> to vector<1x272xf32>
    %519 = arith.maximumf %517, %518 : vector<1x272xf32>
    %520 = vector.extract_strided_slice %514 {offsets = [2, 0], sizes = [1, 272], strides = [1, 1]} : vector<7x272xf32> to vector<1x272xf32>
    %521 = vector.extract_strided_slice %514 {offsets = [3, 0], sizes = [1, 272], strides = [1, 1]} : vector<7x272xf32> to vector<1x272xf32>
    %522 = arith.maximumf %520, %521 : vector<1x272xf32>
    %523 = vector.extract_strided_slice %514 {offsets = [4, 0], sizes = [1, 272], strides = [1, 1]} : vector<7x272xf32> to vector<1x272xf32>
    %524 = arith.maximumf %522, %523 : vector<1x272xf32>
    %525 = vector.extract_strided_slice %514 {offsets = [4, 0], sizes = [1, 272], strides = [1, 1]} : vector<7x272xf32> to vector<1x272xf32>
    %526 = vector.extract_strided_slice %514 {offsets = [5, 0], sizes = [1, 272], strides = [1, 1]} : vector<7x272xf32> to vector<1x272xf32>
    %527 = arith.maximumf %525, %526 : vector<1x272xf32>
    %528 = vector.extract_strided_slice %514 {offsets = [6, 0], sizes = [1, 272], strides = [1, 1]} : vector<7x272xf32> to vector<1x272xf32>
    %529 = arith.maximumf %527, %528 : vector<1x272xf32>
    %530 = tpu.concatenate %519, %524, %529 in 0 : vector<1x272xf32>, vector<1x272xf32>, vector<1x272xf32> -> vector<3x272xf32>
    %531 = vector.extract_strided_slice %509 {offsets = [14, 0], sizes = [7, 272], strides = [1, 1]} : vector<49x272xf32> to vector<7x272xf32>
    %532 = vector.extract_strided_slice %509 {offsets = [21, 0], sizes = [7, 272], strides = [1, 1]} : vector<49x272xf32> to vector<7x272xf32>
    %533 = arith.maximumf %531, %532 : vector<7x272xf32>
    %534 = vector.extract_strided_slice %509 {offsets = [28, 0], sizes = [7, 272], strides = [1, 1]} : vector<49x272xf32> to vector<7x272xf32>
    %535 = arith.maximumf %533, %534 : vector<7x272xf32>
    %536 = vector.extract_strided_slice %535 {offsets = [0, 0], sizes = [1, 272], strides = [1, 1]} : vector<7x272xf32> to vector<1x272xf32>
    %537 = vector.extract_strided_slice %535 {offsets = [1, 0], sizes = [1, 272], strides = [1, 1]} : vector<7x272xf32> to vector<1x272xf32>
    %538 = arith.maximumf %536, %537 : vector<1x272xf32>
    %539 = vector.extract_strided_slice %535 {offsets = [2, 0], sizes = [1, 272], strides = [1, 1]} : vector<7x272xf32> to vector<1x272xf32>
    %540 = arith.maximumf %538, %539 : vector<1x272xf32>
    %541 = vector.extract_strided_slice %535 {offsets = [2, 0], sizes = [1, 272], strides = [1, 1]} : vector<7x272xf32> to vector<1x272xf32>
    %542 = vector.extract_strided_slice %535 {offsets = [3, 0], sizes = [1, 272], strides = [1, 1]} : vector<7x272xf32> to vector<1x272xf32>
    %543 = arith.maximumf %541, %542 : vector<1x272xf32>
    %544 = vector.extract_strided_slice %535 {offsets = [4, 0], sizes = [1, 272], strides = [1, 1]} : vector<7x272xf32> to vector<1x272xf32>
    %545 = arith.maximumf %543, %544 : vector<1x272xf32>
    %546 = vector.extract_strided_slice %535 {offsets = [4, 0], sizes = [1, 272], strides = [1, 1]} : vector<7x272xf32> to vector<1x272xf32>
    %547 = vector.extract_strided_slice %535 {offsets = [5, 0], sizes = [1, 272], strides = [1, 1]} : vector<7x272xf32> to vector<1x272xf32>
    %548 = arith.maximumf %546, %547 : vector<1x272xf32>
    %549 = vector.extract_strided_slice %535 {offsets = [6, 0], sizes = [1, 272], strides = [1, 1]} : vector<7x272xf32> to vector<1x272xf32>
    %550 = arith.maximumf %548, %549 : vector<1x272xf32>
    %551 = tpu.concatenate %540, %545, %550 in 0 : vector<1x272xf32>, vector<1x272xf32>, vector<1x272xf32> -> vector<3x272xf32>
    %552 = vector.extract_strided_slice %509 {offsets = [28, 0], sizes = [7, 272], strides = [1, 1]} : vector<49x272xf32> to vector<7x272xf32>
    %553 = vector.extract_strided_slice %509 {offsets = [35, 0], sizes = [7, 272], strides = [1, 1]} : vector<49x272xf32> to vector<7x272xf32>
    %554 = arith.maximumf %552, %553 : vector<7x272xf32>
    %555 = vector.extract_strided_slice %509 {offsets = [42, 0], sizes = [7, 272], strides = [1, 1]} : vector<49x272xf32> to vector<7x272xf32>
    %556 = arith.maximumf %554, %555 : vector<7x272xf32>
    %557 = vector.extract_strided_slice %556 {offsets = [0, 0], sizes = [1, 272], strides = [1, 1]} : vector<7x272xf32> to vector<1x272xf32>
    %558 = vector.extract_strided_slice %556 {offsets = [1, 0], sizes = [1, 272], strides = [1, 1]} : vector<7x272xf32> to vector<1x272xf32>
    %559 = arith.maximumf %557, %558 : vector<1x272xf32>
    %560 = vector.extract_strided_slice %556 {offsets = [2, 0], sizes = [1, 272], strides = [1, 1]} : vector<7x272xf32> to vector<1x272xf32>
    %561 = arith.maximumf %559, %560 : vector<1x272xf32>
    %562 = vector.extract_strided_slice %556 {offsets = [2, 0], sizes = [1, 272], strides = [1, 1]} : vector<7x272xf32> to vector<1x272xf32>
    %563 = vector.extract_strided_slice %556 {offsets = [3, 0], sizes = [1, 272], strides = [1, 1]} : vector<7x272xf32> to vector<1x272xf32>
    %564 = arith.maximumf %562, %563 : vector<1x272xf32>
    %565 = vector.extract_strided_slice %556 {offsets = [4, 0], sizes = [1, 272], strides = [1, 1]} : vector<7x272xf32> to vector<1x272xf32>
    %566 = arith.maximumf %564, %565 : vector<1x272xf32>
    %567 = vector.extract_strided_slice %556 {offsets = [4, 0], sizes = [1, 272], strides = [1, 1]} : vector<7x272xf32> to vector<1x272xf32>
    %568 = vector.extract_strided_slice %556 {offsets = [5, 0], sizes = [1, 272], strides = [1, 1]} : vector<7x272xf32> to vector<1x272xf32>
    %569 = arith.maximumf %567, %568 : vector<1x272xf32>
    %570 = vector.extract_strided_slice %556 {offsets = [6, 0], sizes = [1, 272], strides = [1, 1]} : vector<7x272xf32> to vector<1x272xf32>
    %571 = arith.maximumf %569, %570 : vector<1x272xf32>
    %572 = tpu.concatenate %561, %566, %571 in 0 : vector<1x272xf32>, vector<1x272xf32>, vector<1x272xf32> -> vector<3x272xf32>
    %573 = tpu.concatenate %530, %551, %572 in 0 : vector<3x272xf32>, vector<3x272xf32>, vector<3x272xf32> -> vector<9x272xf32>
    %c0_117 = arith.constant 0 : index
    %c0_118 = arith.constant 0 : index
    %574 = vector.load %arg12[%c0_117, %c0_118] : memref<272x96xf32, #tpu.memory_space<vmem>>, vector<272x96xf32>
    %cst_119 = arith.constant dense<0.000000e+00> : vector<9x96xf32>
    %575 = tpu.matmul %573, %574, %cst_119 {dimension_numbers = #tpu.dot_dimension_numbers<[1], [0], [0], [1], [0, 0, 1, 1], [], []>} : vector<9x272xf32>, vector<272x96xf32>, vector<9x96xf32> -> vector<9x96xf32>
    %c0_120 = arith.constant 0 : index
    %c0_121 = arith.constant 0 : index
    %576 = vector.load %arg13[%c0_120, %c0_121] : memref<1x96xf32, #tpu.memory_space<vmem>>, vector<1x96xf32>
    %577 = vector.broadcast %576 : vector<1x96xf32> to vector<9x96xf32>
    %578 = arith.addf %575, %577 : vector<9x96xf32>
    %cst_122 = arith.constant 0.000000e+00 : f32
    %579 = vector.broadcast %cst_122 : f32 to vector<9x96xf32>
    %580 = arith.maximumf %578, %579 : vector<9x96xf32>
    %cst_123 = arith.constant 0.000000e+00 : f32
    %581 = vector.broadcast %cst_123 : f32 to vector<9x208xf32>
    %cst_124 = arith.constant 0.000000e+00 : f32
    %582 = vector.broadcast %cst_124 : f32 to vector<4x96xf32>
    %583 = vector.extract_strided_slice %580 {offsets = [0, 0], sizes = [5, 96], strides = [1, 1]} : vector<9x96xf32> to vector<5x96xf32>
    %584 = tpu.concatenate %582, %583 in 0 : vector<4x96xf32>, vector<5x96xf32> -> vector<9x96xf32>
    %c0_i32_125 = arith.constant 0 : i32
    %585 = vector.broadcast %c0_i32_125 : i32 to vector<9x1xi32>
    %586 = arith.cmpi eq, %324, %585 : vector<9x1xi32>
    %cst_126 = arith.constant 0.000000e+00 : f32
    %587 = vector.shape_cast %586 : vector<9x1xi1> to vector<9x1xi1>
    %588 = vector.broadcast %587 : vector<9x1xi1> to vector<9x96xi1>
    %589 = vector.broadcast %cst_126 : f32 to vector<9x96xf32>
    %590 = arith.select %588, %589, %584 : vector<9x96xi1>, vector<9x96xf32>
    %c0_127 = arith.constant 0 : index
    %c0_128 = arith.constant 0 : index
    %c0_129 = arith.constant 0 : index
    %c0_130 = arith.constant 0 : index
    %591 = vector.load %arg14[%c0_127, %c0_128, %c0_129, %c0_130] : memref<3x3x96x208xf32, #tpu.memory_space<vmem>>, vector<1x1x96x208xf32>
    %592 = vector.shape_cast %591 : vector<1x1x96x208xf32> to vector<96x208xf32>
    %cst_131 = arith.constant dense<0.000000e+00> : vector<9x208xf32>
    %593 = tpu.matmul %590, %592, %cst_131 {dimension_numbers = #tpu.dot_dimension_numbers<[1], [0], [0], [1], [0, 0, 1, 1], [], []>} : vector<9x96xf32>, vector<96x208xf32>, vector<9x208xf32> -> vector<9x208xf32>
    %594 = arith.addf %581, %593 : vector<9x208xf32>
    %cst_132 = arith.constant 0.000000e+00 : f32
    %595 = vector.broadcast %cst_132 : f32 to vector<3x96xf32>
    %596 = vector.extract_strided_slice %580 {offsets = [0, 0], sizes = [6, 96], strides = [1, 1]} : vector<9x96xf32> to vector<6x96xf32>
    %597 = tpu.concatenate %595, %596 in 0 : vector<3x96xf32>, vector<6x96xf32> -> vector<9x96xf32>
    %c0_133 = arith.constant 0 : index
    %c1_134 = arith.constant 1 : index
    %c0_135 = arith.constant 0 : index
    %c0_136 = arith.constant 0 : index
    %598 = vector.load %arg14[%c0_133, %c1_134, %c0_135, %c0_136] : memref<3x3x96x208xf32, #tpu.memory_space<vmem>>, vector<1x1x96x208xf32>
    %599 = vector.shape_cast %598 : vector<1x1x96x208xf32> to vector<96x208xf32>
    %cst_137 = arith.constant dense<0.000000e+00> : vector<9x208xf32>
    %600 = tpu.matmul %597, %599, %cst_137 {dimension_numbers = #tpu.dot_dimension_numbers<[1], [0], [0], [1], [0, 0, 1, 1], [], []>} : vector<9x96xf32>, vector<96x208xf32>, vector<9x208xf32> -> vector<9x208xf32>
    %601 = arith.addf %594, %600 : vector<9x208xf32>
    %cst_138 = arith.constant 0.000000e+00 : f32
    %602 = vector.broadcast %cst_138 : f32 to vector<2x96xf32>
    %603 = vector.extract_strided_slice %580 {offsets = [0, 0], sizes = [7, 96], strides = [1, 1]} : vector<9x96xf32> to vector<7x96xf32>
    %604 = tpu.concatenate %602, %603 in 0 : vector<2x96xf32>, vector<7x96xf32> -> vector<9x96xf32>
    %c2_i32 = arith.constant 2 : i32
    %605 = vector.broadcast %c2_i32 : i32 to vector<9x1xi32>
    %606 = arith.cmpi eq, %324, %605 : vector<9x1xi32>
    %cst_139 = arith.constant 0.000000e+00 : f32
    %607 = vector.shape_cast %606 : vector<9x1xi1> to vector<9x1xi1>
    %608 = vector.broadcast %607 : vector<9x1xi1> to vector<9x96xi1>
    %609 = vector.broadcast %cst_139 : f32 to vector<9x96xf32>
    %610 = arith.select %608, %609, %604 : vector<9x96xi1>, vector<9x96xf32>
    %c0_140 = arith.constant 0 : index
    %c2_141 = arith.constant 2 : index
    %c0_142 = arith.constant 0 : index
    %c0_143 = arith.constant 0 : index
    %611 = vector.load %arg14[%c0_140, %c2_141, %c0_142, %c0_143] : memref<3x3x96x208xf32, #tpu.memory_space<vmem>>, vector<1x1x96x208xf32>
    %612 = vector.shape_cast %611 : vector<1x1x96x208xf32> to vector<96x208xf32>
    %cst_144 = arith.constant dense<0.000000e+00> : vector<9x208xf32>
    %613 = tpu.matmul %610, %612, %cst_144 {dimension_numbers = #tpu.dot_dimension_numbers<[1], [0], [0], [1], [0, 0, 1, 1], [], []>} : vector<9x96xf32>, vector<96x208xf32>, vector<9x208xf32> -> vector<9x208xf32>
    %614 = arith.addf %601, %613 : vector<9x208xf32>
    %cst_145 = arith.constant 0.000000e+00 : f32
    %615 = vector.broadcast %cst_145 : f32 to vector<1x96xf32>
    %616 = vector.extract_strided_slice %580 {offsets = [0, 0], sizes = [8, 96], strides = [1, 1]} : vector<9x96xf32> to vector<8x96xf32>
    %617 = tpu.concatenate %615, %616 in 0 : vector<1x96xf32>, vector<8x96xf32> -> vector<9x96xf32>
    %c0_i32_146 = arith.constant 0 : i32
    %618 = vector.broadcast %c0_i32_146 : i32 to vector<9x1xi32>
    %619 = arith.cmpi eq, %324, %618 : vector<9x1xi32>
    %cst_147 = arith.constant 0.000000e+00 : f32
    %620 = vector.shape_cast %619 : vector<9x1xi1> to vector<9x1xi1>
    %621 = vector.broadcast %620 : vector<9x1xi1> to vector<9x96xi1>
    %622 = vector.broadcast %cst_147 : f32 to vector<9x96xf32>
    %623 = arith.select %621, %622, %617 : vector<9x96xi1>, vector<9x96xf32>
    %c1_148 = arith.constant 1 : index
    %c0_149 = arith.constant 0 : index
    %c0_150 = arith.constant 0 : index
    %c0_151 = arith.constant 0 : index
    %624 = vector.load %arg14[%c1_148, %c0_149, %c0_150, %c0_151] : memref<3x3x96x208xf32, #tpu.memory_space<vmem>>, vector<1x1x96x208xf32>
    %625 = vector.shape_cast %624 : vector<1x1x96x208xf32> to vector<96x208xf32>
    %cst_152 = arith.constant dense<0.000000e+00> : vector<9x208xf32>
    %626 = tpu.matmul %623, %625, %cst_152 {dimension_numbers = #tpu.dot_dimension_numbers<[1], [0], [0], [1], [0, 0, 1, 1], [], []>} : vector<9x96xf32>, vector<96x208xf32>, vector<9x208xf32> -> vector<9x208xf32>
    %627 = arith.addf %614, %626 : vector<9x208xf32>
    %c1_153 = arith.constant 1 : index
    %c1_154 = arith.constant 1 : index
    %c0_155 = arith.constant 0 : index
    %c0_156 = arith.constant 0 : index
    %628 = vector.load %arg14[%c1_153, %c1_154, %c0_155, %c0_156] : memref<3x3x96x208xf32, #tpu.memory_space<vmem>>, vector<1x1x96x208xf32>
    %629 = vector.shape_cast %628 : vector<1x1x96x208xf32> to vector<96x208xf32>
    %cst_157 = arith.constant dense<0.000000e+00> : vector<9x208xf32>
    %630 = tpu.matmul %580, %629, %cst_157 {dimension_numbers = #tpu.dot_dimension_numbers<[1], [0], [0], [1], [0, 0, 1, 1], [], []>} : vector<9x96xf32>, vector<96x208xf32>, vector<9x208xf32> -> vector<9x208xf32>
    %631 = arith.addf %627, %630 : vector<9x208xf32>
    %cst_158 = arith.constant 0.000000e+00 : f32
    %632 = vector.broadcast %cst_158 : f32 to vector<1x96xf32>
    %633 = vector.extract_strided_slice %580 {offsets = [1, 0], sizes = [8, 96], strides = [1, 1]} : vector<9x96xf32> to vector<8x96xf32>
    %634 = tpu.concatenate %633, %632 in 0 : vector<8x96xf32>, vector<1x96xf32> -> vector<9x96xf32>
    %c2_i32_159 = arith.constant 2 : i32
    %635 = vector.broadcast %c2_i32_159 : i32 to vector<9x1xi32>
    %636 = arith.cmpi eq, %324, %635 : vector<9x1xi32>
    %cst_160 = arith.constant 0.000000e+00 : f32
    %637 = vector.shape_cast %636 : vector<9x1xi1> to vector<9x1xi1>
    %638 = vector.broadcast %637 : vector<9x1xi1> to vector<9x96xi1>
    %639 = vector.broadcast %cst_160 : f32 to vector<9x96xf32>
    %640 = arith.select %638, %639, %634 : vector<9x96xi1>, vector<9x96xf32>
    %c1_161 = arith.constant 1 : index
    %c2_162 = arith.constant 2 : index
    %c0_163 = arith.constant 0 : index
    %c0_164 = arith.constant 0 : index
    %641 = vector.load %arg14[%c1_161, %c2_162, %c0_163, %c0_164] : memref<3x3x96x208xf32, #tpu.memory_space<vmem>>, vector<1x1x96x208xf32>
    %642 = vector.shape_cast %641 : vector<1x1x96x208xf32> to vector<96x208xf32>
    %cst_165 = arith.constant dense<0.000000e+00> : vector<9x208xf32>
    %643 = tpu.matmul %640, %642, %cst_165 {dimension_numbers = #tpu.dot_dimension_numbers<[1], [0], [0], [1], [0, 0, 1, 1], [], []>} : vector<9x96xf32>, vector<96x208xf32>, vector<9x208xf32> -> vector<9x208xf32>
    %644 = arith.addf %631, %643 : vector<9x208xf32>
    %cst_166 = arith.constant 0.000000e+00 : f32
    %645 = vector.broadcast %cst_166 : f32 to vector<2x96xf32>
    %646 = vector.extract_strided_slice %580 {offsets = [2, 0], sizes = [7, 96], strides = [1, 1]} : vector<9x96xf32> to vector<7x96xf32>
    %647 = tpu.concatenate %646, %645 in 0 : vector<7x96xf32>, vector<2x96xf32> -> vector<9x96xf32>
    %c0_i32_167 = arith.constant 0 : i32
    %648 = vector.broadcast %c0_i32_167 : i32 to vector<9x1xi32>
    %649 = arith.cmpi eq, %324, %648 : vector<9x1xi32>
    %cst_168 = arith.constant 0.000000e+00 : f32
    %650 = vector.shape_cast %649 : vector<9x1xi1> to vector<9x1xi1>
    %651 = vector.broadcast %650 : vector<9x1xi1> to vector<9x96xi1>
    %652 = vector.broadcast %cst_168 : f32 to vector<9x96xf32>
    %653 = arith.select %651, %652, %647 : vector<9x96xi1>, vector<9x96xf32>
    %c2_169 = arith.constant 2 : index
    %c0_170 = arith.constant 0 : index
    %c0_171 = arith.constant 0 : index
    %c0_172 = arith.constant 0 : index
    %654 = vector.load %arg14[%c2_169, %c0_170, %c0_171, %c0_172] : memref<3x3x96x208xf32, #tpu.memory_space<vmem>>, vector<1x1x96x208xf32>
    %655 = vector.shape_cast %654 : vector<1x1x96x208xf32> to vector<96x208xf32>
    %cst_173 = arith.constant dense<0.000000e+00> : vector<9x208xf32>
    %656 = tpu.matmul %653, %655, %cst_173 {dimension_numbers = #tpu.dot_dimension_numbers<[1], [0], [0], [1], [0, 0, 1, 1], [], []>} : vector<9x96xf32>, vector<96x208xf32>, vector<9x208xf32> -> vector<9x208xf32>
    %657 = arith.addf %644, %656 : vector<9x208xf32>
    %cst_174 = arith.constant 0.000000e+00 : f32
    %658 = vector.broadcast %cst_174 : f32 to vector<3x96xf32>
    %659 = vector.extract_strided_slice %580 {offsets = [3, 0], sizes = [6, 96], strides = [1, 1]} : vector<9x96xf32> to vector<6x96xf32>
    %660 = tpu.concatenate %659, %658 in 0 : vector<6x96xf32>, vector<3x96xf32> -> vector<9x96xf32>
    %c2_175 = arith.constant 2 : index
    %c1_176 = arith.constant 1 : index
    %c0_177 = arith.constant 0 : index
    %c0_178 = arith.constant 0 : index
    %661 = vector.load %arg14[%c2_175, %c1_176, %c0_177, %c0_178] : memref<3x3x96x208xf32, #tpu.memory_space<vmem>>, vector<1x1x96x208xf32>
    %662 = vector.shape_cast %661 : vector<1x1x96x208xf32> to vector<96x208xf32>
    %cst_179 = arith.constant dense<0.000000e+00> : vector<9x208xf32>
    %663 = tpu.matmul %660, %662, %cst_179 {dimension_numbers = #tpu.dot_dimension_numbers<[1], [0], [0], [1], [0, 0, 1, 1], [], []>} : vector<9x96xf32>, vector<96x208xf32>, vector<9x208xf32> -> vector<9x208xf32>
    %664 = arith.addf %657, %663 : vector<9x208xf32>
    %cst_180 = arith.constant 0.000000e+00 : f32
    %665 = vector.broadcast %cst_180 : f32 to vector<4x96xf32>
    %666 = vector.extract_strided_slice %580 {offsets = [4, 0], sizes = [5, 96], strides = [1, 1]} : vector<9x96xf32> to vector<5x96xf32>
    %667 = tpu.concatenate %666, %665 in 0 : vector<5x96xf32>, vector<4x96xf32> -> vector<9x96xf32>
    %c2_i32_181 = arith.constant 2 : i32
    %668 = vector.broadcast %c2_i32_181 : i32 to vector<9x1xi32>
    %669 = arith.cmpi eq, %324, %668 : vector<9x1xi32>
    %cst_182 = arith.constant 0.000000e+00 : f32
    %670 = vector.shape_cast %669 : vector<9x1xi1> to vector<9x1xi1>
    %671 = vector.broadcast %670 : vector<9x1xi1> to vector<9x96xi1>
    %672 = vector.broadcast %cst_182 : f32 to vector<9x96xf32>
    %673 = arith.select %671, %672, %667 : vector<9x96xi1>, vector<9x96xf32>
    %c2_183 = arith.constant 2 : index
    %c2_184 = arith.constant 2 : index
    %c0_185 = arith.constant 0 : index
    %c0_186 = arith.constant 0 : index
    %674 = vector.load %arg14[%c2_183, %c2_184, %c0_185, %c0_186] : memref<3x3x96x208xf32, #tpu.memory_space<vmem>>, vector<1x1x96x208xf32>
    %675 = vector.shape_cast %674 : vector<1x1x96x208xf32> to vector<96x208xf32>
    %cst_187 = arith.constant dense<0.000000e+00> : vector<9x208xf32>
    %676 = tpu.matmul %673, %675, %cst_187 {dimension_numbers = #tpu.dot_dimension_numbers<[1], [0], [0], [1], [0, 0, 1, 1], [], []>} : vector<9x96xf32>, vector<96x208xf32>, vector<9x208xf32> -> vector<9x208xf32>
    %677 = arith.addf %664, %676 : vector<9x208xf32>
    %c0_188 = arith.constant 0 : index
    %c0_189 = arith.constant 0 : index
    %678 = vector.load %arg15[%c0_188, %c0_189] : memref<1x208xf32, #tpu.memory_space<vmem>>, vector<1x208xf32>
    %679 = vector.broadcast %678 : vector<1x208xf32> to vector<9x208xf32>
    %680 = arith.addf %677, %679 : vector<9x208xf32>
    %cst_190 = arith.constant 0.000000e+00 : f32
    %681 = vector.broadcast %cst_190 : f32 to vector<9x208xf32>
    %682 = arith.maximumf %680, %681 : vector<9x208xf32>
    %cst_191 = arith.constant -3.000000e+38 : f32
    %683 = vector.broadcast %cst_191 : f32 to vector<4x272xf32>
    %684 = vector.extract_strided_slice %573 {offsets = [0, 0], sizes = [5, 272], strides = [1, 1]} : vector<9x272xf32> to vector<5x272xf32>
    %685 = tpu.concatenate %683, %684 in 0 : vector<4x272xf32>, vector<5x272xf32> -> vector<9x272xf32>
    %c0_i32_192 = arith.constant 0 : i32
    %686 = vector.broadcast %c0_i32_192 : i32 to vector<9x1xi32>
    %687 = arith.cmpi eq, %324, %686 : vector<9x1xi32>
    %cst_193 = arith.constant -3.000000e+38 : f32
    %688 = vector.shape_cast %687 : vector<9x1xi1> to vector<9x1xi1>
    %689 = vector.broadcast %688 : vector<9x1xi1> to vector<9x272xi1>
    %690 = vector.broadcast %cst_193 : f32 to vector<9x272xf32>
    %691 = arith.select %689, %690, %685 : vector<9x272xi1>, vector<9x272xf32>
    %692 = arith.maximumf %573, %691 : vector<9x272xf32>
    %cst_194 = arith.constant -3.000000e+38 : f32
    %693 = vector.broadcast %cst_194 : f32 to vector<3x272xf32>
    %694 = vector.extract_strided_slice %573 {offsets = [0, 0], sizes = [6, 272], strides = [1, 1]} : vector<9x272xf32> to vector<6x272xf32>
    %695 = tpu.concatenate %693, %694 in 0 : vector<3x272xf32>, vector<6x272xf32> -> vector<9x272xf32>
    %696 = arith.maximumf %692, %695 : vector<9x272xf32>
    %cst_195 = arith.constant -3.000000e+38 : f32
    %697 = vector.broadcast %cst_195 : f32 to vector<2x272xf32>
    %698 = vector.extract_strided_slice %573 {offsets = [0, 0], sizes = [7, 272], strides = [1, 1]} : vector<9x272xf32> to vector<7x272xf32>
    %699 = tpu.concatenate %697, %698 in 0 : vector<2x272xf32>, vector<7x272xf32> -> vector<9x272xf32>
    %c2_i32_196 = arith.constant 2 : i32
    %700 = vector.broadcast %c2_i32_196 : i32 to vector<9x1xi32>
    %701 = arith.cmpi eq, %324, %700 : vector<9x1xi32>
    %cst_197 = arith.constant -3.000000e+38 : f32
    %702 = vector.shape_cast %701 : vector<9x1xi1> to vector<9x1xi1>
    %703 = vector.broadcast %702 : vector<9x1xi1> to vector<9x272xi1>
    %704 = vector.broadcast %cst_197 : f32 to vector<9x272xf32>
    %705 = arith.select %703, %704, %699 : vector<9x272xi1>, vector<9x272xf32>
    %706 = arith.maximumf %696, %705 : vector<9x272xf32>
    %cst_198 = arith.constant -3.000000e+38 : f32
    %707 = vector.broadcast %cst_198 : f32 to vector<1x272xf32>
    %708 = vector.extract_strided_slice %573 {offsets = [0, 0], sizes = [8, 272], strides = [1, 1]} : vector<9x272xf32> to vector<8x272xf32>
    %709 = tpu.concatenate %707, %708 in 0 : vector<1x272xf32>, vector<8x272xf32> -> vector<9x272xf32>
    %c0_i32_199 = arith.constant 0 : i32
    %710 = vector.broadcast %c0_i32_199 : i32 to vector<9x1xi32>
    %711 = arith.cmpi eq, %324, %710 : vector<9x1xi32>
    %cst_200 = arith.constant -3.000000e+38 : f32
    %712 = vector.shape_cast %711 : vector<9x1xi1> to vector<9x1xi1>
    %713 = vector.broadcast %712 : vector<9x1xi1> to vector<9x272xi1>
    %714 = vector.broadcast %cst_200 : f32 to vector<9x272xf32>
    %715 = arith.select %713, %714, %709 : vector<9x272xi1>, vector<9x272xf32>
    %716 = arith.maximumf %706, %715 : vector<9x272xf32>
    %cst_201 = arith.constant -3.000000e+38 : f32
    %717 = vector.broadcast %cst_201 : f32 to vector<1x272xf32>
    %718 = vector.extract_strided_slice %573 {offsets = [1, 0], sizes = [8, 272], strides = [1, 1]} : vector<9x272xf32> to vector<8x272xf32>
    %719 = tpu.concatenate %718, %717 in 0 : vector<8x272xf32>, vector<1x272xf32> -> vector<9x272xf32>
    %c2_i32_202 = arith.constant 2 : i32
    %720 = vector.broadcast %c2_i32_202 : i32 to vector<9x1xi32>
    %721 = arith.cmpi eq, %324, %720 : vector<9x1xi32>
    %cst_203 = arith.constant -3.000000e+38 : f32
    %722 = vector.shape_cast %721 : vector<9x1xi1> to vector<9x1xi1>
    %723 = vector.broadcast %722 : vector<9x1xi1> to vector<9x272xi1>
    %724 = vector.broadcast %cst_203 : f32 to vector<9x272xf32>
    %725 = arith.select %723, %724, %719 : vector<9x272xi1>, vector<9x272xf32>
    %726 = arith.maximumf %716, %725 : vector<9x272xf32>
    %cst_204 = arith.constant -3.000000e+38 : f32
    %727 = vector.broadcast %cst_204 : f32 to vector<2x272xf32>
    %728 = vector.extract_strided_slice %573 {offsets = [2, 0], sizes = [7, 272], strides = [1, 1]} : vector<9x272xf32> to vector<7x272xf32>
    %729 = tpu.concatenate %728, %727 in 0 : vector<7x272xf32>, vector<2x272xf32> -> vector<9x272xf32>
    %c0_i32_205 = arith.constant 0 : i32
    %730 = vector.broadcast %c0_i32_205 : i32 to vector<9x1xi32>
    %731 = arith.cmpi eq, %324, %730 : vector<9x1xi32>
    %cst_206 = arith.constant -3.000000e+38 : f32
    %732 = vector.shape_cast %731 : vector<9x1xi1> to vector<9x1xi1>
    %733 = vector.broadcast %732 : vector<9x1xi1> to vector<9x272xi1>
    %734 = vector.broadcast %cst_206 : f32 to vector<9x272xf32>
    %735 = arith.select %733, %734, %729 : vector<9x272xi1>, vector<9x272xf32>
    %736 = arith.maximumf %726, %735 : vector<9x272xf32>
    %cst_207 = arith.constant -3.000000e+38 : f32
    %737 = vector.broadcast %cst_207 : f32 to vector<3x272xf32>
    %738 = vector.extract_strided_slice %573 {offsets = [3, 0], sizes = [6, 272], strides = [1, 1]} : vector<9x272xf32> to vector<6x272xf32>
    %739 = tpu.concatenate %738, %737 in 0 : vector<6x272xf32>, vector<3x272xf32> -> vector<9x272xf32>
    %740 = arith.maximumf %736, %739 : vector<9x272xf32>
    %cst_208 = arith.constant -3.000000e+38 : f32
    %741 = vector.broadcast %cst_208 : f32 to vector<4x272xf32>
    %742 = vector.extract_strided_slice %573 {offsets = [4, 0], sizes = [5, 272], strides = [1, 1]} : vector<9x272xf32> to vector<5x272xf32>
    %743 = tpu.concatenate %742, %741 in 0 : vector<5x272xf32>, vector<4x272xf32> -> vector<9x272xf32>
    %c2_i32_209 = arith.constant 2 : i32
    %744 = vector.broadcast %c2_i32_209 : i32 to vector<9x1xi32>
    %745 = arith.cmpi eq, %324, %744 : vector<9x1xi32>
    %cst_210 = arith.constant -3.000000e+38 : f32
    %746 = vector.shape_cast %745 : vector<9x1xi1> to vector<9x1xi1>
    %747 = vector.broadcast %746 : vector<9x1xi1> to vector<9x272xi1>
    %748 = vector.broadcast %cst_210 : f32 to vector<9x272xf32>
    %749 = arith.select %747, %748, %743 : vector<9x272xi1>, vector<9x272xf32>
    %750 = arith.maximumf %740, %749 : vector<9x272xf32>
    %c0_211 = arith.constant 0 : index
    %c0_212 = arith.constant 0 : index
    %751 = vector.load %arg16[%c0_211, %c0_212] : memref<272x64xf32, #tpu.memory_space<vmem>>, vector<272x64xf32>
    %cst_213 = arith.constant dense<0.000000e+00> : vector<9x64xf32>
    %752 = tpu.matmul %750, %751, %cst_213 {dimension_numbers = #tpu.dot_dimension_numbers<[1], [0], [0], [1], [0, 0, 1, 1], [], []>} : vector<9x272xf32>, vector<272x64xf32>, vector<9x64xf32> -> vector<9x64xf32>
    %c0_214 = arith.constant 0 : index
    %c0_215 = arith.constant 0 : index
    %753 = vector.load %arg17[%c0_214, %c0_215] : memref<1x64xf32, #tpu.memory_space<vmem>>, vector<1x64xf32>
    %754 = vector.broadcast %753 : vector<1x64xf32> to vector<9x64xf32>
    %755 = arith.addf %752, %754 : vector<9x64xf32>
    %cst_216 = arith.constant 0.000000e+00 : f32
    %756 = vector.broadcast %cst_216 : f32 to vector<9x64xf32>
    %757 = arith.maximumf %755, %756 : vector<9x64xf32>
    %758 = tpu.concatenate %682, %757 in 1 : vector<9x208xf32>, vector<9x64xf32> -> vector<9x272xf32>
    %759 = vector.extract_strided_slice %758 {offsets = [0, 0], sizes = [3, 272], strides = [1, 1]} : vector<9x272xf32> to vector<3x272xf32>
    %760 = vector.extract_strided_slice %758 {offsets = [3, 0], sizes = [3, 272], strides = [1, 1]} : vector<9x272xf32> to vector<3x272xf32>
    %761 = arith.maximumf %759, %760 : vector<3x272xf32>
    %762 = vector.extract_strided_slice %758 {offsets = [6, 0], sizes = [3, 272], strides = [1, 1]} : vector<9x272xf32> to vector<3x272xf32>
    %763 = arith.maximumf %761, %762 : vector<3x272xf32>
    %764 = vector.extract_strided_slice %763 {offsets = [0, 0], sizes = [1, 272], strides = [1, 1]} : vector<3x272xf32> to vector<1x272xf32>
    %765 = vector.extract_strided_slice %763 {offsets = [1, 0], sizes = [1, 272], strides = [1, 1]} : vector<3x272xf32> to vector<1x272xf32>
    %766 = arith.maximumf %764, %765 : vector<1x272xf32>
    %767 = vector.extract_strided_slice %763 {offsets = [2, 0], sizes = [1, 272], strides = [1, 1]} : vector<3x272xf32> to vector<1x272xf32>
    %768 = arith.maximumf %766, %767 : vector<1x272xf32>
    %c0_217 = arith.constant 0 : index
    %c0_218 = arith.constant 0 : index
    %c0_219 = arith.constant 0 : index
    %769 = vector.load %arg20[%c0_217, %c0_218, %c0_219] : memref<1x1x272xf32, #tpu.memory_space<vmem>>, vector<1x1x272xf32>
    %770 = vector.shape_cast %769 : vector<1x1x272xf32> to vector<1x272xf32>
    %771 = vector.shape_cast %768 : vector<1x272xf32> to vector<1x1x272xf32>
    tpu.vector_store %arg20[%c0_217, %c0_218, %c0_219], %771 {strides = array<i32>} : memref<1x1x272xf32, #tpu.memory_space<vmem>>, vector<1x1x272xf32>,
    return
  }
  func.func @transform_0(%arg0: i32) -> (i32, i32, i32) {
    %c0_i32 = arith.constant 0 : i32
    %c0_i32_0 = arith.constant 0 : i32
    %c0_i32_1 = arith.constant 0 : i32
    return %arg0, %c0_i32, %c0_i32_0 : i32, i32, i32
  }
  func.func @transform_1(%arg0: i32) -> (i32, i32) {
    %c0_i32 = arith.constant 0 : i32
    %c0_i32_0 = arith.constant 0 : i32
    %c0_i32_1 = arith.constant 0 : i32
    return %c0_i32, %c0_i32_0 : i32, i32
  }
  func.func @transform_2(%arg0: i32) -> (i32, i32) {
    %c0_i32 = arith.constant 0 : i32
    %c0_i32_0 = arith.constant 0 : i32
    %c0_i32_1 = arith.constant 0 : i32
    return %c0_i32, %c0_i32_0 : i32, i32
  }
  func.func @transform_3(%arg0: i32) -> (i32, i32) {
    %c0_i32 = arith.constant 0 : i32
    %c0_i32_0 = arith.constant 0 : i32
    %c0_i32_1 = arith.constant 0 : i32
    return %c0_i32, %c0_i32_0 : i32, i32
  }
  func.func @transform_4(%arg0: i32) -> (i32, i32) {
    %c0_i32 = arith.constant 0 : i32
    %c0_i32_0 = arith.constant 0 : i32
    %c0_i32_1 = arith.constant 0 : i32
    return %c0_i32, %c0_i32_0 : i32, i32
  }
  func.func @transform_5(%arg0: i32) -> (i32, i32) {
    %c0_i32 = arith.constant 0 : i32
    %c0_i32_0 = arith.constant 0 : i32
    %c0_i32_1 = arith.constant 0 : i32
    return %c0_i32, %c0_i32_0 : i32, i32
  }
  func.func @transform_6(%arg0: i32) -> (i32, i32) {
    %c0_i32 = arith.constant 0 : i32
    %c0_i32_0 = arith.constant 0 : i32
    %c0_i32_1 = arith.constant 0 : i32
    return %c0_i32, %c0_i32_0 : i32, i32
  }
  func.func @transform_7(%arg0: i32) -> (i32, i32, i32, i32) {
    %c0_i32 = arith.constant 0 : i32
    %c0_i32_0 = arith.constant 0 : i32
    %c0_i32_1 = arith.constant 0 : i32
    %c0_i32_2 = arith.constant 0 : i32
    %c0_i32_3 = arith.constant 0 : i32
    return %c0_i32, %c0_i32_0, %c0_i32_1, %c0_i32_2 : i32, i32, i32, i32
  }
  func.func @transform_8(%arg0: i32) -> (i32, i32) {
    %c0_i32 = arith.constant 0 : i32
    %c0_i32_0 = arith.constant 0 : i32
    %c0_i32_1 = arith.constant 0 : i32
    return %c0_i32, %c0_i32_0 : i32, i32
  }
  func.func @transform_9(%arg0: i32) -> (i32, i32) {
    %c0_i32 = arith.constant 0 : i32
    %c0_i32_0 = arith.constant 0 : i32
    %c0_i32_1 = arith.constant 0 : i32
    return %c0_i32, %c0_i32_0 : i32, i32
  }
  func.func @transform_10(%arg0: i32) -> (i32, i32) {
    %c0_i32 = arith.constant 0 : i32
    %c0_i32_0 = arith.constant 0 : i32
    %c0_i32_1 = arith.constant 0 : i32
    return %c0_i32, %c0_i32_0 : i32, i32
  }
  func.func @transform_11(%arg0: i32) -> (i32, i32) {
    %c0_i32 = arith.constant 0 : i32
    %c0_i32_0 = arith.constant 0 : i32
    %c0_i32_1 = arith.constant 0 : i32
    return %c0_i32, %c0_i32_0 : i32, i32
  }
  func.func @transform_12(%arg0: i32) -> (i32, i32) {
    %c0_i32 = arith.constant 0 : i32
    %c0_i32_0 = arith.constant 0 : i32
    %c0_i32_1 = arith.constant 0 : i32
    return %c0_i32, %c0_i32_0 : i32, i32
  }
  func.func @transform_13(%arg0: i32) -> (i32, i32, i32, i32) {
    %c0_i32 = arith.constant 0 : i32
    %c0_i32_0 = arith.constant 0 : i32
    %c0_i32_1 = arith.constant 0 : i32
    %c0_i32_2 = arith.constant 0 : i32
    %c0_i32_3 = arith.constant 0 : i32
    return %c0_i32, %c0_i32_0, %c0_i32_1, %c0_i32_2 : i32, i32, i32, i32
  }
  func.func @transform_14(%arg0: i32) -> (i32, i32) {
    %c0_i32 = arith.constant 0 : i32
    %c0_i32_0 = arith.constant 0 : i32
    %c0_i32_1 = arith.constant 0 : i32
    return %c0_i32, %c0_i32_0 : i32, i32
  }
  func.func @transform_15(%arg0: i32) -> (i32, i32) {
    %c0_i32 = arith.constant 0 : i32
    %c0_i32_0 = arith.constant 0 : i32
    %c0_i32_1 = arith.constant 0 : i32
    return %c0_i32, %c0_i32_0 : i32, i32
  }
  func.func @transform_16(%arg0: i32) -> (i32, i32) {
    %c0_i32 = arith.constant 0 : i32
    %c0_i32_0 = arith.constant 0 : i32
    %c0_i32_1 = arith.constant 0 : i32
    return %c0_i32, %c0_i32_0 : i32, i32
  }
  func.func @transform_17(%arg0: i32) -> (i32, i32) {
    %c0_i32 = arith.constant 0 : i32
    %c0_i32_0 = arith.constant 0 : i32
    %c0_i32_1 = arith.constant 0 : i32
    return %c0_i32, %c0_i32_0 : i32, i32
  }
  func.func @transform_18(%arg0: i32) -> (i32, i32) {
    %c0_i32 = arith.constant 0 : i32
    %c0_i32_0 = arith.constant 0 : i32
    %c0_i32_1 = arith.constant 0 : i32
    return %c0_i32, %c0_i32_0 : i32, i32
  }
  func.func @transform_19(%arg0: i32) -> (i32, i32, i32) {
    %c0_i32 = arith.constant 0 : i32
    %c0_i32_0 = arith.constant 0 : i32
    %c0_i32_1 = arith.constant 0 : i32
    return %arg0, %c0_i32, %c0_i32_0 : i32, i32, i32
  }
}

</mosaic_0001>

<bundles_post_ra>
// kernel: dexpression_forward.3
= control target key start
LH: loop header
LB: loop body
LE: loop exit
PB: predicated region body
PF: predicated region fallthrough
CT: control target
= control target key end

     0   :  { %s322_s0 = inlined_call_operand.vmem [shape: f32[2,272], index: 0, kind: input, shape index: {}]   ;;  %s323_s1 = inlined_call_operand.vmem [shape: f32[272,7], index: 1, kind: input, shape index: {}]   ;;  %s324_s2 = inlined_call_operand.vmem [shape: f32[1,7], index: 2, kind: input, shape index: {}]   ;;  %s325_s3 = inlined_call_operand.hbm [shape: f32[2,7], index: 3, kind: output, shape index: {}]  }
   0x1   :  { %v31_v0 = vld [vmem:[%s323_s1 + $0x78] sm:$0xff]  ;;  %v30_v1 = vld [vmem:[%s323_s1 + $0x70] sm:$0xff]  ;;  %v29_v4 = vld [vmem:[%s323_s1 + $0x68] sm:$0xff] }
   0x2   :  { %v47_v2 = vld [vmem:[%s323_s1 + $0xf8] sm:$0xff]  ;;  %64 = vmatpush.msra.mxu0 %v31_v0  ;;  %v46_v3 = vld [vmem:[%s323_s1 + $0xf0] sm:$0xff]  ;;  %v45_v5 = vld [vmem:[%s323_s1 + $0xe8] sm:$0xff] }
   0x3   :  { %84 = vmatpush.msra.mxu1 %v47_v2  ;;  %v28_v6 = vld [vmem:[%s323_s1 + $0x60] sm:$0xff]  ;;  %v27_v8 = vld [vmem:[%s323_s1 + $0x58] sm:$0xff]  ;;  %v26_v10 = vld [vmem:[%s323_s1 + $0x50] sm:$0xff] }
   0x4   :  { %65 = vmatpush.msra.mxu0 %v30_v1  ;;  %v44_v7 = vld [vmem:[%s323_s1 + $0xe0] sm:$0xff]  ;;  %v43_v9 = vld [vmem:[%s323_s1 + $0xd8] sm:$0xff]  ;;  %v42_v11 = vld [vmem:[%s323_s1 + $0xd0] sm:$0xff] }
   0x5   :  { %85 = vmatpush.msra.mxu1 %v46_v3  ;;  %v25_v12 = vld [vmem:[%s323_s1 + $0x48] sm:$0xff]  ;;  %v48_v15 = vld [vmem:[%s323_s1 + $0x100] sm:$0xff] }
   0x6   :  { %66 = vmatpush.msra.mxu0 %v29_v4  ;;  %v49_v13 = vld [vmem:[%s323_s1 + $0x108] sm:$0xff]  ;;  %v15_v16 = vld [vmem:[%s322_s0] sm:$0x3f] }
   0x7   :  { %86 = vmatpush.msra.mxu1 %v45_v5  ;;  %v41_v14 = vld [vmem:[%s323_s1 + $0xc8] sm:$0xff]  ;;  %118 = vmatpush.msra.mxu2 %v49_v13  ;;  %55 = vst [vmem:[#allocation1] ss:$4 sm:$0xff] %v15_v16  ;;  %v24_v17 = vld [vmem:[%s323_s1 + $0x40] sm:$0xff] }
   0x8   :  { %67 = vmatpush.msra.mxu0 %v28_v6  ;;  %v40_v18 = vld [vmem:[%s323_s1 + $0xc0] sm:$0xff] }
   0x9   :  { %87 = vmatpush.msra.mxu1 %v44_v7  ;;  %119 = vmatpush.msra.mxu2 %v48_v15 }
   0xa   :  { %68 = vmatpush.msra.mxu0 %v27_v8 }
   0xb   :  { %88 = vmatpush.msra.mxu1 %v43_v9 }
   0xc   :  { %69 = vmatpush.msra.mxu0 %v26_v10 }
   0xd   :  { %89 = vmatpush.msra.mxu1 %v42_v11 }
   0xe   :  { %8 = vsyncpa [#allocation3], 0  ;;  %70 = vmatpush.msra.mxu0 %v25_v12  ;;  %v23_v19 = vld [vmem:[%s323_s1 + $0x38] sm:$0xff]  ;;  %v22_v21 = vld [vmem:[%s323_s1 + $0x30] sm:$0xff]  ;;  %vm61_vm0 = vcmask 130048   ;;  %vm124_vm1 = vcmask 50176  }
   0xf   :  { %90 = vmatpush.msra.mxu1 %v41_v14  ;;  %v39_v20 = vld [vmem:[%s323_s1 + $0xb8] sm:$0xff]  ;;  %v38_v22 = vld [vmem:[%s323_s1 + $0xb0] sm:$0xff]  ;;  %v21_v23 = vld [vmem:[%s323_s1 + $0x28] sm:$0xff]  ;;  %s145_s30 = sshll.u32 %s325_s3, 4  ;;  %s146_s30 = int_to_ptr.hbm [resolvable:$true] %s145_s30 }
  0x10   :  { %71 = vmatpush.msra.mxu0 %v24_v17  ;;  %v37_v24 = vld [vmem:[%s323_s1 + $0xa8] sm:$0xff]  ;;  %v58_v25 = vld.sshfl [vmem:[#allocation1 + $0x10] sm:$0xff pattern:$0x73625140]  ;;  %v20_v26 = vld [vmem:[%s323_s1 + $0x20] sm:$0xff] }
  0x11   :  { %91 = vmatpush.msra.mxu1 %v40_v18  ;;  %v36_v27 = vld [vmem:[%s323_s1 + $0xa0] sm:$0xff]  ;;  %154 = vmatmul.msk.f32.vlgmr.msra.gmra.mxu2 %vm61_vm0, %v58_v25  ;;  %v19_v28 = vld [vmem:[%s323_s1 + $0x18] sm:$0xff]  ;;  %v18_v30 = vld [vmem:[%s323_s1 + $0x10] sm:$0xff] }
  0x12   :  { %72 = vmatpush.msra.mxu0 %v23_v19  ;;  %v35_v29 = vld [vmem:[%s323_s1 + $0x98] sm:$0xff]  ;;  %v34_v31 = vld [vmem:[%s323_s1 + $0x90] sm:$0xff]  ;;  %v17_v32 = vld [vmem:[%s323_s1 + $0x8] sm:$0xff] }
  0x13   :  { %92 = vmatpush.msra.mxu1 %v39_v20  ;;  %v33_v33 = vld [vmem:[%s323_s1 + $0x88] sm:$0xff]  ;;  %v16_v34 = vld [vmem:[%s323_s1] sm:$0xff] }
  0x14   :  { %73 = vmatpush.msra.mxu0 %v22_v21  ;;  %v32_v35 = vld [vmem:[%s323_s1 + $0x80] sm:$0xff]  ;;  %v57_v37 = vld.sshfl [vmem:[#allocation1 + $0x8] sm:$0xff pattern:$0x73625140]  ;;  %s187_s1 = smov [#allocation2]  }
  0x15   :  { %93 = vmatpush.msra.mxu1 %v38_v22  ;;  %v56_v36 = vld.sshfl [vmem:[#allocation1] sm:$0xff pattern:$0x73625140] }
  0x16   :  { %74 = vmatpush.msra.mxu0 %v21_v23  ;;  %v156_v38 = vld [vmem:[%s324_s2] ss:$0 sm:$0xff]  ;;  %s143_s2 = sshll.u32 %s187_s1, 4  ;;  %s144_s2 = int_to_ptr.vmem [resolvable:$true] %s143_s2 }
  0x17   :  { %94 = vmatpush.msra.mxu1 %v37_v24 }
  0x18   :  { %75 = vmatpush.msra.mxu0 %v20_v26 }
  0x19   :  { %95 = vmatpush.msra.mxu1 %v36_v27 }
  0x1a   :  { %76 = vmatpush.msra.mxu0 %v19_v28 }
  0x1b   :  { %96 = vmatpush.msra.mxu1 %v35_v29 }
  0x1c   :  { %77 = vmatpush.msra.mxu0 %v18_v30 }
  0x1d   :  { %97 = vmatpush.msra.mxu1 %v34_v31 }
  0x1e   :  { %78 = vmatpush.msra.mxu0 %v17_v32 }
  0x1f   :  { %98 = vmatpush.msra.mxu1 %v33_v33 }
  0x20   :  { %79 = vmatpush.msra.mxu0 %v16_v34 }
  0x21   :  { %99 = vmatpush.msra.mxu1 %v32_v35  ;;  %80 = vmatmul.f32.vlgmr.msra.gmra.mxu0 %v56_v36 }
  0x22   :  { %100 = vmatmul.f32.vlgmr.msra.gmra.mxu1 %v57_v37 }
  0x94   :  { %v121_v42 = vpop.f32.mrf.mxu2 }
  0x9e   :  { %v81_v39 = vpop.f32.mrf.mxu0 }
  0x9f   :  { %v101_v40 = vpop.f32.mrf.mxu1  ;;  %v82_v41 = vadd.f32 %v156_v38, %v81_v39 }
  0xa1   :  { %v102_v43 = vadd.f32 %v101_v40, %v82_v41 }
  0xa3   :  { %v122_v44 = vadd.f32 %v121_v42, %v102_v43 }
  0xa5   :  { %v125_v45 = vsel %vm124_vm1, %v122_v44, -inf }
  0xa6   :  { %126 = vmax.xlane.f32.xlu0 %v125_v45 }
 0x119   :  { %v127_v46 = vpop.xlane.xlu0 %126 }
 0x11a   :  { %v128_v47 = vsub.f32 %v122_v44, %v127_v46 }
 0x11c   :  { %v129_v48 = vmul.f32 1.442695, %v128_v47 }
 0x11e   :  { %157 = vpow2.f32 %v129_v48 }
 0x124   :  { %v158_v49 = vpop.eup %157 }
 0x125   :  { %v131_v50 = vsel %vm124_vm1, %v158_v49, 0.0 }
 0x126   :  { %132 = vadd.xlane.f32.xlu0 %v131_v50 }
 0x199   :  { %v133_v51 = vpop.xlane.xlu0 %132 }
 0x19a   :  { %159 = vlog2.f32 %v133_v51 }
 0x1a0   :  { %v160_v52 = vpop.eup %159 }
 0x1a1   :  { %v135_v53 = vmul.f32 0.6931472, %v160_v52 }
 0x1a3   :  { %v136_v54 = vsub.f32 %v128_v47, %v135_v53 }
 0x1a5   :  { %137 = vst.msk [vmem:[#allocation2] sm:$0x3] %vm124_vm1, %v136_v54 }
 0x1a6   :  { %148 = dma.vmem_to_hbm [thread:$0]  %s144_s2, 32, %s146_s30, [#allocation3]  }
 0x1a7   :  { %185 = dma.done.wait [#allocation3], 32  }
 0x1a8   :  { %186 = vsyncadd [#allocation3], 4294967264 }
 0x1a9   :  { %153 = vsyncpa [#allocation3], 1 }

// kernel: dexpression_forward.2
= control target key start
LH: loop header
LB: loop body
LE: loop exit
PB: predicated region body
PF: predicated region fallthrough
CT: control target
= control target key end

     0   :  { %s9280_s0 = inlined_call_operand.vmem [shape: f32[2,256,147], index: 0, kind: input, shape index: {}]   ;;  %s9281_s1 = inlined_call_operand.vmem [shape: f32[147,64], index: 1, kind: input, shape index: {}]   ;;  %s9282_s2 = inlined_call_operand.vmem [shape: f32[1,64], index: 2, kind: input, shape index: {}]   ;;  %s9283_s3 = inlined_call_operand.vmem [shape: f32[49,64], index: 3, kind: input, shape index: {}]   ;;  %s9284_s4 = inlined_call_operand.vmem [shape: f32[49,64], index: 4, kind: input, shape index: {}]   ;;  %s9285_s5 = inlined_call_operand.vmem [shape: f32[64,96], index: 5, kind: input, shape index: {}]   ;;  %s9286_s6 = inlined_call_operand.vmem [shape: f32[1,96], index: 6, kind: input, shape index: {}]   ;;  %s9287_s7 = inlined_call_operand.vmem [shape: f32[3,3,96,208], index: 7, kind: input, shape index: {}]   ;;  %s9288_s8 = inlined_call_operand.vmem [shape: f32[1,208], index: 8, kind: input, shape index: {}]   ;;  %s9289_s9 = inlined_call_operand.vmem [shape: f32[64,64], index: 9, kind: input, shape index: {}]   ;;  %s9290_s10 = inlined_call_operand.vmem [shape: f32[1,64], index: 10, kind: input, shape index: {}]   ;;  %s9291_s11 = inlined_call_operand.vmem [shape: f32[272,96], index: 11, kind: input, shape index: {}]   ;;  %s9292_s12 = inlined_call_operand.vmem [shape: f32[1,96], index: 12, kind: input, shape index: {}]   ;;  %s9293_s13 = inlined_call_operand.vmem [shape: f32[3,3,96,208], index: 13, kind: input, shape index: {}]   ;;  %s9294_s14 = inlined_call_operand.vmem [shape: f32[1,208], index: 14, kind: input, shape index: {}]   ;;  %s9295_s15 = inlined_call_operand.vmem [shape: f32[272,64], index: 15, kind: input, shape index: {}]   ;;  %s9296_s16 = inlined_call_operand.vmem [shape: f32[1,64], index: 16, kind: input, shape index: {}]   ;;  %s9297_s17 = inlined_call_operand.vmem [shape: s32[49,1], index: 17, kind: input, shape index: {}]   ;;  %s9298_s18 = inlined_call_operand.vmem [shape: s32[9,1], index: 18, kind: input, shape index: {}]   ;;  %s9299_s19 = inlined_call_operand.vmem [shape: f32[2,1,272], index: 19, kind: output, shape index: {}]  }
   0x1   :  { %9319 = sst [smem:[#allocation32_spill]] %s9280_s0  ;;  %s5629_s0 = smov 0  }
   0x2   :  { %9320 = sst [smem:[#allocation33_spill]] %s9281_s1 }
   0x3   :  { %9321 = sst [smem:[#allocation34_spill]] %s9282_s2 }
   0x4   :  { %9322 = sst [smem:[#allocation35_spill]] %s9283_s3 }
   0x5 LB: > { %9323 = sst [smem:[#allocation2_spill]] %s5523_s0  ;;  %s4899_s30 = sadd.s32 4294967295, %s5523_s0   ;;  %s5523_s0 = sphi %s5629_s0, %s29_s0  }
   0x6   : > { %p4903_p0 = scmp.ge.s32.totalorder %s5523_s0, 1  ;;  %p537_p1 = scmp.lt.s32.totalorder %s5523_s0, 3 }
   0x8   : > { %p538_p2 = pnand %p4903_p0, %p537_p1 }
   0xa   : > { %541 = sbr.rel (%p538_p2) target bundleno = 2058 (0x80a), region = 96 }
   0xf   : > { %s9324_s1 = sld [smem:[#allocation33_spill]]  ;;  %p592_p3 = scmp.lt.s32.totalorder %s4899_s30, 1  ;;  %vm9308_vm0 = vcmask 1042432   ;;  %vm688_vm1 = vcmask 154624   ;;  %vm1075_vm2 = vcmask 1040384   ;;  %vm1077_vm3 = vcmask 1041408  }
  0x10   : > { %s9325_s24 = sld [smem:[#allocation32_spill]]  ;;  %vm9304_vm4 = vcmask 1043456   ;;  %vm9303_vm5 = vcmask 1044480   ;;  %vm9312_vm6 = vcmask 1045504   ;;  %vm1344_vm7 = vcmask 1046528   ;;  %s5528_s2 = smov 80  }
  0x11   : > { %s9445_s30 = smov (!%p592_p3, %s4899_s30), 1  ;;  %s9326_s27 = sld [smem:[#allocation34_spill]]  ;;  %vm1351_vm8 = vcmask 523264   ;;  %vm1363_vm9 = vcmask 516096  }
  0x12   : > { %s5487_s26 = sshll.u32 %s9445_s30, 9 }
  0x15   : > { %v680_v0 = vld [vmem:[%s9324_s1 + $0x78] sm:$0xff]  ;;  %v679_v1 = vld [vmem:[%s9324_s1 + $0x70] sm:$0xff]  ;;  %v678_v2 = vld [vmem:[%s9324_s1 + $0x68] sm:$0xff] }
  0x16   : > { %789 = vmatpush.msra.mxu0 %v680_v0  ;;  %v677_v3 = vld [vmem:[%s9324_s1 + $0x60] sm:$0xff]  ;;  %v683_v4 = vld [vmem:[%s9324_s1 + $0x90] sm:$0x7]  ;;  %v682_v5 = vld [vmem:[%s9324_s1 + $0x88] sm:$0xff]  ;;  %s5665_s25 = scalar_lea.vmem %s9325_s24, %s5487_s26 }
  0x17   : > { %v676_v6 = vld [vmem:[%s9324_s1 + $0x58] sm:$0xff]  ;;  %4906 = vmatpush.msk.msra.mxu1 %vm9308_vm0, %v683_v4  ;;  %v681_v7 = vld [vmem:[%s9324_s1 + $0x80] sm:$0xff]  ;;  %v675_v8 = vld [vmem:[%s9324_s1 + $0x50] sm:$0xff] }
  0x18   : > { %790 = vmatpush.msra.mxu0 %v679_v1  ;;  %v602_v9 = vld [vmem:[%s5665_s25 + $0x8] sm:$0xff]  ;;  %v673_v11 = vld [vmem:[%s9324_s1 + $0x40] sm:$0xff]  ;;  %v672_v12 = vld [vmem:[%s9324_s1 + $0x38] sm:$0xff] }
  0x19   : > { %914 = vmatpush.msra.mxu1 %v682_v5  ;;  %v674_v10 = vld [vmem:[%s9324_s1 + $0x48] sm:$0xff]  ;;  %v671_v13 = vld [vmem:[%s9324_s1 + $0x30] sm:$0xff]  ;;  %v604_v14 = vld [vmem:[%s5665_s25 + $0x18] sm:$0xff] }
  0x1a   : > { %791 = vmatpush.msra.mxu0 %v678_v2  ;;  %v670_v15 = vld [vmem:[%s9324_s1 + $0x28] sm:$0xff]  ;;  %v669_v16 = vld [vmem:[%s9324_s1 + $0x20] sm:$0xff]  ;;  %v668_v17 = vld [vmem:[%s9324_s1 + $0x18] sm:$0xff] }
  0x1b   : > { %915 = vmatpush.msra.mxu1 %v681_v7  ;;  %v667_v18 = vld [vmem:[%s9324_s1 + $0x10] sm:$0xff]  ;;  %v606_v19 = vld [vmem:[%s5665_s25 + $0x28] sm:$0xff]  ;;  %v665_v21 = vld [vmem:[%s9324_s1] sm:$0xff] }
  0x1c   : > { %792 = vmatpush.msra.mxu0 %v677_v3  ;;  %4907 = vmatmul.msk.f32.vlgmr.msra.gmra.mxu1 %vm688_vm1, %v602_v9  ;;  %v666_v20 = vld [vmem:[%s9324_s1 + $0x8] sm:$0xff]  ;;  %v601_v22 = vld [vmem:[%s5665_s25] sm:$0xff]  ;;  %v608_v23 = vld [vmem:[%s5665_s25 + $0x38] sm:$0xff] }
  0x1d   : > { %v603_v24 = vld [vmem:[%s5665_s25 + $0x10] sm:$0xff]  ;;  %v610_v25 = vld [vmem:[%s5665_s25 + $0x48] sm:$0xff]  ;;  %v605_v26 = vld [vmem:[%s5665_s25 + $0x20] sm:$0xff] }
  0x1e   : > { %793 = vmatpush.msra.mxu0 %v676_v6  ;;  %v612_v27 = vld [vmem:[%s5665_s25 + $0x58] sm:$0xff]  ;;  %v607_v28 = vld [vmem:[%s5665_s25 + $0x30] sm:$0xff]  ;;  %v614_v29 = vld [vmem:[%s5665_s25 + $0x68] sm:$0xff] }
  0x1f   : > { %v609_v30 = vld [vmem:[%s5665_s25 + $0x40] sm:$0xff]  ;;  %v616_v31 = vld [vmem:[%s5665_s25 + $0x78] sm:$0xff]  ;;  %v611_v32 = vld [vmem:[%s5665_s25 + $0x50] sm:$0xff] }
  0x20   : > { %794 = vmatpush.msra.mxu0 %v675_v8  ;;  %v618_v33 = vld [vmem:[%s5665_s25 + $0x88] sm:$0xff]  ;;  %v613_v34 = vld [vmem:[%s5665_s25 + $0x60] sm:$0xff]  ;;  %v620_v35 = vld [vmem:[%s5665_s25 + $0x98] sm:$0xff] }
  0x21   : > { %v615_v36 = vld [vmem:[%s5665_s25 + $0x70] sm:$0xff]  ;;  %v622_v37 = vld [vmem:[%s5665_s25 + $0xa8] sm:$0xff]  ;;  %v617_v38 = vld [vmem:[%s5665_s25 + $0x80] sm:$0xff] }
  0x22   : > { %795 = vmatpush.msra.mxu0 %v674_v10  ;;  %v624_v39 = vld [vmem:[%s5665_s25 + $0xb8] sm:$0xff]  ;;  %v619_v40 = vld [vmem:[%s5665_s25 + $0x90] sm:$0xff]  ;;  %v626_v41 = vld [vmem:[%s5665_s25 + $0xc8] sm:$0xff] }
  0x23   : > { %v621_v42 = vld [vmem:[%s5665_s25 + $0xa0] sm:$0xff]  ;;  %v628_v43 = vld [vmem:[%s5665_s25 + $0xd8] sm:$0xff]  ;;  %v623_v44 = vld [vmem:[%s5665_s25 + $0xb0] sm:$0xff] }
  0x24   : > { %796 = vmatpush.msra.mxu0 %v673_v11  ;;  %4908 = vmatmul.msk.f32.gmra.mxu1 %vm688_vm1, %v604_v14  ;;  %v630_v45 = vld [vmem:[%s5665_s25 + $0xe8] sm:$0xff]  ;;  %v625_v46 = vld [vmem:[%s5665_s25 + $0xc0] sm:$0xff]  ;;  %v632_v47 = vld [vmem:[%s5665_s25 + $0xf8] sm:$0xff] }
  0x25   : > { %v627_v48 = vld [vmem:[%s5665_s25 + $0xd0] sm:$0xff]  ;;  %v634_v50 = vld [vmem:[%s5665_s25 + $0x108] sm:$0xff]  ;;  %v629_v51 = vld [vmem:[%s5665_s25 + $0xe0] sm:$0xff] }
  0x26   : > { %797 = vmatpush.msra.mxu0 %v672_v12  ;;  %v636_v53 = vld [vmem:[%s5665_s25 + $0x118] sm:$0xff]  ;;  %v631_v54 = vld [vmem:[%s5665_s25 + $0xf0] sm:$0xff]  ;;  %v638_v56 = vld [vmem:[%s5665_s25 + $0x128] sm:$0xff] }
  0x27   : > { %v633_v58 = vld [vmem:[%s5665_s25 + $0x100] sm:$0xff]  ;;  %v640_v60 = vld [vmem:[%s5665_s25 + $0x138] sm:$0xff]  ;;  %v635_v62 = vld [vmem:[%s5665_s25 + $0x110] sm:$0xff] }
  0x28   : > { %798 = vmatpush.msra.mxu0 %v671_v13  ;;  %v5764_v63 = vld [vmem:[%s9326_s27] ss:$0 sm:$0xff]  ;;  %v642_v1 = vld [vmem:[%s5665_s25 + $0x148] sm:$0xff]  ;;  %v644_v9 = vld [vmem:[%s5665_s25 + $0x158] sm:$0xff] }
  0x29   : > { %v637_v4 = vld [vmem:[%s5665_s25 + $0x120] sm:$0xff] }
  0x2a   : > { %799 = vmatpush.msra.mxu0 %v670_v15  ;;  %v639_v15 = vld [vmem:[%s5665_s25 + $0x130] sm:$0xff] }
  0x2c   : > { %800 = vmatpush.msra.mxu0 %v669_v16  ;;  %4909 = vmatmul.msk.f32.gmra.mxu1 %vm688_vm1, %v606_v19 }
  0x2e   : > { %801 = vmatpush.msra.mxu0 %v668_v17 }
  0x30   : > { %802 = vmatpush.msra.mxu0 %v667_v18 }
  0x32   : > { %803 = vmatpush.msra.mxu0 %v666_v20  ;;  %v646_v20 = vld [vmem:[%s5665_s25 + $0x168] sm:$0xff] }
  0x34   : > { %804 = vmatpush.msra.mxu0 %v665_v21  ;;  %4910 = vmatmul.msk.f32.gmra.mxu1 %vm688_vm1, %v608_v23 }
  0x35   : > { %805 = vmatmul.f32.vlgmr.msra.gmra.mxu0 %v601_v22 }
  0x3c   : > { %4911 = vmatmul.msk.f32.gmra.mxu1 %vm688_vm1, %v610_v25  ;;  %v641_v25 = vld [vmem:[%s5665_s25 + $0x140] sm:$0xff] }
  0x3d   : > { %808 = vmatmul.f32.gmra.mxu0 %v603_v24 }
  0x44   : > { %4912 = vmatmul.msk.f32.gmra.mxu1 %vm688_vm1, %v612_v27 }
  0x45   : > { %811 = vmatmul.f32.gmra.mxu0 %v605_v26 }
  0x4c   : > { %4913 = vmatmul.msk.f32.gmra.mxu1 %vm688_vm1, %v614_v29  ;;  %v648_v29 = vld [vmem:[%s5665_s25 + $0x178] sm:$0xff] }
  0x4d   : > { %814 = vmatmul.f32.gmra.mxu0 %v607_v28 }
  0x54   : > { %4914 = vmatmul.msk.f32.gmra.mxu1 %vm688_vm1, %v616_v31 }
  0x55   : > { %817 = vmatmul.f32.gmra.mxu0 %v609_v30 }
  0x5c   : > { %4915 = vmatmul.msk.f32.gmra.mxu1 %vm688_vm1, %v618_v33  ;;  %v643_v33 = vld [vmem:[%s5665_s25 + $0x150] sm:$0xff] }
  0x5d   : > { %820 = vmatmul.f32.gmra.mxu0 %v611_v32 }
  0x64   : > { %4916 = vmatmul.msk.f32.gmra.mxu1 %vm688_vm1, %v620_v35 }
  0x65   : > { %823 = vmatmul.f32.gmra.mxu0 %v613_v34 }
  0x6c   : > { %4917 = vmatmul.msk.f32.gmra.mxu1 %vm688_vm1, %v622_v37 }
  0x6d   : > { %826 = vmatmul.f32.gmra.mxu0 %v615_v36 }
  0x74   : > { %4918 = vmatmul.msk.f32.gmra.mxu1 %vm688_vm1, %v624_v39 }
  0x75   : > { %829 = vmatmul.f32.gmra.mxu0 %v617_v38 }
  0x7c   : > { %4919 = vmatmul.msk.f32.gmra.mxu1 %vm688_vm1, %v626_v41 }
  0x7d   : > { %832 = vmatmul.f32.gmra.mxu0 %v619_v40  ;;  %v650_v40 = vld [vmem:[%s5665_s25 + $0x188] sm:$0xff] }
  0x84   : > { %4920 = vmatmul.msk.f32.gmra.mxu1 %vm688_vm1, %v628_v43 }
  0x85   : > { %835 = vmatmul.f32.gmra.mxu0 %v621_v42 }
  0x8c   : > { %4921 = vmatmul.msk.f32.gmra.mxu1 %vm688_vm1, %v630_v45 }
  0x8d   : > { %838 = vmatmul.f32.gmra.mxu0 %v623_v44 }
  0x94   : > { %4922 = vmatmul.msk.f32.gmra.mxu1 %vm688_vm1, %v632_v47 }
  0x95   : > { %841 = vmatmul.f32.gmra.mxu0 %v625_v46  ;;  %v645_v46 = vld [vmem:[%s5665_s25 + $0x160] sm:$0xff] }
  0x99   : > { %v917_v49 = vpop.f32.mrf.mxu1 }
  0x9c   : > { %4923 = vmatmul.msk.f32.gmra.mxu1 %vm688_vm1, %v634_v50 }
  0x9d   : > { %844 = vmatmul.f32.gmra.mxu0 %v627_v48 }
  0xa1   : > { %v920_v52 = vpop.f32.mrf.mxu1 }
  0xa4   : > { %4924 = vmatmul.msk.f32.gmra.mxu1 %vm688_vm1, %v636_v53 }
  0xa5   : > { %847 = vmatmul.f32.gmra.mxu0 %v629_v51 }
  0xa9   : > { %v923_v55 = vpop.f32.mrf.mxu1 }
  0xac   : > { %4925 = vmatmul.msk.f32.gmra.mxu1 %vm688_vm1, %v638_v56 }
  0xad   : > { %850 = vmatmul.f32.gmra.mxu0 %v631_v54  ;;  %v652_v54 = vld [vmem:[%s5665_s25 + $0x198] sm:$0xff] }
  0xb1   : > { %v926_v59 = vpop.f32.mrf.mxu1 }
  0xb2   : > { %v806_v57 = vpop.f32.mrf.mxu0 }
  0xb3   : > { %v807_v2 = vadd.f32 %v5764_v63, %v806_v57 }
  0xb4   : > { %4926 = vmatmul.msk.f32.gmra.mxu1 %vm688_vm1, %v640_v60 }
  0xb5   : > { %853 = vmatmul.f32.gmra.mxu0 %v633_v58  ;;  %v918_v5 = vadd.f32 %v917_v49, %v807_v2 }
  0xb7   : > { %v1011_v10 = vmax.f32 %v918_v5, 0.0  ;;  %v654_v5 = vld [vmem:[%s5665_s25 + $0x1a8] sm:$0xff] }
  0xb9   : > { %v929_v0 = vpop.f32.mrf.mxu1 }
  0xba   : > { %v809_v61 = vpop.f32.mrf.mxu0 }
  0xbb   : > { %v810_v11 = vadd.f32 %v5764_v63, %v809_v61 }
  0xbc   : > { %4927 = vmatmul.msk.f32.gmra.mxu1 %vm688_vm1, %v642_v1 }
  0xbd   : > { %856 = vmatmul.f32.gmra.mxu0 %v635_v62  ;;  %v921_v16 = vadd.f32 %v920_v52, %v810_v11  ;;  %v647_v62 = vld [vmem:[%s5665_s25 + $0x170] sm:$0xff] }
  0xbf   : > { %v1012_v21 = vmax.f32 %v921_v16, 0.0 }
  0xc1   : > { %v932_v8 = vpop.f32.mrf.mxu1 }
  0xc2   : > { %v812_v3 = vpop.f32.mrf.mxu0 }
  0xc3   : > { %v813_v6 = vadd.f32 %v5764_v63, %v812_v3 }
  0xc4   : > { %4928 = vmatmul.msk.f32.gmra.mxu1 %vm688_vm1, %v644_v9  ;;  %v649_v9 = vld [vmem:[%s5665_s25 + $0x180] sm:$0xff] }
  0xc5   : > { %v924_v7 = vadd.f32 %v923_v55, %v813_v6  ;;  %859 = vmatmul.f32.gmra.mxu0 %v637_v4 }
  0xc7   : > { %v1013_v12 = vmax.f32 %v924_v7, 0.0 }
  0xc9   : > { %v1041_v13 = vmax.f32 %v1011_v10, %v1013_v12  ;;  %v5776_v19 = vpop.f32.mrf.mxu1 }
  0xca   : > { %v815_v14 = vpop.f32.mrf.mxu0 }
  0xcb   : > { %v816_v17 = vadd.f32 %v5764_v63, %v815_v14 }
  0xcc   : > { %4929 = vmatmul.msk.f32.gmra.mxu1 %vm688_vm1, %v646_v20 }
  0xcd   : > { %v927_v18 = vadd.f32 %v926_v59, %v816_v17  ;;  %862 = vmatmul.f32.gmra.mxu0 %v639_v15  ;;  %v656_v15 = vld [vmem:[%s5665_s25 + $0x1b8] sm:$0xff] }
  0xcf   : > { %v1014_v22 = vmax.f32 %v927_v18, 0.0 }
  0xd1   : > { %v1042_v23 = vmax.f32 %v1012_v21, %v1014_v22  ;;  %v5784_v28 = vpop.f32.mrf.mxu1  ;;  %v651_v21 = vld [vmem:[%s5665_s25 + $0x190] sm:$0xff] }
  0xd2   : > { %v818_v24 = vpop.f32.mrf.mxu0 }
  0xd3   : > { %v819_v26 = vadd.f32 %v5764_v63, %v818_v24 }
  0xd4   : > { %4930 = vmatmul.msk.f32.gmra.mxu1 %vm688_vm1, %v648_v29  ;;  %v658_v29 = vld [vmem:[%s5665_s25 + $0x1c8] sm:$0xff] }
  0xd5   : > { %v5782_v27 = vadd.f32 %v929_v0, %v819_v26  ;;  %865 = vmatmul.f32.gmra.mxu0 %v641_v25 }
  0xd7   : > { %v1015_v30 = vmax.f32 %v5782_v27, 0.0 }
  0xd9   : > { %v1043_v31 = vmax.f32 %v1041_v13, %v1015_v30  ;;  %v941_v39 = vpop.f32.mrf.mxu1 }
  0xda   : > { %v821_v32 = vpop.f32.mrf.mxu0 }
  0xdb   : > { %v1046_v34 = vrot.slane %v1043_v31, 1  ;;  %v822_v35 = vadd.f32 %v5764_v63, %v821_v32  ;;  %v1049_v37 = vrot.slane %v1043_v31, 2 }
  0xdc   : > { %4931 = vmatmul.msk.f32.gmra.mxu1 %vm688_vm1, %v650_v40 }
  0xdd   : > { %v1048_v36 = vmax.f32 %v1043_v31, %v1046_v34  ;;  %v5791_v38 = vadd.f32 %v932_v8, %v822_v35  ;;  %868 = vmatmul.f32.gmra.mxu0 %v643_v33 }
  0xdf   : > { %v1051_v41 = vmax.f32 %v1048_v36, %v1049_v37  ;;  %v1016_v42 = vmax.f32 %v5791_v38, 0.0 }
  0xe1   : > { %v1061_v43 = vrot.slane %v1051_v41, 1  ;;  %v1044_v44 = vmax.f32 %v1042_v23, %v1016_v42  ;;  %v1063_v49 = vrot.slane %v1051_v41, 2  ;;  %v944_v53 = vpop.f32.mrf.mxu1 }
  0xe2   : > { %v824_v45 = vpop.f32.mrf.mxu0 }
  0xe3   : > { %v1053_v47 = vrot.slane %v1044_v44, 2  ;;  %v1056_v48 = vrot.slane %v1044_v44, 1  ;;  %v1076_v50 = vsel %vm1075_vm2, %v1051_v41, %v1061_v43  ;;  %v825_v2 = vadd.f32 %v5764_v63, %v824_v45 }
  0xe4   : > { %v1078_v57 = vsel %vm1077_vm3, %v1076_v50, %v1063_v49  ;;  %4932 = vmatmul.msk.f32.gmra.mxu1 %vm688_vm1, %v652_v54 }
  0xe5   : > { %v1055_v51 = vmax.f32 %v1048_v36, %v1053_v47  ;;  %v1058_v52 = vmax.f32 %v1044_v44, %v1056_v48  ;;  %871 = vmatmul.f32.gmra.mxu0 %v645_v46  ;;  %v936_v7 = vadd.f32 %v5776_v19, %v825_v2  ;;  %v653_v36 = vld [vmem:[%s5665_s25 + $0x1a0] sm:$0xff]  ;;  %v660_v44 = vld [vmem:[%s5665_s25 + $0x1d8] sm:$0xff] }
  0xe7   : > { %v1059_v55 = vmax.f32 %v1058_v52, %v1053_v47  ;;  %v1066_v56 = vrot.slane %v1055_v51, 3  ;;  %v1017_v10 = vmax.f32 %v936_v7, 0.0  ;;  %v655_v52 = vld [vmem:[%s5665_s25 + $0x1b0] sm:$0xff] }
  0xe9   : > { %v1069_v58 = vrot.slane %v1059_v55, 4  ;;  %v1071_v59 = vrot.slane %v1059_v55, 5  ;;  %v1079_v60 = vsel %vm9308_vm0, %v1078_v57, %v1066_v56  ;;  %v1073_v0 = vrot.slane %v1059_v55, 6  ;;  %v5808_v4 = vpop.f32.mrf.mxu1 }
  0xea   : > { %v827_v61 = vpop.f32.mrf.mxu0  ;;  %v1086_v16 = vmax.f32 %v1015_v30, %v1017_v10 }
  0xeb   : > { %v1081_v1 = vsel %vm9304_vm4, %v1079_v60, %v1069_v58  ;;  %v828_v11 = vadd.f32 %v5764_v63, %v827_v61  ;;  %v657_v61 = vld [vmem:[%s5665_s25 + $0x1c0] sm:$0xff] }
  0xec   : > { %v1083_v3 = vsel %vm9303_vm5, %v1081_v1, %v1071_v59  ;;  %4933 = vmatmul.msk.f32.gmra.mxu1 %vm688_vm1, %v654_v5  ;;  %v659_v1 = vld [vmem:[%s5665_s25 + $0x1d0] sm:$0xff] }
  0xed   : > { %874 = vmatmul.f32.gmra.mxu0 %v647_v62  ;;  %v5812_v6 = vsel %vm9312_vm6, %v1083_v3, %v1073_v0  ;;  %v939_v17 = vadd.f32 %v5784_v28, %v828_v11 }
  0xef   : > { %v1018_v22 = vmax.f32 %v939_v17, 0.0 }
  0xf1   : > { %v5821_v14 = vpop.f32.mrf.mxu1  ;;  %v1087_v30 = vmax.f32 %v1016_v42, %v1018_v22 }
  0xf2   : > { %v830_v8 = vpop.f32.mrf.mxu0 }
  0xf3   : > { %v831_v12 = vadd.f32 %v5764_v63, %v830_v8 }
  0xf4   : > { %4934 = vmatmul.msk.f32.gmra.mxu1 %vm688_vm1, %v656_v15 }
  0xf5   : > { %v5819_v13 = vadd.f32 %v941_v39, %v831_v12  ;;  %877 = vmatmul.f32.gmra.mxu0 %v649_v9 }
  0xf7   : > { %v1019_v18 = vmax.f32 %v5819_v13, 0.0 }
  0xf9   : > { %v1088_v19 = vmax.f32 %v1086_v16, %v1019_v18  ;;  %v5833_v28 = vpop.f32.mrf.mxu1 }
  0xfa   : > { %v833_v20 = vpop.f32.mrf.mxu0 }
  0xfb   : > { %v1091_v23 = vrot.slane %v1088_v19, 1  ;;  %v834_v24 = vadd.f32 %v5764_v63, %v833_v20  ;;  %v1094_v26 = vrot.slane %v1088_v19, 2 }
  0xfc   : > { %4935 = vmatmul.msk.f32.gmra.mxu1 %vm688_vm1, %v658_v29 }
  0xfd   : > { %v1093_v25 = vmax.f32 %v1088_v19, %v1091_v23  ;;  %v5831_v27 = vadd.f32 %v944_v53, %v834_v24  ;;  %880 = vmatmul.f32.gmra.mxu0 %v651_v21 }
  0xff   : > { %v1096_v31 = vmax.f32 %v1093_v25, %v1094_v26  ;;  %v1020_v32 = vmax.f32 %v5831_v27, 0.0 }
 0x101   : > { %v1106_v33 = vrot.slane %v1096_v31, 1  ;;  %v1089_v34 = vmax.f32 %v1087_v30, %v1020_v32  ;;  %v1108_v40 = vrot.slane %v1096_v31, 2  ;;  %v5844_v43 = vpop.f32.mrf.mxu1 }
 0x102   : > { %v836_v35 = vpop.f32.mrf.mxu0 }
 0x103   : > { %v1098_v37 = vrot.slane %v1089_v34, 2  ;;  %v1101_v39 = vrot.slane %v1089_v34, 1  ;;  %v1120_v41 = vsel %vm1075_vm2, %v1096_v31, %v1106_v33  ;;  %v837_v23 = vadd.f32 %v5764_v63, %v836_v35 }
 0x104   : > { %v1121_v47 = vsel %vm1077_vm3, %v1120_v41, %v1108_v40  ;;  %4936 = vmatmul.msk.f32.gmra.mxu1 %vm688_vm1, %v660_v44 }
 0x105   : > { %v1100_v38 = vmax.f32 %v1093_v25, %v1098_v37  ;;  %v1103_v42 = vmax.f32 %v1089_v34, %v1101_v39  ;;  %883 = vmatmul.f32.gmra.mxu0 %v653_v36  ;;  %v948_v30 = vadd.f32 %v5808_v4, %v837_v23 }
 0x107   : > { %v1104_v45 = vmax.f32 %v1103_v42, %v1098_v37  ;;  %v1111_v46 = vrot.slane %v1100_v38, 3  ;;  %v1021_v36 = vmax.f32 %v948_v30, 0.0 }
 0x109   : > { %v1114_v48 = vrot.slane %v1104_v45, 4  ;;  %v1116_v49 = vrot.slane %v1104_v45, 5  ;;  %v1122_v50 = vsel %vm9308_vm0, %v1121_v47, %v1111_v46  ;;  %v1118_v53 = vrot.slane %v1104_v45, 6  ;;  %v959_v56 = vpop.f32.mrf.mxu1 }
 0x10a   : > { %v839_v51 = vpop.f32.mrf.mxu0 }
 0x10b   : > { %v1123_v54 = vsel %vm9304_vm4, %v1122_v50, %v1114_v48  ;;  %v840_v40 = vadd.f32 %v5764_v63, %v839_v51 }
 0x10c   : > { %v1124_v55 = vsel %vm9303_vm5, %v1123_v54, %v1116_v49 }
 0x10d   : > { %886 = vmatmul.f32.gmra.mxu0 %v655_v52  ;;  %v5854_v57 = vsel %vm9312_vm6, %v1124_v55, %v1118_v53  ;;  %v951_v49 = vadd.f32 %v5821_v14, %v840_v40 }
 0x10e   : > { %v1327_v58 = vrot.slane %v5854_v57, 1 }
 0x110   : > { %v5861_v59 = vsel %vm1344_vm7, %v5812_v6, %v1327_v58 }
 0x111   : > { %v962_v62 = vpop.f32.mrf.mxu1 }
 0x112   : > { %v842_v60 = vpop.f32.mrf.mxu0 }
 0x113   : > { %v843_v25 = vadd.f32 %v5764_v63, %v842_v60 }
 0x115   : > { %889 = vmatmul.f32.gmra.mxu0 %v657_v61  ;;  %v954_v33 = vadd.f32 %v5833_v28, %v843_v25  ;;  %v1126_v28 = vmax.f32 %v1019_v18, %v1021_v36  ;;  %v1022_v18 = vmax.f32 %v951_v49, 0.0 }
 0x117   : > { %v1023_v35 = vmax.f32 %v954_v33, 0.0 }
 0x119   : > { %v965_v2 = vpop.f32.mrf.mxu1  ;;  %v1128_v51 = vmax.f32 %v1126_v28, %v1023_v35 }
 0x11a   : > { %v845_v0 = vpop.f32.mrf.mxu0 }
 0x11b   : > { %v846_v45 = vadd.f32 %v5764_v63, %v845_v0 }
 0x11d   : > { %892 = vmatmul.f32.gmra.mxu0 %v659_v1  ;;  %v957_v55 = vadd.f32 %v5844_v43, %v846_v45 }
 0x121   : > { %v968_v5 = vpop.f32.mrf.mxu1 }
 0x122   : > { %v848_v3 = vpop.f32.mrf.mxu0 }
 0x123   : > { %v849_v26 = vadd.f32 %v5764_v63, %v848_v3 }
 0x125   : > { %v960_v34 = vadd.f32 %v959_v56, %v849_v26 }
 0x127   : > { %v1025_v41 = vmax.f32 %v960_v34, 0.0  ;;  %v1134_v34 = vrot.slane %v1128_v51, 2 }
 0x129   : > { %v971_v8 = vpop.f32.mrf.mxu1  ;;  %v1166_v52 = vmax.f32 %v1023_v35, %v1025_v41 }
 0x12a   : > { %v851_v7 = vpop.f32.mrf.mxu0 }
 0x12b   : > { %v852_v4 = vadd.f32 %v5764_v63, %v851_v7 }
 0x12d   : > { %v963_v56 = vadd.f32 %v962_v62, %v852_v4 }
 0x131   : > { %v5865_v10 = vpop.f32.mrf.mxu1 }
 0x132   : > { %v854_v9 = vpop.f32.mrf.mxu0 }
 0x133   : > { %v855_v31 = vadd.f32 %v5764_v63, %v854_v9  ;;  %v1026_v9 = vmax.f32 %v963_v56, 0.0 }
 0x135   : > { %v966_v37 = vadd.f32 %v965_v2, %v855_v31  ;;  %v1131_v2 = vrot.slane %v1128_v51, 1 }
 0x137   : > { %v1027_v46 = vmax.f32 %v966_v37, 0.0  ;;  %v1133_v23 = vmax.f32 %v1128_v51, %v1131_v2 }
 0x139   : > { %v977_v12 = vpop.f32.mrf.mxu1  ;;  %v1168_v60 = vmax.f32 %v1166_v52, %v1027_v46  ;;  %v1136_v35 = vmax.f32 %v1133_v23, %v1134_v34 }
 0x13a   : > { %v857_v11 = vpop.f32.mrf.mxu0 }
 0x13b   : > { %v858_v50 = vadd.f32 %v5764_v63, %v857_v11  ;;  %v1171_v43 = vrot.slane %v1168_v60, 1  ;;  %v1174_v37 = vrot.slane %v1168_v60, 2  ;;  %v1146_v49 = vrot.slane %v1136_v35, 1 }
 0x13d   : > { %v969_v0 = vadd.f32 %v968_v5, %v858_v50  ;;  %v1127_v5 = vmax.f32 %v1020_v32, %v1022_v18  ;;  %v1173_v31 = vmax.f32 %v1168_v60, %v1171_v43  ;;  %v1160_v2 = vsel %vm1075_vm2, %v1136_v35, %v1146_v49 }
 0x141   : > { %v5867_v16 = vpop.f32.mrf.mxu1 }
 0x142   : > { %v860_v15 = vpop.f32.mrf.mxu0 }
 0x143   : > { %v861_v39 = vadd.f32 %v5764_v63, %v860_v15 }
 0x145   : > { %v972_v47 = vadd.f32 %v971_v8, %v861_v39  ;;  %v1024_v8 = vmax.f32 %v957_v55, 0.0 }
 0x147   : > { %v1029_v61 = vmax.f32 %v972_v47, 0.0  ;;  %v1167_v26 = vmax.f32 %v1024_v8, %v1026_v9 }
 0x149   : > { %v983_v19 = vpop.f32.mrf.mxu1  ;;  %v1206_v62 = vmax.f32 %v1027_v46, %v1029_v61 }
 0x14a   : > { %v863_v6 = vpop.f32.mrf.mxu0 }
 0x14b   : > { %v864_v1 = vadd.f32 %v5764_v63, %v863_v6  ;;  %v1028_v6 = vmax.f32 %v969_v0, 0.0 }
 0x14d   : > { %v1169_v36 = vmax.f32 %v1167_v26, %v1028_v6 }
 0x14f   : > { %v1181_v4 = vrot.slane %v1169_v36, 1 }
 0x151   : > { %v986_v21 = vpop.f32.mrf.mxu1  ;;  %v1183_v60 = vmax.f32 %v1169_v36, %v1181_v4 }
 0x152   : > { %v866_v17 = vpop.f32.mrf.mxu0 }
 0x153   : > { %v867_v38 = vadd.f32 %v5764_v63, %v866_v17 }
 0x155   : > { %v978_v53 = vadd.f32 %v977_v12, %v867_v38 }
 0x157   : > { %v1031_v3 = vmax.f32 %v978_v53, 0.0 }
 0x159   : > { %v989_v24 = vpop.f32.mrf.mxu1 }
 0x15a   : > { %v869_v20 = vpop.f32.mrf.mxu0 }
 0x15b   : > { %v870_v11 = vadd.f32 %v5764_v63, %v869_v20  ;;  %v1129_v20 = vmax.f32 %v1127_v5, %v1024_v8 }
 0x15d   : > { %v1141_v41 = vrot.slane %v1129_v20, 1  ;;  %v1138_v45 = vrot.slane %v1129_v20, 2 }
 0x15f   : > { %v1143_v50 = vmax.f32 %v1129_v20, %v1141_v41  ;;  %v1140_v53 = vmax.f32 %v1133_v23, %v1138_v45 }
 0x161   : > { %v992_v44 = vpop.f32.mrf.mxu1  ;;  %v1151_v9 = vrot.slane %v1140_v53, 3 }
 0x162   : > { %v872_v22 = vpop.f32.mrf.mxu0 }
 0x163   : > { %v873_v48 = vadd.f32 %v5764_v63, %v872_v22 }
 0x165   : > { %v984_v13 = vadd.f32 %v983_v19, %v873_v48  ;;  %v975_v19 = vadd.f32 %v5865_v10, %v864_v1 }
 0x167   : > { %v1033_v15 = vmax.f32 %v984_v13, 0.0  ;;  %v1030_v27 = vmax.f32 %v975_v19, 0.0  ;;  %v1148_v13 = vrot.slane %v1136_v35, 2 }
 0x169   : > { %v5892_v17 = vpop.f32.mrf.mxu1  ;;  %v1246_v33 = vmax.f32 %v1031_v3, %v1033_v15  ;;  %v1207_v28 = vmax.f32 %v1028_v6, %v1030_v27  ;;  %v1161_v26 = vsel %vm1077_vm3, %v1160_v2, %v1148_v13 }
 0x16a   : > { %v875_v29 = vpop.f32.mrf.mxu0  ;;  %v1162_v34 = vsel %vm9308_vm0, %v1161_v26, %v1151_v9 }
 0x16b   : > { %v876_v12 = vadd.f32 %v5764_v63, %v875_v29  ;;  %v981_v29 = vadd.f32 %v5867_v16, %v870_v11  ;;  %v1176_v16 = vmax.f32 %v1173_v31, %v1174_v37 }
 0x16d   : > { %v987_v30 = vadd.f32 %v986_v21, %v876_v12  ;;  %v1032_v38 = vmax.f32 %v981_v29, 0.0  ;;  %v1178_v21 = vrot.slane %v1169_v36, 2  ;;  %v1186_v55 = vrot.slane %v1176_v16, 1 }
 0x16e   : > { %v1188_v11 = vrot.slane %v1176_v16, 2 }
 0x16f   : > { %v1209_v51 = vmax.f32 %v1207_v28, %v1032_v38  ;;  %v1180_v56 = vmax.f32 %v1173_v31, %v1178_v21  ;;  %v5914_v15 = vmax.f32 %v1183_v60, %v1178_v21 }
 0x171   : > { %v5905_v48 = vpop.f32.mrf.mxu1  ;;  %v1218_v12 = vrot.slane %v1209_v51, 2  ;;  %v1191_v5 = vrot.slane %v1180_v56, 3  ;;  %v1194_v36 = vrot.slane %v5914_v15, 4  ;;  %v1196_v28 = vrot.slane %v5914_v15, 5 }
 0x172   : > { %v878_v42 = vpop.f32.mrf.mxu0 }
 0x173   : > { %v879_v54 = vadd.f32 %v5764_v63, %v878_v42  ;;  %v1034_v42 = vmax.f32 %v987_v30, 0.0 }
 0x175   : > { %v5888_v14 = vadd.f32 %v989_v24, %v879_v54  ;;  %v1208_v24 = vmax.f32 %v1206_v62, %v1031_v3  ;;  %v1247_v52 = vmax.f32 %v1032_v38, %v1034_v42  ;;  %v5910_v3 = vmax.f32 %v1143_v50, %v1138_v45 }
 0x176   : > { %v1200_v62 = vsel %vm1075_vm2, %v1176_v16, %v1186_v55 }
 0x177   : > { %v1035_v25 = vmax.f32 %v5888_v14, 0.0  ;;  %v1211_v10 = vrot.slane %v1208_v24, 1  ;;  %v1214_v54 = vrot.slane %v1208_v24, 2  ;;  %v1154_v29 = vrot.slane %v5910_v3, 4 }
 0x178   : > { %v1201_v30 = vsel %vm1077_vm3, %v1200_v62, %v1188_v11  ;;  %v1156_v16 = vrot.slane %v5910_v3, 5  ;;  %v1158_v2 = vrot.slane %v5910_v3, 6  ;;  %v1198_v62 = vrot.slane %v5914_v15, 6 }
 0x179   : > { %v1248_v39 = vmax.f32 %v1246_v33, %v1035_v25  ;;  %v1213_v47 = vmax.f32 %v1208_v24, %v1211_v10  ;;  %v1001_v33 = vpop.f32.mrf.mxu1  ;;  %v1202_v27 = vsel %vm9308_vm0, %v1201_v30, %v1191_v5  ;;  %v1163_v21 = vsel %vm9304_vm4, %v1162_v34, %v1154_v29 }
 0x17a   : > { %v881_v7 = vpop.f32.mrf.mxu0  ;;  %v1203_v53 = vsel %vm9304_vm4, %v1202_v27, %v1194_v36 }
 0x17b   : > { %v882_v22 = vadd.f32 %v5764_v63, %v881_v7  ;;  %v1216_v18 = vmax.f32 %v1213_v47, %v1214_v54  ;;  %v1221_v7 = vrot.slane %v1209_v51, 1  ;;  %v1254_v43 = vrot.slane %v1248_v39, 2 }
 0x17c   : > { %v1220_v31 = vmax.f32 %v1213_v47, %v1218_v12  ;;  %v1204_v11 = vsel %vm9303_vm5, %v1203_v53, %v1196_v28 }
 0x17d   : > { %v5900_v32 = vadd.f32 %v992_v44, %v882_v22  ;;  %v1251_v44 = vrot.slane %v1248_v39, 1  ;;  %v1226_v19 = vrot.slane %v1216_v18, 1  ;;  %v1223_v24 = vmax.f32 %v1209_v51, %v1221_v7 }
 0x17e   : > { %v1228_v10 = vrot.slane %v1216_v18, 2  ;;  %v1231_v4 = vrot.slane %v1220_v31, 3 }
 0x17f   : > { %v1036_v46 = vmax.f32 %v5900_v32, 0.0  ;;  %v1253_v0 = vmax.f32 %v1248_v39, %v1251_v44  ;;  %v1240_v39 = vsel %vm1075_vm2, %v1216_v18, %v1226_v19  ;;  %v1224_v41 = vmax.f32 %v1223_v24, %v1218_v12 }
 0x180   : > { %v1241_v50 = vsel %vm1077_vm3, %v1240_v39, %v1228_v10  ;;  %v1205_v24 = vsel %vm9312_vm6, %v1204_v11, %v1198_v62 }
 0x181   : > { %v1249_v61 = vmax.f32 %v1247_v52, %v1036_v46  ;;  %v1256_v22 = vmax.f32 %v1253_v0, %v1254_v43  ;;  %v1234_v54 = vrot.slane %v1224_v41, 4  ;;  %v1236_v7 = vrot.slane %v1224_v41, 5  ;;  %v1004_v9 = vpop.f32.mrf.mxu1 }
 0x182   : > { %v884_v40 = vpop.f32.mrf.mxu0  ;;  %v1238_v30 = vrot.slane %v1224_v41, 6 }
 0x183   : > { %v885_v8 = vadd.f32 %v5764_v63, %v884_v40  ;;  %v1261_v6 = vrot.slane %v1249_v61, 1  ;;  %v1258_v23 = vrot.slane %v1249_v61, 2  ;;  %v1266_v40 = vrot.slane %v1256_v22, 1 }
 0x184   : > { %v1268_v47 = vrot.slane %v1256_v22, 2 }
 0x185   : > { %v996_v20 = vadd.f32 %v5892_v17, %v885_v8  ;;  %v1263_v37 = vmax.f32 %v1249_v61, %v1261_v6  ;;  %v1260_v17 = vmax.f32 %v1253_v0, %v1258_v23  ;;  %v1280_v51 = vsel %vm1075_vm2, %v1256_v22, %v1266_v40 }
 0x186   : > { %v1242_v61 = vsel %vm9308_vm0, %v1241_v50, %v1231_v4  ;;  %v1281_v13 = vsel %vm1077_vm3, %v1280_v51, %v1268_v47 }
 0x187   : > { %v1037_v38 = vmax.f32 %v996_v20, 0.0  ;;  %v1264_v44 = vmax.f32 %v1263_v37, %v1258_v23  ;;  %v1271_v52 = vrot.slane %v1260_v17, 3  ;;  %v1243_v43 = vsel %vm9304_vm4, %v1242_v61, %v1234_v54 }
 0x188   : > { %v1244_v20 = vsel %vm9303_vm5, %v1243_v43, %v1236_v7  ;;  %v1333_v37 = vrot.slane %v1205_v24, 3  ;;  %v9309_v24 = vmov 0  }
 0x189   : > { %v1286_v55 = vmax.f32 %v1035_v25, %v1037_v38  ;;  %v1274_v18 = vrot.slane %v1264_v44, 4  ;;  %v1282_v14 = vsel %vm9308_vm0, %v1281_v13, %v1271_v52  ;;  %v1276_v5 = vrot.slane %v1264_v44, 5  ;;  %5505 = vset.pattern.permute.xlu1 %v9309_v24  ;;  %5506 = vset.pattern.permute.xlu2 %v9309_v24 }
 0x18a   : > { %v887_v1 = vpop.f32.mrf.mxu0  ;;  %v1245_v36 = vsel %vm9312_vm6, %v1244_v20, %v1238_v30  ;;  %v1278_v27 = vrot.slane %v1264_v44, 6  ;;  %v5998_v20 = vld [vmem:[%s9297_s17 + $0x18] sm:$0xff]  ;;  %5507 = vset.pattern.permute.xlu0 %v9309_v24 }
 0x18b   : > { %v888_v42 = vadd.f32 %v5764_v63, %v887_v1  ;;  %v1164_v1 = vsel %vm9303_vm5, %v1163_v21, %v1156_v16  ;;  %v1283_v23 = vsel %vm9304_vm4, %v1282_v14, %v1274_v18  ;;  %vm1558_vm11 = vcmp.eq.s32.totalorder %v5998_v20, 0 }
 0x18c   : > { %v1165_v6 = vsel %vm9312_vm6, %v1164_v1, %v1158_v2  ;;  %v1284_v15 = vsel %vm9303_vm5, %v1283_v23, %v1276_v5  ;;  %v1469_v23 = vld [vmem:[%s9297_s17 + $0x8] sm:$0xff]  ;;  %v1565_v30 = vsel %vm1558_vm11, 1, %v9309_v24 }
 0x18d   : > { %v999_v56 = vadd.f32 %v5905_v48, %v888_v42  ;;  %v1330_v31 = vrot.slane %v1165_v6, 2  ;;  %v1285_v40 = vsel %vm9312_vm6, %v1284_v15, %v1278_v27  ;;  %v5525_v6 = vmov 3136.0   ;;  %v1472_v15 = vld [vmem:[%s9297_s17 + $0x20] sm:$0xff]  ;;  %1579 = vperm.xlu2 %5506, %v1565_v30   ;;  %v1480_v30 = vld [vmem:[%s9285_s5 + $0x18] sm:$0xff] }
 0x18e   : > { %v1339_v42 = vrot.slane %v1285_v40, 5  ;;  %5513 = vrcp.f32 %v5525_v6  ;;  %vm1556_vm10 = vcmp.eq.s32.totalorder %v1469_v23, 0  ;;  %vm1559_vm14 = vcmp.eq.s32.totalorder %v1472_v15, 0 }
 0x18f   : > { %v1038_v25 = vmax.f32 %v999_v56, 0.0  ;;  %v5956_v32 = vsel %vm9312_vm6, %v1327_v58, %v1330_v31  ;;  %v1352_v58 = vsel %vm1351_vm8, %v5861_v59, 0.0  ;;  %v1566_v27 = vsel %vm1559_vm14, 1, %v9309_v24 }
 0x190   : > { %v1353_v4 = vsel %vm1351_vm8, %v5956_v32, 0.0  ;;  %vm1883_vm14 = vcmp.eq.s32.totalorder %v1472_v15, 6 }
 0x191   : > { %v1287_v26 = vmax.f32 %v1036_v46, %v1038_v25  ;;  %v1354_v52 = vadd.f32 %v1353_v4, %v1352_v58 }
 0x192   : > { %v890_v35 = vpop.f32.mrf.mxu0 }
 0x193   : > { %v891_v45 = vadd.f32 %v5764_v63, %v890_v35  ;;  %v1336_v35 = vrot.slane %v1245_v36, 4  ;;  %v6016_v36 = vld [vmem:[%s9297_s17 + $0x30] sm:$0x1] }
 0x194   : > { %vm1561_vm15 = vcmp.eq.s32.totalorder %v6016_v36, 0 }
 0x195   : > { %v1002_v49 = vadd.f32 %v1001_v33, %v891_v45  ;;  %v5960_v45 = vsel %vm9303_vm5, %v1330_v31, %v1333_v37  ;;  %v5966_v57 = vsel %vm9304_vm4, %v1333_v37, %v1336_v35  ;;  %v5974_v51 = vsel %vm9308_vm0, %v1336_v35, %v1339_v42  ;;  %1582 = vperm.xlu2 %5506, %v1566_v27  }
 0x196   : > { %v1355_v50 = vsel %vm1351_vm8, %v5960_v45, 0.0  ;;  %v1359_v13 = vsel %vm1351_vm8, %v5974_v51, 0.0 }
 0x197   : > { %v1039_v60 = vmax.f32 %v1002_v49, 0.0 }
 0x199   : > { %v1288_v0 = vmax.f32 %v1286_v55, %v1039_v60  ;;  %v1357_v55 = vsel %vm1351_vm8, %v5966_v57, 0.0  ;;  %v1356_v60 = vadd.f32 %v1355_v50, %v1354_v52 }
 0x19a   : > { %v893_v8 = vpop.f32.mrf.mxu0 }
 0x19b   : > { %v1291_v48 = vrot.slane %v1288_v0, 1  ;;  %v894_v12 = vadd.f32 %v5764_v63, %v893_v8  ;;  %v1294_v3 = vrot.slane %v1288_v0, 2 }
 0x19d   : > { %v1293_v19 = vmax.f32 %v1288_v0, %v1291_v48  ;;  %v1005_v22 = vadd.f32 %v1004_v9, %v894_v12  ;;  %v1358_v0 = vadd.f32 %v1357_v55, %v1356_v60 }
 0x19f   : > { %v1296_v63 = vmax.f32 %v1293_v19, %v1294_v3  ;;  %v1040_v29 = vmax.f32 %v1005_v22, 0.0  ;;  %v1360_v2 = vadd.f32 %v1359_v13, %v1358_v0 }
 0x1a1   : > { %v1306_v33 = vrot.slane %v1296_v63, 1  ;;  %v1289_v34 = vmax.f32 %v1287_v26, %v1040_v29  ;;  %v1308_v17 = vrot.slane %v1296_v63, 2  ;;  %v1470_v29 = vld [vmem:[%s9297_s17 + $0x10] sm:$0xff] }
 0x1a2   : > { %vm1557_vm12 = vcmp.eq.s32.totalorder %v1470_v29, 0 }
 0x1a3   : > { %v1298_v10 = vrot.slane %v1289_v34, 2  ;;  %v1301_v39 = vrot.slane %v1289_v34, 1  ;;  %v1320_v46 = vsel %vm1075_vm2, %v1296_v63, %v1306_v33  ;;  %v1563_v63 = vsel %vm1556_vm10, 1, %v9309_v24 }
 0x1a4   : > { %v1321_v28 = vsel %vm1077_vm3, %v1320_v46, %v1308_v17  ;;  %1573 = vperm.xlu1 %5505, %v1563_v63   ;;  %v1564_v33 = vsel %vm1557_vm12, 1, %v9309_v24  ;;  %v1568_v46 = vsel %vm1561_vm15, 1, %v9309_v24  ;;  %vm1880_vm10 = vcmp.eq.s32.totalorder %v1469_v23, 6  ;;  %v1483_v23 = vld [vmem:[%s9285_s5 + $0x30] sm:$0xff]  ;;  %v1482_v63 = vld [vmem:[%s9285_s5 + $0x28] sm:$0xff] }
 0x1a5   : > { %v1300_v41 = vmax.f32 %v1293_v19, %v1298_v10  ;;  %v1303_v38 = vmax.f32 %v1289_v34, %v1301_v39  ;;  %v5514_v19 = vpop.eup %5513  ;;  %vm1881_vm12 = vcmp.eq.s32.totalorder %v1470_v29, 6  ;;  %v1481_v29 = vld [vmem:[%s9285_s5 + $0x20] sm:$0xff] }
 0x1a6   : > { %v1377_v3 = vmul.f32 3136.0, %v5514_v19  ;;  %vm1381_vm13 = vweird.f32 %v5514_v19  ;;  %v1888_v13 = vsel %vm1881_vm12, 1, %v9309_v24 }
 0x1a7   : > { %v1304_v16 = vmax.f32 %v1303_v38, %v1298_v10  ;;  %v1311_v21 = vrot.slane %v1300_v41, 3 }
 0x1a8   : > { %v1378_v22 = vsub.f32 1.0, %v1377_v3 }
 0x1a9   : > { %v1314_v47 = vrot.slane %v1304_v16, 4  ;;  %v1316_v44 = vrot.slane %v1304_v16, 5  ;;  %v1322_v49 = vsel %vm9308_vm0, %v1321_v28, %v1311_v21  ;;  %v1318_v53 = vrot.slane %v1304_v16, 6  ;;  %v1468_v28 = vld [vmem:[%s9297_s17] sm:$0xff] }
 0x1aa   : > { %v1379_v26 = vmul.f32 %v5514_v19, %v1378_v22  ;;  %vm1879_vm11 = vcmp.eq.s32.totalorder %v1468_v28, 6 }
 0x1ab   : > { %v1323_v54 = vsel %vm9304_vm4, %v1322_v49, %v1314_v47  ;;  %v1886_v49 = vsel %vm1879_vm11, 1, %v9309_v24  ;;  %vm1885_vm11 = vcmp.eq.s32.totalorder %v6016_v36, 6  ;;  %v1478_v36 = vld [vmem:[%s9285_s5 + $0x8] sm:$0xff] }
 0x1ac   : > { %v1324_v56 = vsel %vm9303_vm5, %v1323_v54, %v1316_v44  ;;  %v1380_v31 = vadd.f32 %v5514_v19, %v1379_v26  ;;  %1576 = vperm.xlu1 %5505, %v1564_v33   ;;  %1894 = vperm.xlu2 %5506, %v1886_v49  }
 0x1ad   : > { %v1325_v61 = vsel %vm9312_vm6, %v1324_v56, %v1318_v53  ;;  %v1887_v53 = vsel %vm1880_vm10, 1, %v9309_v24 }
 0x1ae   : > { %v5983_v18 = vrot.slane %v1325_v61, 6  ;;  %v6011_v34 = vsel %vm1381_vm13, %v5514_v19, %v1380_v31  ;;  %vm1882_vm13 = vcmp.eq.s32.totalorder %v5998_v20, 6  ;;  %v1484_v19 = vld [vmem:[%s9285_s5 + $0x38] sm:$0xff]  ;;  %v1479_v31 = vld [vmem:[%s9285_s5 + $0x10] sm:$0xff] }
 0x1af   : > { %1518 = vmatpush.msra.mxu2 %v1484_v19  ;;  %v1459_v19 = vld [vmem:[%s9284_s4 + $0x28] sm:$0xff] }
 0x1b0   : > { %v1350_v1 = vsel %vm1077_vm3, %v1339_v42, %v5983_v18  ;;  %v1364_v9 = vsel %vm1363_vm9, %v5983_v18, 0.0 }
 0x1b1   : > { %v1361_v7 = vsel %vm1351_vm8, %v1350_v1, 0.0  ;;  %1519 = vmatpush.msra.mxu2 %v1483_v23 }
 0x1b2   : > { %v1362_v8 = vadd.f32 %v1361_v7, %v1360_v2  ;;  %v1473_v2 = vld [vmem:[%s9297_s17 + $0x28] sm:$0xff]  ;;  %v1890_v7 = vsel %vm1883_vm14, 1, %v9309_v24 }
 0x1b3   : > { %vm1884_vm15 = vcmp.eq.s32.totalorder %v1473_v2, 6  ;;  %vm1560_vm10 = vcmp.eq.s32.totalorder %v1473_v2, 0  ;;  %1520 = vmatpush.msra.mxu2 %v1482_v63 }
 0x1b4   : > { %v1365_v11 = vadd.f32 %v1364_v9, %v1362_v8  ;;  %1588 = vperm.xlu1 %5505, %v1568_v46   ;;  %1900 = vperm.xlu2 %5506, %v1888_v13   ;;  %v1891_v8 = vsel %vm1884_vm15, 1, %v9309_v24  ;;  %v1477_v46 = vld [vmem:[%s9285_s5] sm:$0xff] }
 0x1b5   : > { %1521 = vmatpush.msra.mxu2 %v1481_v29 }
 0x1b6   : > { %1366 = vadd.xlane.f32.xlu0 %v1365_v11  ;;  %v1567_v11 = vsel %vm1560_vm10, 1, %v9309_v24 }
 0x1b7   : > { %1522 = vmatpush.msra.mxu2 %v1480_v30 }
 0x1b9   : > { %1523 = vmatpush.msra.mxu2 %v1479_v31 }
 0x1bb   : > { %1524 = vmatpush.msra.mxu2 %v1478_v36 }
 0x1bc   : > { %1897 = vperm.xlu1 %5505, %v1887_v53   ;;  %1906 = vperm.xlu2 %5506, %v1890_v7  }
 0x1bd   : > { %1525 = vmatpush.msra.mxu2 %v1477_v46  ;;  %v5132_v46 = vld [vmem:[%s9287_s7 + $0x470] sm:$0xff] }
 0x1be   : > { %2417 = vmatpush.msrb.mxu0 %v5132_v46 }
 0x1e7   : > { %v6085_v22 = vpop.permute.xlu2 %1579 }
 0x1e8   : > { %vm1593_vm15 = vcmp.eq.s32.totalorder %v6085_v22, 1 }
 0x1ef   : > { %v6092_v26 = vpop.permute.xlu2 %1582 }
 0x1f0   : > { %vm9305_vm10 = vcmp.eq.s32.totalorder %v6092_v26, 1 }
 0x216   : > { %v6083_v3 = vpop.permute.xlu1 %1573 }
 0x217   : > { %vm1591_vm4 = vcmp.eq.s32.totalorder %v6083_v3, 1  ;;  %v5084_v3 = vld [vmem:[%s9287_s7 + $0x360] sm:$0xff] }
 0x21e   : > { %v6090_v20 = vpop.permute.xlu1 %1576 }
 0x229   : > { %v1367_v14 = vpop.xlane.xlu0 %1366 }
 0x22a   : > { %v1368_v25 = vrot.slane %v1367_v14, 4 }
 0x22c   : > { %v1369_v48 = vadd.f32 %v1368_v25, %v1367_v14  ;;  %v1892_v14 = vsel %vm1885_vm11, 1, %v9309_v24 }
 0x22d   : > { %1912 = vperm.xlu2 %5506, %v1892_v14  }
 0x22e   : > { %v1370_v12 = vrot.slane %v1369_v48, 2 }
 0x230   : > { %v1371_v43 = vadd.f32 %v1370_v12, %v1369_v48 }
 0x232   : > { %v1372_v62 = vrot.slane %v1371_v43, 1 }
 0x234   : > { %v1373_v5 = vadd.f32 %v1372_v62, %v1371_v43 }
 0x236   : > { %5489 = vpush %v1373_v5 }
 0x267   : > { %s5490_s3 = spop %5489 }
 0x268   : > { %v1375_v37 = vstv %s5490_s3  ;;  %s9327_s3 = sld [smem:[#allocation35_spill]] }
 0x269   : > { %v1383_v10 = vmul.f32 %v6011_v34, %v1375_v37  ;;  %v6110_v37 = vpop.permute.xlu1 %1588 }
 0x26b   : > { %v6022_v39 = vsub.f32 %v5861_v59, %v1383_v10  ;;  %v6025_v40 = vsub.f32 %v5956_v32, %v1383_v10  ;;  %v6028_v17 = vsub.f32 %v5960_v45, %v1383_v10  ;;  %v6031_v35 = vsub.f32 %v5966_v57, %v1383_v10 }
 0x26c   : > { %v6035_v41 = vsub.f32 %v5974_v51, %v1383_v10  ;;  %v6043_v42 = vsub.f32 %v1350_v1, %v1383_v10  ;;  %v6053_v57 = vsub.f32 %v5983_v18, %v1383_v10  ;;  %v1889_v1 = vsel %vm1882_vm13, 1, %v9309_v24  ;;  %v6112_v10 = vpop.permute.xlu2 %1894 }
 0x26d   : > { %v1391_v38 = vmul.f32 %v6022_v39, %v6022_v39  ;;  %v1392_v59 = vmul.f32 %v6025_v40, %v6025_v40  ;;  %v1393_v32 = vmul.f32 %v6028_v17, %v6028_v17  ;;  %v1394_v45 = vmul.f32 %v6031_v35, %v6031_v35  ;;  %1903 = vperm.xlu1 %5505, %v1889_v1   ;;  %v1458_v1 = vld [vmem:[%s9284_s4 + $0x20] sm:$0xff] }
 0x26e   : > { %v1395_v58 = vmul.f32 %v6035_v41, %v6035_v41  ;;  %v1396_v50 = vmul.f32 %v6043_v42, %v6043_v42  ;;  %v1397_v54 = vmul.f32 %v6053_v57, %v6053_v57  ;;  %v1443_v49 = vld [vmem:[%s9327_s3 + $0x18] sm:$0xff]  ;;  %vm1914_vm0 = vcmp.eq.s32.totalorder %v6112_v10, 1  ;;  %v5055_v10 = vld [vmem:[%s9287_s7 + $0x2e8] sm:$0xff] }
 0x26f   : > { %v1398_v16 = vsel %vm1351_vm8, %v1391_v38, 0.0  ;;  %v1399_v21 = vsel %vm1351_vm8, %v1392_v59, 0.0  ;;  %v1401_v47 = vsel %vm1351_vm8, %v1393_v32, 0.0  ;;  %v1403_v51 = vsel %vm1351_vm8, %v1394_v45, 0.0 }
 0x270   : > { %v1400_v4 = vadd.f32 %v1399_v21, %v1398_v16  ;;  %v1405_v55 = vsel %vm1351_vm8, %v1395_v58, 0.0  ;;  %v1407_v60 = vsel %vm1351_vm8, %v1396_v50, 0.0  ;;  %v1409_v18 = vsel %vm1363_vm9, %v1397_v54, 0.0  ;;  %v1444_v54 = vld [vmem:[%s9327_s3 + $0x20] sm:$0xff] }
 0x271   : > { %vm1555_vm9 = vcmp.eq.s32.totalorder %v1468_v28, 0  ;;  %v6117_v45 = vpop.permute.xlu1 %1897  ;;  %v1440_v28 = vld [vmem:[%s9327_s3] sm:$0xff] }
 0x272   : > { %v1402_v44 = vadd.f32 %v1401_v47, %v1400_v4  ;;  %v1562_v9 = vsel %vm1555_vm9, 1, %v9309_v24  ;;  %v1441_v47 = vld [vmem:[%s9327_s3 + $0x8] sm:$0xff]  ;;  %vm9307_vm9 = vcmp.eq.s32.totalorder %v6090_v20, 1 }
 0x274   : > { %v1404_v52 = vadd.f32 %v1403_v51, %v1402_v44  ;;  %v6119_v16 = vpop.permute.xlu2 %1900  ;;  %v1442_v44 = vld [vmem:[%s9327_s3 + $0x10] sm:$0xff] }
 0x275   : > { %1909 = vperm.xlu1 %5505, %v1891_v8   ;;  %vm9306_vm11 = vcmp.eq.s32.totalorder %v6119_v16, 1 }
 0x276   : > { %v1406_v56 = vadd.f32 %v1405_v55, %v1404_v52  ;;  %v1454_v55 = vld [vmem:[%s9284_s4] sm:$0xff] }
 0x278   : > { %v1408_v61 = vadd.f32 %v1407_v60, %v1406_v56 }
 0x27a   : > { %v1410_v0 = vadd.f32 %v1409_v18, %v1408_v61 }
 0x27c   : > { %1411 = vadd.xlane.f32.xlu0 %v1410_v0  ;;  %v6168_v7 = vpop.permute.xlu2 %1906 }
 0x27d   : > { %1570 = vperm.xlu1 %5505, %v1562_v9  }
 0x290   : > { %1585 = vperm.xlu0 %5507, %v1567_v11  }
 0x2df   : > { %v6166_v2 = vpop.permute.xlu1 %1903 }
 0x2ef   : > { %v1412_v25 = vpop.xlane.xlu0 %1411 }
 0x2f0   : > { %v1413_v48 = vrot.slane %v1412_v25, 4 }
 0x2f2   : > { %v1414_v12 = vadd.f32 %v1413_v48, %v1412_v25 }
 0x2f4   : > { %v1415_v43 = vrot.slane %v1414_v12, 2 }
 0x2f6   : > { %v1416_v62 = vadd.f32 %v1415_v43, %v1414_v12 }
 0x2f8   : > { %v1417_v5 = vrot.slane %v1416_v62, 1 }
 0x2fa   : > { %v1418_v6 = vadd.f32 %v1417_v5, %v1416_v62 }
 0x2fc   : > { %5491 = vpush %v1418_v6 }
 0x302   : > { %v6187_v6 = vpop.permute.xlu0 %1585 }
 0x303   : > { %vm1595_vm5 = vcmp.eq.s32.totalorder %v6187_v6, 1 }
 0x32d   : > { %s5492_s29 = spop %5491 }
 0x32e   : > { %v1420_v15 = vstv %s5492_s29 }
 0x32f   : > { %v1421_v33 = vmul.f32 %v1420_v15, %v6011_v34  ;;  %v1460_v15 = vld [vmem:[%s9284_s4 + $0x30] sm:$0x1] }
 0x331   : > { %v1422_v27 = vadd.f32 1e-05, %v1421_v33 }
 0x333   : > { %5515 = vrsqrt.f32 %v1422_v27  ;;  %vm1429_vm13 = vweird.f32 %v1422_v27 }
 0x339   : > { %v5516_v38 = vpop.eup %5515 }
 0x33a   : > { %v1424_v34 = vmul.f32 %v5516_v38, %v1422_v27  ;;  %vm1430_vm12 = vweird.f32 %v5516_v38 }
 0x33b   : > { %vm1431_vm14 = vmor %vm1429_vm13, %vm1430_vm12  ;;  %vm1917_vm12 = vcmp.eq.s32.totalorder %v6166_v2, 1  ;;  %vm9313_vm13 = vcmp.eq.s32.totalorder %v6110_v37, 1 }
 0x33c   : > { %v1425_v59 = vmul.f32 %v5516_v38, %v1424_v34 }
 0x33e   : > { %v1426_v32 = vmul.f32 0.5, %v1425_v59 }
 0x340   : > { %v1427_v21 = vsub.f32 1.5, %v1426_v32 }
 0x342   : > { %v1428_v4 = vmul.f32 %v5516_v38, %v1427_v21 }
 0x344   : > { %v1432_v58 = vsel %vm1431_vm14, %v5516_v38, %v1428_v4  ;;  %vm1918_vm14 = vcmp.eq.s32.totalorder %v6168_v7, 1 }
 0x345   : > { %v1433_v50 = vmul.f32 %v1432_v58, %v6022_v39  ;;  %v1434_v51 = vmul.f32 %v1432_v58, %v6025_v40  ;;  %v1435_v52 = vmul.f32 %v1432_v58, %v6028_v17  ;;  %v1436_v53 = vmul.f32 %v1432_v58, %v6031_v35  ;;  %v1455_v40 = vld [vmem:[%s9284_s4 + $0x8] sm:$0xff]  ;;  %v1456_v17 = vld [vmem:[%s9284_s4 + $0x10] sm:$0xff]  ;;  %v1457_v35 = vld [vmem:[%s9284_s4 + $0x18] sm:$0xff] }
 0x346   : > { %v1437_v56 = vmul.f32 %v1432_v58, %v6035_v41  ;;  %v1438_v60 = vmul.f32 %v1432_v58, %v6043_v42  ;;  %v1439_v39 = vmul.f32 %v1432_v58, %v6053_v57  ;;  %v1445_v41 = vld [vmem:[%s9327_s3 + $0x28] sm:$0xff]  ;;  %v1446_v42 = vld [vmem:[%s9327_s3 + $0x30] sm:$0x1] }
 0x347   : > { %v1447_v57 = vmul.f32 %v1440_v28, %v1433_v50  ;;  %v1448_v61 = vmul.f32 %v1441_v47, %v1434_v51  ;;  %v1449_v13 = vmul.f32 %v1442_v44, %v1435_v52  ;;  %v1450_v18 = vmul.f32 %v1443_v49, %v1436_v53 }
 0x348   : > { %v1451_v0 = vmul.f32 %v1444_v54, %v1437_v56  ;;  %v1452_v25 = vmul.f32 %v1445_v41, %v1438_v60  ;;  %v1453_v48 = vmul.f32 %v1446_v42, %v1439_v39  ;;  %v6251_v39 = vpop.permute.xlu1 %1909 }
 0x349   : > { %v6170_v8 = vadd.f32 %v1454_v55, %v1447_v57  ;;  %v6172_v9 = vadd.f32 %v1455_v40, %v1448_v61  ;;  %v6174_v11 = vadd.f32 %v1456_v17, %v1449_v13  ;;  %v6176_v14 = vadd.f32 %v1457_v35, %v1450_v18  ;;  %v6253_v40 = vpop.permute.xlu2 %1912 }
 0x34a   : > { %v6180_v12 = vadd.f32 %v1458_v1, %v1451_v0  ;;  %v6225_v32 = vadd.f32 %v1459_v19, %v1452_v25  ;;  %v6230_v58 = vadd.f32 %v1460_v15, %v1453_v48 }
 0x34b   : > { %v2969_v43 = vsel %vm9307_vm9, -3e+38, %v6172_v9  ;;  %v2982_v62 = vrot.slane %v6172_v9, 1  ;;  %v2984_v5 = vrot.slane %v6174_v11, 1  ;;  %4939 = vmatmul.msk.f32.vlgmr.msra.gmra.mxu2 %vm1351_vm8, %v6170_v8  ;;  %v3007_v63 = vrot.slane %v6170_v8, 2 }
 0x34c   : > { %v2976_v23 = vmax.f32 %v6174_v11, %v2969_v43  ;;  %v3008_v29 = vrot.slane %v6172_v9, 2  ;;  %v2970_v30 = vsel %vm1593_vm15, -3e+38, %v6174_v11  ;;  %v2986_v36 = vrot.slane %v6176_v14, 1 }
 0x34d   : > { %v6208_v31 = vsel %vm1344_vm7, %v2982_v62, %v2984_v5  ;;  %v2977_v33 = vmax.f32 %v6176_v14, %v2970_v30  ;;  %v3010_v27 = vrot.slane %v6174_v11, 2  ;;  %v3041_v59 = vrot.slane %v6172_v9, 7 }
 0x34e   : > { %v3002_v38 = vmax.f32 %v2976_v23, %v6208_v31  ;;  %v6221_v34 = vsel %vm9312_vm6, %v3007_v63, %v3008_v29  ;;  %v2987_v21 = vsel %vm1344_vm7, %v2984_v5, %v2986_v36  ;;  %v3043_v28 = vrot.slane %v6174_v11, 7 }
 0x34f   : > { %v3011_v4 = vsel %vm9312_vm6, %v3008_v29, %v3010_v27  ;;  %v3003_v47 = vmax.f32 %v2977_v33, %v2987_v21  ;;  %v2971_v49 = vsel %vm9305_vm10, -3e+38, %v6176_v14  ;;  %v2988_v53 = vrot.slane %v6180_v12, 1 }
 0x350   : > { %v3028_v44 = vsel %vm9306_vm11, -3e+38, %v3011_v4  ;;  %v6241_v51 = vsel %vm1075_vm2, %v3041_v59, %v3043_v28  ;;  %v2978_v52 = vmax.f32 %v6180_v12, %v2971_v49  ;;  %v3012_v55 = vrot.slane %v6176_v14, 2 }
 0x351   : > { %v3035_v50 = vmax.f32 %v3002_v38, %v3028_v44  ;;  %v3061_v54 = vsel %vm9307_vm9, -3e+38, %v6241_v51  ;;  %v3045_v56 = vrot.slane %v6176_v14, 7  ;;  %v3014_v60 = vrot.slane %v6180_v12, 2 }
 0x352   : > { %v2989_v35 = vsel %vm1344_vm7, %v2986_v36, %v2988_v53  ;;  %vm1919_vm10 = vcmp.eq.s32.totalorder %v6251_v39, 1  ;;  %v3047_v41 = vrot.slane %v6180_v12, 7  ;;  %v6261_v42 = vrot.slane %v6225_v32, 7 }
 0x353   : > { %v6255_v17 = vmax.f32 %v3035_v50, %v3061_v54  ;;  %4940 = vmatmul.msk.f32.gmra.mxu2 %vm1351_vm8, %v6172_v9  ;;  %v6267_v57 = vsel %vm9306_vm11, -3e+38, %v2987_v21  ;;  %v6269_v61 = vmax.f32 %v2978_v52, %v2989_v35  ;;  %v3013_v13 = vsel %vm9312_vm6, %v3010_v27, %v3012_v55 }
 0x354   : > { %v6275_v18 = vsel %vm1075_vm2, %v3043_v28, %v3045_v56  ;;  %v3029_v1 = vsel %vm1917_vm12, -3e+38, %v3013_v13  ;;  %v3015_v25 = vsel %vm9312_vm6, %v3012_v55, %v3014_v60  ;;  %vm9311_vm11 = vcmp.eq.s32.totalorder %v6253_v40, 1  ;;  %v5130_v13 = vld [vmem:[%s9287_s7 + $0x460] sm:$0xff] }
 0x355   : > { %v3084_v0 = vmax.f32 %v6255_v17, %v6267_v57  ;;  %vm1915_vm9 = vcmp.eq.s32.totalorder %v6117_v45, 1  ;;  %v3036_v48 = vmax.f32 %v3003_v47, %v3029_v1  ;;  %v6286_v43 = vsel %vm1918_vm14, -3e+38, %v3015_v25  ;;  %v5126_v1 = vld [vmem:[%s9287_s7 + $0x440] sm:$0xff]  ;;  %2418 = vmatpush.msrb.mxu0 %v5130_v13  ;;  %v4957_v17 = vld [vmem:[%s9287_s7 + $0x118] sm:$0xff] }
 0x356   : > { %v6292_v5 = vsel %vm1075_vm2, %v3047_v41, %v6261_v42  ;;  %v3098_v19 = vrot.slane %v6225_v32, 6  ;;  %v3062_v23 = vsel %vm1593_vm15, -3e+38, %v6275_v18  ;;  %v3037_v29 = vmax.f32 %v6269_v61, %v6286_v43  ;;  %v5079_v57 = vld [vmem:[%s9287_s7 + $0x338] sm:$0xff]  ;;  %v5046_v45 = vld [vmem:[%s9287_s7 + $0x2a0] sm:$0xff] }
 0x357   : > { %v3100_v30 = vrot.slane %v6230_v58, 6  ;;  %v2972_v15 = vsel %vm1595_vm5, -3e+38, %v6180_v12  ;;  %v6305_v33 = vmax.f32 %v3036_v48, %v3062_v23  ;;  %v2973_v27 = vsel %vm9313_vm13, -3e+38, %v6225_v32 }
 0x358   : > { %v2979_v36 = vmax.f32 %v6225_v32, %v2972_v15  ;;  %v2990_v46 = vrot.slane %v6225_v32, 1  ;;  %v6314_v38 = vsel %vm1917_vm12, -3e+38, %v2989_v35  ;;  %v2980_v4 = vmax.f32 %v6230_v58, %v2973_v27 }
 0x359   : > { %v6319_v21 = vsel %vm1077_vm3, %v3098_v19, %v3100_v30  ;;  %v3016_v28 = vrot.slane %v6225_v32, 2  ;;  %v3064_v44 = vsel %vm1595_vm5, -3e+38, %v6292_v5  ;;  %v3073_v50 = vrot.slane %v6230_v58, 1 }
 0x35a   : > { %v6329_v49 = vsel %vm1344_vm7, %v2988_v53, %v2990_v46  ;;  %v3006_v54 = vmax.f32 %v2980_v4, %v2990_v46  ;;  %v3065_v35 = vsel %vm9313_vm13, -3e+38, %v6261_v42  ;;  %v5128_v53 = vld [vmem:[%s9287_s7 + $0x450] sm:$0xff]  ;;  %v2968_v23 = vsel %vm1591_vm4, -3e+38, %v6170_v8  ;;  %v5095_v4 = vld [vmem:[%s9287_s7 + $0x3b8] sm:$0xff] }
 0x35b   : > { %v3005_v52 = vmax.f32 %v2979_v36, %v6329_v49  ;;  %v3017_v55 = vsel %vm9312_vm6, %v3014_v60, %v3016_v28  ;;  %4941 = vmatmul.msk.f32.gmra.mxu2 %vm1351_vm8, %v6174_v11  ;;  %v3032_v25 = vsel %vm9311_vm11, -3e+38, %v3016_v28  ;;  %v6353_v48 = vsel %vm1344_vm7, %v2990_v46, %v3073_v50  ;;  %v5093_v46 = vld [vmem:[%s9287_s7 + $0x3a8] sm:$0xff]  ;;  %v4968_v28 = vld [vmem:[%s9287_s7 + $0x170] sm:$0xff]  ;;  %v6369_v50 = vpop.permute.xlu1 %1570  ;;  %2419 = vmatpush.msrb.mxu0 %v5128_v53  ;;  %v4966_v53 = vld [vmem:[%s9287_s7 + $0x160] sm:$0xff] }
 0x35c   : > { %v3031_v60 = vsel %vm1919_vm10, -3e+38, %v3017_v55  ;;  %v3039_v15 = vmax.f32 %v3006_v54, %v3032_v25  ;;  %v2974_v36 = vmax.f32 %v6170_v8, -3e+38  ;;  %v2975_v27 = vmax.f32 %v6172_v9, %v2968_v23  ;;  %2308 = vmatpush.msrb.mxu1 %v5095_v4  ;;  %1691 = vmatpush.msra.mxu3 %v4968_v28  ;;  %v662_v4 = vld [vmem:[%s5665_s25 + $0x1e8] sm:$0xff] }
 0x35d   : > { %v3038_v30 = vmax.f32 %v3005_v52, %v3031_v60  ;;  %v2981_v52 = vrot.slane %v6170_v8, 1  ;;  %v3025_v54 = vsel %vm9312_vm6, -3e+38, %v3007_v63  ;;  %v3040_v55 = vrot.slane %v6170_v8, 7  ;;  %v4969_v60 = vld [vmem:[%s9287_s7 + $0x178] sm:$0xff]  ;;  %2420 = vmatpush.msrb.mxu0 %v5126_v1  ;;  %4937 = vmatmul.msk.f32.gmra.mxu1 %vm688_vm1, %v662_v4 }
 0x35e   : > { %v3089_v13 = vrot.slane %v6170_v8, 6  ;;  %v3027_v25 = vsel %vm1915_vm9, -3e+38, %v6221_v34  ;;  %v6385_v24 = vmax.f32 %v3039_v15, %v3065_v35  ;;  %v3090_v63 = vrot.slane %v6172_v9, 6  ;;  %1729 = vmatpush.msrb.mxu2 %v4969_v60  ;;  %v5091_v8 = vld [vmem:[%s9287_s7 + $0x398] sm:$0xff]  ;;  %v4967_v34 = vld [vmem:[%s9287_s7 + $0x168] sm:$0xff]  ;;  %2309 = vmatpush.msrb.mxu1 %v5093_v46 }
 0x35f   : > { %v6383_v23 = vmax.f32 %v3038_v30, %v3064_v44  ;;  %v2983_v44 = vsel %vm1344_vm7, %v2981_v52, %v2982_v62  ;;  %v2999_v35 = vsel %vm1344_vm7, -3e+38, %v2981_v52  ;;  %v3026_v30 = vsel %vm1914_vm0, -3e+38, %v3025_v54  ;;  %1692 = vmatpush.msra.mxu3 %v4966_v53  ;;  %v5089_v62 = vld [vmem:[%s9287_s7 + $0x388] sm:$0xff] }
 0x360   : > { %v6406_v15 = vsel %vm1075_vm2, %v3040_v55, %v3041_v59  ;;  %vm1590_vm11 = vcmp.eq.s32.totalorder %v6369_v50, 1  ;;  %v3000_v28 = vmax.f32 %v2974_v36, %v2999_v35  ;;  %v3001_v60 = vmax.f32 %v2975_v27, %v2983_v44  ;;  %1730 = vmatpush.msrb.mxu2 %v4967_v34  ;;  %v4964_v59 = vld [vmem:[%s9287_s7 + $0x150] sm:$0xff]  ;;  %2310 = vmatpush.msrb.mxu1 %v5091_v8  ;;  %v4965_v36 = vld [vmem:[%s9287_s7 + $0x158] sm:$0xff] }
 0x361   : > { %v3058_v47 = vsel %vm1075_vm2, -3e+38, %v3040_v55  ;;  %v3091_v1 = vsel %vm1077_vm3, %v3089_v13, %v3090_v63  ;;  %v6426_v27 = vsel %vm1075_vm2, %v3045_v56, %v3047_v41  ;;  %v6431_v46 = vsel %vm1914_vm0, -3e+38, %v6172_v9  ;;  %v5087_v55 = vld [vmem:[%s9287_s7 + $0x378] sm:$0xff]  ;;  %v4962_v56 = vld [vmem:[%s9287_s7 + $0x140] sm:$0xff]  ;;  %1693 = vmatpush.msra.mxu3 %v4964_v59 }
 0x362   : > { %v3033_v52 = vmax.f32 %v3000_v28, %v3026_v30  ;;  %v3034_v54 = vmax.f32 %v3001_v60, %v3027_v25  ;;  %v3059_v41 = vsel %vm1590_vm11, -3e+38, %v3058_v47  ;;  %v3060_v9 = vsel %vm1591_vm4, -3e+38, %v6406_v15  ;;  %2311 = vmatpush.msrb.mxu1 %v5089_v62  ;;  %v4963_v13 = vld [vmem:[%s9287_s7 + $0x148] sm:$0xff]  ;;  %1731 = vmatpush.msrb.mxu2 %v4965_v36  ;;  %v4960_v35 = vld [vmem:[%s9287_s7 + $0x130] sm:$0xff] }
 0x363   : > { %4942 = vmatmul.msk.f32.gmra.mxu2 %vm1351_vm8, %v6176_v14  ;;  %v3092_v25 = vrot.slane %v6174_v11, 6  ;;  %v3077_v8 = vsel %vm1915_vm9, -3e+38, %v6208_v31  ;;  %v5085_v47 = vld [vmem:[%s9287_s7 + $0x368] sm:$0xff]  ;;  %v5124_v30 = vld [vmem:[%s9287_s7 + $0x430] sm:$0xff]  ;;  %v3094_v4 = vrot.slane %v6176_v14, 6  ;;  %1694 = vmatpush.msra.mxu3 %v4962_v56 }
 0x364   : > { %v3066_v53 = vmax.f32 %v3033_v52, %v3059_v41  ;;  %v3067_v34 = vmax.f32 %v3034_v54, %v3060_v9  ;;  %vm9328_vm6 = vcmask 1042432   ;;  %v3076_v28 = vsel %vm1914_vm0, -3e+38, %v2983_v44  ;;  %2312 = vmatpush.msrb.mxu1 %v5087_v55  ;;  %v4961_v60 = vld [vmem:[%s9287_s7 + $0x138] sm:$0xff]  ;;  %1732 = vmatpush.msrb.mxu2 %v4963_v13  ;;  %v4958_v54 = vld [vmem:[%s9287_s7 + $0x120] sm:$0xff] }
 0x365   : > { %v6466_v31 = vsel %vm9328_vm6, %v6319_v21, -3e+38  ;;  %v3093_v62 = vsel %vm1077_vm3, %v3090_v63, %v3092_v25  ;;  %v3096_v59 = vrot.slane %v6180_v12, 6  ;;  %v3109_v21 = vsel %vm1590_vm11, -3e+38, %v3091_v1  ;;  %v5083_v44 = vld [vmem:[%s9287_s7 + $0x358] sm:$0xff]  ;;  %2421 = vmatpush.msrb.mxu0 %v5124_v30  ;;  %1695 = vmatpush.msra.mxu3 %v4960_v35 }
 0x366   : > { %v3082_v36 = vmax.f32 %v3066_v53, %v3076_v28  ;;  %v3083_v52 = vmax.f32 %v3067_v34, %v3077_v8  ;;  %v3095_v55 = vsel %vm1077_vm3, %v3092_v25, %v3094_v4  ;;  %2313 = vmatpush.msrb.mxu1 %v5085_v47  ;;  %v664_v63 = vld [vmem:[%s5665_s25 + $0x1f8] sm:$0xff]  ;;  %v3110_v56 = vsel %vm1591_vm4, -3e+38, %v3093_v62  ;;  %1733 = vmatpush.msrb.mxu2 %v4961_v60  ;;  %v4959_v25 = vld [vmem:[%s9287_s7 + $0x128] sm:$0xff] }
 0x367   : > { %v3135_v1 = vsel %vm1915_vm9, -3e+38, %v6174_v11  ;;  %v3097_v41 = vsel %vm1077_vm3, %v3094_v4, %v3096_v59  ;;  %v3099_v9 = vsel %vm1077_vm3, %v3096_v59, %v3098_v19  ;;  %v5081_v8 = vld [vmem:[%s9287_s7 + $0x348] sm:$0xff]  ;;  %vm9329_vm6 = vcmp.eq.s32.totalorder %v6090_v20, 1  ;;  %1696 = vmatpush.msra.mxu3 %v4958_v54  ;;  %v4956_v19 = vld [vmem:[%s9287_s7 + $0x110] sm:$0xff]  ;;  %4938 = vmatmul.msk.f32.gmra.mxu1 %vm688_vm1, %v664_v63 }
 0x368   : > { %v3115_v13 = vmax.f32 %v3082_v36, %v3109_v21  ;;  %v3116_v53 = vmax.f32 %v3083_v52, %v3110_v56  ;;  %v3111_v11 = vsel %vm9329_vm6, -3e+38, %v3095_v55  ;;  %vm9330_vm13 = vcmp.eq.s32.totalorder %v6092_v26, 1  ;;  %2314 = vmatpush.msrb.mxu1 %v5083_v44  ;;  %1734 = vmatpush.msrb.mxu2 %v4959_v25  ;;  %v4951_v25 = vld [vmem:[%s9287_s7 + $0xe8] sm:$0xff] }
 0x369   : > { %v3063_v34 = vsel %vm9330_vm13, -3e+38, %v6426_v27  ;;  %v3117_v47 = vmax.f32 %v3084_v0, %v3111_v11  ;;  %v3112_v30 = vsel %vm1593_vm15, -3e+38, %v3097_v41  ;;  %v3122_v4 = vrot.slane %v6230_v58, 7  ;;  %1697 = vmatpush.msra.mxu3 %v4956_v19  ;;  %v661_v41 = vld [vmem:[%s5665_s25 + $0x1e0] sm:$0xff] }
 0x36a   : > { %v3070_v35 = vmax.f32 %v3037_v29, %v3063_v34  ;;  %v3126_v28 = vmax.f32 %v3115_v13, %v6406_v15  ;;  %v3127_v61 = vmax.f32 %v3116_v53, %v6241_v51  ;;  %v9331_v0 = vmax.f32 %v6305_v33, %v6314_v38  ;;  %2315 = vmatpush.msrb.mxu1 %v5081_v8  ;;  %v4954_v15 = vld [vmem:[%s9287_s7 + $0x100] sm:$0xff]  ;;  %v5075_v13 = vld [vmem:[%s9287_s7 + $0x318] sm:$0xff]  ;;  %v5073_v8 = vld [vmem:[%s9287_s7 + $0x308] sm:$0xff] }
 0x36b   : > { %4943 = vmatmul.msk.f32.gmra.mxu2 %vm1351_vm8, %v6180_v12  ;;  %v3080_v29 = vsel %vm1918_vm14, -3e+38, %v6329_v49  ;;  %v3128_v60 = vmax.f32 %v3117_v47, %v6275_v18  ;;  %vm9332_vm1 = vcmp.eq.s32.totalorder %v6119_v16, 1  ;;  %v3113_v33 = vsel %vm9330_vm13, -3e+38, %v3099_v9  ;;  %v4955_v49 = vld [vmem:[%s9287_s7 + $0x108] sm:$0xff]  ;;  %1698 = vmatpush.msra.mxu3 %v4954_v15 }
 0x36c   : > { %v3118_v43 = vmax.f32 %v9331_v0, %v3112_v30  ;;  %v3136_v51 = vsel %vm9332_vm1, -3e+38, %v6176_v14  ;;  %v3086_v62 = vmax.f32 %v3070_v35, %v3080_v29  ;;  %v6544_v38 = vmax.f32 %v3126_v28, %v6431_v46  ;;  %1735 = vmatpush.msrb.mxu2 %v4957_v17  ;;  %2316 = vmatpush.msrb.mxu1 %v5079_v57  ;;  %v4952_v9 = vld [vmem:[%s9287_s7 + $0xf0] sm:$0xff]  ;;  %v5122_v53 = vld [vmem:[%s9287_s7 + $0x420] sm:$0xff]  ;;  %v4949_v34 = vld [vmem:[%s9287_s7 + $0xd8] sm:$0xff] }
 0x36d   : > { %v6549_v59 = vmax.f32 %v3127_v61, %v3135_v1  ;;  %v3081_v14 = vsel %vm1919_vm10, -3e+38, %v6353_v48  ;;  %v6555_v36 = vmax.f32 %v3128_v60, %v3136_v51  ;;  %v3137_v46 = vsel %vm1917_vm12, -3e+38, %v6180_v12  ;;  %v5077_v1 = vld [vmem:[%s9287_s7 + $0x328] sm:$0xff]  ;;  %895 = vmatmul.f32.gmra.mxu0 %v661_v41  ;;  %1699 = vmatpush.msra.mxu3 %v4952_v9  ;;  %v4948_v11 = vld [vmem:[%s9287_s7 + $0xd0] sm:$0xff] }
 0x36e   : > { %v3129_v18 = vmax.f32 %v3118_v43, %v6426_v27  ;;  %v3119_v52 = vmax.f32 %v3086_v62, %v3113_v33  ;;  %v3087_v21 = vmax.f32 %v6383_v23, %v3081_v14  ;;  %v3114_v44 = vsel %vm1595_vm5, -3e+38, %v6466_v31  ;;  %1736 = vmatpush.msrb.mxu2 %v4955_v49  ;;  %2317 = vmatpush.msrb.mxu1 %v5077_v1  ;;  %v5120_v19 = vld [vmem:[%s9287_s7 + $0x410] sm:$0xff]  ;;  %v4946_v47 = vld [vmem:[%s9287_s7 + $0xc0] sm:$0xff]  ;;  %v4947_v35 = vld [vmem:[%s9287_s7 + $0xc8] sm:$0xff] }
 0x36f   : > { %v3123_v48 = vsel %vm1075_vm2, %v6261_v42, %v3122_v4  ;;  %v3133_v12 = vsel %vm1075_vm2, %v6230_v58, -3e+38  ;;  %v3138_v23 = vsel %vm1918_vm14, -3e+38, %v6225_v32  ;;  %2422 = vmatpush.msrb.mxu0 %v5122_v53  ;;  %v5118_v30 = vld [vmem:[%s9287_s7 + $0x400] sm:$0xff]  ;;  %v663_v4 = vld [vmem:[%s5665_s25 + $0x1f0] sm:$0xff] }
 0x370   : > { %v6564_v27 = vmax.f32 %v3129_v18, %v3137_v46  ;;  %v3130_v54 = vmax.f32 %v3119_v52, %v6292_v5  ;;  %v3120_v55 = vmax.f32 %v3087_v21, %v3114_v44  ;;  %v3125_v31 = vsel %vm1077_vm3, %v3123_v48, -3e+38  ;;  %2318 = vmatpush.msrb.mxu1 %v5075_v13  ;;  %v5116_v28 = vld [vmem:[%s9287_s7 + $0x3f0] sm:$0xff]  ;;  %v5114_v17 = vld [vmem:[%s9287_s7 + $0x3e0] sm:$0xff]  ;;  %v5169_v49 = vld [vmem:[%s9287_s7 + $0x538] sm:$0xff] }
 0x371   : > { %v3139_v42 = vsel %vm1919_vm10, -3e+38, %v3133_v12  ;;  %2423 = vmatpush.msrb.mxu0 %v5120_v19  ;;  %v5112_v57 = vld [vmem:[%s9287_s7 + $0x3d0] sm:$0xff]  ;;  %v5110_v61 = vld [vmem:[%s9287_s7 + $0x3c0] sm:$0xff]  ;;  %vm1671_vm6 = vcmask 785408   ;;  %v5167_v21 = vld [vmem:[%s9287_s7 + $0x528] sm:$0xff] }
 0x372   : > { %v6575_v63 = vmax.f32 %v3130_v54, %v3138_v23  ;;  %v3131_v56 = vmax.f32 %v3120_v55, %v3125_v31  ;;  %2319 = vmatpush.msrb.mxu1 %v5073_v8  ;;  %v1625_v0 = vld [vmem:[%s9287_s7 + $0xb0] sm:$0xff]  ;;  %v6647_v43 = vld [vmem:[%s9286_s6] ss:$0 sm:$0xff]  ;;  %v1626_v44 = vld [vmem:[%s9287_s7 + $0xb8] sm:$0xff]  ;;  %vm9333_vm13 = vcmp.eq.s32.totalorder %v6090_v20, 1 }
 0x373   : > { %4944 = vmatmul.msk.f32.gmra.mxu2 %vm1351_vm8, %v6225_v32  ;;  %v4953_v32 = vld [vmem:[%s9287_s7 + $0xf8] sm:$0xff]  ;;  %2424 = vmatpush.msrb.mxu0 %v5118_v30  ;;  %v1623_v51 = vld [vmem:[%s9287_s7 + $0xa0] sm:$0xff]  ;;  %v1621_v33 = vld [vmem:[%s9287_s7 + $0x90] sm:$0xff] }
 0x374   : > { %v6581_v5 = vmax.f32 %v3131_v56, %v3139_v42  ;;  %1737 = vmatpush.msrb.mxu2 %v4953_v32  ;;  %2614 = vmatpush.msra.mxu1 %v5169_v49  ;;  %v1619_v48 = vld [vmem:[%s9287_s7 + $0x80] sm:$0xff]  ;;  %v5165_v54 = vld [vmem:[%s9287_s7 + $0x518] sm:$0xff]  ;;  %v1624_v55 = vld [vmem:[%s9287_s7 + $0xa8] sm:$0xff] }
 0x375   : > { %897 = vmatmul.f32.gmra.mxu0 %v663_v4  ;;  %v1617_v23 = vld [vmem:[%s9287_s7 + $0x70] sm:$0xff]  ;;  %v5163_v31 = vld [vmem:[%s9287_s7 + $0x508] sm:$0xff]  ;;  %v1622_v42 = vld [vmem:[%s9287_s7 + $0x98] sm:$0xff] }
 0x376   : > { %1738 = vmatpush.msrb.mxu2 %v4951_v25  ;;  %2425 = vmatpush.msrb.mxu0 %v5116_v28  ;;  %v5161_v9 = vld [vmem:[%s9287_s7 + $0x4f8] sm:$0xff]  ;;  %v1620_v13 = vld [vmem:[%s9287_s7 + $0x88] sm:$0xff]  ;;  %v1613_v28 = vld [vmem:[%s9287_s7 + $0x50] sm:$0xff] }
 0x377   : > { %2615 = vmatpush.msra.mxu1 %v5167_v21  ;;  %v5159_v8 = vld [vmem:[%s9287_s7 + $0x4e8] sm:$0xff]  ;;  %v1618_v53 = vld [vmem:[%s9287_s7 + $0x78] sm:$0xff]  ;;  %v5196_v21 = vld [vmem:[%s9287_s7 + $0x5b0] sm:$0xff] }
 0x378   : > { %1739 = vmatpush.msrb.mxu2 %v4949_v34  ;;  %2426 = vmatpush.msrb.mxu0 %v5114_v17  ;;  %v1615_v34 = vld [vmem:[%s9287_s7 + $0x60] sm:$0xff]  ;;  %v1616_v4 = vld [vmem:[%s9287_s7 + $0x68] sm:$0xff] }
 0x379   : > { %2616 = vmatpush.msra.mxu1 %v5165_v54 }
 0x37a   : > { %1740 = vmatpush.msrb.mxu2 %v4947_v35  ;;  %2427 = vmatpush.msrb.mxu0 %v5112_v57  ;;  %v5157_v35 = vld [vmem:[%s9287_s7 + $0x4d8] sm:$0xff] }
 0x37b   : > { %4945 = vmatmul.msk.f32.gmra.mxu2 %vm1351_vm8, %v6230_v58  ;;  %v4950_v58 = vld [vmem:[%s9287_s7 + $0xe0] sm:$0xff]  ;;  %2617 = vmatpush.msra.mxu1 %v5163_v31 }
 0x37c   : > { %1700 = vmatpush.msra.mxu3 %v4950_v58  ;;  %2428 = vmatpush.msrb.mxu0 %v5110_v61  ;;  %v5155_v61 = vld [vmem:[%s9287_s7 + $0x4c8] sm:$0xff] }
 0x37d   : > { %1826 = vmatpush.msra.mxu2 %v1626_v44  ;;  %2618 = vmatpush.msra.mxu1 %v5161_v9  ;;  %v1608_v9 = vld [vmem:[%s9287_s7 + $0x28] sm:$0xff] }
 0x37e   : > { %1701 = vmatpush.msra.mxu3 %v4948_v11  ;;  %v5204_v11 = vld [vmem:[%s9287_s7 + $0x5f0] sm:$0xff] }
 0x37f   : > { %1827 = vmatpush.msra.mxu2 %v1624_v55  ;;  %2708 = vmatpush.msra.mxu0 %v5204_v11  ;;  %v1610_v55 = vld [vmem:[%s9287_s7 + $0x38] sm:$0xff]  ;;  %v1603_v11 = vld [vmem:[%s9287_s7] sm:$0xff] }
 0x380   : > { %1702 = vmatpush.msra.mxu3 %v4946_v47  ;;  %v5202_v47 = vld [vmem:[%s9287_s7 + $0x5e0] sm:$0xff]  ;;  %2619 = vmatpush.msra.mxu1 %v5159_v8  ;;  %v5147_v8 = vld [vmem:[%s9287_s7 + $0x488] sm:$0xff] }
 0x381   : > { %1828 = vmatpush.msra.mxu2 %v1622_v42  ;;  %2709 = vmatpush.msra.mxu0 %v5202_v47  ;;  %v5194_v42 = vld [vmem:[%s9287_s7 + $0x5a0] sm:$0xff]  ;;  %v1604_v47 = vld [vmem:[%s9287_s7 + $0x8] sm:$0xff] }
 0x382   : > { %1788 = vmatpush.msrb.mxu3 %v1625_v0  ;;  %v5200_v0 = vld [vmem:[%s9287_s7 + $0x5d0] sm:$0xff]  ;;  %2620 = vmatpush.msra.mxu1 %v5157_v35 }
 0x383   : > { %1829 = vmatpush.msra.mxu2 %v1620_v13  ;;  %2710 = vmatpush.msra.mxu0 %v5200_v0  ;;  %v5192_v13 = vld [vmem:[%s9287_s7 + $0x590] sm:$0xff] }
 0x384   : > { %1789 = vmatpush.msrb.mxu3 %v1623_v51  ;;  %v1611_v51 = vld [vmem:[%s9287_s7 + $0x40] sm:$0xff]  ;;  %2621 = vmatpush.msra.mxu1 %v5155_v61 }
 0x385   : > { %1830 = vmatpush.msra.mxu2 %v1618_v53  ;;  %v1606_v53 = vld [vmem:[%s9287_s7 + $0x18] sm:$0xff]  ;;  %v5186_v61 = vld [vmem:[%s9287_s7 + $0x560] sm:$0xff] }
 0x386   : > { %1790 = vmatpush.msrb.mxu3 %v1621_v33 }
 0x387   : > { %1831 = vmatpush.msra.mxu2 %v1616_v4 }
 0x388   : > { %1791 = vmatpush.msrb.mxu3 %v1619_v48  ;;  %v5151_v48 = vld [vmem:[%s9287_s7 + $0x4a8] sm:$0xff] }
 0x38a   : > { %1792 = vmatpush.msrb.mxu3 %v1617_v23 }
 0x38c   : > { %1793 = vmatpush.msrb.mxu3 %v1615_v34  ;;  %v5190_v34 = vld [vmem:[%s9287_s7 + $0x580] sm:$0xff] }
 0x38e   : > { %1794 = vmatpush.msrb.mxu3 %v1613_v28 }
 0x390   : > { %1795 = vmatpush.msrb.mxu3 %v1611_v51 }
 0x3ce   : > { %v1527_v29 = vpop.f32.mrf.mxu2 }
 0x3cf   : > { %v1528_v15 = vadd.f32 %v6647_v43, %v1527_v29 }
 0x3d1   : > { %v6650_v60 = vmax.f32 %v1528_v15, 0.0  ;;  %v1614_v15 = vld [vmem:[%s9287_s7 + $0x58] sm:$0xff] }
 0x3d2   : > { %1832 = vmatpush.msra.mxu2 %v1614_v15 }
 0x3d3   : > { %5103 = vmatmul.msk.f32.vlgmr.msrb.gmra.mxu1 %vm1671_vm6, %v6650_v60  ;;  %v1633_v62 = vrot.slane %v6650_v60, 1 }
 0x3d5   : > { %v1645_v18 = vsel %vm1344_vm7, 0.0, %v1633_v62 }
 0x3d6   : > { %v1530_v14 = vpop.f32.mrf.mxu2  ;;  %4970 = vmatmul.msk.f32.vlgmr.msra.gmra.mxu3 %vm1671_vm6, %v1645_v18  ;;  %4977 = vmatmul.msk.f32.vlgmr.msrb.gmra.mxu2 %vm1671_vm6, %v1645_v18  ;;  %v5153_v18 = vld [vmem:[%s9287_s7 + $0x4b8] sm:$0xff] }
 0x3d7   : > { %v1531_v46 = vadd.f32 %v6647_v43, %v1530_v14  ;;  %v1612_v14 = vld [vmem:[%s9287_s7 + $0x48] sm:$0xff]  ;;  %2622 = vmatpush.msra.mxu1 %v5153_v18 }
 0x3d8   : > { %1833 = vmatpush.msra.mxu2 %v1612_v14 }
 0x3d9   : > { %v6668_v52 = vmax.f32 %v1531_v46, 0.0  ;;  %v1609_v46 = vld [vmem:[%s9287_s7 + $0x30] sm:$0xff]  ;;  %2623 = vmatpush.msra.mxu1 %v5151_v48 }
 0x3da   : > { %v1007_v58 = vpop.f32.mrf.mxu1  ;;  %1796 = vmatpush.msrb.mxu3 %v1609_v46  ;;  %1834 = vmatpush.msra.mxu2 %v1610_v55  ;;  %v5018_v46 = vld [vmem:[%s9287_s7 + $0x230] sm:$0xff] }
 0x3db   : > { %5104 = vmatmul.msk.f32.gmra.mxu1 %vm1671_vm6, %v6668_v52  ;;  %v1634_v12 = vrot.slane %v6668_v52, 1  ;;  %v2504_v48 = vrot.slane %v6668_v52, 6 }
 0x3dc   : > { %1835 = vmatpush.msra.mxu2 %v1608_v9  ;;  %v5241_v9 = vld [vmem:[%s9287_s7 + $0x6b8] sm:$0xff] }
 0x3dd   : > { %v1635_v56 = vsel %vm1344_vm7, %v1633_v62, %v1634_v12  ;;  %v5198_v62 = vld [vmem:[%s9287_s7 + $0x5c0] sm:$0xff] }
 0x3de   : > { %v1533_v1 = vpop.f32.mrf.mxu2  ;;  %4971 = vmatmul.msk.f32.gmra.mxu3 %vm1671_vm6, %v1635_v56  ;;  %v6701_v41 = vsel %vm1914_vm0, 0.0, %v1635_v56  ;;  %4978 = vmatmul.msk.f32.gmra.mxu2 %vm1671_vm6, %v1635_v56  ;;  %v5149_v56 = vld [vmem:[%s9287_s7 + $0x498] sm:$0xff] }
 0x3df   : > { %v1534_v32 = vadd.f32 %v6647_v43, %v1533_v1  ;;  %5134 = vmatmul.msk.f32.vlgmr.msrb.gmra.mxu0 %vm1671_vm6, %v6701_v41  ;;  %2624 = vmatpush.msra.mxu1 %v5149_v56 }
 0x3e0   : > { %2711 = vmatpush.msra.mxu0 %v5198_v62  ;;  %1836 = vmatpush.msra.mxu2 %v1606_v53  ;;  %v5182_v62 = vld [vmem:[%s9287_s7 + $0x540] sm:$0xff] }
 0x3e1   : > { %v6713_v25 = vmax.f32 %v1534_v32, 0.0  ;;  %v1605_v32 = vld [vmem:[%s9287_s7 + $0x10] sm:$0xff]  ;;  %2625 = vmatpush.msra.mxu1 %v5147_v8  ;;  %v5019_v8 = vld [vmem:[%s9287_s7 + $0x238] sm:$0xff] }
 0x3e2   : > { %2712 = vmatpush.msra.mxu0 %v5196_v21  ;;  %1837 = vmatpush.msra.mxu2 %v1604_v47  ;;  %v5235_v47 = vld [vmem:[%s9287_s7 + $0x688] sm:$0xff] }
 0x3e3   : > { %5105 = vmatmul.msk.f32.gmra.mxu1 %vm1671_vm6, %v6713_v25  ;;  %v1636_v19 = vrot.slane %v6713_v25, 1 }
 0x3e4   : > { %v1009_v33 = vpop.f32.mrf.mxu1  ;;  %2713 = vmatpush.msra.mxu0 %v5194_v42  ;;  %v2506_v42 = vrot.slane %v6713_v25, 6  ;;  %2886 = vmatpush.msrb.mxu1 %v5241_v9  ;;  %v5004_v9 = vld [vmem:[%s9287_s7 + $0x1c0] sm:$0xff] }
 0x3e5   : > { %v1637_v30 = vsel %vm1344_vm7, %v1634_v12, %v1636_v19  ;;  %v1607_v12 = vld [vmem:[%s9287_s7 + $0x20] sm:$0xff]  ;;  %2016 = vmatpush.msrb.mxu2 %v5019_v8 }
 0x3e6   : > { %v1536_v17 = vpop.f32.mrf.mxu2  ;;  %4972 = vmatmul.msk.f32.gmra.mxu3 %vm1671_vm6, %v1637_v30  ;;  %4979 = vmatmul.msk.f32.gmra.mxu2 %vm1671_vm6, %v1637_v30  ;;  %v6747_v57 = vsel %vm1915_vm9, 0.0, %v1637_v30  ;;  %v5188_v30 = vld [vmem:[%s9287_s7 + $0x570] sm:$0xff]  ;;  %v2507_v53 = vsel %vm1077_vm3, %v2504_v48, %v2506_v42 }
 0x3e7   : > { %v1537_v29 = vadd.f32 %v6647_v43, %v1536_v17  ;;  %5135 = vmatmul.msk.f32.gmra.mxu0 %vm1671_vm6, %v6747_v57  ;;  %1797 = vmatpush.msrb.mxu3 %v1607_v12  ;;  %v5016_v12 = vld [vmem:[%s9287_s7 + $0x220] sm:$0xff] }
 0x3e8   : > { %2714 = vmatpush.msra.mxu0 %v5192_v13  ;;  %v5239_v13 = vld [vmem:[%s9287_s7 + $0x6a8] sm:$0xff] }
 0x3e9   : > { %v6767_v49 = vmax.f32 %v1537_v29, 0.0  ;;  %1798 = vmatpush.msrb.mxu3 %v1605_v32  ;;  %v5184_v29 = vld [vmem:[%s9287_s7 + $0x550] sm:$0xff]  ;;  %v9314_v32 = vmov 0.0   ;;  %2887 = vmatpush.msrb.mxu1 %v5239_v13  ;;  %v5227_v13 = vld [vmem:[%s9287_s7 + $0x648] sm:$0xff] }
 0x3ea   : > { %2715 = vmatpush.msra.mxu0 %v5190_v34  ;;  %v5237_v34 = vld [vmem:[%s9287_s7 + $0x698] sm:$0xff] }
 0x3eb   : > { %5106 = vmatmul.msk.f32.gmra.mxu1 %vm1671_vm6, %v6767_v49  ;;  %v1638_v44 = vrot.slane %v6767_v49, 1  ;;  %1799 = vmatpush.msrb.mxu3 %v1603_v11  ;;  %v5012_v11 = vld [vmem:[%s9287_s7 + $0x200] sm:$0xff] }
 0x3ec   : > { %2716 = vmatpush.msra.mxu0 %v5188_v30  ;;  %2888 = vmatpush.msrb.mxu1 %v5237_v34  ;;  %v6938_v30 = vsel %vm1591_vm4, 0.0, %v2507_v53  ;;  %v5007_v53 = vld [vmem:[%s9287_s7 + $0x1d8] sm:$0xff] }
 0x3ed   : > { %v1639_v54 = vsel %vm1344_vm7, %v1636_v19, %v1638_v44  ;;  %1978 = vmatpush.msra.mxu3 %v5018_v46  ;;  %v5225_v34 = vld [vmem:[%s9287_s7 + $0x638] sm:$0xff] }
 0x3ee   : > { %v1539_v23 = vpop.f32.mrf.mxu2  ;;  %4973 = vmatmul.msk.f32.gmra.mxu3 %vm1671_vm6, %v1639_v54  ;;  %4980 = vmatmul.msk.f32.gmra.mxu2 %vm1671_vm6, %v1639_v54  ;;  %v6798_v31 = vsel %vm9332_vm1, 0.0, %v1639_v54  ;;  %v2503_v54 = vrot.slane %v6650_v60, 6  ;;  %vm9334_vm1 = vmmov %vm9333_vm13 }
 0x3ef   : > { %v1540_v1 = vadd.f32 %v6647_v43, %v1539_v23  ;;  %5136 = vmatmul.msk.f32.gmra.mxu0 %vm1671_vm6, %v6798_v31  ;;  %1979 = vmatpush.msra.mxu3 %v5016_v12  ;;  %v5009_v12 = vld [vmem:[%s9287_s7 + $0x1e8] sm:$0xff]  ;;  %v1598_v8 = vsel %vm9334_vm1, 0.0, %v6668_v52 }
 0x3f0   : > { %2717 = vmatpush.msra.mxu0 %v5186_v61  ;;  %v2505_v23 = vsel %vm1077_vm3, %v2503_v54, %v2504_v48  ;;  %v5010_v61 = vld [vmem:[%s9287_s7 + $0x1f0] sm:$0xff]  ;;  %2889 = vmatpush.msrb.mxu1 %v5235_v47  ;;  %v5008_v48 = vld [vmem:[%s9287_s7 + $0x1e0] sm:$0xff]  ;;  %v5229_v54 = vld [vmem:[%s9287_s7 + $0x658] sm:$0xff] }
 0x3f1   : > { %v6818_v58 = vmax.f32 %v1540_v1, 0.0  ;;  %v6900_v56 = vsel %vm1590_vm11, 0.0, %v2505_v23  ;;  %v5014_v1 = vld [vmem:[%s9287_s7 + $0x210] sm:$0xff] }
 0x3f2   : > { %2718 = vmatpush.msra.mxu0 %v5184_v29  ;;  %1980 = vmatpush.msra.mxu3 %v5014_v1  ;;  %v2064_v29 = vrot.slane %v6650_v60, 7 }
 0x3f3   : > { %5107 = vmatmul.msk.f32.gmra.mxu1 %vm1671_vm6, %v6818_v58  ;;  %v1640_v19 = vrot.slane %v6818_v58, 1  ;;  %v2510_v1 = vrot.slane %v6818_v58, 6 }
 0x3f4   : > { %2719 = vmatpush.msra.mxu0 %v5182_v62  ;;  %1981 = vmatpush.msra.mxu3 %v5012_v11  ;;  %v5013_v62 = vld [vmem:[%s9287_s7 + $0x208] sm:$0xff] }
 0x3f5   : > { %v1641_v35 = vsel %vm1344_vm7, %v1638_v44, %v1640_v19 }
 0x3f6   : > { %v1542_v4 = vpop.f32.mrf.mxu2  ;;  %4974 = vmatmul.msk.f32.gmra.mxu3 %vm1671_vm6, %v1641_v35  ;;  %4981 = vmatmul.msk.f32.gmra.mxu2 %vm1671_vm6, %v1641_v35  ;;  %v6846_v28 = vsel %vm1917_vm12, 0.0, %v1641_v35  ;;  %v5015_v35 = vld [vmem:[%s9287_s7 + $0x218] sm:$0xff] }
 0x3f7   : > { %v1543_v17 = vadd.f32 %v6647_v43, %v1542_v4  ;;  %5137 = vmatmul.msk.f32.gmra.mxu0 %vm1671_vm6, %v6846_v28  ;;  %v2065_v4 = vrot.slane %v6668_v52, 7  ;;  %1982 = vmatpush.msra.mxu3 %v5010_v61  ;;  %v5000_v61 = vld [vmem:[%s9287_s7 + $0x1a0] sm:$0xff] }
 0x3f9   : > { %v6854_v0 = vmax.f32 %v1543_v17, 0.0  ;;  %v2508_v17 = vrot.slane %v6767_v49, 6  ;;  %1983 = vmatpush.msra.mxu3 %v5008_v48  ;;  %v3152_v48 = vld [vmem:[%s9289_s9 + $0x28] sm:$0xff] }
 0x3fb   : > { %5108 = vmatmul.msk.f32.gmra.mxu1 %vm1671_vm6, %v6854_v0  ;;  %v1642_v15 = vrot.slane %v6854_v0, 1  ;;  %v2509_v46 = vsel %vm1077_vm3, %v2506_v42, %v2508_v17  ;;  %v2067_v42 = vrot.slane %v6713_v25, 7  ;;  %v2511_v47 = vsel %vm1077_vm3, %v2508_v17, %v2510_v1  ;;  %v5223_v17 = vld [vmem:[%s9287_s7 + $0x628] sm:$0xff] }
 0x3fc   : > { %v6987_v23 = vsel %vm9333_vm13, 0.0, %v2509_v46  ;;  %v4998_v46 = vld [vmem:[%s9287_s7 + $0x190] sm:$0xff]  ;;  %vm9335_vm13 = vcmp.eq.s32.totalorder %v6092_v26, 1 }
 0x3fd   : > { %v1643_v51 = vsel %vm1344_vm7, %v1640_v19, %v1642_v15  ;;  %v5017_v19 = vld [vmem:[%s9287_s7 + $0x228] sm:$0xff]  ;;  %v7008_v11 = vsel %vm1075_vm2, %v2065_v4, %v2067_v42  ;;  %vm9336_vm1 = vmmov %vm9335_vm13 }
 0x3fe   : > { %v1545_v33 = vpop.f32.mrf.mxu2  ;;  %4975 = vmatmul.msk.f32.gmra.mxu3 %vm1671_vm6, %v1643_v51  ;;  %4982 = vmatmul.msk.f32.gmra.mxu2 %vm1671_vm6, %v1643_v51  ;;  %v6870_v18 = vsel %vm1918_vm14, 0.0, %v1643_v51  ;;  %v1597_v51 = vsel %vm1591_vm4, 0.0, %v6650_v60 }
 0x3ff   : > { %v1546_v14 = vadd.f32 %v6647_v43, %v1545_v33  ;;  %5138 = vmatmul.msk.f32.gmra.mxu0 %vm1671_vm6, %v6870_v18  ;;  %2017 = vmatpush.msrb.mxu2 %v5017_v19  ;;  %v6962_v33 = vsel %vm1075_vm2, %v2064_v29, %v2065_v4  ;;  %v5002_v19 = vld [vmem:[%s9287_s7 + $0x1b0] sm:$0xff]  ;;  %v3154_v4 = vld [vmem:[%s9289_s9 + $0x38] sm:$0xff] }
 0x400   : > { %3188 = vmatpush.msrb.mxu0 %v3154_v4  ;;  %v2071_v4 = vrot.slane %v6818_v58, 7 }
 0x401   : > { %v6878_v21 = vmax.f32 %v1546_v14, 0.0  ;;  %2018 = vmatpush.msrb.mxu2 %v5015_v35  ;;  %v5231_v14 = vld [vmem:[%s9287_s7 + $0x668] sm:$0xff] }
 0x402   : > { %v5005_v35 = vld [vmem:[%s9287_s7 + $0x1c8] sm:$0xff] }
 0x403   : > { %5109 = vmatmul.msk.f32.gmra.mxu1 %vm1671_vm6, %v6878_v21  ;;  %v2356_v44 = vrot.slane %v6878_v21, 1  ;;  %2019 = vmatpush.msrb.mxu2 %v5013_v62  ;;  %v7039_v62 = vsel %vm1593_vm15, 0.0, %v2511_v47  ;;  %v3150_v47 = vld [vmem:[%s9289_s9 + $0x18] sm:$0xff] }
 0x405   : > { %v2357_v43 = vsel %vm1344_vm7, %v1642_v15, %v2356_v44  ;;  %v5011_v44 = vld [vmem:[%s9287_s7 + $0x1f8] sm:$0xff] }
 0x406   : > { %4976 = vmatmul.msk.f32.gmra.mxu3 %vm1671_vm6, %v1642_v15  ;;  %4983 = vmatmul.msk.f32.gmra.mxu2 %vm1671_vm6, %v1642_v15  ;;  %v6890_v55 = vsel %vm1919_vm10, 0.0, %v2357_v43  ;;  %v5233_v15 = vld [vmem:[%s9287_s7 + $0x678] sm:$0xff]  ;;  %v5006_v43 = vld [vmem:[%s9287_s7 + $0x1d0] sm:$0xff] }
 0x407   : > { %5139 = vmatmul.msk.f32.gmra.mxu0 %vm1671_vm6, %v6890_v55  ;;  %2890 = vmatpush.msrb.mxu1 %v5233_v15  ;;  %v3153_v15 = vld [vmem:[%s9289_s9 + $0x30] sm:$0xff] }
 0x408   : > { %2020 = vmatpush.msrb.mxu2 %v5011_v44  ;;  %1984 = vmatpush.msra.mxu3 %v5006_v43  ;;  %v2512_v44 = vrot.slane %v6854_v0, 6  ;;  %v5221_v43 = vld [vmem:[%s9287_s7 + $0x618] sm:$0xff] }
 0x409   : > { %2891 = vmatpush.msrb.mxu1 %v5231_v14  ;;  %v2069_v14 = vrot.slane %v6767_v49, 7  ;;  %3189 = vmatpush.msrb.mxu0 %v3153_v15 }
 0x40a   : > { %2021 = vmatpush.msrb.mxu2 %v5009_v12  ;;  %1985 = vmatpush.msra.mxu3 %v5004_v9  ;;  %v5001_v12 = vld [vmem:[%s9287_s7 + $0x1a8] sm:$0xff]  ;;  %v4996_v9 = vld [vmem:[%s9287_s7 + $0x180] sm:$0xff] }
 0x40b   : > { %5176 = vmatmul.msk.f32.vlgmr.msra.gmra.mxu1 %vm1671_vm6, %v6900_v56  ;;  %3190 = vmatpush.msrb.mxu0 %v3152_v48  ;;  %v896_v48 = vpop.f32.mrf.mxu0 }
 0x40c   : > { %2892 = vmatpush.msrb.mxu1 %v5229_v54  ;;  %2022 = vmatpush.msrb.mxu2 %v5007_v53  ;;  %v1599_v54 = vsel %vm1593_vm15, 0.0, %v6713_v25  ;;  %v3151_v53 = vld [vmem:[%s9289_s9 + $0x20] sm:$0xff]  ;;  %v5057_v48 = vld [vmem:[%s9287_s7 + $0x2f8] sm:$0xff] }
 0x40d   : > { %1986 = vmatpush.msra.mxu3 %v5002_v19  ;;  %v4999_v19 = vld [vmem:[%s9287_s7 + $0x198] sm:$0xff]  ;;  %3191 = vmatpush.msrb.mxu0 %v3151_v53 }
 0x40e   : > { %1800 = vmatmul.f32.vlgmr.msrb.gmra.mxu3 %v9314_v32  ;;  %1838 = vmatmul.f32.vlgmr.msra.gmra.mxu2 %v9314_v32 }
 0x40f   : > { %2447 = vmatmul.f32.gmra.mxu0 %v9314_v32  ;;  %2893 = vmatpush.msrb.mxu1 %v5227_v13  ;;  %v7066_v13 = vsel %vm1075_vm2, %v2067_v42, %v2069_v14  ;;  %v2514_v42 = vrot.slane %v6878_v21, 6 }
 0x410   : > { %2023 = vmatpush.msrb.mxu2 %v5005_v35  ;;  %1987 = vmatpush.msra.mxu3 %v5000_v61  ;;  %v4997_v35 = vld [vmem:[%s9287_s7 + $0x188] sm:$0xff]  ;;  %v3149_v61 = vld [vmem:[%s9289_s9 + $0x10] sm:$0xff] }
 0x411   : > { %2894 = vmatpush.msrb.mxu1 %v5225_v34  ;;  %v2513_v34 = vsel %vm1077_vm3, %v2510_v1, %v2512_v44  ;;  %3192 = vmatpush.msrb.mxu0 %v3150_v47  ;;  %v2515_v15 = vsel %vm1077_vm3, %v2512_v44, %v2514_v42 }
 0x412   : > { %1988 = vmatpush.msra.mxu3 %v4998_v46  ;;  %v7089_v1 = vsel %vm9335_vm13, 0.0, %v2513_v34  ;;  %v7107_v46 = vsel %vm1075_vm2, %v2069_v14, %v2071_v4  ;;  %vm9337_vm13 = vcmask 1042432   ;;  %v1601_v14 = vsel %vm1595_vm5, 0.0, %v6818_v58  ;;  %v5056_v34 = vld [vmem:[%s9287_s7 + $0x2f0] sm:$0xff] }
 0x413   : > { %5177 = vmatmul.msk.f32.gmra.mxu1 %vm1671_vm6, %v6938_v30  ;;  %3193 = vmatpush.msrb.mxu0 %v3149_v61  ;;  %v2522_v44 = vsel %vm9337_vm13, %v2515_v15, 0.0  ;;  %v898_v53 = vpop.f32.mrf.mxu0  ;;  %v7159_v61 = vsel %vm1914_vm0, 0.0, %v6668_v52  ;;  %vm9339_vm13 = vcmask 1045504  }
 0x414   : > { %2895 = vmatpush.msrb.mxu1 %v5223_v17  ;;  %1989 = vmatpush.msra.mxu3 %v4996_v9  ;;  %v1600_v17 = vsel %vm9336_vm1, 0.0, %v6767_v49  ;;  %vm9338_vm1 = vcmp.eq.s32.totalorder %v6110_v37, 1 }
 0x415   : > { %v1602_v42 = vsel %vm9338_vm1, 0.0, %v6854_v0 }
 0x416   : > { %4984 = vmatmul.msk.f32.gmra.mxu3 %vm1671_vm6, %v1597_v51  ;;  %4990 = vmatmul.msk.f32.gmra.mxu2 %vm1671_vm6, %v1597_v51  ;;  %v5003_v51 = vld [vmem:[%s9287_s7 + $0x1b8] sm:$0xff] }
 0x417   : > { %5206 = vmatmul.msk.f32.vlgmr.msra.gmra.mxu0 %vm1671_vm6, %v6962_v33  ;;  %2024 = vmatpush.msrb.mxu2 %v5003_v51  ;;  %v3148_v51 = vld [vmem:[%s9289_s9 + $0x8] sm:$0xff] }
 0x418   : > { %2896 = vmatpush.msrb.mxu1 %v5221_v43  ;;  %v3147_v43 = vld [vmem:[%s9289_s9] sm:$0xff]  ;;  %3194 = vmatpush.msrb.mxu0 %v3148_v51 }
 0x419   : > { %2025 = vmatpush.msrb.mxu2 %v5001_v12  ;;  %v7120_v12 = vrot.slane %v6854_v0, 7  ;;  %2140 = vmatpush.msrb.mxu3 %v5056_v34  ;;  %v5048_v34 = vld [vmem:[%s9287_s7 + $0x2b0] sm:$0xff] }
 0x41a   : > { %3195 = vmatpush.msrb.mxu0 %v3147_v43  ;;  %v5050_v43 = vld [vmem:[%s9287_s7 + $0x2c0] sm:$0xff] }
 0x41b   : > { %5178 = vmatmul.msk.f32.gmra.mxu1 %vm1671_vm6, %v6987_v23  ;;  %2026 = vmatpush.msrb.mxu2 %v4999_v19  ;;  %v7131_v9 = vsel %vm1075_vm2, %v2071_v4, %v7120_v12  ;;  %v5054_v4 = vld [vmem:[%s9287_s7 + $0x2e0] sm:$0xff] }
 0x41c   : > { %2141 = vmatpush.msrb.mxu3 %v5054_v4  ;;  %v5049_v4 = vld [vmem:[%s9287_s7 + $0x2b8] sm:$0xff] }
 0x41d   : > { %2027 = vmatpush.msrb.mxu2 %v4997_v35  ;;  %v1860_v35 = vrot.slane %v6650_v60, 2 }
 0x41e   : > { %4985 = vmatmul.msk.f32.gmra.mxu3 %vm1671_vm6, %v1598_v8  ;;  %4991 = vmatmul.msk.f32.gmra.mxu2 %vm1671_vm6, %v1598_v8  ;;  %v5219_v8 = vld [vmem:[%s9287_s7 + $0x608] sm:$0xff] }
 0x41f   : > { %5207 = vmatmul.msk.f32.gmra.mxu0 %vm1671_vm6, %v7008_v11  ;;  %2897 = vmatpush.msrb.mxu1 %v5219_v8  ;;  %v2662_v8 = vrot.slane %v6878_v21, 7  ;;  %v1878_v15 = vsel %vm9339_vm13, 0.0, %v1860_v35 }
 0x420   : > { %v1921_v51 = vsel %vm1914_vm0, 0.0, %v1878_v15  ;;  %2178 = vmatpush.msra.mxu2 %v5057_v48  ;;  %vm9340_vm0 = vmmov %vm9339_vm13  ;;  %v5047_v15 = vld [vmem:[%s9287_s7 + $0x2a8] sm:$0xff]  ;;  %v5045_v48 = vld [vmem:[%s9287_s7 + $0x298] sm:$0xff] }
 0x421   : > { %v2663_v19 = vsel %vm1075_vm2, %v7120_v12, %v2662_v8  ;;  %v7188_v8 = vsel %vm1915_vm9, 0.0, %v6713_v25  ;;  %vm9342_vm1 = vmmov %vm9340_vm0 }
 0x422   : > { %v7148_v47 = vsel %vm1077_vm3, %v2663_v19, 0.0  ;;  %2179 = vmatpush.msra.mxu2 %v5055_v10  ;;  %v5051_v19 = vld [vmem:[%s9287_s7 + $0x2c8] sm:$0xff] }
 0x423   : > { %5179 = vmatmul.msk.f32.gmra.mxu1 %vm1671_vm6, %v7039_v62 }
 0x426   : > { %4986 = vmatmul.msk.f32.gmra.mxu3 %vm1671_vm6, %v1599_v54  ;;  %4992 = vmatmul.msk.f32.gmra.mxu2 %vm1671_vm6, %v1599_v54  ;;  %v7117_v54 = vsel %vm1595_vm5, 0.0, %v2522_v44  ;;  %v1861_v44 = vrot.slane %v6668_v52, 2 }
 0x427   : > { %5208 = vmatmul.msk.f32.gmra.mxu0 %vm1671_vm6, %v7066_v13 }
 0x428   : > { %v1862_v53 = vsel %vm9340_vm0, %v1860_v35, %v1861_v44  ;;  %v1863_v35 = vrot.slane %v6713_v25, 2 }
 0x42b   : > { %5180 = vmatmul.msk.f32.gmra.mxu1 %vm1671_vm6, %v7089_v1 }
 0x42e   : > { %4987 = vmatmul.msk.f32.gmra.mxu3 %vm1671_vm6, %v1600_v17  ;;  %4993 = vmatmul.msk.f32.gmra.mxu2 %vm1671_vm6, %v1600_v17  ;;  %v5052_v17 = vld [vmem:[%s9287_s7 + $0x2d0] sm:$0xff] }
 0x42f   : > { %5209 = vmatmul.msk.f32.gmra.mxu0 %vm1671_vm6, %v7107_v46  ;;  %2142 = vmatpush.msrb.mxu3 %v5052_v17  ;;  %v5044_v17 = vld [vmem:[%s9287_s7 + $0x290] sm:$0xff] }
 0x431   : > { %2143 = vmatpush.msrb.mxu3 %v5050_v43  ;;  %v5042_v43 = vld [vmem:[%s9287_s7 + $0x280] sm:$0xff] }
 0x433   : > { %5181 = vmatmul.msk.f32.gmra.mxu1 %vm1671_vm6, %v7117_v54  ;;  %2144 = vmatpush.msrb.mxu3 %v5048_v34 }
 0x435   : > { %2145 = vmatpush.msrb.mxu3 %v5046_v45 }
 0x436   : > { %4988 = vmatmul.msk.f32.gmra.mxu3 %vm1671_vm6, %v1601_v14  ;;  %4994 = vmatmul.msk.f32.gmra.mxu2 %vm1671_vm6, %v1601_v14  ;;  %v5053_v14 = vld [vmem:[%s9287_s7 + $0x2d8] sm:$0xff] }
 0x437   : > { %5210 = vmatmul.msk.f32.gmra.mxu0 %vm1671_vm6, %v7131_v9  ;;  %2180 = vmatpush.msra.mxu2 %v5053_v14  ;;  %v1865_v14 = vrot.slane %v6767_v49, 2 }
 0x438   : > { %2146 = vmatpush.msrb.mxu3 %v5044_v17 }
 0x439   : > { %2181 = vmatpush.msra.mxu2 %v5051_v19  ;;  %v1866_v45 = vsel %vm9340_vm0, %v1863_v35, %v1865_v14 }
 0x43a   : > { %2147 = vmatpush.msrb.mxu3 %v5042_v43  ;;  %v1867_v43 = vrot.slane %v6818_v58, 2 }
 0x43b   : > { %2644 = vmatmul.f32.gmra.mxu1 %v9314_v32  ;;  %2182 = vmatpush.msra.mxu2 %v5049_v4  ;;  %v5039_v4 = vld [vmem:[%s9287_s7 + $0x268] sm:$0xff] }
 0x43d   : > { %2183 = vmatpush.msra.mxu2 %v5047_v15  ;;  %v5036_v15 = vld [vmem:[%s9287_s7 + $0x250] sm:$0xff] }
 0x43e   : > { %4989 = vmatmul.msk.f32.gmra.mxu3 %vm1671_vm6, %v1602_v42  ;;  %4995 = vmatmul.msk.f32.gmra.mxu2 %vm1671_vm6, %v1602_v42  ;;  %v1922_v42 = vsel %vm1915_vm9, 0.0, %v1862_v53  ;;  %vm9341_vm9 = vcmp.eq.s32.totalorder %v6119_v16, 1  ;;  %v5040_v53 = vld [vmem:[%s9287_s7 + $0x270] sm:$0xff]  ;;  %v5041_v16 = vld [vmem:[%s9287_s7 + $0x278] sm:$0xff] }
 0x43f   : > { %5211 = vmatmul.msk.f32.gmra.mxu0 %vm1671_vm6, %v7148_v47  ;;  %vm9343_vm13 = vmmov %vm9341_vm9  ;;  %2184 = vmatpush.msra.mxu2 %v5045_v48  ;;  %v1924_v48 = vsel %vm1917_vm12, 0.0, %v1866_v45 }
 0x440   : > { %2148 = vmatpush.msrb.mxu3 %v5040_v53  ;;  %v7294_v53 = vsel %vm1918_vm14, 0.0, %v6854_v0 }
 0x443   : > { %5248 = vmatmul.msk.f32.vlgmr.msrb.gmra.mxu1 %vm1671_vm6, %v7159_v61 }
 0x446   : > { %5020 = vmatmul.msk.f32.vlgmr.msra.gmra.mxu3 %vm1671_vm6, %v1921_v51  ;;  %5027 = vmatmul.msk.f32.vlgmr.msrb.gmra.mxu2 %vm1671_vm6, %v1921_v51  ;;  %v7221_v51 = vsel %vm9341_vm9, 0.0, %v6767_v49 }
 0x447   : > { %2738 = vmatmul.f32.gmra.mxu0 %v9314_v32 }
 0x44b   : > { %5249 = vmatmul.msk.f32.gmra.mxu1 %vm1671_vm6, %v7188_v8 }
 0x44e   : > { %5021 = vmatmul.msk.f32.gmra.mxu3 %vm1671_vm6, %v1922_v42  ;;  %5028 = vmatmul.msk.f32.gmra.mxu2 %vm1671_vm6, %v1922_v42  ;;  %v5038_v42 = vld [vmem:[%s9287_s7 + $0x260] sm:$0xff] }
 0x44f   : > { %5254 = vmatmul.msk.f32.vlgmr.msrb.gmra.mxu0 %vm1351_vm8, %v6544_v38  ;;  %v1864_v38 = vsel %vm9342_vm1, %v1861_v44, %v1863_v35  ;;  %v5043_v44 = vld [vmem:[%s9287_s7 + $0x288] sm:$0xff]  ;;  %2149 = vmatpush.msrb.mxu3 %v5038_v42  ;;  %v5034_v35 = vld [vmem:[%s9287_s7 + $0x240] sm:$0xff] }
 0x450   : > { %v1923_v10 = vsel %vm9343_vm13, 0.0, %v1864_v38  ;;  %2185 = vmatpush.msra.mxu2 %v5043_v44  ;;  %v5037_v38 = vld [vmem:[%s9287_s7 + $0x258] sm:$0xff]  ;;  %vm9381_vm13 = vcmask 1042432  }
 0x451   : > { %2150 = vmatpush.msrb.mxu3 %v5036_v15 }
 0x452   : > { %2186 = vmatpush.msra.mxu2 %v5041_v16 }
 0x453   : > { %5250 = vmatmul.msk.f32.gmra.mxu1 %vm1671_vm6, %v7221_v51  ;;  %2151 = vmatpush.msrb.mxu3 %v5034_v35  ;;  %v3088_v35 = vmax.f32 %v6385_v24, -3e+38  ;;  %v5092_v24 = vld [vmem:[%s9287_s7 + $0x3a0] sm:$0xff] }
 0x454   : > { %2187 = vmatpush.msra.mxu2 %v5039_v4  ;;  %v1869_v4 = vrot.slane %v6854_v0, 2 }
 0x456   : > { %5022 = vmatmul.msk.f32.gmra.mxu3 %vm1671_vm6, %v1923_v10  ;;  %5029 = vmatmul.msk.f32.gmra.mxu2 %vm1671_vm6, %v1923_v10  ;;  %v5035_v10 = vld [vmem:[%s9287_s7 + $0x248] sm:$0xff] }
 0x457   : > { %5255 = vmatmul.msk.f32.gmra.mxu0 %vm1351_vm8, %v6549_v59  ;;  %v7261_v59 = vsel %vm1917_vm12, 0.0, %v6818_v58  ;;  %2188 = vmatpush.msra.mxu2 %v5037_v38  ;;  %vm9345_vm12 = vmmov %vm9340_vm0 }
 0x458   : > { %v1868_v16 = vsel %vm9345_vm12, %v1865_v14, %v1867_v43  ;;  %v2794_v14 = vsel %vm1075_vm2, %v6878_v21, 0.0  ;;  %vm9397_vm12 = vmmov %vm9381_vm13 }
 0x459   : > { %v7248_v34 = vpop.f32.mrf.mxu3  ;;  %v7250_v19 = vpop.f32.mrf.mxu2  ;;  %2189 = vmatpush.msra.mxu2 %v5035_v10  ;;  %v7316_v7 = vsel %vm1919_vm10, 0.0, %v2794_v14 }
 0x45b   : > { %5251 = vmatmul.msk.f32.gmra.mxu1 %vm1671_vm6, %v7261_v59 }
 0x45c   : > { %v7269_v17 = vpop.f32.mrf.mxu0 }
 0x45d   : > { %9344 = vst [vmem:[#allocation3_spill] sm:$0xff] %v7269_v17 }
 0x45e   : > { %5023 = vmatmul.msk.f32.gmra.mxu3 %vm1671_vm6, %v1924_v48  ;;  %5030 = vmatmul.msk.f32.gmra.mxu2 %vm1671_vm6, %v1924_v48 }
 0x45f   : > { %5256 = vmatmul.msk.f32.gmra.mxu0 %vm1351_vm8, %v6555_v36  ;;  %v1925_v36 = vsel %vm1918_vm14, 0.0, %v1868_v16  ;;  %vm9347_vm14 = vmmov %vm9340_vm0  ;;  %v5094_v16 = vld [vmem:[%s9287_s7 + $0x3b0] sm:$0xff]  ;;  %vm3253_vm0 = vcmask 654336  }
 0x460   : > { %v1870_v38 = vsel %vm9347_vm14, %v1867_v43, %v1869_v4  ;;  %2270 = vmatpush.msra.mxu3 %v5094_v16 }
 0x461   : > { %v7287_v2 = vpop.f32.mrf.mxu3  ;;  %v7289_v44 = vpop.f32.mrf.mxu2 }
 0x462   : > { %2271 = vmatpush.msra.mxu3 %v5092_v24  ;;  %v5131_v24 = vld [vmem:[%s9287_s7 + $0x468] sm:$0xff] }
 0x463   : > { %5252 = vmatmul.msk.f32.gmra.mxu1 %vm1671_vm6, %v7294_v53 }
 0x464   : > { %v7299_v42 = vpop.f32.mrf.mxu0 }
 0x465   : > { %9346 = vst [vmem:[#allocation4_spill] sm:$0xff] %v7299_v42 }
 0x466   : > { %5024 = vmatmul.msk.f32.gmra.mxu3 %vm1671_vm6, %v1925_v36  ;;  %5031 = vmatmul.msk.f32.gmra.mxu2 %vm1671_vm6, %v1925_v36  ;;  %v3121_v36 = vmax.f32 %v3088_v35, -3e+38 }
 0x467   : > { %5257 = vmatmul.msk.f32.gmra.mxu0 %vm1351_vm8, %v6564_v27  ;;  %v1926_v27 = vsel %vm1919_vm10, 0.0, %v1870_v38  ;;  %vm9348_vm10 = vcmp.eq.s32.totalorder %v6253_v40, 1  ;;  %v2082_v40 = vsel %vm1075_vm2, 0.0, %v2064_v29  ;;  %v5088_v29 = vld [vmem:[%s9287_s7 + $0x380] sm:$0xff] }
 0x468   : > { %v1927_v14 = vsel %vm9348_vm10, 0.0, %v1869_v4  ;;  %v5090_v4 = vld [vmem:[%s9287_s7 + $0x390] sm:$0xff] }
 0x469   : > { %v7310_v45 = vpop.f32.mrf.mxu3  ;;  %v7312_v15 = vpop.f32.mrf.mxu2  ;;  %2272 = vmatpush.msra.mxu3 %v5090_v4  ;;  %v5086_v4 = vld [vmem:[%s9287_s7 + $0x370] sm:$0xff] }
 0x46b   : > { %5253 = vmatmul.msk.f32.gmra.mxu1 %vm1671_vm6, %v7316_v7  ;;  %2273 = vmatpush.msra.mxu3 %v5088_v29 }
 0x46c   : > { %v7321_v48 = vpop.f32.mrf.mxu0 }
 0x46d   : > { %2274 = vmatpush.msra.mxu3 %v5086_v4  ;;  %v5082_v4 = vld [vmem:[%s9287_s7 + $0x350] sm:$0xff] }
 0x46e   : > { %5025 = vmatmul.msk.f32.gmra.mxu3 %vm1671_vm6, %v1926_v27  ;;  %5032 = vmatmul.msk.f32.gmra.mxu2 %vm1671_vm6, %v1926_v27 }
 0x46f   : > { %5258 = vmatmul.msk.f32.gmra.mxu0 %vm1351_vm8, %v6575_v63  ;;  %v3132_v63 = vmax.f32 %v3121_v36, -3e+38  ;;  %v5133_v36 = vld [vmem:[%s9287_s7 + $0x478] sm:$0xff]  ;;  %2275 = vmatpush.msra.mxu3 %v5084_v3  ;;  %v5078_v3 = vld [vmem:[%s9287_s7 + $0x330] sm:$0xff] }
 0x470   : > { %2455 = vmatpush.msrb.mxu2 %v5133_v36  ;;  %v5125_v36 = vld [vmem:[%s9287_s7 + $0x438] sm:$0xff] }
 0x471   : > { %v7330_v10 = vpop.f32.mrf.mxu3  ;;  %v7332_v43 = vpop.f32.mrf.mxu2  ;;  %v3146_v16 = vmax.f32 %v3132_v63, -3e+38  ;;  %v5129_v63 = vld [vmem:[%s9287_s7 + $0x458] sm:$0xff]  ;;  %2276 = vmatpush.msra.mxu3 %v5082_v4 }
 0x472   : > { %2456 = vmatpush.msrb.mxu2 %v5131_v24 }
 0x473   : > { %2916 = vmatmul.f32.gmra.mxu1 %v9314_v32  ;;  %v5119_v32 = vld [vmem:[%s9287_s7 + $0x408] sm:$0xff] }
 0x474   : > { %v7338_v39 = vpop.f32.mrf.mxu0  ;;  %2457 = vmatpush.msrb.mxu2 %v5129_v63  ;;  %v5123_v63 = vld [vmem:[%s9287_s7 + $0x428] sm:$0xff] }
 0x476   : > { %5026 = vmatmul.msk.f32.gmra.mxu3 %vm1671_vm6, %v1927_v14  ;;  %5033 = vmatmul.msk.f32.gmra.mxu2 %vm1671_vm6, %v1927_v14 }
 0x477   : > { %5259 = vmatmul.msk.f32.gmra.mxu0 %vm1351_vm8, %v6581_v5  ;;  %v2083_v5 = vsel %vm1590_vm11, 0.0, %v2082_v40 }
 0x479   : > { %v7349_v38 = vpop.f32.mrf.mxu3  ;;  %v7351_v27 = vpop.f32.mrf.mxu2 }
 0x47c   : > { %v7359_v35 = vpop.f32.mrf.mxu0 }
 0x47e   : > { %5058 = vmatmul.msk.f32.vlgmr.msrb.gmra.mxu3 %vm1671_vm6, %v2083_v5  ;;  %5065 = vmatmul.msk.f32.vlgmr.msra.gmra.mxu2 %vm1671_vm6, %v2083_v5  ;;  %v2084_v5 = vsel %vm1591_vm4, 0.0, %v6962_v33  ;;  %vm9351_vm4 = vcmp.eq.s32.totalorder %v6090_v20, 1 }
 0x47f   : > { %5260 = vmatmul.msk.f32.gmra.mxu0 %vm1351_vm8, %v3146_v16  ;;  %v5127_v16 = vld [vmem:[%s9287_s7 + $0x448] sm:$0xff]  ;;  %vm9354_vm8 = vcmp.eq.s32.totalorder %v6092_v26, 1 }
 0x480   : > { %2458 = vmatpush.msrb.mxu2 %v5127_v16  ;;  %v5121_v16 = vld [vmem:[%s9287_s7 + $0x418] sm:$0xff]  ;;  %v2087_v22 = vsel %vm9354_vm8, 0.0, %v7107_v46  ;;  %vm9404_vm8 = vmmov %vm9397_vm12 }
 0x481   : > { %v7372_v14 = vpop.f32.mrf.mxu3  ;;  %v7374_v50 = vpop.f32.mrf.mxu2 }
 0x482   : > { %2459 = vmatpush.msrb.mxu2 %v5125_v36  ;;  %v5080_v36 = vld [vmem:[%s9287_s7 + $0x340] sm:$0xff] }
 0x483   : > { %2277 = vmatpush.msra.mxu3 %v5080_v36  ;;  %v2086_v36 = vsel %vm1593_vm15, 0.0, %v7066_v13 }
 0x484   : > { %v7382_v40 = vpop.f32.mrf.mxu0  ;;  %2460 = vmatpush.msrb.mxu2 %v5123_v63  ;;  %v5117_v63 = vld [vmem:[%s9287_s7 + $0x3f8] sm:$0xff] }
 0x485   : > { %9349 = vst [vmem:[#allocation5_spill] sm:$0xff] %v7382_v40  ;;  %v2085_v40 = vsel %vm9351_vm4, 0.0, %v7008_v11  ;;  %2278 = vmatpush.msra.mxu3 %v5078_v3  ;;  %vm9403_vm4 = vcmask 1043456  }
 0x486   : > { %5059 = vmatmul.msk.f32.gmra.mxu3 %vm1671_vm6, %v2084_v5  ;;  %5066 = vmatmul.msk.f32.gmra.mxu2 %vm1671_vm6, %v2084_v5 }
 0x487   : > { %2461 = vmatpush.msrb.mxu2 %v5121_v16  ;;  %v5115_v16 = vld [vmem:[%s9287_s7 + $0x3e8] sm:$0xff] }
 0x489   : > { %v7398_v29 = vpop.f32.mrf.mxu3  ;;  %v7400_v24 = vpop.f32.mrf.mxu2  ;;  %2462 = vmatpush.msrb.mxu2 %v5119_v32  ;;  %v5074_v32 = vld [vmem:[%s9287_s7 + $0x310] sm:$0xff] }
 0x48b   : > { %2463 = vmatpush.msrb.mxu2 %v5117_v63 }
 0x48c   : > { %v7414_v5 = vpop.f32.mrf.mxu0 }
 0x48d   : > { %9350 = vst [vmem:[#allocation6_spill] sm:$0xff] %v7414_v5  ;;  %2464 = vmatpush.msrb.mxu2 %v5115_v16 }
 0x48e   : > { %5060 = vmatmul.msk.f32.gmra.mxu3 %vm1671_vm6, %v2085_v40  ;;  %5067 = vmatmul.msk.f32.gmra.mxu2 %vm1671_vm6, %v2085_v40  ;;  %v5076_v40 = vld [vmem:[%s9287_s7 + $0x320] sm:$0xff] }
 0x48f   : > { %2279 = vmatpush.msra.mxu3 %v5076_v40 }
 0x491   : > { %v1801_v5 = vpop.f32.mrf.mxu3  ;;  %v1839_v42 = vpop.f32.mrf.mxu2  ;;  %2280 = vmatpush.msra.mxu3 %v5074_v32 }
 0x492   : > { %v7434_v20 = vadd.f32 %v1801_v5, %v7248_v34  ;;  %v7437_v4 = vadd.f32 %v1839_v42, %v7250_v19  ;;  %v5113_v34 = vld [vmem:[%s9287_s7 + $0x3d8] sm:$0xff]  ;;  %v5072_v42 = vld [vmem:[%s9287_s7 + $0x300] sm:$0xff]  ;;  %v5111_v5 = vld [vmem:[%s9287_s7 + $0x3c8] sm:$0xff] }
 0x493   : > { %2465 = vmatpush.msrb.mxu2 %v5113_v34  ;;  %2281 = vmatpush.msra.mxu3 %v5072_v42 }
 0x494   : > { %v7451_v19 = vpop.f32.mrf.mxu0 }
 0x495   : > { %9352 = vst [vmem:[#allocation7_spill] sm:$0xff] %v7451_v19  ;;  %2466 = vmatpush.msrb.mxu2 %v5111_v5  ;;  %v2088_v5 = vsel %vm1595_vm5, 0.0, %v7131_v9  ;;  %vm9357_vm5 = vcmp.eq.s32.totalorder %v6110_v37, 1  ;;  %v5164_v37 = vld [vmem:[%s9287_s7 + $0x510] sm:$0xff] }
 0x496   : > { %5061 = vmatmul.msk.f32.gmra.mxu3 %vm1671_vm6, %v2086_v36  ;;  %5068 = vmatmul.msk.f32.gmra.mxu2 %vm1671_vm6, %v2086_v36  ;;  %v2089_v6 = vsel %vm9357_vm5, 0.0, %v7120_v12  ;;  %vm9405_vm5 = vmmov %vm9347_vm14 }
 0x499   : > { %v1804_v3 = vpop.f32.mrf.mxu3  ;;  %v1842_v63 = vpop.f32.mrf.mxu2 }
 0x49a   : > { %v7465_v40 = vadd.f32 %v1804_v3, %v7287_v2  ;;  %v7468_v16 = vadd.f32 %v1842_v63, %v7289_v44 }
 0x49c   : > { %v7470_v19 = vpop.f32.mrf.mxu0 }
 0x49d   : > { %9353 = vst [vmem:[#allocation8_spill] sm:$0xff] %v7470_v19 }
 0x49e   : > { %5062 = vmatmul.msk.f32.gmra.mxu3 %vm1671_vm6, %v2087_v22  ;;  %5069 = vmatmul.msk.f32.gmra.mxu2 %vm1671_vm6, %v2087_v22 }
 0x4a1   : > { %v1807_v32 = vpop.f32.mrf.mxu3  ;;  %v1845_v34 = vpop.f32.mrf.mxu2 }
 0x4a2   : > { %v7478_v42 = vadd.f32 %v1807_v32, %v7310_v45  ;;  %v7481_v2 = vadd.f32 %v1845_v34, %v7312_v15  ;;  %v5168_v15 = vld [vmem:[%s9287_s7 + $0x530] sm:$0xff] }
 0x4a3   : > { %2576 = vmatpush.msrb.mxu3 %v5168_v15  ;;  %v5201_v15 = vld [vmem:[%s9287_s7 + $0x5d8] sm:$0xff] }
 0x4a4   : > { %v7483_v44 = vpop.f32.mrf.mxu0 }
 0x4a5   : > { %9355 = vst [vmem:[#allocation9_spill] sm:$0xff] %v7483_v44 }
 0x4a6   : > { %5063 = vmatmul.msk.f32.gmra.mxu3 %vm1671_vm6, %v2088_v5  ;;  %5070 = vmatmul.msk.f32.gmra.mxu2 %vm1671_vm6, %v2088_v5 }
 0x4a9   : > { %v1810_v26 = vpop.f32.mrf.mxu3  ;;  %v1848_v36 = vpop.f32.mrf.mxu2 }
 0x4aa   : > { %v7491_v3 = vadd.f32 %v1810_v26, %v7330_v10  ;;  %v7494_v45 = vadd.f32 %v1848_v36, %v7332_v43  ;;  %v5166_v10 = vld [vmem:[%s9287_s7 + $0x520] sm:$0xff] }
 0x4ab   : > { %2577 = vmatpush.msrb.mxu3 %v5166_v10  ;;  %v5197_v10 = vld [vmem:[%s9287_s7 + $0x5b8] sm:$0xff] }
 0x4ac   : > { %v7499_v63 = vpop.f32.mrf.mxu0 }
 0x4ad   : > { %9356 = vst [vmem:[#allocation10_spill] sm:$0xff] %v7499_v63  ;;  %2578 = vmatpush.msrb.mxu3 %v5164_v37  ;;  %v5158_v37 = vld [vmem:[%s9287_s7 + $0x4e0] sm:$0xff] }
 0x4ae   : > { %5064 = vmatmul.msk.f32.gmra.mxu3 %vm1671_vm6, %v2089_v6  ;;  %5071 = vmatmul.msk.f32.gmra.mxu2 %vm1671_vm6, %v2089_v6 }
 0x4b1   : > { %v1813_v43 = vpop.f32.mrf.mxu3  ;;  %v1851_v22 = vpop.f32.mrf.mxu2 }
 0x4b2   : > { %v7510_v32 = vadd.f32 %v1813_v43, %v7349_v38  ;;  %v7513_v34 = vadd.f32 %v1851_v22, %v7351_v27  ;;  %v5205_v38 = vld [vmem:[%s9287_s7 + $0x5f8] sm:$0xff]  ;;  %v5162_v27 = vld [vmem:[%s9287_s7 + $0x500] sm:$0xff] }
 0x4b3   : > { %2746 = vmatpush.msra.mxu2 %v5205_v38  ;;  %2579 = vmatpush.msrb.mxu3 %v5162_v27  ;;  %v5195_v38 = vld [vmem:[%s9287_s7 + $0x5a8] sm:$0xff]  ;;  %v5156_v27 = vld [vmem:[%s9287_s7 + $0x4d0] sm:$0xff] }
 0x4b4   : > { %v7518_v12 = vpop.f32.mrf.mxu0 }
 0x4b5   : > { %9358 = vst [vmem:[#allocation11_spill] sm:$0xff] %v7518_v12 }
 0x4b6   : > { %5096 = vmatmul.msk.f32.vlgmr.msra.gmra.mxu3 %vm1671_vm6, %v6650_v60  ;;  %5140 = vmatmul.msk.f32.vlgmr.msrb.gmra.mxu2 %vm1671_vm6, %v6701_v41  ;;  %v5203_v41 = vld [vmem:[%s9287_s7 + $0x5e8] sm:$0xff] }
 0x4b7   : > { %2747 = vmatpush.msra.mxu2 %v5203_v41  ;;  %v5152_v41 = vld [vmem:[%s9287_s7 + $0x4b0] sm:$0xff] }
 0x4b9   : > { %v1816_v5 = vpop.f32.mrf.mxu3  ;;  %v1854_v26 = vpop.f32.mrf.mxu2  ;;  %2748 = vmatpush.msra.mxu2 %v5201_v15 }
 0x4ba   : > { %v7531_v36 = vadd.f32 %v1816_v5, %v7372_v14  ;;  %v7534_v60 = vadd.f32 %v1854_v26, %v7374_v50  ;;  %v5160_v14 = vld [vmem:[%s9287_s7 + $0x4f0] sm:$0xff]  ;;  %v5199_v50 = vld [vmem:[%s9287_s7 + $0x5c8] sm:$0xff] }
 0x4bb   : > { %2580 = vmatpush.msrb.mxu3 %v5160_v14  ;;  %2749 = vmatpush.msra.mxu2 %v5199_v50  ;;  %v5191_v26 = vld [vmem:[%s9287_s7 + $0x588] sm:$0xff]  ;;  %v7596_v14 = vld [vmem:[%s9290_s10] ss:$0 sm:$0xff] }
 0x4bc   : > { %v7542_v6 = vpop.f32.mrf.mxu0 }
 0x4bd   : > { %9359 = vst [vmem:[#allocation12_spill] sm:$0xff] %v7542_v6  ;;  %2750 = vmatpush.msra.mxu2 %v5197_v10  ;;  %2581 = vmatpush.msrb.mxu3 %v5158_v37 }
 0x4be   : > { %5097 = vmatmul.msk.f32.gmra.mxu3 %vm1671_vm6, %v6668_v52  ;;  %5141 = vmatmul.msk.f32.gmra.mxu2 %vm1671_vm6, %v6747_v57 }
 0x4bf   : > { %2751 = vmatpush.msra.mxu2 %v5195_v38  ;;  %2582 = vmatpush.msrb.mxu3 %v5156_v27 }
 0x4c1   : > { %v1819_v43 = vpop.f32.mrf.mxu3  ;;  %v1857_v22 = vpop.f32.mrf.mxu2 }
 0x4c2   : > { %v7558_v52 = vadd.f32 %v1819_v43, %v7398_v29  ;;  %v7561_v57 = vadd.f32 %v1857_v22, %v7400_v24  ;;  %v5193_v29 = vld [vmem:[%s9287_s7 + $0x598] sm:$0xff]  ;;  %v5154_v24 = vld [vmem:[%s9287_s7 + $0x4c0] sm:$0xff]  ;;  %v5187_v22 = vld [vmem:[%s9287_s7 + $0x568] sm:$0xff] }
 0x4c3   : > { %2752 = vmatpush.msra.mxu2 %v5193_v29  ;;  %2583 = vmatpush.msrb.mxu3 %v5154_v24  ;;  %v5150_v43 = vld [vmem:[%s9287_s7 + $0x4a0] sm:$0xff]  ;;  %v5183_v24 = vld [vmem:[%s9287_s7 + $0x548] sm:$0xff] }
 0x4c4   : > { %v7572_v5 = vpop.f32.mrf.mxu0  ;;  %v5146_v29 = vld [vmem:[%s9287_s7 + $0x480] sm:$0xff] }
 0x4c5   : > { %9360 = vst [vmem:[#allocation13_spill] sm:$0xff] %v7572_v5  ;;  %2753 = vmatpush.msra.mxu2 %v5191_v26  ;;  %2584 = vmatpush.msrb.mxu3 %v5152_v41 }
 0x4c6   : > { %5098 = vmatmul.msk.f32.gmra.mxu3 %vm1671_vm6, %v6713_v25  ;;  %5142 = vmatmul.msk.f32.gmra.mxu2 %vm1671_vm6, %v6798_v31  ;;  %v5189_v25 = vld [vmem:[%s9287_s7 + $0x578] sm:$0xff] }
 0x4c7   : > { %2754 = vmatpush.msra.mxu2 %v5189_v25  ;;  %2585 = vmatpush.msrb.mxu3 %v5150_v43 }
 0x4c9   : > { %v1991_v15 = vpop.f32.mrf.mxu3  ;;  %v2029_v31 = vpop.f32.mrf.mxu2  ;;  %2755 = vmatpush.msra.mxu2 %v5187_v22 }
 0x4ca   : > { %v7599_v50 = vadd.f32 %v1991_v15, %v7434_v20  ;;  %v7602_v10 = vadd.f32 %v2029_v31, %v7437_v4  ;;  %v5148_v20 = vld [vmem:[%s9287_s7 + $0x490] sm:$0xff]  ;;  %v5185_v4 = vld [vmem:[%s9287_s7 + $0x558] sm:$0xff] }
 0x4cb   : > { %2586 = vmatpush.msrb.mxu3 %v5148_v20  ;;  %2756 = vmatpush.msra.mxu2 %v5185_v4 }
 0x4cc   : > { %v3197_v37 = vpop.f32.mrf.mxu0 }
 0x4cd   : > { %v3198_v38 = vadd.f32 %v7596_v14, %v3197_v37  ;;  %2587 = vmatpush.msrb.mxu3 %v5146_v29  ;;  %2757 = vmatpush.msra.mxu2 %v5183_v24  ;;  %v7646_v37 = vpop.f32.mrf.mxu1  ;;  %v9361_v24 = vmov 0.0  }
 0x4ce   : > { %5099 = vmatmul.msk.f32.gmra.mxu3 %vm1671_vm6, %v6767_v49  ;;  %5143 = vmatmul.msk.f32.gmra.mxu2 %vm1671_vm6, %v6846_v28 }
 0x4cf   : > { %v3218_v27 = vmax.f32 %v3198_v38, 0.0 }
 0x4d1   : > { %3232 = vrot.lane.b32.xlu1 %v3218_v27, %s5528_s2  ;;  %v1994_v26 = vpop.f32.mrf.mxu3  ;;  %v2032_v41 = vpop.f32.mrf.mxu2  ;;  %v5240_v27 = vld [vmem:[%s9287_s7 + $0x6b0] sm:$0xff] }
 0x4d2   : > { %v7629_v49 = vadd.f32 %v1994_v26, %v7465_v40  ;;  %v7632_v28 = vadd.f32 %v2032_v41, %v7468_v16  ;;  %2848 = vmatpush.msra.mxu3 %v5240_v27  ;;  %v9363_v27 = vmov 0  }
 0x4d4   : > { %v3200_v25 = vpop.f32.mrf.mxu0 }
 0x4d5   : > { %v3201_v15 = vadd.f32 %v7596_v14, %v3200_v25 }
 0x4d6   : > { %5100 = vmatmul.msk.f32.gmra.mxu3 %vm1671_vm6, %v6818_v58  ;;  %5144 = vmatmul.msk.f32.gmra.mxu2 %vm1671_vm6, %v6870_v18 }
 0x4d7   : > { %v3219_v31 = vmax.f32 %v3201_v15, 0.0 }
 0x4d9   : > { %3234 = vrot.lane.b32.xlu2 %v3219_v31, %s5528_s2  ;;  %v1997_v43 = vpop.f32.mrf.mxu3  ;;  %v2035_v22 = vpop.f32.mrf.mxu2 }
 0x4da   : > { %v7641_v40 = vadd.f32 %v1997_v43, %v7478_v42  ;;  %v7644_v16 = vadd.f32 %v2035_v22, %v7481_v2  ;;  %v5234_v43 = vld [vmem:[%s9287_s7 + $0x680] sm:$0xff] }
 0x4dc   : > { %v3203_v20 = vpop.f32.mrf.mxu0 }
 0x4dd   : > { %v3204_v4 = vadd.f32 %v7596_v14, %v3203_v20  ;;  %v1475_v20 = vld [vmem:[%s9298_s18] sm:$0xff] }
 0x4de   : > { %5101 = vmatmul.msk.f32.gmra.mxu3 %vm1671_vm6, %v6854_v0  ;;  %5145 = vmatmul.msk.f32.gmra.mxu2 %vm1671_vm6, %v6890_v55  ;;  %v7664_v55 = vpop.f32.mrf.mxu1  ;;  %vm3712_vm15 = vcmp.eq.s32.totalorder %v1475_v20, 0  ;;  %vm3884_vm1 = vcmp.eq.s32.totalorder %v1475_v20, 2 }
 0x4df   : > { %v3220_v58 = vmax.f32 %v3204_v4, 0.0 }
 0x4e1   : > { %3236 = vrot.lane.b32.xlu2 %v3220_v58, %s5528_s2  ;;  %v2000_v18 = vpop.f32.mrf.mxu3  ;;  %v2038_v42 = vpop.f32.mrf.mxu2 }
 0x4e2   : > { %v7655_v38 = vadd.f32 %v2000_v18, %v7491_v3  ;;  %v7658_v2 = vadd.f32 %v2038_v42, %v7494_v45  ;;  %v5238_v3 = vld [vmem:[%s9287_s7 + $0x6a0] sm:$0xff] }
 0x4e3   : > { %2849 = vmatpush.msra.mxu3 %v5238_v3 }
 0x4e4   : > { %v3206_v0 = vpop.f32.mrf.mxu0 }
 0x4e5   : > { %v3207_v29 = vadd.f32 %v7596_v14, %v3206_v0  ;;  %v3714_v0 = vsel %vm3712_vm15, 1, %v9363_v27 }
 0x4e6   : > { %5102 = vmatmul.msk.f32.gmra.mxu3 %vm1671_vm6, %v6878_v21  ;;  %2485 = vmatmul.f32.gmra.mxu2 %v9361_v24  ;;  %v5236_v21 = vld [vmem:[%s9287_s7 + $0x690] sm:$0xff]  ;;  %v7689_v22 = vpop.f32.mrf.mxu1 }
 0x4e7   : > { %v3221_v45 = vmax.f32 %v3207_v29, 0.0  ;;  %2850 = vmatpush.msra.mxu3 %v5236_v21  ;;  %v5228_v21 = vld [vmem:[%s9287_s7 + $0x650] sm:$0xff] }
 0x4e9   : > { %3238 = vrot.lane.b32.xlu0 %v3221_v45, %s5528_s2  ;;  %v2003_v26 = vpop.f32.mrf.mxu3  ;;  %v7673_v41 = vpop.f32.mrf.mxu2  ;;  %2851 = vmatpush.msra.mxu3 %v5234_v43 }
 0x4ea   : > { %v7676_v25 = vadd.f32 %v2003_v26, %v7510_v32 }
 0x4ec   : > { %v3209_v15 = vpop.f32.mrf.mxu0 }
 0x4ed   : > { %v3210_v31 = vadd.f32 %v7596_v14, %v3209_v15 }
 0x4ee   : > { %5170 = vmatmul.msk.f32.vlgmr.msrb.gmra.mxu3 %vm1671_vm6, %v6900_v56  ;;  %5212 = vmatmul.msk.f32.vlgmr.msra.gmra.mxu2 %vm1671_vm6, %v6962_v33  ;;  %v5232_v33 = vld [vmem:[%s9287_s7 + $0x670] sm:$0xff]  ;;  %v7715_v26 = vpop.f32.mrf.mxu1 }
 0x4ef   : > { %v3222_v32 = vmax.f32 %v3210_v31, 0.0  ;;  %2852 = vmatpush.msra.mxu3 %v5232_v33  ;;  %v5226_v31 = vld [vmem:[%s9287_s7 + $0x640] sm:$0xff]  ;;  %v5224_v33 = vld [vmem:[%s9287_s7 + $0x630] sm:$0xff] }
 0x4f1   : > { %3240 = vrot.lane.b32.xlu0 %v3222_v32, %s5528_s2  ;;  %v2006_v4 = vpop.f32.mrf.mxu3  ;;  %v7695_v58 = vpop.f32.mrf.mxu2 }
 0x4f2   : > { %v7698_v56 = vadd.f32 %v2006_v4, %v7531_v36  ;;  %v1476_v36 = vld [vmem:[%s9298_s18 + $0x8] sm:$0x1] }
 0x4f3   : > { %vm3885_vm11 = vcmp.eq.s32.totalorder %v1476_v36, 2  ;;  %vm3713_vm9 = vcmp.eq.s32.totalorder %v1476_v36, 0 }
 0x4f4   : > { %9362 = vst [vmem:[#allocation14_spill] sm:$0xff] %v7698_v56  ;;  %v3212_v18 = vpop.f32.mrf.mxu0  ;;  %v3715_v4 = vsel %vm3713_vm9, 1, %v9363_v27  ;;  %vm9410_vm9 = vcmask 1044480  }
 0x4f5   : > { %v3213_v42 = vadd.f32 %v7596_v14, %v3212_v18 }
 0x4f6   : > { %5171 = vmatmul.msk.f32.gmra.mxu3 %vm1671_vm6, %v6938_v30  ;;  %5213 = vmatmul.msk.f32.gmra.mxu2 %vm1671_vm6, %v7008_v11  ;;  %v5230_v11 = vld [vmem:[%s9287_s7 + $0x660] sm:$0xff] }
 0x4f7   : > { %v3223_v29 = vmax.f32 %v3213_v42, 0.0  ;;  %2853 = vmatpush.msra.mxu3 %v5230_v11  ;;  %v7748_v42 = vpop.f32.mrf.mxu1 }
 0x4f9   : > { %3717 = vperm.xlu0 %5507, %v3714_v0   ;;  %3242 = vrot.lane.b32.xlu1 %v3223_v29, %s5528_s2  ;;  %v2009_v3 = vpop.f32.mrf.mxu3  ;;  %v7713_v45 = vpop.f32.mrf.mxu2  ;;  %v5220_v0 = vld [vmem:[%s9287_s7 + $0x610] sm:$0xff]  ;;  %v5218_v29 = vld [vmem:[%s9287_s7 + $0x600] sm:$0xff] }
 0x4fa   : > { %9364 = vst [vmem:[#allocation15_spill] sm:$0xff] %v7713_v45  ;;  %v7718_v30 = vadd.f32 %v2009_v3, %v7558_v52  ;;  %2854 = vmatpush.msra.mxu3 %v5228_v21  ;;  %v3887_v52 = vsel %vm3885_vm11, 1, %v9363_v27 }
 0x4fc   : > { %9365 = vst [vmem:[#allocation16_spill] sm:$0xff] %v7718_v30  ;;  %v3215_v15 = vpop.f32.mrf.mxu0  ;;  %2855 = vmatpush.msra.mxu3 %v5226_v31 }
 0x4fd   : > { %v3216_v43 = vadd.f32 %v7596_v14, %v3215_v15 }
 0x4fe   : > { %5172 = vmatmul.msk.f32.gmra.mxu3 %vm1671_vm6, %v6987_v23  ;;  %5214 = vmatmul.msk.f32.gmra.mxu2 %vm1671_vm6, %v7066_v13  ;;  %v5222_v13 = vld [vmem:[%s9287_s7 + $0x620] sm:$0xff] }
 0x4ff   : > { %v3224_v32 = vmax.f32 %v3216_v43, 0.0  ;;  %2856 = vmatpush.msra.mxu3 %v5224_v33  ;;  %v7766_v11 = vpop.f32.mrf.mxu1 }
 0x501   : > { %3892 = vperm.xlu0 %5507, %v3887_v52   ;;  %3244 = vrot.lane.b32.xlu2 %v3224_v32, %s5528_s2  ;;  %v2153_v14 = vpop.f32.mrf.mxu3  ;;  %v7740_v18 = vpop.f32.mrf.mxu2 }
 0x502   : > { %3720 = vperm.xlu1 %5505, %v3715_v4   ;;  %v7743_v23 = vadd.f32 %v2153_v14, %v7599_v50  ;;  %2857 = vmatpush.msra.mxu3 %v5222_v13  ;;  %v3886_v50 = vsel %vm3884_vm1, 1, %v9363_v27  ;;  %vm9411_vm1 = vmmov %vm9403_vm4 }
 0x504   : > { %9366 = vst [vmem:[#allocation17_spill] sm:$0xff] %v7743_v23  ;;  %2858 = vmatpush.msra.mxu3 %v5220_v0 }
 0x506   : > { %5173 = vmatmul.msk.f32.gmra.mxu3 %vm1671_vm6, %v7039_v62  ;;  %5215 = vmatmul.msk.f32.gmra.mxu2 %vm1671_vm6, %v7107_v46 }
 0x507   : > { %2859 = vmatpush.msra.mxu3 %v5218_v29 }
 0x509   : > { %3889 = vperm.xlu2 %5506, %v3886_v50   ;;  %v2156_v20 = vpop.f32.mrf.mxu3  ;;  %v7761_v36 = vpop.f32.mrf.mxu2 }
 0x50a   : > { %v7764_v3 = vadd.f32 %v2156_v20, %v7629_v49  ;;  %v7781_v49 = vpop.f32.mrf.mxu1 }
 0x50b   : > { %9368 = vst [vmem:[#allocation19_spill] sm:$0xff] %v7781_v49 }
 0x50c   : > { %9367 = vst [vmem:[#allocation18_spill] sm:$0xff] %v7764_v3 }
 0x50e   : > { %5174 = vmatmul.msk.f32.gmra.mxu3 %vm1671_vm6, %v7089_v1  ;;  %5216 = vmatmul.msk.f32.gmra.mxu2 %vm1671_vm6, %v7131_v9 }
 0x511   : > { %v2159_v62 = vpop.f32.mrf.mxu3  ;;  %v7772_v46 = vpop.f32.mrf.mxu2 }
 0x512   : > { %v7775_v27 = vadd.f32 %v2159_v62, %v7641_v40  ;;  %v7792_v31 = vpop.f32.mrf.mxu1  ;;  %v2059_v62 = vadd.f32 %v7673_v41, %v7513_v34 }
 0x516   : > { %5175 = vmatmul.msk.f32.gmra.mxu3 %vm1671_vm6, %v7117_v54  ;;  %5217 = vmatmul.msk.f32.gmra.mxu2 %vm1671_vm6, %v7148_v47 }
 0x519   : > { %v2162_v21 = vpop.f32.mrf.mxu3  ;;  %v7783_v15 = vpop.f32.mrf.mxu2 }
 0x51a   : > { %v7786_v1 = vadd.f32 %v2162_v21, %v7655_v38  ;;  %v7800_v43 = vpop.f32.mrf.mxu1 }
 0x51e   : > { %2606 = vmatmul.f32.gmra.mxu3 %v9361_v24  ;;  %2776 = vmatmul.f32.gmra.mxu2 %v9361_v24 }
 0x521   : > { %v7790_v9 = vpop.f32.mrf.mxu3  ;;  %v2203_v40 = vpop.f32.mrf.mxu2 }
 0x522   : > { %v7808_v32 = vpop.f32.mrf.mxu1  ;;  %v2221_v5 = vadd.f32 %v2203_v40, %v2059_v62 }
 0x524   : > { %v2351_v30 = vadd.f32 %v7748_v42, %v2221_v5 }
 0x526   : > { %5242 = vmatmul.msk.f32.vlgmr.msra.gmra.mxu3 %vm1671_vm6, %v7159_v61 }
 0x529   : > { %v7796_v54 = vpop.f32.mrf.mxu3  ;;  %v7798_v47 = vpop.f32.mrf.mxu2 }
 0x52a   : > { %9369 = vst [vmem:[#allocation20_spill] sm:$0xff] %v7796_v54  ;;  %v7818_v33 = vpop.f32.mrf.mxu1 }
 0x52e   : > { %5243 = vmatmul.msk.f32.gmra.mxu3 %vm1671_vm6, %v7188_v8 }
 0x531   : > { %v7804_v38 = vpop.f32.mrf.mxu3  ;;  %v7806_v52 = vpop.f32.mrf.mxu2 }
 0x532   : > { %9370 = vst [vmem:[#allocation21_spill] sm:$0xff] %v7804_v38 }
 0x533   : > { %9371 = vst [vmem:[#allocation22_spill] sm:$0xff] %v7806_v52  ;;  %v7830_v50 = vpop.permute.xlu2 %3234 }
 0x534   : > { %v3272_v6 = vrot.slane %v7830_v50, 7  ;;  %v3288_v56 = vrot.slane %v7830_v50, 6 }
 0x536   : > { %5244 = vmatmul.msk.f32.gmra.mxu3 %vm1671_vm6, %v7221_v51  ;;  %v2639_v51 = vpop.f32.mrf.mxu1 }
 0x539   : > { %v7812_v4 = vpop.f32.mrf.mxu3  ;;  %v7814_v61 = vpop.f32.mrf.mxu2 }
 0x53a   : > { %9372 = vst [vmem:[#allocation23_spill] sm:$0xff] %v7812_v4 }
 0x53b   : > { %v7846_v12 = vpop.permute.xlu2 %3236 }
 0x53c   : > { %v3289_v38 = vrot.slane %v7846_v12, 6  ;;  %v3343_v62 = vrot.slane %v7846_v12, 7 }
 0x53e   : > { %5245 = vmatmul.msk.f32.gmra.mxu3 %vm1671_vm6, %v7261_v59  ;;  %v7843_v21 = vpop.f32.mrf.mxu1  ;;  %v3358_v42 = vmax.f32 %v7830_v50, %v3343_v62 }
 0x53f   : > { %9374 = vst [vmem:[#allocation25_spill] sm:$0xff] %v7843_v21 }
 0x541   : > { %v7820_v14 = vpop.f32.mrf.mxu3  ;;  %v7822_v8 = vpop.f32.mrf.mxu2 }
 0x542   : > { %9373 = vst [vmem:[#allocation24_spill] sm:$0xff] %v7820_v14 }
 0x543   : > { %v7834_v59 = vpop.permute.xlu1 %3232 }
 0x546   : > { %5246 = vmatmul.msk.f32.gmra.mxu3 %vm1671_vm6, %v7294_v53  ;;  %v3271_v53 = vrot.slane %v7834_v59, 7  ;;  %v7861_v44 = vpop.f32.mrf.mxu1 }
 0x547   : > { %9375 = vst [vmem:[#allocation26_spill] sm:$0xff] %v7861_v44 }
 0x549   : > { %v7826_v13 = vpop.f32.mrf.mxu3  ;;  %v7828_v0 = vpop.f32.mrf.mxu2 }
 0x54e   : > { %5247 = vmatmul.msk.f32.gmra.mxu3 %vm1671_vm6, %v7316_v7  ;;  %v3273_v7 = vsel %vm1075_vm2, %v3271_v53, %v3272_v6  ;;  %v3290_v6 = vsel %vm1077_vm3, %v3288_v56, %v3289_v38  ;;  %v2899_v4 = vpop.f32.mrf.mxu1 }
 0x54f   : > { %v3279_v54 = vmax.f32 %v7834_v59, %v3273_v7 }
 0x551   : > { %v7836_v29 = vpop.f32.mrf.mxu3  ;;  %v7838_v20 = vpop.f32.mrf.mxu2  ;;  %v3296_v53 = vmax.f32 %v3279_v54, %v3290_v6 }
 0x553   : > { %v3302_v19 = vrot.slane %v3296_v53, 1 }
 0x555   : > { %v3308_v6 = vmax.f32 %v3296_v53, %v3302_v19 }
 0x556   : > { %2878 = vmatmul.f32.gmra.mxu3 %v9361_v24 }
 0x559   : > { %v7853_v34 = vpop.f32.mrf.mxu3  ;;  %v2480_v41 = vpop.f32.mrf.mxu2 }
 0x55a   : > { %v2498_v40 = vadd.f32 %v2480_v41, %v2351_v30 }
 0x55b   : > { %v7857_v63 = vpop.permute.xlu0 %3238 }
 0x55c   : > { %v3366_v24 = vrot.slane %v7857_v63, 6  ;;  %v3348_v5 = vrot.slane %v7857_v63, 7  ;;  %v7865_v7 = vadd.f32 %v2639_v51, %v2498_v40 }
 0x55e   : > { %v3381_v14 = vmax.f32 %v3358_v42, %v3366_v24  ;;  %v3349_v3 = vsel %vm1075_vm2, %v3343_v62, %v3348_v5  ;;  %v3311_v42 = vrot.slane %v3296_v53, 2  ;;  %v2213_v62 = vadd.f32 %v7740_v18, %v7602_v10 }
 0x55f   : > { %v3361_v17 = vmax.f32 %v7846_v12, %v3349_v3  ;;  %v7885_v3 = vpop.permute.xlu2 %3244 }
 0x560   : > { %v3390_v44 = vrot.slane %v3381_v14, 1  ;;  %v3317_v5 = vmax.f32 %v3308_v6, %v3311_v42  ;;  %9379 = vst [vmem:[#allocation30_spill] sm:$0xff] %v7885_v3  ;;  %v2343_v10 = vadd.f32 %v7646_v37, %v2213_v62  ;;  %v3477_v6 = vrot.slane %v7885_v3, 6 }
 0x561   : > { %v7867_v30 = vpop.f32.mrf.mxu3  ;;  %v7869_v41 = vpop.f32.mrf.mxu2 }
 0x562   : > { %9376 = vst [vmem:[#allocation27_spill] sm:$0xff] %v7867_v30  ;;  %v3396_v23 = vmax.f32 %v3381_v14, %v3390_v44  ;;  %v3323_v18 = vrot.slane %v3317_v5, 1  ;;  %v2215_v14 = vadd.f32 %v7761_v36, %v7632_v28 }
 0x563   : > { %v7872_v56 = vpop.permute.xlu0 %3240 }
 0x564   : > { %v3371_v54 = vrot.slane %v7872_v56, 6  ;;  %v3449_v38 = vrot.slane %v7872_v56, 7 }
 0x566   : > { %v3372_v51 = vsel %vm1077_vm3, %v3366_v24, %v3371_v54  ;;  %v3464_v40 = vmax.f32 %v7857_v63, %v3449_v38 }
 0x567   : > { %v3384_v30 = vmax.f32 %v3361_v17, %v3372_v51 }
 0x569   : > { %v3402_v49 = vrot.slane %v3384_v30, 2  ;;  %v3411_v21 = vrot.slane %v3384_v30, 1  ;;  %v7881_v52 = vpop.f32.mrf.mxu3  ;;  %v7883_v19 = vpop.f32.mrf.mxu2 }
 0x56a   : > { %9377 = vst [vmem:[#allocation28_spill] sm:$0xff] %v7881_v52  ;;  %v2490_v52 = vadd.f32 %v7814_v61, %v2343_v10 }
 0x56b   : > { %9378 = vst [vmem:[#allocation29_spill] sm:$0xff] %v7883_v19  ;;  %v3408_v45 = vmax.f32 %v3396_v23, %v3402_v49  ;;  %v3417_v24 = vmax.f32 %v3384_v30, %v3411_v21  ;;  %v7887_v54 = vpop.permute.xlu1 %3242  ;;  %v3329_v19 = vrot.slane %v3317_v5, 2 }
 0x56c   : > { %9380 = vst [vmem:[#allocation31_spill] sm:$0xff] %v7887_v54  ;;  %v3454_v17 = vrot.slane %v7887_v54, 7  ;;  %v3472_v53 = vrot.slane %v7887_v54, 6 }
 0x56d   : > { %v3420_v44 = vmax.f32 %v3417_v24, %v3402_v49  ;;  %v3426_v23 = vrot.slane %v3408_v45, 6  ;;  %v3335_v49 = vsel %vm1075_vm2, %v3317_v5, %v3323_v18  ;;  %v2345_v45 = vadd.f32 %v7664_v55, %v2215_v14 }
 0x56e   : > { %v3455_v51 = vsel %vm1075_vm2, %v3449_v38, %v3454_v17  ;;  %v3487_v42 = vmax.f32 %v3464_v40, %v3472_v53  ;;  %v3478_v54 = vsel %vm1077_vm3, %v3472_v53, %v3477_v6  ;;  %v2902_v38 = vpop.f32.mrf.mxu1  ;;  %v3338_v5 = vsel %vm1077_vm3, %v3335_v49, %v3329_v19 }
 0x56f   : > { %v3435_v21 = vrot.slane %v3420_v44, 7  ;;  %v3467_v30 = vmax.f32 %v7872_v56, %v3455_v51  ;;  %v2492_v53 = vadd.f32 %v7822_v8, %v2345_v45 }
 0x570   : > { %v3496_v37 = vrot.slane %v3487_v42, 1  ;;  %v3505_v51 = vrot.slane %v3487_v42, 2 }
 0x571   : > { %v3441_v62 = vsel %vm1075_vm2, %v3426_v23, %v3435_v21  ;;  %v3490_v28 = vmax.f32 %v3467_v30, %v3478_v54  ;;  %v7901_v36 = vpop.f32.mrf.mxu3  ;;  %v2759_v24 = vpop.f32.mrf.mxu2  ;;  %v2649_v54 = vadd.f32 %v7792_v31, %v2490_v52  ;;  %v2651_v8 = vadd.f32 %v7800_v43, %v2492_v53 }
 0x572   : > { %v3444_v40 = vsel %vm1077_vm3, %v3441_v62, %v3420_v44  ;;  %v3502_v17 = vmax.f32 %v3487_v42, %v3496_v37  ;;  %v7914_v42 = vld [vmem:[%s9288_s8] sm:$0x3]  ;;  %v2219_v43 = vadd.f32 %v7783_v15, %v7658_v2  ;;  %v2348_v2 = vadd.f32 %v7836_v29, %v7786_v1 }
 0x573   : > { %v3574_v61 = vrot.slane %v3444_v40, 5  ;;  %v3517_v10 = vrot.slane %v3490_v28, 2  ;;  %v3526_v3 = vrot.slane %v3490_v28, 1  ;;  %v2781_v14 = vadd.f32 %v2759_v24, %v2649_v54 }
 0x574   : > { %v3511_v18 = vmax.f32 %v3502_v17, %v3505_v51 }
 0x575   : > { %v7909_v6 = vsel %vm9381_vm13, %v3338_v5, %v3574_v61  ;;  %v3523_v23 = vmax.f32 %v3502_v17, %v3517_v10  ;;  %v3532_v21 = vmax.f32 %v3490_v28, %v3526_v3  ;;  %v2921_v49 = vadd.f32 %v2899_v4, %v2781_v14  ;;  %vm9414_vm13 = vmmov %vm9410_vm9 }
 0x576   : > { %v3541_v55 = vrot.slane %v3511_v18, 4  ;;  %v7921_v3 = vperm.slane %v7914_v42, 1  ;;  %v2217_v28 = vadd.f32 %v7772_v46, %v7644_v16  ;;  %v2905_v45 = vpop.f32.mrf.mxu1  ;;  %v2346_v4 = vadd.f32 %v7826_v13, %v7775_v27 }
 0x577   : > { %v3535_v44 = vmax.f32 %v3532_v21, %v3517_v10  ;;  %v3550_v30 = vrot.slane %v3523_v23, 5  ;;  %v2349_v16 = vadd.f32 %v7715_v26, %v2219_v43  ;;  %v2495_v23 = vadd.f32 %v7338_v39, %v2348_v2  ;;  %v9382_v2 = vld [vmem:[#allocation15_spill] sm:$0xff] }
 0x578   : > { %v2941_v40 = vadd.f32 %v7921_v3, %v2921_v49  ;;  %v2347_v51 = vadd.f32 %v7689_v22, %v2217_v28  ;;  %v2493_v22 = vadd.f32 %v7321_v48, %v2346_v4 }
 0x579   : > { %v3559_v19 = vrot.slane %v3535_v44, 6  ;;  %v3565_v37 = vsel %vm1075_vm2, %v3541_v55, %v3550_v30  ;;  %v7918_v31 = vpop.f32.mrf.mxu3  ;;  %v2762_v52 = vpop.f32.mrf.mxu2  ;;  %v2496_v15 = vadd.f32 %v7838_v20, %v2349_v16  ;;  %v2061_v44 = vadd.f32 %v7695_v58, %v7534_v60  ;;  %v3622_v58 = vld [vmem:[%s9291_s11 + $0xe8] sm:$0xff] }
 0x57a   : > { %v2783_v62 = vadd.f32 %v2762_v52, %v2651_v8  ;;  %v2494_v61 = vadd.f32 %v7828_v0, %v2347_v51  ;;  %v2955_v46 = vmax.f32 %v2941_v40, 0.0 }
 0x57b   : > { %v7926_v24 = vsel %vm1077_vm3, %v3565_v37, %v3559_v19  ;;  %v2655_v1 = vadd.f32 %v7818_v33, %v2496_v15  ;;  %v3624_v19 = vld [vmem:[%s9291_s11 + $0xf8] sm:$0xff] }
 0x57c   : > { %v2923_v17 = vadd.f32 %v2902_v38, %v2783_v62  ;;  %v2653_v38 = vadd.f32 %v7808_v32, %v2494_v61  ;;  %v3254_v13 = vsel %vm3253_vm0, %v2955_v46, %v7834_v59  ;;  %v2220_v32 = vadd.f32 %v7790_v9, %v7676_v25  ;;  %v3623_v25 = vld [vmem:[%s9291_s11 + $0xf0] sm:$0xff]  ;;  %3660 = vmatpush.msrb.mxu3 %v3624_v19 }
 0x57d   : > { %v3268_v29 = vrot.slane %v3254_v13, 7  ;;  %v2223_v9 = vadd.f32 %v7798_v47, %v2061_v44 }
 0x57e   : > { %v2943_v5 = vadd.f32 %v7921_v3, %v2923_v17  ;;  %v2908_v27 = vpop.f32.mrf.mxu1  ;;  %v2350_v39 = vadd.f32 %v7853_v34, %v2220_v32  ;;  %3661 = vmatpush.msrb.mxu3 %v3623_v25 }
 0x57f   : > { %v2353_v17 = vadd.f32 %v7766_v11, %v2223_v9  ;;  %v2063_v11 = vadd.f32 %v9382_v2, %v7561_v57  ;;  %v3618_v9 = vld [vmem:[%s9291_s11 + $0xc8] sm:$0xff] }
 0x580   : > { %v2957_v0 = vmax.f32 %v2943_v5, 0.0  ;;  %v2497_v62 = vadd.f32 %v7359_v35, %v2350_v39  ;;  %3662 = vmatpush.msrb.mxu3 %v3622_v58  ;;  %v9386_v39 = vld [vmem:[#allocation29_spill] sm:$0xff] }
 0x581   : > { %v2595_v10 = vpop.f32.mrf.mxu3  ;;  %v2765_v53 = vpop.f32.mrf.mxu2  ;;  %v2500_v16 = vadd.f32 %v7869_v41, %v2353_v17 }
 0x582   : > { %v7944_v18 = vadd.f32 %v2595_v10, %v2493_v22  ;;  %v2785_v26 = vadd.f32 %v2765_v53, %v2653_v38  ;;  %v3255_v54 = vsel %vm3253_vm0, %v2957_v0, %v7830_v50  ;;  %v9384_v0 = vld [vmem:[#allocation25_spill] sm:$0xff] }
 0x583   : > { %v3269_v20 = vrot.slane %v3255_v54, 7  ;;  %v3285_v28 = vrot.slane %v3255_v54, 6 }
 0x584   : > { %v2925_v55 = vadd.f32 %v2905_v45, %v2785_v26  ;;  %v2659_v26 = vadd.f32 %v9384_v0, %v2500_v16  ;;  %v3616_v16 = vld [vmem:[%s9291_s11 + $0xb8] sm:$0xff] }
 0x585   : > { %v3270_v50 = vsel %vm1075_vm2, %v3268_v29, %v3269_v20  ;;  %v3621_v29 = vld [vmem:[%s9291_s11 + $0xe0] sm:$0xff]  ;;  %v3620_v20 = vld [vmem:[%s9291_s11 + $0xd8] sm:$0xff] }
 0x586   : > { %v3278_v30 = vmax.f32 %v3254_v13, %v3270_v50  ;;  %v2945_v33 = vadd.f32 %v7921_v3, %v2925_v55  ;;  %v2911_v34 = vpop.f32.mrf.mxu1  ;;  %3663 = vmatpush.msrb.mxu3 %v3621_v29  ;;  %v3619_v50 = vld [vmem:[%s9291_s11 + $0xd0] sm:$0xff] }
 0x588   : > { %v2959_v37 = vmax.f32 %v2945_v33, 0.0  ;;  %3664 = vmatpush.msrb.mxu3 %v3620_v20 }
 0x589   : > { %v2598_v48 = vpop.f32.mrf.mxu3  ;;  %v2768_v21 = vpop.f32.mrf.mxu2 }
 0x58a   : > { %v7952_v59 = vadd.f32 %v2598_v48, %v2495_v23  ;;  %v2787_v14 = vadd.f32 %v2768_v21, %v2655_v1  ;;  %v3256_v52 = vsel %vm3253_vm0, %v2959_v37, %v7846_v12  ;;  %v9385_v48 = vld [vmem:[#allocation19_spill] sm:$0xff]  ;;  %v9387_v37 = vld [vmem:[#allocation17_spill] sm:$0xff]  ;;  %3665 = vmatpush.msrb.mxu3 %v3619_v50 }
 0x58b   : > { %v3286_v45 = vrot.slane %v3256_v52, 6  ;;  %v3342_v43 = vrot.slane %v3256_v52, 7 }
 0x58c   : > { %v2927_v8 = vadd.f32 %v2908_v27, %v2787_v14  ;;  %3666 = vmatpush.msrb.mxu3 %v3618_v9 }
 0x58d   : > { %v3287_v12 = vsel %vm1077_vm3, %v3285_v28, %v3286_v45  ;;  %v3357_v10 = vmax.f32 %v3255_v54, %v3342_v43  ;;  %v3617_v45 = vld [vmem:[%s9291_s11 + $0xc0] sm:$0xff] }
 0x58e   : > { %v2947_v60 = vadd.f32 %v7921_v3, %v2927_v8  ;;  %v3295_v46 = vmax.f32 %v3278_v30, %v3287_v12  ;;  %v2914_v41 = vpop.f32.mrf.mxu1  ;;  %3667 = vmatpush.msrb.mxu3 %v3617_v45 }
 0x590   : > { %v2961_v49 = vmax.f32 %v2947_v60, 0.0  ;;  %v3301_v32 = vrot.slane %v3295_v46, 1  ;;  %v9388_v60 = vld [vmem:[#allocation23_spill] sm:$0xff]  ;;  %3668 = vmatpush.msrb.mxu3 %v3616_v16 }
 0x591   : > { %v2601_v47 = vpop.f32.mrf.mxu3  ;;  %v2771_v40 = vpop.f32.mrf.mxu2  ;;  %v2342_v58 = vadd.f32 %v9388_v60, %v9387_v37 }
 0x592   : > { %v3257_v51 = vsel %vm3253_vm0, %v2961_v49, %v7857_v63  ;;  %v7976_v4 = vadd.f32 %v2601_v47, %v2497_v62  ;;  %v2789_v61 = vadd.f32 %v2771_v40, %v7865_v7  ;;  %v9383_v7 = vld [vmem:[#allocation22_spill] sm:$0xff] }
 0x593   : > { %v3346_v35 = vrot.slane %v3257_v51, 7  ;;  %v3365_v53 = vrot.slane %v3257_v51, 6  ;;  %v2225_v27 = vadd.f32 %v9383_v7, %v2063_v11  ;;  %v9389_v40 = vld [vmem:[#allocation26_spill] sm:$0xff] }
 0x594   : > { %v2929_v5 = vadd.f32 %v2911_v34, %v2789_v61  ;;  %v3307_v34 = vmax.f32 %v3295_v46, %v3301_v32  ;;  %v9392_v7 = vld [vmem:[#allocation18_spill] sm:$0xff] }
 0x595   : > { %v3347_v15 = vsel %vm1075_vm2, %v3342_v43, %v3346_v35  ;;  %v3380_v63 = vmax.f32 %v3357_v10, %v3365_v53  ;;  %v2355_v21 = vadd.f32 %v9385_v48, %v2225_v27  ;;  %v3310_v43 = vrot.slane %v3295_v46, 2  ;;  %v9390_v10 = vld [vmem:[#allocation31_spill] sm:$0xff]  ;;  %v9393_v27 = vld [vmem:[#allocation24_spill] sm:$0xff] }
 0x596   : > { %v3360_v22 = vmax.f32 %v3256_v52, %v3347_v15  ;;  %v2949_v38 = vadd.f32 %v7921_v3, %v2929_v5  ;;  %v9391_v15 = vld [vmem:[#allocation3_spill] sm:$0xff]  ;;  %v3614_v48 = vld [vmem:[%s9291_s11 + $0xa8] sm:$0xff] }
 0x597   : > { %v3389_v44 = vrot.slane %v3380_v63, 1  ;;  %v2502_v30 = vadd.f32 %v9386_v39, %v2355_v21  ;;  %v3316_v5 = vmax.f32 %v3307_v34, %v3310_v43  ;;  %v3611_v34 = vld [vmem:[%s9291_s11 + $0x90] sm:$0xff] }
 0x598   : > { %v2963_v13 = vmax.f32 %v2949_v38, 0.0  ;;  %v3615_v38 = vld [vmem:[%s9291_s11 + $0xb0] sm:$0xff] }
 0x599   : > { %v7987_v54 = vpop.f32.mrf.mxu3  ;;  %v2774_v23 = vpop.f32.mrf.mxu2  ;;  %v3395_v52 = vmax.f32 %v3380_v63, %v3389_v44  ;;  %v2661_v17 = vadd.f32 %v9389_v40, %v2502_v30  ;;  %v2489_v63 = vadd.f32 %v9391_v15, %v2342_v58  ;;  %v3322_v21 = vrot.slane %v3316_v5, 1  ;;  %3669 = vmatpush.msrb.mxu3 %v3615_v38  ;;  %v9394_v44 = vld [vmem:[#allocation4_spill] sm:$0xff]  ;;  %v9395_v30 = vld [vmem:[#allocation7_spill] sm:$0xff] }
 0x59a   : > { %v7991_v1 = vsel %vm3253_vm0, %v2963_v13, %v7872_v56  ;;  %v2791_v57 = vadd.f32 %v2774_v23, %v2659_v26  ;;  %v2344_v13 = vadd.f32 %v9393_v27, %v9392_v7  ;;  %v8051_v58 = vperm.slane %v7914_v42, 0 }
 0x59b   : > { %v3369_v55 = vrot.slane %v7991_v1, 6  ;;  %v3448_v14 = vrot.slane %v7991_v1, 7  ;;  %3670 = vmatpush.msrb.mxu3 %v3614_v48  ;;  %v3334_v9 = vsel %vm1075_vm2, %v3316_v5, %v3322_v21 }
 0x59c   : > { %v2931_v56 = vadd.f32 %v2914_v41, %v2791_v57  ;;  %v2648_v41 = vadd.f32 %v7901_v36, %v2489_v63  ;;  %v2491_v36 = vadd.f32 %v9394_v44, %v2344_v13  ;;  %v9400_v44 = vld [vmem:[#allocation10_spill] sm:$0xff] }
 0x59d   : > { %v3370_v33 = vsel %vm1077_vm3, %v3365_v53, %v3369_v55  ;;  %v3463_v8 = vmax.f32 %v3257_v51, %v3448_v14  ;;  %v2917_v53 = vpop.f32.mrf.mxu1 }
 0x59e   : > { %v3383_v19 = vmax.f32 %v3360_v22, %v3370_v33  ;;  %v2951_v25 = vadd.f32 %v7921_v3, %v2931_v56  ;;  %v2780_v33 = vadd.f32 %v9395_v30, %v2648_v41  ;;  %v3608_v30 = vld [vmem:[%s9291_s11 + $0x78] sm:$0xff] }
 0x59f   : > { %3637 = vmatpush.msrb.mxu2 %v3608_v30 }
 0x5a0   : > { %v3401_v49 = vrot.slane %v3383_v19, 2  ;;  %v3410_v62 = vrot.slane %v3383_v19, 1  ;;  %v2965_v28 = vmax.f32 %v2951_v25, 0.0 }
 0x5a1   : > { %v8016_v47 = vpop.f32.mrf.mxu3  ;;  %v2777_v51 = vpop.f32.mrf.mxu2 }
 0x5a2   : > { %v3407_v61 = vmax.f32 %v3395_v52, %v3401_v49  ;;  %v3416_v12 = vmax.f32 %v3383_v19, %v3410_v62  ;;  %v3259_v35 = vsel %vm3253_vm0, %v2965_v28, %v9390_v10  ;;  %v2793_v46 = vadd.f32 %v2777_v51, %v2661_v17  ;;  %v9396_v19 = vld [vmem:[#allocation30_spill] sm:$0xff]  ;;  %v3610_v28 = vld [vmem:[%s9291_s11 + $0x88] sm:$0xff] }
 0x5a3   : > { %v3452_v2 = vrot.slane %v3259_v35, 7  ;;  %v3471_v11 = vrot.slane %v3259_v35, 6  ;;  %v9398_v51 = vld [vmem:[#allocation8_spill] sm:$0xff] }
 0x5a4   : > { %v3419_v22 = vmax.f32 %v3416_v12, %v3401_v49  ;;  %v2933_v23 = vadd.f32 %v2917_v53, %v2793_v46  ;;  %v3425_v57 = vrot.slane %v3407_v61, 6  ;;  %v3609_v12 = vld [vmem:[%s9291_s11 + $0x80] sm:$0xff] }
 0x5a5   : > { %v3453_v0 = vsel %vm1075_vm2, %v3448_v14, %v3452_v2  ;;  %v3486_v26 = vmax.f32 %v3463_v8, %v3471_v11  ;;  %v3613_v14 = vld [vmem:[%s9291_s11 + $0xa0] sm:$0xff]  ;;  %v2650_v8 = vadd.f32 %v7918_v31, %v2491_v36  ;;  %v8084_v36 = vpop.permute.xlu0 %3717 }
 0x5a6   : > { %v3434_v29 = vrot.slane %v3419_v22, 7  ;;  %v3466_v20 = vmax.f32 %v7991_v1, %v3453_v0  ;;  %v2953_v32 = vadd.f32 %v7921_v3, %v2933_v23  ;;  %v3328_v1 = vrot.slane %v3316_v5, 2  ;;  %v3612_v3 = vld [vmem:[%s9291_s11 + $0x98] sm:$0xff]  ;;  %3671 = vmatpush.msrb.mxu3 %v3613_v14  ;;  %v9399_v23 = vld [vmem:[#allocation9_spill] sm:$0xff] }
 0x5a7   : > { %v3495_v56 = vrot.slane %v3486_v26, 1  ;;  %v3504_v43 = vrot.slane %v3486_v26, 2  ;;  %v2782_v61 = vadd.f32 %v9398_v51, %v2650_v8  ;;  %v2784_v41 = vadd.f32 %v9399_v23, %v7944_v18 }
 0x5a8   : > { %v3440_v55 = vsel %vm1075_vm2, %v3425_v57, %v3434_v29  ;;  %v2967_v50 = vmax.f32 %v2953_v32, 0.0  ;;  %3672 = vmatpush.msrb.mxu3 %v3612_v3  ;;  %v3337_v45 = vsel %vm1077_vm3, %v3334_v9, %v3328_v1  ;;  %v2786_v18 = vadd.f32 %v9400_v44, %v7952_v59 }
 0x5a9   : > { %v2861_v39 = vpop.f32.mrf.mxu3  ;;  %v3443_v52 = vsel %vm1077_vm3, %v3440_v55, %v3419_v22  ;;  %v3501_v49 = vmax.f32 %v3486_v26, %v3495_v56  ;;  %vm3722_vm10 = vcmp.eq.s32.totalorder %v8084_v36, 1  ;;  %v5468_v36 = vld [vmem:[%s9293_s13 + $0x658] sm:$0xff] }
 0x5aa   : > { %v3260_v25 = vsel %vm3253_vm0, %v2967_v50, %v9396_v19  ;;  %v2920_v60 = vadd.f32 %v2861_v39, %v2780_v33  ;;  %v3573_v31 = vrot.slane %v3443_v52, 5  ;;  %3673 = vmatpush.msrb.mxu3 %v3611_v34  ;;  %v9402_v34 = vld [vmem:[#allocation20_spill] sm:$0xff] }
 0x5ab   : > { %v3475_v37 = vrot.slane %v3260_v25, 6  ;;  %v3510_v10 = vmax.f32 %v3501_v49, %v3504_v43 }
 0x5ac   : > { %v3588_v40 = vsel %vm9397_vm12, %v3337_v45, %v3573_v31  ;;  %v2940_v17 = vadd.f32 %v8051_v58, %v2920_v60  ;;  %3674 = vmatpush.msrb.mxu3 %v3610_v28  ;;  %v9401_v60 = vld [vmem:[#allocation14_spill] sm:$0xff]  ;;  %v8106_v28 = vpop.permute.xlu2 %3889 }
 0x5ad   : > { %v3476_v62 = vsel %vm1077_vm3, %v3471_v11, %v3475_v37  ;;  %v3540_v63 = vrot.slane %v3510_v10, 4  ;;  %v2222_v52 = vadd.f32 %v9402_v34, %v9401_v60  ;;  %vm3894_vm15 = vcmp.eq.s32.totalorder %v8106_v28, 1  ;;  %v9413_v34 = vld [vmem:[#allocation28_spill] sm:$0xff] }
 0x5ae   : > { %v3489_v42 = vmax.f32 %v3466_v20, %v3476_v62  ;;  %3675 = vmatpush.msrb.mxu3 %v3609_v12  ;;  %v2954_v46 = vmax.f32 %v2940_v17, 0.0  ;;  %v3606_v17 = vld [vmem:[%s9291_s11 + $0x68] sm:$0xff] }
 0x5af   : > { %v5432_v28 = vld [vmem:[%s9293_s13 + $0x548] sm:$0xff] }
 0x5b0   : > { %v3516_v35 = vrot.slane %v3489_v42, 2  ;;  %v3525_v53 = vrot.slane %v3489_v42, 1  ;;  %v3265_v0 = vrot.slane %v2954_v46, 7 }
 0x5b1   : > { %v2864_v16 = vpop.f32.mrf.mxu3 }
 0x5b2   : > { %v2922_v5 = vadd.f32 %v2864_v16, %v2782_v61  ;;  %v3522_v2 = vmax.f32 %v3501_v49, %v3516_v35  ;;  %v3531_v11 = vmax.f32 %v3489_v42, %v3525_v53  ;;  %v8126_v53 = vpop.permute.xlu1 %3720 }
 0x5b3   : > { %vm3723_vm11 = vcmp.eq.s32.totalorder %v8126_v53, 1  ;;  %v5442_v53 = vld [vmem:[%s9293_s13 + $0x598] sm:$0xff] }
 0x5b4   : > { %v2942_v15 = vadd.f32 %v8051_v58, %v2922_v5  ;;  %v3534_v22 = vmax.f32 %v3531_v11, %v3516_v35  ;;  %v3549_v38 = vrot.slane %v3522_v2, 5  ;;  %v3605_v5 = vld [vmem:[%s9291_s11 + $0x60] sm:$0xff] }
 0x5b6   : > { %v2956_v7 = vmax.f32 %v2942_v15, 0.0  ;;  %v3558_v27 = vrot.slane %v3534_v22, 6  ;;  %v3564_v13 = vsel %vm1075_vm2, %v3540_v63, %v3549_v38  ;;  %v9406_v15 = vld [vmem:[#allocation16_spill] sm:$0xff]  ;;  %v9407_v63 = vld [vmem:[#allocation21_spill] sm:$0xff]  ;;  %v9408_v38 = vld [vmem:[#allocation27_spill] sm:$0xff] }
 0x5b7   : > { %v2224_v22 = vadd.f32 %v9407_v63, %v9406_v15  ;;  %v3602_v63 = vld [vmem:[%s9291_s11 + $0x48] sm:$0xff] }
 0x5b8   : > { %v3266_v26 = vrot.slane %v2956_v7, 7  ;;  %v3567_v57 = vsel %vm1077_vm3, %v3564_v13, %v3558_v27  ;;  %v3282_v56 = vrot.slane %v2956_v7, 6 }
 0x5b9   : > { %v2867_v29 = vpop.f32.mrf.mxu3  ;;  %v8073_v20 = vrot.slane %v3567_v57, 2 }
 0x5ba   : > { %v3267_v48 = vsel %vm1075_vm2, %v3265_v0, %v3266_v26  ;;  %v2924_v21 = vadd.f32 %v2867_v29, %v2784_v41  ;;  %v9409_v41 = vld [vmem:[#allocation11_spill] sm:$0xff] }
 0x5bb   : > { %v3277_v32 = vmax.f32 %v2954_v46, %v3267_v48  ;;  %v8079_v14 = vsel %vm9347_vm14, %v3588_v40, %v8073_v20  ;;  %v4576_v39 = vrot.slane %v8073_v20, 1  ;;  %v4597_v1 = vrot.slane %v8073_v20, 2  ;;  %v3607_v40 = vld [vmem:[%s9291_s11 + $0x70] sm:$0xff]  ;;  %vm9415_vm14 = vmmov %vm9405_vm5 }
 0x5bc   : > { %v2944_v55 = vadd.f32 %v8051_v58, %v2924_v21  ;;  %3676 = vmatmul.f32.vlgmr.msrb.gmra.mxu3 %v8079_v14  ;;  %v4495_v33 = vrot.slane %v8079_v14, 4  ;;  %v4516_v3 = vrot.slane %v8079_v14, 5  ;;  %v4531_v8 = vrot.slane %v8079_v14, 6  ;;  %3638 = vmatpush.msrb.mxu2 %v3607_v40 }
 0x5bd   : > { %v4552_v59 = vrot.slane %v8079_v14, 7  ;;  %v4575_v9 = vrot.slane %v8079_v14, 1  ;;  %v4596_v37 = vrot.slane %v8079_v14, 2  ;;  %v4621_v62 = vrot.slane %v8073_v20, 3 }
 0x5be   : > { %v8086_v50 = vmax.f32 %v2944_v55, 0.0  ;;  %v4501_v31 = vsel %vm9403_vm4, -3e+38, %v4495_v33  ;;  %v4522_v10 = vsel %vm9404_vm8, -3e+38, %v4516_v3  ;;  %3639 = vmatpush.msrb.mxu2 %v3606_v17  ;;  %v4620_v26 = vrot.slane %v8079_v14, 3  ;;  %vm9419_vm4 = vmmov %vm9404_vm8 }
 0x5bf   : > { %v4504_v51 = vsel %vm3722_vm10, -3e+38, %v4501_v31  ;;  %v4537_v35 = vsel %vm1077_vm3, -3e+38, %v4531_v8  ;;  %v4558_v2 = vsel %vm1075_vm2, -3e+38, %v4552_v59  ;;  %v4577_v11 = vsel %vm1344_vm7, %v4575_v9, %v4576_v39  ;;  %vm9420_vm8 = vmmov %vm9405_vm5 }
 0x5c0   : > { %v3283_v19 = vrot.slane %v8086_v50, 6  ;;  %v3341_v25 = vrot.slane %v8086_v50, 7  ;;  %v4510_v12 = vmax.f32 %v8079_v14, %v4504_v51  ;;  %v4598_v46 = vsel %vm9405_vm5, %v4596_v37, %v4597_v1  ;;  %3640 = vmatpush.msrb.mxu2 %v3605_v5  ;;  %vm9421_vm5 = vmmov %vm9411_vm1 }
 0x5c1   : > { %v2870_v49 = vpop.f32.mrf.mxu3  ;;  %v4540_v0 = vsel %vm3894_vm15, -3e+38, %v4537_v35  ;;  %v4640_v23 = vrot.slane %v8073_v20, 4  ;;  %v2788_v57 = vadd.f32 %v9409_v41, %v7976_v4  ;;  %v4561_v48 = vsel %vm3722_vm10, -3e+38, %v4558_v2 }
 0x5c2   : > { %v3284_v45 = vsel %vm1077_vm3, %v3282_v56, %v3283_v19  ;;  %v3356_v43 = vmax.f32 %v2956_v7, %v3341_v25  ;;  %v2926_v42 = vadd.f32 %v2870_v49, %v2786_v18  ;;  %v2352_v7 = vadd.f32 %v9408_v38, %v2222_v52  ;;  %v9412_v18 = vld [vmem:[#allocation5_spill] sm:$0xff]  ;;  %v8161_v49 = vpop.permute.xlu0 %3892 }
 0x5c3   : > { %v8117_v61 = vmax.f32 %v3277_v32, %v3284_v45  ;;  %v4525_v27 = vmax.f32 %v4510_v12, %v4522_v10  ;;  %v4622_v55 = vsel %vm9410_vm9, %v4620_v26, %v4621_v62  ;;  %v4641_v44 = vsel %vm9411_vm1, %v4495_v33, %v4640_v23  ;;  %v9416_v10 = vld [vmem:[#allocation6_spill] sm:$0xff]  ;;  %vm9422_vm9 = vmmov %vm9411_vm1 }
 0x5c4   : > { %v2946_v16 = vadd.f32 %v8051_v58, %v2926_v42  ;;  %3679 = vmatmul.f32.gmra.mxu3 %v8073_v20  ;;  %v2499_v56 = vadd.f32 %v9412_v18, %v2352_v7  ;;  %v4606_v30 = vsel %vm1344_vm7, %v4598_v46, -3e+38  ;;  %v4507_v4 = vsel %vm3723_vm11, -3e+38, %v4495_v33  ;;  %vm9423_vm1 = vmmov %vm9420_vm8 }
 0x5c5   : > { %v4546_v29 = vmax.f32 %v4525_v27, %v4540_v0  ;;  %v4585_v60 = vsel %vm3894_vm15, -3e+38, %v4577_v11  ;;  %v2354_v52 = vadd.f32 %v9413_v34, %v2224_v22  ;;  %v4609_v33 = vsel %vm3722_vm10, -3e+38, %v4606_v30 }
 0x5c6   : > { %v2960_v13 = vmax.f32 %v2946_v16, 0.0  ;;  %v2658_v31 = vadd.f32 %v7987_v54, %v2499_v56  ;;  %v4648_v17 = vsel %vm9414_vm13, %v4641_v44, -3e+38  ;;  %vm3895_vm12 = vcmp.eq.s32.totalorder %v8161_v49, 1  ;;  %v3604_v54 = vld [vmem:[%s9291_s11 + $0x58] sm:$0xff]  ;;  %v9417_v16 = vld [vmem:[#allocation12_spill] sm:$0xff]  ;;  %vm9424_vm13 = vmmov %vm9419_vm4 }
 0x5c7   : > { %v4567_v1 = vmax.f32 %v4546_v29, %v4561_v48  ;;  %v4630_v12 = vsel %vm9415_vm14, %v4622_v55, -3e+38  ;;  %v2501_v35 = vadd.f32 %v9416_v10, %v2354_v52  ;;  %3641 = vmatpush.msrb.mxu2 %v3604_v54  ;;  %v4543_v11 = vsel %vm3895_vm12, -3e+38, %v4531_v8  ;;  %v4670_v49 = vld [vmem:[%s9295_s15 + $0x58] sm:$0xff] }
 0x5c8   : > { %v3344_v21 = vrot.slane %v2960_v13, 7  ;;  %v3364_v32 = vrot.slane %v2960_v13, 6  ;;  %v2790_v5 = vadd.f32 %v9417_v16, %v2658_v31  ;;  %v4564_v8 = vsel %vm3723_vm11, -3e+38, %v4552_v59  ;;  %v3600_v59 = vld [vmem:[%s9291_s11 + $0x38] sm:$0xff]  ;;  %v3594_v16 = vld [vmem:[%s9291_s11 + $0x8] sm:$0xff] }
 0x5c9   : > { %v2873_v39 = vpop.f32.mrf.mxu3  ;;  %v4588_v45 = vmax.f32 %v4567_v1, %v4585_v60  ;;  %v3309_v48 = vrot.slane %v8117_v61, 2  ;;  %v2660_v55 = vadd.f32 %v8016_v47, %v2501_v35  ;;  %vm9425_vm14 = vcmask 1044480  }
 0x5ca   : > { %v3345_v19 = vsel %vm1075_vm2, %v3341_v25, %v3344_v21  ;;  %v3379_v9 = vmax.f32 %v3356_v43, %v3364_v32  ;;  %v2928_v37 = vadd.f32 %v2873_v39, %v2788_v57  ;;  %v4513_v25 = vmax.f32 %v8073_v20, %v4507_v4  ;;  %v3601_v57 = vld [vmem:[%s9291_s11 + $0x40] sm:$0xff]  ;;  %v9418_v4 = vld [vmem:[#allocation13_spill] sm:$0xff] }
 0x5cb   : > { %v3359_v62 = vmax.f32 %v8086_v50, %v3345_v19  ;;  %v3300_v43 = vrot.slane %v8117_v61, 1  ;;  %v4612_v40 = vmax.f32 %v4588_v45, %v4609_v33  ;;  %v3603_v50 = vld [vmem:[%s9291_s11 + $0x50] sm:$0xff]  ;;  %v2792_v19 = vadd.f32 %v9418_v4, %v2660_v55  ;;  %v3597_v45 = vld [vmem:[%s9291_s11 + $0x20] sm:$0xff] }
 0x5cc   : > { %v2948_v42 = vadd.f32 %v8051_v58, %v2928_v37  ;;  %v4528_v20 = vmax.f32 %v4513_v25, %v4516_v3  ;;  %v4651_v3 = vsel %vm3894_vm15, -3e+38, %v4648_v17  ;;  %v3388_v7 = vrot.slane %v3379_v9, 1  ;;  %3642 = vmatpush.msrb.mxu2 %v3603_v50  ;;  %v3598_v37 = vld [vmem:[%s9291_s11 + $0x28] sm:$0xff]  ;;  %v3596_v17 = vld [vmem:[%s9291_s11 + $0x18] sm:$0xff] }
 0x5cd   : > { %v4633_v2 = vmax.f32 %v4612_v40, %v4630_v12  ;;  %v3306_v38 = vmax.f32 %v8117_v61, %v3300_v43  ;;  %v3599_v61 = vld [vmem:[%s9291_s11 + $0x30] sm:$0xff] }
 0x5ce   : > { %v8172_v51 = vmax.f32 %v2948_v42, 0.0  ;;  %v4549_v22 = vmax.f32 %v4528_v20, %v4543_v11  ;;  %3643 = vmatpush.msrb.mxu2 %v3602_v63 }
 0x5cf   : > { %v8197_v0 = vmax.f32 %v4633_v2, %v4651_v3 }
 0x5d0   : > { %v3367_v46 = vrot.slane %v8172_v51, 6  ;;  %v3447_v15 = vrot.slane %v8172_v51, 7  ;;  %v8207_v29 = vmax.f32 %v4549_v22, %v4564_v8  ;;  %3644 = vmatpush.msrb.mxu2 %v3601_v57  ;;  %v3626_v22 = vld [vmem:[%s9291_s11 + $0x108] sm:$0xff]  ;;  %v3625_v8 = vld [vmem:[%s9291_s11 + $0x100] sm:$0xff] }
 0x5d1   : > { %v2876_v27 = vpop.f32.mrf.mxu3 }
 0x5d2   : > { %v3368_v26 = vsel %vm1077_vm3, %v3364_v32, %v3367_v46  ;;  %v2930_v23 = vadd.f32 %v2876_v27, %v2790_v5  ;;  %v3462_v41 = vmax.f32 %v2960_v13, %v3447_v15  ;;  %v3315_v32 = vmax.f32 %v3306_v38, %v3309_v48  ;;  %3645 = vmatpush.msrb.mxu2 %v3600_v59 }
 0x5d3   : > { %v3382_v21 = vmax.f32 %v3359_v62, %v3368_v26  ;;  %v3394_v13 = vmax.f32 %v3379_v9, %v3388_v7 }
 0x5d4   : > { %v2950_v14 = vadd.f32 %v8051_v58, %v2930_v23  ;;  %v3321_v9 = vrot.slane %v3315_v32, 1  ;;  %3646 = vmatpush.msrb.mxu2 %v3599_v61  ;;  %v3327_v43 = vrot.slane %v3315_v32, 2 }
 0x5d5   : > { %v3400_v44 = vrot.slane %v3382_v21, 2  ;;  %v3409_v18 = vrot.slane %v3382_v21, 1 }
 0x5d6   : > { %v2964_v56 = vmax.f32 %v2950_v14, 0.0  ;;  %3647 = vmatpush.msrb.mxu2 %v3598_v37  ;;  %v3333_v54 = vsel %vm1075_vm2, %v3315_v32, %v3321_v9 }
 0x5d7   : > { %v3406_v39 = vmax.f32 %v3394_v13, %v3400_v44  ;;  %v3415_v1 = vmax.f32 %v3382_v21, %v3409_v18  ;;  %v3336_v5 = vsel %vm1077_vm3, %v3333_v54, %v3327_v43  ;;  %v8270_v54 = vrot.slane %v7926_v24, 2 }
 0x5d8   : > { %v3450_v47 = vrot.slane %v2964_v56, 7  ;;  %v3470_v30 = vrot.slane %v2964_v56, 6  ;;  %3648 = vmatpush.msrb.mxu2 %v3597_v45 }
 0x5d9   : > { %v3418_v60 = vmax.f32 %v3415_v1, %v3400_v44  ;;  %v2879_v34 = vpop.f32.mrf.mxu3  ;;  %v3424_v42 = vrot.slane %v3406_v39, 6 }
 0x5da   : > { %v3451_v52 = vsel %vm1075_vm2, %v3447_v15, %v3450_v47  ;;  %v3485_v31 = vmax.f32 %v3462_v41, %v3470_v30  ;;  %v2932_v62 = vadd.f32 %v2879_v34, %v2792_v19  ;;  %3649 = vmatpush.msrb.mxu2 %v3596_v17  ;;  %v3593_v15 = vld [vmem:[%s9291_s11] sm:$0xff] }
 0x5db   : > { %v3433_v33 = vrot.slane %v3418_v60, 7  ;;  %v3465_v25 = vmax.f32 %v8172_v51, %v3451_v52  ;;  %v3595_v51 = vld [vmem:[%s9291_s11 + $0x10] sm:$0xff] }
 0x5dc   : > { %v2952_v40 = vadd.f32 %v8051_v58, %v2932_v62  ;;  %v3494_v12 = vrot.slane %v3485_v31, 1  ;;  %3650 = vmatpush.msrb.mxu2 %v3595_v51  ;;  %v3503_v63 = vrot.slane %v3485_v31, 2 }
 0x5dd   : > { %v3439_v50 = vsel %vm1075_vm2, %v3424_v42, %v3433_v33 }
 0x5de   : > { %v3442_v20 = vsel %vm1077_vm3, %v3439_v50, %v3418_v60  ;;  %v2966_v10 = vmax.f32 %v2952_v40, 0.0  ;;  %v3500_v2 = vmax.f32 %v3485_v31, %v3494_v12  ;;  %3651 = vmatpush.msrb.mxu2 %v3594_v16 }
 0x5df   : > { %v3572_v35 = vrot.slane %v3442_v20, 5 }
 0x5e0   : > { %v3473_v58 = vrot.slane %v2966_v10, 6  ;;  %v3509_v38 = vmax.f32 %v3500_v2, %v3503_v63  ;;  %3652 = vmatpush.msrb.mxu2 %v3593_v15 }
 0x5e1   : > { %v3587_v11 = vsel %vm9419_vm4, %v3336_v5, %v3572_v35  ;;  %vm3631_vm4 = vcmask 130048  }
 0x5e2   : > { %v3474_v46 = vsel %vm1077_vm3, %v3470_v30, %v3473_v58  ;;  %3697 = vmatpush.msra.mxu2 %v3626_v22  ;;  %v3539_v41 = vrot.slane %v3509_v38, 4 }
 0x5e3   : > { %v3488_v3 = vmax.f32 %v3465_v25, %v3474_v46 }
 0x5e4   : > { %3698 = vmatpush.msra.mxu2 %v3625_v8  ;;  %v3748_v8 = vld [vmem:[%s9293_s13 + $0xb0] sm:$0xff] }
 0x5e5   : > { %v3515_v7 = vrot.slane %v3488_v3, 2  ;;  %v3524_v27 = vrot.slane %v3488_v3, 1 }
 0x5e7   : > { %v3521_v26 = vmax.f32 %v3500_v2, %v3515_v7  ;;  %v3530_v23 = vmax.f32 %v3488_v3, %v3524_v27  ;;  %v5286_v27 = vld [vmem:[%s9293_s13 + $0x178] sm:$0xff] }
 0x5e8   : > { %3810 = vmatpush.msra.mxu3 %v5286_v27  ;;  %v3745_v27 = vld [vmem:[%s9293_s13 + $0x98] sm:$0xff] }
 0x5e9   : > { %v3533_v57 = vmax.f32 %v3530_v23, %v3515_v7  ;;  %v3548_v48 = vrot.slane %v3521_v26, 5  ;;  %v5285_v7 = vld [vmem:[%s9293_s13 + $0x170] sm:$0xff]  ;;  %v5283_v26 = vld [vmem:[%s9293_s13 + $0x160] sm:$0xff]  ;;  %v5284_v23 = vld [vmem:[%s9293_s13 + $0x168] sm:$0xff] }
 0x5ea   : > { %3787 = vmatpush.msra.mxu1 %v5285_v7  ;;  %3811 = vmatpush.msra.mxu3 %v5284_v23  ;;  %v5373_v7 = vld [vmem:[%s9293_s13 + $0x3b0] sm:$0xff]  ;;  %v5371_v23 = vld [vmem:[%s9293_s13 + $0x3a0] sm:$0xff] }
 0x5eb   : > { %v3557_v21 = vrot.slane %v3533_v57, 6  ;;  %v3563_v55 = vsel %vm1075_vm2, %v3539_v41, %v3548_v48  ;;  %v3746_v41 = vld [vmem:[%s9293_s13 + $0xa0] sm:$0xff]  ;;  %v5317_v57 = vld [vmem:[%s9293_s13 + $0x230] sm:$0xff] }
 0x5ec   : > { %v5281_v48 = vld [vmem:[%s9293_s13 + $0x150] sm:$0xff]  ;;  %3788 = vmatpush.msra.mxu1 %v5283_v26  ;;  %3933 = vmatpush.msra.mxu0 %v5317_v57  ;;  %v5312_v57 = vld [vmem:[%s9293_s13 + $0x208] sm:$0xff] }
 0x5ed   : > { %v3566_v14 = vsel %vm1077_vm3, %v3563_v55, %v3557_v21  ;;  %v5282_v21 = vld [vmem:[%s9293_s13 + $0x158] sm:$0xff]  ;;  %v3744_v55 = vld [vmem:[%s9293_s13 + $0x90] sm:$0xff] }
 0x5ee   : > { %v3581_v59 = vrot.slane %v3566_v14, 2  ;;  %v5315_v14 = vld [vmem:[%s9293_s13 + $0x220] sm:$0xff]  ;;  %3789 = vmatpush.msra.mxu1 %v5281_v48  ;;  %3812 = vmatpush.msra.mxu3 %v5282_v21  ;;  %v5341_v26 = vld [vmem:[%s9293_s13 + $0x2d0] sm:$0xff] }
 0x5ef   : > { %3934 = vmatpush.msra.mxu0 %v5315_v14  ;;  %v5339_v48 = vld [vmem:[%s9293_s13 + $0x2c0] sm:$0xff]  ;;  %v5369_v21 = vld [vmem:[%s9293_s13 + $0x390] sm:$0xff]  ;;  %v5310_v14 = vld [vmem:[%s9293_s13 + $0x1f8] sm:$0xff] }
 0x5f0   : > { %v3590_v32 = vsel %vm9420_vm8, %v3587_v11, %v3581_v59  ;;  %v4573_v13 = vrot.slane %v3581_v59, 1  ;;  %v4638_v44 = vrot.slane %v3581_v59, 4  ;;  %v4594_v61 = vrot.slane %v3581_v59, 2  ;;  %vm9426_vm8 = vmmov %vm9423_vm1 }
 0x5f1   : > { %3653 = vmatmul.f32.vlgmr.msrb.gmra.mxu2 %v3590_v32  ;;  %v4494_v18 = vrot.slane %v3590_v32, 4  ;;  %v4530_v56 = vrot.slane %v3590_v32, 6  ;;  %v4618_v39 = vrot.slane %v3581_v59, 3  ;;  %v4515_v1 = vrot.slane %v3590_v32, 5 }
 0x5f2   : > { %v4572_v47 = vrot.slane %v3590_v32, 1  ;;  %v4593_v30 = vrot.slane %v3590_v32, 2  ;;  %v4617_v4 = vrot.slane %v3590_v32, 3  ;;  %v4551_v37 = vrot.slane %v3590_v32, 7  ;;  %3839 = vmatpush.msrb.mxu2 %v3748_v8  ;;  %v5314_v8 = vld [vmem:[%s9293_s13 + $0x218] sm:$0xff] }
 0x5f3   : > { %v4500_v19 = vsel %vm9421_vm5, -3e+38, %v4494_v18  ;;  %v4639_v9 = vsel %vm9422_vm9, %v4494_v18, %v4638_v44  ;;  %v4536_v31 = vsel %vm1077_vm3, -3e+38, %v4530_v56  ;;  %v4521_v45 = vsel %vm9424_vm13, -3e+38, %v4515_v1  ;;  %vm9427_vm5 = vmmov %vm9425_vm14 }
 0x5f4   : > { %v4503_v60 = vsel %vm3722_vm10, -3e+38, %v4500_v19  ;;  %v4574_v34 = vsel %vm1344_vm7, %v4572_v47, %v4573_v13  ;;  %v4595_v62 = vsel %vm9423_vm1, %v4593_v30, %v4594_v61  ;;  %v4619_v42 = vsel %vm9425_vm14, %v4617_v4, %v4618_v39  ;;  %vm9428_vm9 = vmmov %vm9423_vm1  ;;  %3840 = vmatpush.msrb.mxu2 %v3746_v41  ;;  %v3742_v13 = vld [vmem:[%s9293_s13 + $0x80] sm:$0xff]  ;;  %v5313_v44 = vld [vmem:[%s9293_s13 + $0x210] sm:$0xff] }
 0x5f5   : > { %v4509_v52 = vmax.f32 %v3590_v32, %v4503_v60  ;;  %v4506_v33 = vsel %vm3723_vm11, -3e+38, %v4494_v18  ;;  %v4557_v43 = vsel %vm1075_vm2, -3e+38, %v4551_v37  ;;  %v4539_v40 = vsel %vm3894_vm15, -3e+38, %v4536_v31  ;;  %3935 = vmatpush.msra.mxu0 %v5313_v44  ;;  %vm9429_vm1 = vmmov %vm9424_vm13 }
 0x5f6   : > { %v4512_v17 = vmax.f32 %v3581_v59, %v4506_v33  ;;  %v4560_v12 = vsel %vm3722_vm10, -3e+38, %v4557_v43  ;;  %v4605_v51 = vsel %vm1344_vm7, %v4595_v62, -3e+38  ;;  %v4542_v35 = vsel %vm3895_vm12, -3e+38, %v4530_v56  ;;  %3841 = vmatpush.msrb.mxu2 %v3744_v55  ;;  %vm9431_vm14 = vmmov %vm9426_vm8 }
 0x5f7   : > { %v4524_v25 = vmax.f32 %v4509_v52, %v4521_v45  ;;  %v4584_v58 = vsel %vm3894_vm15, -3e+38, %v4574_v34  ;;  %v8282_v24 = vsel %vm9426_vm8, %v7909_v6, %v8270_v54  ;;  %v4563_v2 = vsel %vm3723_vm11, -3e+38, %v4551_v37  ;;  %v5280_v32 = vld [vmem:[%s9293_s13 + $0x148] sm:$0xff]  ;;  %v5277_v18 = vld [vmem:[%s9293_s13 + $0x130] sm:$0xff] }
 0x5f8   : > { %v4527_v20 = vmax.f32 %v4512_v17, %v4515_v1  ;;  %v4608_v11 = vsel %vm3722_vm10, -3e+38, %v4605_v51  ;;  %v4647_v63 = vsel %vm9427_vm5, %v4639_v9, -3e+38  ;;  %v4629_v3 = vsel %vm9428_vm9, %v4619_v42, -3e+38  ;;  %3813 = vmatpush.msra.mxu3 %v5280_v32  ;;  %3842 = vmatpush.msrb.mxu2 %v3742_v13  ;;  %vm9434_vm5 = vmmov %vm9429_vm1 }
 0x5f9   : > { %3656 = vmatmul.f32.gmra.mxu2 %v3581_v59  ;;  %v4545_v50 = vmax.f32 %v4524_v25, %v4539_v40  ;;  %v4650_v6 = vsel %vm3894_vm15, -3e+38, %v4647_v63  ;;  %v5279_v59 = vld [vmem:[%s9293_s13 + $0x140] sm:$0xff]  ;;  %v5278_v56 = vld [vmem:[%s9293_s13 + $0x138] sm:$0xff]  ;;  %v3740_v61 = vld [vmem:[%s9293_s13 + $0x70] sm:$0xff]  ;;  %vm9430_vm13 = vcmask 1043456  }
 0x5fa   : > { %v4548_v16 = vmax.f32 %v4527_v20, %v4542_v35  ;;  %3790 = vmatpush.msra.mxu1 %v5279_v59  ;;  %v5311_v39 = vld [vmem:[%s9293_s13 + $0x200] sm:$0xff]  ;;  %v5276_v47 = vld [vmem:[%s9293_s13 + $0x128] sm:$0xff]  ;;  %3814 = vmatpush.msra.mxu3 %v5278_v56  ;;  %v5309_v4 = vld [vmem:[%s9293_s13 + $0x1f0] sm:$0xff] }
 0x5fb   : > { %v4566_v10 = vmax.f32 %v4545_v50, %v4560_v12  ;;  %v5275_v1 = vld [vmem:[%s9293_s13 + $0x120] sm:$0xff]  ;;  %3843 = vmatpush.msrb.mxu2 %v3740_v61  ;;  %3936 = vmatpush.msra.mxu0 %v5311_v39  ;;  %v5273_v19 = vld [vmem:[%s9293_s13 + $0x110] sm:$0xff]  ;;  %v5274_v37 = vld [vmem:[%s9293_s13 + $0x118] sm:$0xff] }
 0x5fc   : > { %v8290_v46 = vmax.f32 %v4548_v16, %v4563_v2  ;;  %3791 = vmatpush.msra.mxu1 %v5277_v18  ;;  %v3738_v30 = vld [vmem:[%s9293_s13 + $0x60] sm:$0xff]  ;;  %3815 = vmatpush.msra.mxu3 %v5276_v47  ;;  %v3736_v9 = vld [vmem:[%s9293_s13 + $0x50] sm:$0xff]  ;;  %v5272_v52 = vld [vmem:[%s9293_s13 + $0x108] sm:$0xff] }
 0x5fd   : > { %v4587_v5 = vmax.f32 %v4566_v10, %v4584_v58  ;;  %v5307_v60 = vld [vmem:[%s9293_s13 + $0x1e0] sm:$0xff]  ;;  %3844 = vmatpush.msrb.mxu2 %v3738_v30  ;;  %3937 = vmatpush.msra.mxu0 %v5309_v4  ;;  %v5305_v62 = vld [vmem:[%s9293_s13 + $0x1d0] sm:$0xff]  ;;  %v5270_v42 = vld [vmem:[%s9293_s13 + $0xf8] sm:$0xff] }
 0x5fe   : > { %3792 = vmatpush.msra.mxu1 %v5275_v1  ;;  %v5271_v34 = vld [vmem:[%s9293_s13 + $0x100] sm:$0xff]  ;;  %3816 = vmatpush.msra.mxu3 %v5274_v37  ;;  %v5269_v45 = vld [vmem:[%s9293_s13 + $0xf0] sm:$0xff]  ;;  %v5268_v40 = vld [vmem:[%s9293_s13 + $0xe8] sm:$0xff] }
 0x5ff   : > { %v4611_v15 = vmax.f32 %v4587_v5, %v4608_v11  ;;  %v3734_v31 = vld [vmem:[%s9293_s13 + $0x40] sm:$0xff]  ;;  %3845 = vmatpush.msrb.mxu2 %v3736_v9  ;;  %3938 = vmatpush.msra.mxu0 %v5307_v60  ;;  %v3732_v33 = vld [vmem:[%s9293_s13 + $0x30] sm:$0xff]  ;;  %v5266_v20 = vld [vmem:[%s9293_s13 + $0xd8] sm:$0xff] }
 0x600   : > { %3793 = vmatpush.msra.mxu1 %v5273_v19  ;;  %3817 = vmatpush.msra.mxu3 %v5272_v52  ;;  %v5303_v25 = vld [vmem:[%s9293_s13 + $0x1c0] sm:$0xff]  ;;  %v5301_v50 = vld [vmem:[%s9293_s13 + $0x1b0] sm:$0xff]  ;;  %v5264_v58 = vld [vmem:[%s9293_s13 + $0xc8] sm:$0xff] }
 0x601   : > { %5261 = vmatmul.msk.f32.vlgmr.msra.gmra.mxu2 %vm3631_vm4, %v8282_v24  ;;  %v4632_v22 = vmax.f32 %v4611_v15, %v4629_v3  ;;  %3939 = vmatpush.msra.mxu0 %v5305_v62  ;;  %v5267_v43 = vld [vmem:[%s9293_s13 + $0xe0] sm:$0xff]  ;;  %v5265_v12 = vld [vmem:[%s9293_s13 + $0xd0] sm:$0xff]  ;;  %v3749_v5 = vld [vmem:[%s9293_s13 + $0xb8] sm:$0xff] }
 0x602   : > { %3794 = vmatpush.msra.mxu1 %v5271_v34  ;;  %3846 = vmatpush.msrb.mxu2 %v3734_v31  ;;  %v3730_v17 = vld [vmem:[%s9293_s13 + $0x20] sm:$0xff]  ;;  %v3728_v10 = vld [vmem:[%s9293_s13 + $0x10] sm:$0xff]  ;;  %v5318_v11 = vld [vmem:[%s9293_s13 + $0x238] sm:$0xff] }
 0x603   : > { %v8296_v38 = vmax.f32 %v4632_v22, %v4650_v6  ;;  %3818 = vmatpush.msra.mxu3 %v5270_v42  ;;  %3940 = vmatpush.msra.mxu0 %v5303_v25  ;;  %v5299_v51 = vld [vmem:[%s9293_s13 + $0x1a0] sm:$0xff]  ;;  %v5297_v2 = vld [vmem:[%s9293_s13 + $0x190] sm:$0xff]  ;;  %v3747_v63 = vld [vmem:[%s9293_s13 + $0xa8] sm:$0xff] }
 0x604   : > { %3795 = vmatpush.msra.mxu1 %v5269_v45  ;;  %3847 = vmatpush.msrb.mxu2 %v3732_v33  ;;  %v5263_v35 = vld [vmem:[%s9293_s13 + $0xc0] sm:$0xff]  ;;  %v5345_v15 = vld [vmem:[%s9293_s13 + $0x2f0] sm:$0xff]  ;;  %v5316_v22 = vld [vmem:[%s9293_s13 + $0x228] sm:$0xff] }
 0x605   : > { %3819 = vmatpush.msra.mxu3 %v5268_v40  ;;  %3941 = vmatpush.msra.mxu0 %v5301_v50  ;;  %v3726_v16 = vld [vmem:[%s9293_s13] sm:$0xff]  ;;  %v3743_v41 = vld [vmem:[%s9293_s13 + $0x88] sm:$0xff]  ;;  %v3741_v55 = vld [vmem:[%s9293_s13 + $0x78] sm:$0xff] }
 0x606   : > { %3796 = vmatpush.msra.mxu1 %v5267_v43  ;;  %3848 = vmatpush.msrb.mxu2 %v3730_v17  ;;  %v5295_v3 = vld [vmem:[%s9293_s13 + $0x180] sm:$0xff]  ;;  %v5337_v59 = vld [vmem:[%s9293_s13 + $0x2b0] sm:$0xff]  ;;  %v3739_v13 = vld [vmem:[%s9293_s13 + $0x68] sm:$0xff] }
 0x607   : > { %3820 = vmatpush.msra.mxu3 %v5266_v20  ;;  %3942 = vmatpush.msra.mxu0 %v5299_v51  ;;  %v5343_v6 = vld [vmem:[%s9293_s13 + $0x2e0] sm:$0xff]  ;;  %v5308_v44 = vld [vmem:[%s9293_s13 + $0x1e8] sm:$0xff]  ;;  %v5365_v56 = vld [vmem:[%s9293_s13 + $0x370] sm:$0xff] }
 0x608   : > { %3797 = vmatpush.msra.mxu1 %v5265_v12  ;;  %3849 = vmatpush.msrb.mxu2 %v3728_v10  ;;  %v5367_v32 = vld [vmem:[%s9293_s13 + $0x380] sm:$0xff]  ;;  %v3737_v61 = vld [vmem:[%s9293_s13 + $0x58] sm:$0xff]  ;;  %v5333_v1 = vld [vmem:[%s9293_s13 + $0x290] sm:$0xff] }
 0x609   : > { %5262 = vmatmul.msk.f32.gmra.mxu2 %vm3631_vm4, %v8270_v54  ;;  %3821 = vmatpush.msra.mxu3 %v5264_v58  ;;  %v5335_v18 = vld [vmem:[%s9293_s13 + $0x2a0] sm:$0xff]  ;;  %v5306_v39 = vld [vmem:[%s9293_s13 + $0x1d8] sm:$0xff]  ;;  %v3735_v30 = vld [vmem:[%s9293_s13 + $0x48] sm:$0xff] }
 0x60a   : > { %3798 = vmatpush.msra.mxu1 %v5263_v35  ;;  %3850 = vmatpush.msrb.mxu2 %v3726_v16  ;;  %v5363_v47 = vld [vmem:[%s9293_s13 + $0x360] sm:$0xff]  ;;  %v5304_v4 = vld [vmem:[%s9293_s13 + $0x1c8] sm:$0xff]  ;;  %v5361_v37 = vld [vmem:[%s9293_s13 + $0x350] sm:$0xff] }
 0x60b   : > { %3943 = vmatpush.msra.mxu0 %v5297_v2  ;;  %3956 = vmatpush.msrb.mxu3 %v5318_v11  ;;  %v5331_v19 = vld [vmem:[%s9293_s13 + $0x280] sm:$0xff]  ;;  %v3733_v9 = vld [vmem:[%s9293_s13 + $0x38] sm:$0xff]  ;;  %v5329_v34 = vld [vmem:[%s9293_s13 + $0x270] sm:$0xff] }
 0x60c   : > { %3862 = vmatpush.msrb.mxu1 %v3749_v5  ;;  %4019 = vmatpush.msra.mxu2 %v5345_v15  ;;  %v5302_v60 = vld [vmem:[%s9293_s13 + $0x1b8] sm:$0xff]  ;;  %v5359_v52 = vld [vmem:[%s9293_s13 + $0x340] sm:$0xff]  ;;  %v3731_v31 = vld [vmem:[%s9293_s13 + $0x28] sm:$0xff] }
 0x60d   : > { %3944 = vmatpush.msra.mxu0 %v5295_v3  ;;  %3957 = vmatpush.msrb.mxu3 %v5316_v22  ;;  %v5300_v62 = vld [vmem:[%s9293_s13 + $0x1a8] sm:$0xff]  ;;  %v5327_v45 = vld [vmem:[%s9293_s13 + $0x260] sm:$0xff]  ;;  %v5357_v42 = vld [vmem:[%s9293_s13 + $0x330] sm:$0xff] }
 0x60e   : > { %3863 = vmatpush.msrb.mxu1 %v3747_v63  ;;  %4020 = vmatpush.msra.mxu2 %v5343_v6  ;;  %v3729_v33 = vld [vmem:[%s9293_s13 + $0x18] sm:$0xff]  ;;  %v5325_v43 = vld [vmem:[%s9293_s13 + $0x250] sm:$0xff]  ;;  %v5355_v40 = vld [vmem:[%s9293_s13 + $0x320] sm:$0xff] }
 0x60f   : > { %4099 = vmatpush.msrb.mxu0 %v5373_v7  ;;  %3958 = vmatpush.msrb.mxu3 %v5314_v8  ;;  %v5298_v25 = vld [vmem:[%s9293_s13 + $0x198] sm:$0xff]  ;;  %v3727_v17 = vld [vmem:[%s9293_s13 + $0x8] sm:$0xff]  ;;  %v5323_v12 = vld [vmem:[%s9293_s13 + $0x240] sm:$0xff] }
 0x610   : > { %3864 = vmatpush.msrb.mxu1 %v3745_v27  ;;  %4021 = vmatpush.msra.mxu2 %v5341_v26  ;;  %v5296_v50 = vld [vmem:[%s9293_s13 + $0x188] sm:$0xff]  ;;  %v5353_v20 = vld [vmem:[%s9293_s13 + $0x310] sm:$0xff]  ;;  %v5351_v10 = vld [vmem:[%s9293_s13 + $0x300] sm:$0xff] }
 0x611   : > { %4100 = vmatpush.msrb.mxu0 %v5371_v23  ;;  %3959 = vmatpush.msrb.mxu3 %v5312_v57  ;;  %v8591_v35 = vld [vmem:[%s9292_s12] ss:$0 sm:$0xff]  ;;  %v5346_v7 = vld [vmem:[%s9293_s13 + $0x2f8] sm:$0xff]  ;;  %vm9432_vm8 = vmmov %vm9430_vm13 }
 0x612   : > { %3865 = vmatpush.msrb.mxu1 %v3743_v41  ;;  %4022 = vmatpush.msra.mxu2 %v5339_v48  ;;  %v5374_v27 = vld [vmem:[%s9293_s13 + $0x3b8] sm:$0xff]  ;;  %v5401_v48 = vld [vmem:[%s9293_s13 + $0x470] sm:$0xff]  ;;  %vm9435_vm9 = vmmov %vm9432_vm8 }
 0x613   : > { %4101 = vmatpush.msrb.mxu0 %v5369_v21  ;;  %3960 = vmatpush.msrb.mxu3 %v5310_v14  ;;  %v5344_v21 = vld [vmem:[%s9293_s13 + $0x2e8] sm:$0xff]  ;;  %v5427_v14 = vld [vmem:[%s9293_s13 + $0x530] sm:$0xff] }
 0x614   : > { %3866 = vmatpush.msrb.mxu1 %v3741_v55  ;;  %4023 = vmatpush.msra.mxu2 %v5337_v59  ;;  %v5372_v55 = vld [vmem:[%s9293_s13 + $0x3a8] sm:$0xff]  ;;  %v5399_v59 = vld [vmem:[%s9293_s13 + $0x460] sm:$0xff] }
 0x615   : > { %4102 = vmatpush.msrb.mxu0 %v5367_v32  ;;  %3961 = vmatpush.msrb.mxu3 %v5308_v44  ;;  %v5342_v32 = vld [vmem:[%s9293_s13 + $0x2d8] sm:$0xff]  ;;  %v5425_v44 = vld [vmem:[%s9293_s13 + $0x520] sm:$0xff] }
 0x616   : > { %3867 = vmatpush.msrb.mxu1 %v3739_v13  ;;  %4024 = vmatpush.msra.mxu2 %v5335_v18  ;;  %v5370_v13 = vld [vmem:[%s9293_s13 + $0x398] sm:$0xff]  ;;  %v5397_v18 = vld [vmem:[%s9293_s13 + $0x450] sm:$0xff] }
 0x617   : > { %4103 = vmatpush.msrb.mxu0 %v5365_v56  ;;  %3962 = vmatpush.msrb.mxu3 %v5306_v39  ;;  %v5340_v56 = vld [vmem:[%s9293_s13 + $0x2c8] sm:$0xff]  ;;  %v5423_v39 = vld [vmem:[%s9293_s13 + $0x510] sm:$0xff] }
 0x618   : > { %3868 = vmatpush.msrb.mxu1 %v3737_v61  ;;  %4025 = vmatpush.msra.mxu2 %v5333_v1  ;;  %v5368_v61 = vld [vmem:[%s9293_s13 + $0x388] sm:$0xff]  ;;  %v5395_v1 = vld [vmem:[%s9293_s13 + $0x440] sm:$0xff] }
 0x619   : > { %4104 = vmatpush.msrb.mxu0 %v5363_v47  ;;  %3963 = vmatpush.msrb.mxu3 %v5304_v4  ;;  %v5338_v47 = vld [vmem:[%s9293_s13 + $0x2b8] sm:$0xff]  ;;  %v5393_v4 = vld [vmem:[%s9293_s13 + $0x430] sm:$0xff] }
 0x61a   : > { %3869 = vmatpush.msrb.mxu1 %v3735_v30  ;;  %4026 = vmatpush.msra.mxu2 %v5331_v19  ;;  %v5366_v30 = vld [vmem:[%s9293_s13 + $0x378] sm:$0xff] }
 0x61b   : > { %4105 = vmatpush.msrb.mxu0 %v5361_v37  ;;  %3964 = vmatpush.msrb.mxu3 %v5302_v60  ;;  %v5421_v37 = vld [vmem:[%s9293_s13 + $0x500] sm:$0xff] }
 0x61c   : > { %3870 = vmatpush.msrb.mxu1 %v3733_v9  ;;  %4027 = vmatpush.msra.mxu2 %v5329_v34  ;;  %v5336_v9 = vld [vmem:[%s9293_s13 + $0x2a8] sm:$0xff] }
 0x61d   : > { %4106 = vmatpush.msrb.mxu0 %v5359_v52  ;;  %3965 = vmatpush.msrb.mxu3 %v5300_v62  ;;  %v5364_v34 = vld [vmem:[%s9293_s13 + $0x368] sm:$0xff]  ;;  %v5391_v52 = vld [vmem:[%s9293_s13 + $0x420] sm:$0xff]  ;;  %v5334_v62 = vld [vmem:[%s9293_s13 + $0x298] sm:$0xff] }
 0x61e   : > { %3871 = vmatpush.msrb.mxu1 %v3731_v31  ;;  %4028 = vmatpush.msra.mxu2 %v5327_v45  ;;  %v5419_v31 = vld [vmem:[%s9293_s13 + $0x4f0] sm:$0xff]  ;;  %v5362_v45 = vld [vmem:[%s9293_s13 + $0x358] sm:$0xff] }
 0x61f   : > { %4107 = vmatpush.msrb.mxu0 %v5357_v42  ;;  %3966 = vmatpush.msrb.mxu3 %v5298_v25  ;;  %v5389_v42 = vld [vmem:[%s9293_s13 + $0x410] sm:$0xff]  ;;  %v5417_v25 = vld [vmem:[%s9293_s13 + $0x4e0] sm:$0xff] }
 0x620   : > { %3872 = vmatpush.msrb.mxu1 %v3729_v33  ;;  %4029 = vmatpush.msra.mxu2 %v5325_v43  ;;  %v5332_v43 = vld [vmem:[%s9293_s13 + $0x288] sm:$0xff] }
 0x621   : > { %4108 = vmatpush.msrb.mxu0 %v5355_v40  ;;  %3967 = vmatpush.msrb.mxu3 %v5296_v50  ;;  %v5360_v40 = vld [vmem:[%s9293_s13 + $0x348] sm:$0xff]  ;;  %v5415_v50 = vld [vmem:[%s9293_s13 + $0x4d0] sm:$0xff] }
 0x622   : > { %3873 = vmatpush.msrb.mxu1 %v3727_v17  ;;  %4030 = vmatpush.msra.mxu2 %v5323_v12  ;;  %v5387_v17 = vld [vmem:[%s9293_s13 + $0x400] sm:$0xff]  ;;  %v5330_v12 = vld [vmem:[%s9293_s13 + $0x278] sm:$0xff] }
 0x623   : > { %4109 = vmatpush.msrb.mxu0 %v5353_v20 }
 0x625   : > { %4110 = vmatpush.msrb.mxu0 %v5351_v10 }
 0x63f   : > { %v3677_v5 = vpop.f32.mrf.mxu3 }
 0x674   : > { %v3654_v51 = vpop.f32.mrf.mxu2 }
 0x675   : > { %v3655_v16 = vadd.f32 %v8591_v35, %v3654_v51  ;;  %v5358_v51 = vld [vmem:[%s9293_s13 + $0x338] sm:$0xff] }
 0x677   : > { %v3678_v2 = vadd.f32 %v3677_v5, %v3655_v16  ;;  %v5385_v16 = vld [vmem:[%s9293_s13 + $0x3f0] sm:$0xff]  ;;  %v5328_v5 = vld [vmem:[%s9293_s13 + $0x268] sm:$0xff] }
 0x67c   : > { %v8593_v58 = vpop.f32.mrf.mxu2 }
 0x67d   : > { %v3658_v10 = vadd.f32 %v8591_v35, %v8593_v58  ;;  %v5413_v58 = vld [vmem:[%s9293_s13 + $0x4c0] sm:$0xff] }
 0x684   : > { %v3700_v11 = vpop.f32.mrf.mxu2 }
 0x685   : > { %v3701_v15 = vadd.f32 %v3700_v11, %v3678_v2  ;;  %v3680_v2 = vpop.f32.mrf.mxu3 }
 0x687   : > { %v8596_v63 = vmax.f32 %v3701_v15, 0.0  ;;  %v5356_v15 = vld [vmem:[%s9293_s13 + $0x328] sm:$0xff] }
 0x689   : > { %v3750_v3 = vrot.slane %v8596_v63, 5  ;;  %v8600_v22 = vrot.slane %v8596_v63, 4  ;;  %v3881_v6 = vrot.slane %v8596_v63, 6  ;;  %v3979_v33 = vrot.slane %v8596_v63, 7 }
 0x68b   : > { %v3752_v8 = vsel %vm9429_vm1, 0.0, %v3750_v3  ;;  %v3711_v26 = vsel %vm9430_vm13, 0.0, %v8600_v22  ;;  %v3883_v23 = vsel %vm1077_vm3, 0.0, %v3881_v6  ;;  %v8680_v19 = vsel %vm3723_vm11, 0.0, %v8600_v22 }
 0x68c   : > { %5287 = vmatmul.msk.f32.vlgmr.msra.gmra.mxu1 %vm1671_vm6, %v3752_v8  ;;  %5289 = vmatmul.msk.f32.vlgmr.msra.gmra.mxu3 %vm1671_vm6, %v3752_v8  ;;  %v8617_v41 = vsel %vm3722_vm10, 0.0, %v3711_v26  ;;  %v8621_v57 = vsel %vm3894_vm15, 0.0, %v3883_v23  ;;  %v8692_v60 = vsel %vm3895_vm12, 0.0, %v3881_v6  ;;  %v3981_v20 = vsel %vm1075_vm2, 0.0, %v3979_v33  ;;  %v3703_v11 = vpop.f32.mrf.mxu2  ;;  %v5354_v8 = vld [vmem:[%s9293_s13 + $0x318] sm:$0xff]  ;;  %v5381_v26 = vld [vmem:[%s9293_s13 + $0x3d0] sm:$0xff] }
 0x68d   : > { %4042 = vmatpush.msra.mxu1 %v5346_v7  ;;  %4122 = vmatpush.msra.mxu3 %v5374_v27  ;;  %v8750_v35 = vsel %vm3722_vm10, 0.0, %v3981_v20  ;;  %v3681_v6 = vadd.f32 %v3680_v2, %v3658_v10  ;;  %v5411_v7 = vld [vmem:[%s9293_s13 + $0x4b0] sm:$0xff]  ;;  %v5326_v27 = vld [vmem:[%s9293_s13 + $0x258] sm:$0xff]  ;;  %v8884_v20 = vrot.slane %v8282_v24, 4  ;;  %vm9436_vm1 = vcmask 1044480  }
 0x68e   : > { %5291 = vmatmul.msk.f32.vlgmr.msrb.gmra.mxu2 %vm1671_vm6, %v8617_v41  ;;  %5319 = vmatmul.msk.f32.vlgmr.msra.gmra.mxu0 %vm1671_vm6, %v8621_v57  ;;  %v5416_v2 = vld [vmem:[%s9293_s13 + $0x4d8] sm:$0xff]  ;;  %vm9437_vm13 = vmmov %vm9436_vm1 }
 0x68f   : > { %4182 = vmatpush.msrb.mxu2 %v5401_v48  ;;  %4043 = vmatpush.msra.mxu1 %v5344_v21  ;;  %v3704_v23 = vadd.f32 %v3703_v11, %v3681_v6  ;;  %v5352_v48 = vld [vmem:[%s9293_s13 + $0x308] sm:$0xff]  ;;  %v5379_v21 = vld [vmem:[%s9293_s13 + $0x3c0] sm:$0xff]  ;;  %v5441_v11 = vld [vmem:[%s9293_s13 + $0x590] sm:$0xff]  ;;  %v4502_v6 = vsel %vm9432_vm8, -3e+38, %v8884_v20 }
 0x690   : > { %4123 = vmatpush.msra.mxu3 %v5372_v55  ;;  %4266 = vmatpush.msra.mxu0 %v5427_v14  ;;  %v5402_v55 = vld [vmem:[%s9293_s13 + $0x478] sm:$0xff]  ;;  %v5407_v14 = vld [vmem:[%s9293_s13 + $0x490] sm:$0xff]  ;;  %vm9438_vm8 = vmmov %vm9431_vm14 }
 0x691   : > { %4183 = vmatpush.msrb.mxu2 %v5399_v59  ;;  %4044 = vmatpush.msra.mxu1 %v5342_v32  ;;  %v5428_v59 = vld [vmem:[%s9293_s13 + $0x538] sm:$0xff]  ;;  %v8801_v32 = vmax.f32 %v3704_v23, 0.0 }
 0x692   : > { %4124 = vmatpush.msra.mxu3 %v5370_v13  ;;  %4267 = vmatpush.msra.mxu0 %v5425_v44  ;;  %v5453_v13 = vld [vmem:[%s9293_s13 + $0x5f0] sm:$0xff]  ;;  %v5400_v44 = vld [vmem:[%s9293_s13 + $0x468] sm:$0xff]  ;;  %v5412_v23 = vld [vmem:[%s9293_s13 + $0x4b8] sm:$0xff] }
 0x693   : > { %4184 = vmatpush.msrb.mxu2 %v5397_v18  ;;  %4045 = vmatpush.msra.mxu1 %v5340_v56  ;;  %v5405_v18 = vld [vmem:[%s9293_s13 + $0x480] sm:$0xff]  ;;  %v8820_v56 = vsel %vm3723_vm11, 0.0, %v3979_v33 }
 0x694   : > { %4125 = vmatpush.msra.mxu3 %v5368_v61  ;;  %4268 = vmatpush.msra.mxu0 %v5423_v39  ;;  %v5426_v61 = vld [vmem:[%s9293_s13 + $0x528] sm:$0xff]  ;;  %v5451_v39 = vld [vmem:[%s9293_s13 + $0x5e0] sm:$0xff] }
 0x695   : > { %4185 = vmatpush.msrb.mxu2 %v5395_v1  ;;  %5288 = vmatmul.msk.f32.gmra.mxu1 %vm1671_vm6, %v3750_v3  ;;  %v5479_v1 = vld [vmem:[%s9293_s13 + $0x6b0] sm:$0xff] }
 0x696   : > { %5290 = vmatmul.msk.f32.gmra.mxu3 %vm1671_vm6, %v3750_v3  ;;  %4046 = vmatpush.msra.mxu1 %v5338_v47  ;;  %v5383_v3 = vld [vmem:[%s9293_s13 + $0x3e0] sm:$0xff]  ;;  %v5398_v47 = vld [vmem:[%s9293_s13 + $0x458] sm:$0xff] }
 0x697   : > { %4126 = vmatpush.msra.mxu3 %v5366_v30  ;;  %5292 = vmatmul.msk.f32.gmra.mxu2 %vm1671_vm6, %v8680_v19  ;;  %v4229_v30 = vrot.slane %v8801_v32, 2 }
 0x698   : > { %5320 = vmatmul.msk.f32.gmra.mxu0 %vm1671_vm6, %v8692_v60  ;;  %4186 = vmatpush.msrb.mxu2 %v5393_v4  ;;  %v5424_v4 = vld [vmem:[%s9293_s13 + $0x518] sm:$0xff] }
 0x699   : > { %4269 = vmatpush.msra.mxu0 %v5421_v37  ;;  %4047 = vmatpush.msra.mxu1 %v5336_v9  ;;  %v5477_v37 = vld [vmem:[%s9293_s13 + $0x6a0] sm:$0xff]  ;;  %v5396_v9 = vld [vmem:[%s9293_s13 + $0x448] sm:$0xff] }
 0x69a   : > { %4127 = vmatpush.msra.mxu3 %v5364_v34  ;;  %4187 = vmatpush.msrb.mxu2 %v5391_v52  ;;  %v4228_v34 = vrot.slane %v8596_v63, 2  ;;  %v5422_v52 = vld [vmem:[%s9293_s13 + $0x508] sm:$0xff] }
 0x69b   : > { %4270 = vmatpush.msra.mxu0 %v5419_v31  ;;  %4048 = vmatpush.msra.mxu1 %v5334_v62  ;;  %v5447_v31 = vld [vmem:[%s9293_s13 + $0x5c0] sm:$0xff]  ;;  %v5475_v62 = vld [vmem:[%s9293_s13 + $0x690] sm:$0xff] }
 0x69c   : > { %4128 = vmatpush.msra.mxu3 %v5362_v45  ;;  %4188 = vmatpush.msrb.mxu2 %v5389_v42  ;;  %v5394_v45 = vld [vmem:[%s9293_s13 + $0x438] sm:$0xff]  ;;  %v4145_v42 = vrot.slane %v8596_v63, 1  ;;  %v4230_v33 = vsel %vm9431_vm14, %v4228_v34, %v4229_v30  ;;  %v5406_v34 = vld [vmem:[%s9293_s13 + $0x488] sm:$0xff] }
 0x69d   : > { %4271 = vmatpush.msra.mxu0 %v5417_v25  ;;  %4049 = vmatpush.msra.mxu1 %v5332_v43  ;;  %v5420_v25 = vld [vmem:[%s9293_s13 + $0x4f8] sm:$0xff]  ;;  %v5445_v43 = vld [vmem:[%s9293_s13 + $0x5b0] sm:$0xff] }
 0x69e   : > { %4129 = vmatpush.msra.mxu3 %v5360_v40  ;;  %4189 = vmatpush.msrb.mxu2 %v5387_v17  ;;  %v5473_v17 = vld [vmem:[%s9293_s13 + $0x680] sm:$0xff] }
 0x69f   : > { %4272 = vmatpush.msra.mxu0 %v5415_v50  ;;  %5293 = vmatmul.msk.f32.vlgmr.msrb.gmra.mxu1 %vm1671_vm6, %v8617_v41  ;;  %v5409_v41 = vld [vmem:[%s9293_s13 + $0x4a0] sm:$0xff]  ;;  %v4232_v50 = vsel %vm1344_vm7, %v4230_v33, 0.0  ;;  %v4674_v33 = vld [vmem:[%s9295_s15 + $0x78] sm:$0xff] }
 0x6a0   : > { %5321 = vmatmul.msk.f32.vlgmr.msrb.gmra.mxu3 %vm1671_vm6, %v8621_v57  ;;  %4050 = vmatpush.msra.mxu1 %v5330_v12  ;;  %v5324_v57 = vld [vmem:[%s9293_s13 + $0x248] sm:$0xff] }
 0x6a1   : > { %4130 = vmatpush.msra.mxu3 %v5358_v51  ;;  %5347 = vmatmul.msk.f32.vlgmr.msra.gmra.mxu2 %vm1671_vm6, %v8750_v35  ;;  %v5392_v12 = vld [vmem:[%s9293_s13 + $0x428] sm:$0xff] }
 0x6a2   : > { %5375 = vmatmul.msk.f32.vlgmr.msrb.gmra.mxu0 %vm1671_vm6, %v8596_v63  ;;  %4190 = vmatpush.msrb.mxu2 %v5385_v16  ;;  %v5418_v51 = vld [vmem:[%s9293_s13 + $0x4e8] sm:$0xff]  ;;  %v5443_v16 = vld [vmem:[%s9293_s13 + $0x5a0] sm:$0xff] }
 0x6a3   : > { %4273 = vmatpush.msra.mxu0 %v5413_v58  ;;  %4051 = vmatpush.msra.mxu1 %v5328_v5  ;;  %v5471_v58 = vld [vmem:[%s9293_s13 + $0x670] sm:$0xff]  ;;  %v5390_v5 = vld [vmem:[%s9293_s13 + $0x418] sm:$0xff] }
 0x6a4   : > { %4131 = vmatpush.msra.mxu3 %v5356_v15  ;;  %4191 = vmatpush.msrb.mxu2 %v5383_v3  ;;  %v5469_v15 = vld [vmem:[%s9293_s13 + $0x660] sm:$0xff]  ;;  %v5388_v3 = vld [vmem:[%s9293_s13 + $0x408] sm:$0xff] }
 0x6a5   : > { %4274 = vmatpush.msra.mxu0 %v5411_v7  ;;  %4052 = vmatpush.msra.mxu1 %v5326_v27  ;;  %v5414_v7 = vld [vmem:[%s9293_s13 + $0x4c8] sm:$0xff]  ;;  %v5439_v27 = vld [vmem:[%s9293_s13 + $0x580] sm:$0xff] }
 0x6a6   : > { %4132 = vmatpush.msra.mxu3 %v5354_v8  ;;  %4192 = vmatpush.msrb.mxu2 %v5381_v26  ;;  %v5467_v8 = vld [vmem:[%s9293_s13 + $0x650] sm:$0xff]  ;;  %v5386_v26 = vld [vmem:[%s9293_s13 + $0x3f8] sm:$0xff] }
 0x6a7   : > { %4275 = vmatpush.msra.mxu0 %v5409_v41  ;;  %4053 = vmatpush.msra.mxu1 %v5324_v57  ;;  %v4505_v41 = vsel %vm3722_vm10, -3e+38, %v4502_v6  ;;  %v5437_v57 = vld [vmem:[%s9293_s13 + $0x570] sm:$0xff] }
 0x6a8   : > { %4133 = vmatpush.msra.mxu3 %v5352_v48  ;;  %4193 = vmatpush.msrb.mxu2 %v5379_v21  ;;  %v5465_v48 = vld [vmem:[%s9293_s13 + $0x640] sm:$0xff]  ;;  %v4517_v21 = vrot.slane %v8282_v24, 5 }
 0x6a9   : > { %4205 = vmatpush.msrb.mxu1 %v5402_v55  ;;  %4276 = vmatpush.msra.mxu0 %v5407_v14  ;;  %v5384_v55 = vld [vmem:[%s9293_s13 + $0x3e8] sm:$0xff]  ;;  %v4511_v14 = vmax.f32 %v8282_v24, %v4505_v41 }
 0x6aa   : > { %4289 = vmatpush.msrb.mxu3 %v5428_v59  ;;  %5294 = vmatmul.msk.f32.gmra.mxu1 %vm1671_vm6, %v8680_v19  ;;  %v5449_v19 = vld [vmem:[%s9293_s13 + $0x5d0] sm:$0xff]  ;;  %v4532_v59 = vrot.slane %v8282_v24, 6  ;;  %v4523_v30 = vsel %vm9434_vm5, -3e+38, %v4517_v21  ;;  %v4672_v41 = vld [vmem:[%s9295_s15 + $0x68] sm:$0xff] }
 0x6ab   : > { %5322 = vmatmul.msk.f32.gmra.mxu3 %vm1671_vm6, %v8692_v60  ;;  %4349 = vmatpush.msra.mxu2 %v5453_v13  ;;  %v4146_v60 = vrot.slane %v8801_v32, 1  ;;  %v5410_v13 = vld [vmem:[%s9293_s13 + $0x4a8] sm:$0xff] }
 0x6ac   : > { %5348 = vmatmul.msk.f32.gmra.mxu2 %vm1671_vm6, %v8820_v56  ;;  %5376 = vmatmul.msk.f32.gmra.mxu0 %vm1671_vm6, %v8801_v32 }
 0x6ad   : > { %4206 = vmatpush.msrb.mxu1 %v5400_v44  ;;  %4277 = vmatpush.msra.mxu0 %v5405_v18  ;;  %v4147_v40 = vsel %vm1344_vm7, %v4145_v42, %v4146_v60  ;;  %v5435_v44 = vld [vmem:[%s9293_s13 + $0x560] sm:$0xff]  ;;  %v9433_v18 = vmov 0.0   ;;  %v4553_v60 = vrot.slane %v8282_v24, 7  ;;  %v5459_v42 = vld [vmem:[%s9293_s13 + $0x610] sm:$0xff] }
 0x6ae   : > { %4290 = vmatpush.msrb.mxu3 %v5426_v61  ;;  %4350 = vmatpush.msra.mxu2 %v5451_v39  ;;  %v8890_v10 = vsel %vm3894_vm15, 0.0, %v4147_v40  ;;  %v5382_v61 = vld [vmem:[%s9293_s13 + $0x3d8] sm:$0xff] }
 0x6af   : > { %4432 = vmatpush.msrb.mxu0 %v5479_v1  ;;  %4207 = vmatpush.msrb.mxu1 %v5398_v47  ;;  %v5408_v39 = vld [vmem:[%s9293_s13 + $0x498] sm:$0xff]  ;;  %v5433_v1 = vld [vmem:[%s9293_s13 + $0x550] sm:$0xff]  ;;  %v4395_v47 = vrot.slane %v8801_v32, 4 }
 0x6b0   : > { %4291 = vmatpush.msrb.mxu3 %v5424_v4  ;;  %4351 = vmatpush.msra.mxu2 %v5449_v19  ;;  %v5461_v4 = vld [vmem:[%s9293_s13 + $0x620] sm:$0xff]  ;;  %v5380_v19 = vld [vmem:[%s9293_s13 + $0x3c8] sm:$0xff] }
 0x6b1   : > { %4433 = vmatpush.msrb.mxu0 %v5477_v37  ;;  %4208 = vmatpush.msrb.mxu1 %v5396_v9  ;;  %v4526_v37 = vmax.f32 %v4511_v14, %v4523_v30  ;;  %v4538_v9 = vsel %vm1077_vm3, -3e+38, %v4532_v59  ;;  %v4624_v14 = vrot.slane %v8270_v54, 3 }
 0x6b2   : > { %4292 = vmatpush.msrb.mxu3 %v5422_v52  ;;  %4352 = vmatpush.msra.mxu2 %v5447_v31  ;;  %v5431_v52 = vld [vmem:[%s9293_s13 + $0x540] sm:$0xff]  ;;  %v4313_v31 = vrot.slane %v8801_v32, 3  ;;  %v4541_v40 = vsel %vm3894_vm15, -3e+38, %v4538_v9  ;;  %v5470_v9 = vld [vmem:[%s9293_s13 + $0x668] sm:$0xff] }
 0x6b3   : > { %4434 = vmatpush.msrb.mxu0 %v5475_v62  ;;  %4209 = vmatpush.msrb.mxu1 %v5394_v45  ;;  %v4508_v62 = vsel %vm3723_vm11, -3e+38, %v8884_v20  ;;  %v5454_v45 = vld [vmem:[%s9293_s13 + $0x5f8] sm:$0xff] }
 0x6b4   : > { %4293 = vmatpush.msrb.mxu3 %v5420_v25  ;;  %5349 = vmatmul.msk.f32.vlgmr.msra.gmra.mxu1 %vm1671_vm6, %v8750_v35  ;;  %v8902_v35 = vsel %vm3722_vm10, 0.0, %v4232_v50  ;;  %v4312_v25 = vrot.slane %v8596_v63, 3  ;;  %v4579_v50 = vrot.slane %v8270_v54, 1 }
 0x6b5   : > { %5377 = vmatmul.msk.f32.vlgmr.msra.gmra.mxu3 %vm1671_vm6, %v8596_v63  ;;  %4353 = vmatpush.msra.mxu2 %v5445_v43  ;;  %v4396_v43 = vsel %vm9435_vm9, %v8600_v22, %v4395_v47  ;;  %v5452_v63 = vld [vmem:[%s9293_s13 + $0x5e8] sm:$0xff]  ;;  %v5457_v22 = vld [vmem:[%s9293_s13 + $0x600] sm:$0xff] }
 0x6b6   : > { %4435 = vmatpush.msrb.mxu0 %v5473_v17  ;;  %5403 = vmatmul.msk.f32.vlgmr.msrb.gmra.mxu2 %vm1671_vm6, %v8890_v10  ;;  %v4578_v17 = vrot.slane %v8282_v24, 1 }
 0x6b7   : > { %4210 = vmatpush.msrb.mxu1 %v5392_v12  ;;  %5429 = vmatmul.msk.f32.vlgmr.msra.gmra.mxu0 %vm1671_vm6, %v8902_v35  ;;  %v4514_v12 = vmax.f32 %v8270_v54, %v4508_v62 }
 0x6b8   : > { %4294 = vmatpush.msrb.mxu3 %v5418_v51  ;;  %4354 = vmatpush.msra.mxu2 %v5443_v16  ;;  %v4547_v51 = vmax.f32 %v4526_v37, %v4541_v40  ;;  %v4559_v16 = vsel %vm1075_vm2, -3e+38, %v4553_v60  ;;  %v5444_v37 = vld [vmem:[%s9293_s13 + $0x5a8] sm:$0xff]  ;;  %v5438_v40 = vld [vmem:[%s9293_s13 + $0x578] sm:$0xff] }
 0x6b9   : > { %4436 = vmatpush.msrb.mxu0 %v5471_v58  ;;  %4211 = vmatpush.msrb.mxu1 %v5390_v5  ;;  %v4314_v58 = vsel %vm9436_vm1, %v4312_v25, %v4313_v31  ;;  %v4599_v5 = vrot.slane %v8282_v24, 2  ;;  %v4562_v6 = vsel %vm3722_vm10, -3e+38, %v4559_v16  ;;  %v5462_v16 = vld [vmem:[%s9293_s13 + $0x628] sm:$0xff] }
 0x6ba   : > { %4295 = vmatpush.msrb.mxu3 %v5416_v2  ;;  %4355 = vmatpush.msra.mxu2 %v5441_v11  ;;  %v4600_v2 = vrot.slane %v8270_v54, 2  ;;  %v5478_v11 = vld [vmem:[%s9293_s13 + $0x6a8] sm:$0xff] }
 0x6bb   : > { %4437 = vmatpush.msrb.mxu0 %v5469_v15  ;;  %4212 = vmatpush.msrb.mxu1 %v5388_v3  ;;  %v4398_v15 = vsel %vm9437_vm13, %v4396_v43, 0.0  ;;  %v4673_v3 = vld [vmem:[%s9295_s15 + $0x70] sm:$0xff] }
 0x6bc   : > { %4296 = vmatpush.msrb.mxu3 %v5414_v7  ;;  %4356 = vmatpush.msra.mxu2 %v5439_v27  ;;  %v9049_v7 = vsel %vm9431_vm14, %v4314_v58, 0.0  ;;  %v5450_v27 = vld [vmem:[%s9293_s13 + $0x5d8] sm:$0xff] }
 0x6bd   : > { %4438 = vmatpush.msrb.mxu0 %v5467_v8  ;;  %4213 = vmatpush.msrb.mxu1 %v5386_v26  ;;  %v4568_v8 = vmax.f32 %v4547_v51, %v4562_v6  ;;  %v4580_v26 = vsel %vm1344_vm7, %v4578_v17, %v4579_v50  ;;  %v5464_v17 = vld [vmem:[%s9293_s13 + $0x638] sm:$0xff]  ;;  %v5436_v51 = vld [vmem:[%s9293_s13 + $0x568] sm:$0xff]  ;;  %v4663_v6 = vld [vmem:[%s9295_s15 + $0x20] sm:$0xff] }
 0x6be   : > { %4297 = vmatpush.msrb.mxu3 %v5412_v23  ;;  %5350 = vmatmul.msk.f32.gmra.mxu1 %vm1671_vm6, %v8820_v56  ;;  %v5463_v56 = vld [vmem:[%s9293_s13 + $0x630] sm:$0xff]  ;;  %v9064_v23 = vsel %vm3894_vm15, 0.0, %v4398_v15  ;;  %v4664_v15 = vld [vmem:[%s9295_s15 + $0x28] sm:$0xff] }
 0x6bf   : > { %5378 = vmatmul.msk.f32.gmra.mxu3 %vm1671_vm6, %v8801_v32  ;;  %4357 = vmatpush.msra.mxu2 %v5437_v57  ;;  %v5480_v32 = vld [vmem:[%s9293_s13 + $0x6b8] sm:$0xff]  ;;  %v4692_v57 = vld [vmem:[%s9295_s15 + $0x108] sm:$0xff] }
 0x6c0   : > { %4439 = vmatpush.msrb.mxu0 %v5465_v48  ;;  %4197 = vmatmul.f32.gmra.mxu2 %v9433_v18  ;;  %v4601_v48 = vsel %vm9438_vm8, %v4599_v5, %v4600_v2  ;;  %v5434_v2 = vld [vmem:[%s9293_s13 + $0x558] sm:$0xff] }
 0x6c1   : > { %4214 = vmatpush.msrb.mxu1 %v5384_v55  ;;  %4281 = vmatmul.f32.gmra.mxu0 %v9433_v18  ;;  %v5474_v55 = vld [vmem:[%s9293_s13 + $0x688] sm:$0xff]  ;;  %v4607_v30 = vsel %vm1344_vm7, %v4601_v48, -3e+38  ;;  %vm9439_vm7 = vmmov %vm9436_vm1  ;;  %v4590_v48 = vmax.f32 %v8290_v46, -3e+38  ;;  %v4685_v46 = vld [vmem:[%s9295_s15 + $0xd0] sm:$0xff] }
 0x6c2   : > { %4298 = vmatpush.msrb.mxu3 %v5410_v13  ;;  %4358 = vmatpush.msra.mxu2 %v5435_v44  ;;  %v4671_v13 = vld [vmem:[%s9295_s15 + $0x60] sm:$0xff] }
 0x6c3   : > { %4440 = vmatpush.msrb.mxu0 %v5463_v56  ;;  %4215 = vmatpush.msrb.mxu1 %v5382_v61  ;;  %v4691_v44 = vld [vmem:[%s9295_s15 + $0x100] sm:$0xff]  ;;  %v4586_v56 = vsel %vm3894_vm15, -3e+38, %v4580_v26  ;;  %v4544_v61 = vsel %vm3895_vm12, -3e+38, %v4532_v59  ;;  %v4642_v59 = vrot.slane %v8270_v54, 4  ;;  %vm9442_vm12 = vmmov %vm9436_vm1 }
 0x6c4   : > { %4299 = vmatpush.msrb.mxu3 %v5408_v39  ;;  %4359 = vmatpush.msra.mxu2 %v5433_v1  ;;  %v5446_v39 = vld [vmem:[%s9293_s13 + $0x5b8] sm:$0xff]  ;;  %v4589_v47 = vmax.f32 %v4568_v8, %v4586_v56  ;;  %v4610_v54 = vsel %vm3722_vm10, -3e+38, %v4607_v30  ;;  %vm9440_vm10 = vmmov %vm9435_vm9  ;;  %v4689_v8 = vld [vmem:[%s9295_s15 + $0xf0] sm:$0xff] }
 0x6c5   : > { %4441 = vmatpush.msrb.mxu0 %v5461_v4  ;;  %4216 = vmatpush.msrb.mxu1 %v5380_v19  ;;  %v5472_v1 = vld [vmem:[%s9293_s13 + $0x678] sm:$0xff]  ;;  %v4623_v4 = vrot.slane %v8282_v24, 3  ;;  %v4643_v24 = vsel %vm9440_vm10, %v8884_v20, %v4642_v59  ;;  %v4661_v26 = vld [vmem:[%s9295_s15 + $0x10] sm:$0xff] }
 0x6c6   : > { %4300 = vmatpush.msrb.mxu3 %v5406_v34  ;;  %4360 = vmatpush.msra.mxu2 %v5431_v52  ;;  %v4565_v34 = vsel %vm3723_vm11, -3e+38, %v4553_v60  ;;  %v4669_v52 = vld [vmem:[%s9295_s15 + $0x50] sm:$0xff]  ;;  %v4613_v31 = vmax.f32 %v4589_v47, %v4610_v54  ;;  %v4668_v60 = vld [vmem:[%s9295_s15 + $0x48] sm:$0xff]  ;;  %vm9441_vm11 = vmmov %vm9438_vm8  ;;  %v4649_v50 = vsel %vm9442_vm12, %v4643_v24, -3e+38 }
 0x6c7   : > { %4372 = vmatpush.msra.mxu1 %v5454_v45  ;;  %4442 = vmatpush.msrb.mxu0 %v5459_v42  ;;  %v4625_v62 = vsel %vm9439_vm7, %v4623_v4, %v4624_v14  ;;  %v5440_v42 = vld [vmem:[%s9293_s13 + $0x588] sm:$0xff]  ;;  %v4614_v14 = vmax.f32 %v4590_v48, -3e+38  ;;  %v4678_v47 = vld [vmem:[%s9295_s15 + $0x98] sm:$0xff]  ;;  %v4677_v30 = vld [vmem:[%s9295_s15 + $0x90] sm:$0xff] }
 0x6c8   : > { %4455 = vmatpush.msra.mxu3 %v5480_v32  ;;  %4703 = vmatpush.msrb.mxu2 %v4674_v33  ;;  %v5466_v32 = vld [vmem:[%s9293_s13 + $0x648] sm:$0xff]  ;;  %v4631_v20 = vsel %vm9441_vm11, %v4625_v62, -3e+38  ;;  %v4667_v33 = vld [vmem:[%s9295_s15 + $0x40] sm:$0xff] }
 0x6c9   : > { %5404 = vmatmul.msk.f32.vlgmr.msrb.gmra.mxu1 %vm1671_vm6, %v8890_v10  ;;  %5430 = vmatmul.msk.f32.vlgmr.msrb.gmra.mxu3 %vm1671_vm6, %v8902_v35  ;;  %v5476_v10 = vld [vmem:[%s9293_s13 + $0x698] sm:$0xff]  ;;  %v4529_v35 = vmax.f32 %v4514_v12, %v4517_v21  ;;  %v5448_v21 = vld [vmem:[%s9293_s13 + $0x5c8] sm:$0xff]  ;;  %v4634_v25 = vmax.f32 %v4613_v31, %v4631_v20  ;;  %v4635_v56 = vmax.f32 %v4614_v14, -3e+38  ;;  %v4478_v14 = vld [vmem:[%s9294_s14] sm:$0x3] }
 0x6ca   : > { %4373 = vmatpush.msra.mxu1 %v5452_v63  ;;  %4443 = vmatpush.msrb.mxu0 %v5457_v22  ;;  %v4666_v12 = vld [vmem:[%s9295_s15 + $0x38] sm:$0xff]  ;;  %v4665_v63 = vld [vmem:[%s9295_s15 + $0x30] sm:$0xff]  ;;  %v4652_v22 = vsel %vm3894_vm15, -3e+38, %v4649_v50  ;;  %v4676_v4 = vld [vmem:[%s9295_s15 + $0x88] sm:$0xff] }
 0x6cb   : > { %4456 = vmatpush.msra.mxu3 %v5478_v11  ;;  %5455 = vmatmul.msk.f32.vlgmr.msra.gmra.mxu2 %vm1671_vm6, %v9049_v7  ;;  %v4550_v19 = vmax.f32 %v4529_v35, %v4544_v61  ;;  %v4655_v5 = vmax.f32 %v4634_v25, %v4652_v22  ;;  %v5460_v11 = vld [vmem:[%s9293_s13 + $0x618] sm:$0xff]  ;;  %v4656_v61 = vmax.f32 %v4635_v56, -3e+38 }
 0x6cc   : > { %5481 = vmatmul.msk.f32.vlgmr.msrb.gmra.mxu0 %vm1671_vm6, %v9064_v23  ;;  %4704 = vmatpush.msrb.mxu2 %v4673_v3  ;;  %v5458_v3 = vld [vmem:[%s9293_s13 + $0x608] sm:$0xff]  ;;  %v4662_v35 = vld [vmem:[%s9295_s15 + $0x18] sm:$0xff] }
 0x6cd   : > { %4374 = vmatpush.msra.mxu1 %v5450_v27  ;;  %4457 = vmatpush.msra.mxu3 %v5476_v10  ;;  %v4571_v45 = vmax.f32 %v4550_v19, %v4565_v34  ;;  %v4690_v27 = vld [vmem:[%s9295_s15 + $0xf8] sm:$0xff]  ;;  %v4591_v19 = vmax.f32 %v8207_v29, -3e+38 }
 0x6ce   : > { %4705 = vmatpush.msrb.mxu2 %v4672_v41  ;;  %4763 = vmatpush.msra.mxu0 %v4692_v57  ;;  %v4687_v57 = vld [vmem:[%s9295_s15 + $0xe0] sm:$0xff] }
 0x6cf   : > { %4375 = vmatpush.msra.mxu1 %v5448_v21  ;;  %4458 = vmatpush.msra.mxu3 %v5474_v55  ;;  %v4592_v43 = vmax.f32 %v4571_v45, -3e+38  ;;  %v4659_v21 = vld [vmem:[%s9295_s15] sm:$0xff]  ;;  %v4686_v55 = vld [vmem:[%s9295_s15 + $0xd8] sm:$0xff]  ;;  %v4615_v59 = vmax.f32 %v4591_v19, -3e+38 }
 0x6d0   : > { %4706 = vmatpush.msrb.mxu2 %v4671_v13  ;;  %4764 = vmatpush.msra.mxu0 %v4691_v44  ;;  %v4684_v13 = vld [vmem:[%s9295_s15 + $0xc8] sm:$0xff]  ;;  %v4683_v44 = vld [vmem:[%s9295_s15 + $0xc0] sm:$0xff] }
 0x6d1   : > { %4376 = vmatpush.msra.mxu1 %v5446_v39  ;;  %4459 = vmatpush.msra.mxu3 %v5472_v1  ;;  %v4616_v58 = vmax.f32 %v4592_v43, -3e+38  ;;  %v4680_v39 = vld [vmem:[%s9295_s15 + $0xa8] sm:$0xff]  ;;  %v4679_v1 = vld [vmem:[%s9295_s15 + $0xa0] sm:$0xff] }
 0x6d2   : > { %4707 = vmatpush.msrb.mxu2 %v4670_v49  ;;  %4220 = vmatmul.f32.gmra.mxu1 %v9433_v18  ;;  %v4675_v49 = vld [vmem:[%s9295_s15 + $0x80] sm:$0xff] }
 0x6d3   : > { %4304 = vmatmul.f32.gmra.mxu3 %v9433_v18  ;;  %4377 = vmatpush.msra.mxu1 %v5444_v37  ;;  %v4637_v10 = vmax.f32 %v4616_v58, -3e+38  ;;  %v4636_v37 = vmax.f32 %v4615_v59, -3e+38 }
 0x6d4   : > { %4460 = vmatpush.msra.mxu3 %v5470_v9  ;;  %4364 = vmatmul.f32.gmra.mxu2 %v9433_v18 }
 0x6d5   : > { %4447 = vmatmul.f32.gmra.mxu0 %v9433_v18  ;;  %4708 = vmatpush.msrb.mxu2 %v4669_v52  ;;  %v4658_v41 = vmax.f32 %v4637_v10, -3e+38  ;;  %v4657_v9 = vmax.f32 %v4636_v37, -3e+38 }
 0x6d6   : > { %4378 = vmatpush.msra.mxu1 %v5442_v53  ;;  %4461 = vmatpush.msra.mxu3 %v5468_v36 }
 0x6d7   : > { %4709 = vmatpush.msrb.mxu2 %v4668_v60 }
 0x6d8   : > { %4379 = vmatpush.msra.mxu1 %v5440_v42  ;;  %4462 = vmatpush.msra.mxu3 %v5466_v32 }
 0x6d9   : > { %4710 = vmatpush.msrb.mxu2 %v4667_v33 }
 0x6da   : > { %4380 = vmatpush.msra.mxu1 %v5438_v40  ;;  %4463 = vmatpush.msra.mxu3 %v5464_v17 }
 0x6db   : > { %4711 = vmatpush.msrb.mxu2 %v4666_v12 }
 0x6dc   : > { %4381 = vmatpush.msra.mxu1 %v5436_v51  ;;  %4464 = vmatpush.msra.mxu3 %v5462_v16 }
 0x6dd   : > { %4712 = vmatpush.msrb.mxu2 %v4665_v63  ;;  %5483 = vmatmul.msk.f32.vlgmr.msra.gmra.mxu0 %vm3631_vm4, %v4655_v5 }
 0x6de   : > { %4382 = vmatpush.msra.mxu1 %v5434_v2  ;;  %4465 = vmatpush.msra.mxu3 %v5460_v11 }
 0x6df   : > { %4713 = vmatpush.msrb.mxu2 %v4664_v15 }
 0x6e0   : > { %4383 = vmatpush.msra.mxu1 %v5432_v28  ;;  %4466 = vmatpush.msra.mxu3 %v5458_v3 }
 0x6e1   : > { %5456 = vmatmul.msk.f32.vlgmr.msra.gmra.mxu1 %vm1671_vm6, %v9049_v7  ;;  %5482 = vmatmul.msk.f32.vlgmr.msra.gmra.mxu3 %vm1671_vm6, %v9064_v23  ;;  %v4688_v7 = vld [vmem:[%s9295_s15 + $0xe8] sm:$0xff] }
 0x6e2   : > { %4714 = vmatpush.msrb.mxu2 %v4663_v6  ;;  %4726 = vmatpush.msrb.mxu1 %v4690_v27  ;;  %v4660_v23 = vld [vmem:[%s9295_s15 + $0x8] sm:$0xff] }
 0x6e4   : > { %4715 = vmatpush.msrb.mxu2 %v4662_v35  ;;  %4727 = vmatpush.msrb.mxu1 %v4689_v8 }
 0x6e5   : > { %5484 = vmatmul.msk.f32.gmra.mxu0 %vm3631_vm4, %v4658_v41 }
 0x6e6   : > { %4716 = vmatpush.msrb.mxu2 %v4661_v26  ;;  %4728 = vmatpush.msrb.mxu1 %v4688_v7 }
 0x6e8   : > { %4717 = vmatpush.msrb.mxu2 %v4660_v23  ;;  %4729 = vmatpush.msrb.mxu1 %v4687_v57 }
 0x6e9   : > { %4387 = vmatmul.f32.gmra.mxu1 %v9433_v18  ;;  %4470 = vmatmul.f32.gmra.mxu3 %v9433_v18  ;;  %v4682_v18 = vld [vmem:[%s9295_s15 + $0xb8] sm:$0xff] }
 0x6ea   : > { %4718 = vmatpush.msrb.mxu2 %v4659_v21  ;;  %4730 = vmatpush.msrb.mxu1 %v4686_v55 }
 0x6eb   : > { %4719 = vmatmul.f32.vlgmr.msrb.gmra.mxu2 %v8296_v38  ;;  %v4681_v38 = vld [vmem:[%s9295_s15 + $0xb0] sm:$0xff] }
 0x6ec   : > { %4731 = vmatpush.msrb.mxu1 %v4685_v46 }
 0x6ee   : > { %4732 = vmatpush.msrb.mxu1 %v4684_v13 }
 0x6f0   : > { %4733 = vmatpush.msrb.mxu1 %v4683_v44 }
 0x6f2   : > { %4734 = vmatpush.msrb.mxu1 %v4682_v18 }
 0x6f3   : > { %4722 = vmatmul.f32.gmra.mxu2 %v4656_v61 }
 0x6f4   : > { %4735 = vmatpush.msrb.mxu1 %v4681_v38  ;;  %v4480_v38 = vperm.slane %v4478_v14, 0 }
 0x6f6   : > { %4736 = vmatpush.msrb.mxu1 %v4680_v39 }
 0x6f8   : > { %4737 = vmatpush.msrb.mxu1 %v4679_v1 }
 0x6fa   : > { %4738 = vmatpush.msrb.mxu1 %v4678_v47 }
 0x6fc   : > { %4739 = vmatpush.msrb.mxu1 %v4677_v30 }
 0x6fe   : > { %4740 = vmatpush.msrb.mxu1 %v4676_v4 }
 0x700   : > { %4741 = vmatpush.msrb.mxu1 %v4675_v49 }
 0x701   : > { %4742 = vmatmul.f32.vlgmr.msrb.gmra.mxu1 %v8197_v0 }
 0x709   : > { %4745 = vmatmul.f32.gmra.mxu1 %v4657_v9  ;;  %v3800_v34 = vpop.f32.mrf.mxu1 }
 0x70b   : > { %v3946_v52 = vpop.f32.mrf.mxu0 }
 0x70f   : > { %v3823_v29 = vpop.f32.mrf.mxu3 }
 0x711   : > { %v3852_v54 = vpop.f32.mrf.mxu2 }
 0x712   : > { %v3853_v31 = vadd.f32 %v3852_v54, %v3800_v34  ;;  %v3803_v62 = vpop.f32.mrf.mxu1 }
 0x714   : > { %v3975_v45 = vadd.f32 %v3946_v52, %v3853_v31 }
 0x715   : > { %v3949_v24 = vpop.f32.mrf.mxu0 }
 0x719   : > { %v3826_v32 = vpop.f32.mrf.mxu3 }
 0x71a   : > { %v3855_v53 = vpop.f32.mrf.mxu2 }
 0x71b   : > { %v3856_v36 = vadd.f32 %v3855_v53, %v3803_v62 }
 0x71c   : > { %v3875_v60 = vpop.f32.mrf.mxu1 }
 0x71d   : > { %v3977_v42 = vadd.f32 %v3949_v24, %v3856_v36  ;;  %v3876_v17 = vadd.f32 %v3875_v60, %v3823_v29 }
 0x71f   : > { %v4112_v25 = vpop.f32.mrf.mxu0 }
 0x723   : > { %v3969_v40 = vpop.f32.mrf.mxu3 }
 0x724   : > { %v4032_v20 = vpop.f32.mrf.mxu2  ;;  %v3976_v12 = vadd.f32 %v3969_v40, %v3876_v17 }
 0x725   : > { %v4061_v33 = vadd.f32 %v4032_v20, %v3975_v45  ;;  %v5512_v20 = vld [vmem:[%s9296_s16] ss:$0 sm:$0xff] }
 0x727   : > { %v3878_v0 = vpop.f32.mrf.mxu1  ;;  %v4141_v43 = vadd.f32 %v4112_v25, %v4061_v33 }
 0x728   : > { %v3879_v2 = vadd.f32 %v3878_v0, %v3826_v32 }
 0x729   : > { %v4115_v16 = vpop.f32.mrf.mxu0 }
 0x72e   : > { %v3972_v5 = vpop.f32.mrf.mxu3 }
 0x72f   : > { %v4035_v50 = vpop.f32.mrf.mxu2  ;;  %v3978_v15 = vadd.f32 %v3972_v5, %v3879_v2 }
 0x730   : > { %v4063_v51 = vadd.f32 %v4035_v50, %v3977_v42 }
 0x731   : > { %v4055_v63 = vpop.f32.mrf.mxu1 }
 0x732   : > { %v4062_v22 = vadd.f32 %v4055_v63, %v3976_v12  ;;  %v4143_v58 = vadd.f32 %v4115_v16, %v4063_v51 }
 0x734   : > { %v4279_v3 = vpop.f32.mrf.mxu0 }
 0x738   : > { %v4135_v35 = vpop.f32.mrf.mxu3 }
 0x739   : > { %v4195_v11 = vpop.f32.mrf.mxu2  ;;  %v4142_v7 = vadd.f32 %v4135_v35, %v4062_v22 }
 0x73a   : > { %v4224_v28 = vadd.f32 %v4195_v11, %v4141_v43 }
 0x73b   : > { %v4058_v6 = vpop.f32.mrf.mxu1 }
 0x73c   : > { %v4064_v27 = vadd.f32 %v4058_v6, %v3978_v15  ;;  %v4308_v10 = vadd.f32 %v4279_v3, %v4224_v28  ;;  %v4481_v28 = vperm.slane %v4478_v14, 1 }
 0x73e   : > { %v4282_v41 = vpop.f32.mrf.mxu0 }
 0x742   : > { %v4138_v21 = vpop.f32.mrf.mxu3 }
 0x743   : > { %v4198_v8 = vpop.f32.mrf.mxu2  ;;  %v4144_v55 = vadd.f32 %v4138_v21, %v4064_v27 }
 0x744   : > { %v4226_v26 = vadd.f32 %v4198_v8, %v4143_v58 }
 0x746   : > { %v4218_v23 = vpop.f32.mrf.mxu1  ;;  %v4310_v57 = vadd.f32 %v4282_v41, %v4226_v26 }
 0x747   : > { %v4225_v48 = vadd.f32 %v4218_v23, %v4142_v7 }
 0x749   : > { %v4445_v13 = vpop.f32.mrf.mxu0 }
 0x74c   : > { %v4302_v47 = vpop.f32.mrf.mxu3 }
 0x74d   : > { %v4309_v37 = vadd.f32 %v4302_v47, %v4225_v48 }
 0x74e   : > { %v4362_v46 = vpop.f32.mrf.mxu2 }
 0x74f   : > { %v4391_v44 = vadd.f32 %v4362_v46, %v4308_v10  ;;  %v4221_v56 = vpop.f32.mrf.mxu1 }
 0x750   : > { %v4227_v18 = vadd.f32 %v4221_v56, %v4144_v55 }
 0x751   : > { %v4474_v61 = vadd.f32 %v4445_v13, %v4391_v44 }
 0x752   : > { %v4448_v19 = vpop.f32.mrf.mxu0 }
 0x753   : > { %v4484_v39 = vadd.f32 %v4480_v38, %v4474_v61 }
 0x755   : > { %v4488_v4 = vmax.f32 %v4484_v39, 0.0 }
 0x756   : > { %v4305_v29 = vpop.f32.mrf.mxu3 }
 0x757   : > { %v4365_v1 = vpop.f32.mrf.mxu2  ;;  %v4786_v9 = vrot.slane %v4488_v4, 3  ;;  %v4797_v31 = vrot.slane %v4488_v4, 6  ;;  %v4311_v24 = vadd.f32 %v4305_v29, %v4227_v18 }
 0x758   : > { %v4393_v30 = vadd.f32 %v4365_v1, %v4310_v57 }
 0x759   : > { %v4792_v45 = vmax.f32 %v4488_v4, %v4786_v9 }
 0x75a   : > { %v4476_v49 = vadd.f32 %v4448_v19, %v4393_v30  ;;  %v4766_v25 = vpop.f32.mrf.mxu0 }
 0x75c   : > { %v4486_v59 = vadd.f32 %v4480_v38, %v4476_v49  ;;  %v4841_v49 = vlaneseq }
 0x75e   : > { %v4490_v34 = vmax.f32 %v4486_v59, 0.0  ;;  %v4385_v54 = vpop.f32.mrf.mxu1  ;;  %vm4843_vm6 = vcmp.lt.s32.totalorder %v4841_v49, 272 }
 0x75f   : > { %v4392_v52 = vadd.f32 %v4385_v54, %v4309_v37 }
 0x760   : > { %v4798_v62 = vrot.slane %v4490_v34, 6 }
 0x762   : > { %v4799_v53 = vsel %vm1077_vm3, %v4797_v31, %v4798_v62  ;;  %v4769_v63 = vpop.f32.mrf.mxu0 }
 0x763   : > { %v4809_v36 = vmax.f32 %v4792_v45, %v4799_v53 }
 0x764   : > { %v4468_v5 = vpop.f32.mrf.mxu3 }
 0x765   : > { %v4475_v15 = vadd.f32 %v4468_v5, %v4392_v52  ;;  %v4815_v18 = vrot.slane %v4809_v36, 1  ;;  %v4824_v37 = vrot.slane %v4809_v36, 2 }
 0x766   : > { %v4388_v60 = vpop.f32.mrf.mxu1 }
 0x767   : > { %v4394_v42 = vadd.f32 %v4388_v60, %v4311_v24  ;;  %v4485_v6 = vadd.f32 %v4481_v28, %v4475_v15  ;;  %v4821_v30 = vmax.f32 %v4809_v36, %v4815_v18 }
 0x769   : > { %v4489_v35 = vmax.f32 %v4485_v6, 0.0  ;;  %v4830_v34 = vmax.f32 %v4821_v30, %v4824_v37 }
 0x76c   : > { %v4471_v2 = vpop.f32.mrf.mxu3 }
 0x76d   : > { %v4477_v11 = vadd.f32 %v4471_v2, %v4394_v42 }
 0x76e   : > { %v4720_v32 = vpop.f32.mrf.mxu2 }
 0x76f   : > { %v4721_v33 = vadd.f32 %v5512_v20, %v4720_v32  ;;  %v4487_v3 = vadd.f32 %v4481_v28, %v4477_v11 }
 0x771   : > { %v4491_v10 = vmax.f32 %v4487_v3, 0.0 }
 0x776   : > { %v4723_v17 = vpop.f32.mrf.mxu2 }
 0x777   : > { %v4724_v12 = vadd.f32 %v5512_v20, %v4723_v17 }
 0x77e   : > { %v4743_v0 = vpop.f32.mrf.mxu1 }
 0x77f   : > { %v4744_v43 = vadd.f32 %v4743_v0, %v4721_v33 }
 0x781   : > { %v4767_v40 = vadd.f32 %v4766_v25, %v4744_v43 }
 0x783   : > { %v4772_v50 = vmax.f32 %v4767_v40, 0.0 }
 0x785   : > { %4776 = vrot.lane.b32.xlu1 %v4772_v50, %s5528_s2 }
 0x786   : > { %v4746_v51 = vpop.f32.mrf.mxu1 }
 0x787   : > { %v4747_v16 = vadd.f32 %v4746_v51, %v4724_v12 }
 0x789   : > { %v4770_v22 = vadd.f32 %v4769_v63, %v4747_v16 }
 0x78b   : > { %v4773_v58 = vmax.f32 %v4770_v22, 0.0 }
 0x78d   : > { %4778 = vrot.lane.b32.xlu2 %v4773_v58, %s5528_s2  ;;  %s5488_s2 = smul.u32 3, %s9445_s30 }
 0x78f   : > { %s600_s24 = scalar_lea.vmem %s9299_s19, %s5488_s2 }
 0x7e7   : > { %v4779_v27 = vpop.permute.xlu2 %4778 }
 0x7e8   : > { %v4783_v8 = vsel %vm3253_vm0, %v4491_v10, %v4779_v27  ;;  %v4804_v7 = vrot.slane %v4779_v27, 6 }
 0x7e9   : > { %v4801_v48 = vrot.slane %v4783_v8, 6 }
 0x7f7   : > { %v4777_v26 = vpop.permute.xlu1 %4776 }
 0x7f8   : > { %v4782_v41 = vsel %vm3253_vm0, %v4489_v35, %v4777_v26  ;;  %v4788_v23 = vrot.slane %v4777_v26, 3  ;;  %v4803_v57 = vrot.slane %v4777_v26, 6 }
 0x7f9   : > { %v4787_v21 = vrot.slane %v4782_v41, 3  ;;  %v4800_v55 = vrot.slane %v4782_v41, 6 }
 0x7fa   : > { %v4794_v46 = vmax.f32 %v4777_v26, %v4788_v23  ;;  %v4805_v14 = vsel %vm1077_vm3, %v4803_v57, %v4804_v7 }
 0x7fb   : > { %v4793_v13 = vmax.f32 %v4782_v41, %v4787_v21  ;;  %v4802_v44 = vsel %vm1077_vm3, %v4800_v55, %v4801_v48 }
 0x7fc   : > { %v4811_v56 = vmax.f32 %v4794_v46, %v4805_v14 }
 0x7fd   : > { %v4810_v61 = vmax.f32 %v4793_v13, %v4802_v44 }
 0x7fe   : > { %v4817_v38 = vrot.slane %v4811_v56, 1  ;;  %v4826_v47 = vrot.slane %v4811_v56, 2 }
 0x7ff   : > { %v4816_v39 = vrot.slane %v4810_v61, 1  ;;  %v4825_v19 = vrot.slane %v4810_v61, 2 }
 0x800   : > { %v4823_v1 = vmax.f32 %v4811_v56, %v4817_v38 }
 0x801   : > { %v4822_v4 = vmax.f32 %v4810_v61, %v4816_v39 }
 0x802   : > { %v4832_v59 = vmax.f32 %v4823_v1, %v4826_v47 }
 0x803   : > { %v4831_v9 = vmax.f32 %v4822_v4, %v4825_v19 }
 0x804   : > { %v4837_v52 = vrot.slane %v4832_v59, 6 }
 0x805   : > { %v4836_v54 = vrot.slane %v4831_v9, 7 }
 0x807   : > { %v4838_v31 = vsel %vm1075_vm2, %v4830_v34, %v4836_v54 }
 0x808   : > { %v4839_v62 = vsel %vm1077_vm3, %v4838_v31, %v4837_v52 }
 0x809   : > { %4845 = vst.msk [vmem:[%s600_s24] sm:$0x7] %vm4843_vm6, %v4839_v62 }
 0x80a PF: > { %s9443_s27 = sld [smem:[#allocation2_spill]] }
 0x810   : > { %s29_s0 = sadd.s32 1, %s9443_s27  }
 0x811   : > { %p26_p4 = scmp.ge.s32.totalorder %s29_s0, 4  }
 0x813   :  { %28 = sbr.rel (!%p26_p4) target bundleno = 5 (0x5), region = 142 }

</bundles_post_ra>
